<compile_context>
chip_gen: v5e
topology: v5e:2x2
jax: 0.10.0
libtpu: 0.0.40
codegen_flags: <defaults>
</compile_context>

<pallas_src>
import functools

import jax
import jax.numpy as jnp
from jax.experimental import pallas as pl
from jax.experimental.pallas import tpu as pltpu


# ----------------------------------------------------------------------------
# Pallas single-step matmul kernel: bf16 operands, f32 accumulate,
# fused LeakyReLU + optional per-channel (sum, sum(x^2)) for BatchNorm.
# ----------------------------------------------------------------------------
def _matmul_kernel(a_ref, b_ref, o_ref, *stat_refs, leaky, with_stats):
    acc = jnp.dot(a_ref[...], b_ref[...], preferred_element_type=jnp.float32)
    if leaky:
        acc = jnp.where(acc >= 0.0, acc, 0.2 * acc)
    o_ref[...] = acc.astype(o_ref.dtype)
    if with_stats:
        sum_ref, sq_ref = stat_refs
        sum_ref[...] = jnp.sum(acc, axis=0, keepdims=True).reshape(sum_ref.shape)
        sq_ref[...] = jnp.sum(acc * acc, axis=0, keepdims=True).reshape(sq_ref.shape)


def _pick_tiles(M, K, N):
    # K always fits as a single block (max 4096 -> A/B blocks ~1 MiB in bf16).
    tk = K
    tn = 128 if N % 128 == 0 else N  # layer 1 has N=64 -> full-dim block
    # Fat M blocks, but keep >= 2 grid blocks per layer where divisibility
    # allows so v7x's two TensorCores both get work.
    if M % 512 == 0 and M >= 1024:
        tm = 512
    elif M % 256 == 0 and M >= 512:
        tm = 256
    elif M % 128 == 0:
        tm = 128
    else:
        tm = M  # e.g. 32 rows in layer 4 (multiple of 8, fine for sublanes)
    return tm, tk, tn


def pallas_matmul(a, b, *, leaky, with_stats):
    """out = A @ B (optionally LeakyReLU'd); optionally also per-M-tile
    per-channel sum / sum-of-squares partials (for BatchNorm)."""
    M, K = a.shape
    K2, N = b.shape
    assert K == K2
    tm, tk, tn = _pick_tiles(M, K, N)
    assert M % tm == 0 and N % tn == 0
    gm, gn = M // tm, N // tn

    kernel = functools.partial(_matmul_kernel, leaky=leaky, with_stats=with_stats)

    in_specs = [
        pl.BlockSpec((tm, tk), lambda j, i: (i, 0)),   # A: changes with inner axis
        pl.BlockSpec((tk, tn), lambda j, i: (0, j)),   # B: constant over inner axis
    ]
    if with_stats:
        out_shape = (
            jax.ShapeDtypeStruct((M, N), jnp.bfloat16),
            jax.ShapeDtypeStruct((gm, 1, N), jnp.float32),
            jax.ShapeDtypeStruct((gm, 1, N), jnp.float32),
        )
        out_specs = (
            pl.BlockSpec((tm, tn), lambda j, i: (i, j)),
            pl.BlockSpec((1, 1, tn), lambda j, i: (i, 0, j)),
            pl.BlockSpec((1, 1, tn), lambda j, i: (i, 0, j)),
        )
    else:
        out_shape = jax.ShapeDtypeStruct((M, N), jnp.bfloat16)
        out_specs = pl.BlockSpec((tm, tn), lambda j, i: (i, j))

    return pl.pallas_call(
        kernel,
        out_shape=out_shape,
        grid=(gn, gm),                       # j outer, i inner
        in_specs=in_specs,
        out_specs=out_specs,
        compiler_params=pltpu.CompilerParams(
            dimension_semantics=("parallel", "parallel")
        ),
    )(a, b)


# ----------------------------------------------------------------------------
# Glue: BN scale/shift from fused statistics, and im2col with the previous
# layer's BN affine (+ LeakyReLU) folded in BEFORE zero padding.
# ----------------------------------------------------------------------------
def bn_scale_shift(csum, csq, m_total, eps=1e-5):
    """Fresh BatchNorm2d (gamma=1, beta=0), training-mode batch statistics
    (biased variance) from the fused per-tile sum / sumsq."""
    s = jnp.sum(csum, axis=(0, 1))
    sq = jnp.sum(csq, axis=(0, 1))
    mean = s / m_total
    var = jnp.maximum(sq / m_total - mean * mean, 0.0)
    scale = jax.lax.rsqrt(var + eps)   # gamma = 1
    shift = -mean * scale              # beta  = 0
    return scale, shift


def extract_patches(x_nhwc, k, stride, pad, *, scale=None, shift=None, leaky=False):
    """Returns (N*OH*OW, k*k*C) bf16 patches and (N, OH, OW).

    If scale/shift are given, applies the per-channel BN affine (and optional
    LeakyReLU) in f32 before zero-padding, exactly matching PyTorch's
    Conv(pad=1) on a BN'd/activated input.  XLA fuses this with the slicing.
    """
    # TODO(synk): fold im2col into the matmul's A-side index_map (implicit
    # GEMM) to avoid materializing the 4x-larger patches matrix in HBM.
    N, H, W, C = x_nhwc.shape
    if scale is not None:
        xf = x_nhwc.astype(jnp.float32) * scale + shift
        if leaky:
            xf = jnp.where(xf >= 0.0, xf, 0.2 * xf)
        x = xf.astype(jnp.bfloat16)
    else:
        x = x_nhwc.astype(jnp.bfloat16)
    xp = jnp.pad(x, ((0, 0), (pad, pad), (pad, pad), (0, 0)))
    OH = (H + 2 * pad - k) // stride + 1
    OW = (W + 2 * pad - k) // stride + 1
    cols = []
    for kh in range(k):
        for kw in range(k):
            cols.append(
                xp[:, kh: kh + stride * OH: stride, kw: kw + stride * OW: stride, :]
            )
    patches = jnp.stack(cols, axis=3)  # (N, OH, OW, k*k, C)
    return patches.reshape(N * OH * OW, k * k * C), (N, OH, OW)


# ----------------------------------------------------------------------------
# Discriminator forward
# ----------------------------------------------------------------------------
def init_params(key):
    shapes = [  # HWIO
        (4, 4, 3, 64),
        (4, 4, 64, 128),
        (4, 4, 128, 256),
        (4, 4, 256, 512),
        (4, 4, 512, 1),
    ]
    keys = jax.random.split(key, len(shapes))
    return {
        f"w{i + 1}": 0.02 * jax.random.normal(k, s, dtype=jnp.float32)
        for i, (k, s) in enumerate(zip(keys, shapes))
    }


def discriminator_forward(x_nchw, params):
    x = jnp.transpose(x_nchw, (0, 2, 3, 1))  # NHWC

    w1 = params["w1"].reshape(-1, 64).astype(jnp.bfloat16)
    w2 = params["w2"].reshape(-1, 128).astype(jnp.bfloat16)
    w3 = params["w3"].reshape(-1, 256).astype(jnp.bfloat16)
    w4 = params["w4"].reshape(-1, 512).astype(jnp.bfloat16)
    w5 = params["w5"].reshape(-1, 1).astype(jnp.bfloat16)

    # L1: Conv(3->64, k4 s2 p1) + LeakyReLU(0.2)  [leaky fused in epilogue, no BN]
    a, (n, oh, ow) = extract_patches(x, 4, 2, 1)
    y = pallas_matmul(a, w1, leaky=True, with_stats=False)
    x = y.reshape(n, oh, ow, 64)

    # L2: Conv(64->128) + BN + LeakyReLU          [stats fused; affine+leaky deferred]
    a, (n, oh, ow) = extract_patches(x, 4, 2, 1)
    y, s, sq = pallas_matmul(a, w2, leaky=False, with_stats=True)
    sc2, sh2 = bn_scale_shift(s, sq, y.shape[0])
    x = y.reshape(n, oh, ow, 128)

    # L3: Conv(128->256) + LeakyReLU + BN
    # (spec really applies LeakyReLU BEFORE BatchNorm on this layer, so stats
    #  are taken on the post-leaky activation.)  BN2 affine + leaky from L2 are
    #  applied in this layer's im2col glue, before zero padding.
    a, (n, oh, ow) = extract_patches(x, 4, 2, 1, scale=sc2, shift=sh2, leaky=True)
    y, s, sq = pallas_matmul(a, w3, leaky=True, with_stats=True)
    sc3, sh3 = bn_scale_shift(s, sq, y.shape[0])
    x = y.reshape(n, oh, ow, 256)

    # L4: Conv(256->512) + BN + LeakyReLU   [BN3 affine (no leaky after it) fused here]
    a, (n, oh, ow) = extract_patches(x, 4, 2, 1, scale=sc3, shift=sh3, leaky=False)
    y, s, sq = pallas_matmul(a, w4, leaky=False, with_stats=True)
    sc4, sh4 = bn_scale_shift(s, sq, y.shape[0])
    x = y.reshape(n, oh, ow, 512)

    # L5: Conv(512->1, k4 s1 p0).  BN4 affine + leaky fused into im2col; the
    # (2, 8192) x (8192, 1) contraction is left to XLA (jnp.dot) per perf
    # review: a dedicated Pallas launch with a lane-width-1 output is overhead.
    a, (n, oh, ow) = extract_patches(x, 4, 1, 0, scale=sc4, shift=sh4, leaky=True)
    out = jnp.dot(a, w5, preferred_element_type=jnp.float32)
    out = out.reshape(n, oh, ow, 1)

    return jnp.transpose(out, (0, 3, 1, 2))  # NCHW: (N, 1, 1, 1)


if __name__ == "__main__":
    key = jax.random.PRNGKey(0)
    k_param, k_x = jax.random.split(key)
    params = init_params(k_param)
    # Smallest spatial size the architecture supports is 64x64.
    x = jax.random.normal(k_x, (2, 3, 64, 64), dtype=jnp.float32)

    fwd = jax.jit(discriminator_forward)
    out = fwd(x, params)
    jax.block_until_ready(out)
    assert out.shape == (2, 1, 1, 1), out.shape
    assert bool(jnp.all(jnp.isfinite(out)))
    print("KERNEL_OK")
</pallas_src>

<mosaic_0001>
module attributes {stable_mosaic.version = 11 : i64} {
  func.func @_matmul_kernel(%arg0: i32, %arg1: i32, %arg2: memref<512x48xbf16, #tpu.memory_space<vmem>>, %arg3: memref<48x64xbf16, #tpu.memory_space<vmem>>, %arg4: memref<512x64xbf16, #tpu.memory_space<vmem>>) attributes {dimension_semantics = [#tpu.dimension_semantics<parallel>, #tpu.dimension_semantics<parallel>], iteration_bounds = array<i64: 1, 4>, scalar_prefetch = 0 : i64, scratch_operands = 0 : i64, tpu.core_type = #tpu.core_type<tc>, window_params = [{transform_indices = @transform_0, window_bounds = array<i64: 512, 48>}, {transform_indices = @transform_1, window_bounds = array<i64: 48, 64>}, {transform_indices = @transform_2, window_bounds = array<i64: 512, 64>}]} {
    %c0 = arith.constant 0 : index
    %c0_0 = arith.constant 0 : index
    %0 = vector.load %arg2[%c0, %c0_0] : memref<512x48xbf16, #tpu.memory_space<vmem>>, vector<512x48xbf16>
    %c0_1 = arith.constant 0 : index
    %c0_2 = arith.constant 0 : index
    %1 = vector.load %arg3[%c0_1, %c0_2] : memref<48x64xbf16, #tpu.memory_space<vmem>>, vector<48x64xbf16>
    %cst = arith.constant dense<0.000000e+00> : vector<512x64xf32>
    %2 = tpu.matmul %0, %1, %cst {dimension_numbers = #tpu.dot_dimension_numbers<[1], [0], [0], [1], [0, 0, 1, 1], [], []>} : vector<512x48xbf16>, vector<48x64xbf16>, vector<512x64xf32> -> vector<512x64xf32>
    %cst_3 = arith.constant 0.000000e+00 : f32
    %3 = vector.broadcast %cst_3 : f32 to vector<512x64xf32>
    %4 = arith.cmpf oge, %2, %3 : vector<512x64xf32>
    %cst_4 = arith.constant 2.000000e-01 : f32
    %5 = vector.broadcast %cst_4 : f32 to vector<512x64xf32>
    %6 = arith.mulf %5, %2 : vector<512x64xf32>
    %7 = arith.select %4, %2, %6 : vector<512x64xi1>, vector<512x64xf32>
    %8 = arith.truncf %7 : vector<512x64xf32> to vector<512x64xbf16>
    %c0_5 = arith.constant 0 : index
    %c0_6 = arith.constant 0 : index
    %9 = vector.load %arg4[%c0_5, %c0_6] : memref<512x64xbf16, #tpu.memory_space<vmem>>, vector<512x64xbf16>
    tpu.vector_store %arg4[%c0_5, %c0_6], %8 {strides = array<i32>} : memref<512x64xbf16, #tpu.memory_space<vmem>>, vector<512x64xbf16>,
    return
  }
  func.func @transform_0(%arg0: i32, %arg1: i32) -> (i32, i32) {
    %c0_i32 = arith.constant 0 : i32
    %c0_i32_0 = arith.constant 0 : i32
    return %arg1, %c0_i32 : i32, i32
  }
  func.func @transform_1(%arg0: i32, %arg1: i32) -> (i32, i32) {
    %c0_i32 = arith.constant 0 : i32
    %c0_i32_0 = arith.constant 0 : i32
    return %c0_i32, %arg0 : i32, i32
  }
  func.func @transform_2(%arg0: i32, %arg1: i32) -> (i32, i32) {
    %c0_i32 = arith.constant 0 : i32
    return %arg1, %arg0 : i32, i32
  }
}

module attributes {stable_mosaic.version = 11 : i64} {
  func.func @_matmul_kernel(%arg0: i32, %arg1: i32, %arg2: memref<256x1024xbf16, #tpu.memory_space<vmem>>, %arg3: memref<1024x128xbf16, #tpu.memory_space<vmem>>, %arg4: memref<256x128xbf16, #tpu.memory_space<vmem>>, %arg5: memref<1x1x128xf32, #tpu.memory_space<vmem>>, %arg6: memref<1x1x128xf32, #tpu.memory_space<vmem>>) attributes {dimension_semantics = [#tpu.dimension_semantics<parallel>, #tpu.dimension_semantics<parallel>], iteration_bounds = array<i64: 1, 2>, scalar_prefetch = 0 : i64, scratch_operands = 0 : i64, tpu.core_type = #tpu.core_type<tc>, window_params = [{transform_indices = @transform_0, window_bounds = array<i64: 256, 1024>}, {transform_indices = @transform_1, window_bounds = array<i64: 1024, 128>}, {transform_indices = @transform_2, window_bounds = array<i64: 256, 128>}, {transform_indices = @transform_3, window_bounds = array<i64: 1, 1, 128>}, {transform_indices = @transform_4, window_bounds = array<i64: 1, 1, 128>}]} {
    %c0 = arith.constant 0 : index
    %c0_0 = arith.constant 0 : index
    %0 = vector.load %arg2[%c0, %c0_0] : memref<256x1024xbf16, #tpu.memory_space<vmem>>, vector<256x1024xbf16>
    %c0_1 = arith.constant 0 : index
    %c0_2 = arith.constant 0 : index
    %1 = vector.load %arg3[%c0_1, %c0_2] : memref<1024x128xbf16, #tpu.memory_space<vmem>>, vector<1024x128xbf16>
    %cst = arith.constant dense<0.000000e+00> : vector<256x128xf32>
    %2 = tpu.matmul %0, %1, %cst {dimension_numbers = #tpu.dot_dimension_numbers<[1], [0], [0], [1], [0, 0, 1, 1], [], []>} : vector<256x1024xbf16>, vector<1024x128xbf16>, vector<256x128xf32> -> vector<256x128xf32>
    %3 = arith.truncf %2 : vector<256x128xf32> to vector<256x128xbf16>
    %c0_3 = arith.constant 0 : index
    %c0_4 = arith.constant 0 : index
    %4 = vector.load %arg4[%c0_3, %c0_4] : memref<256x128xbf16, #tpu.memory_space<vmem>>, vector<256x128xbf16>
    tpu.vector_store %arg4[%c0_3, %c0_4], %3 {strides = array<i32>} : memref<256x128xbf16, #tpu.memory_space<vmem>>, vector<256x128xbf16>,
    %cst_5 = arith.constant dense<0.000000e+00> : vector<128xf32>
    %5 = vector.multi_reduction <add>, %2, %cst_5 [0] : vector<256x128xf32> to vector<128xf32>
    %6 = vector.shape_cast %5 : vector<128xf32> to vector<1x128xf32>
    %7 = vector.shape_cast %6 : vector<1x128xf32> to vector<1x1x128xf32>
    %c0_6 = arith.constant 0 : index
    %c0_7 = arith.constant 0 : index
    %c0_8 = arith.constant 0 : index
    %8 = vector.load %arg5[%c0_6, %c0_7, %c0_8] : memref<1x1x128xf32, #tpu.memory_space<vmem>>, vector<1x1x128xf32>
    tpu.vector_store %arg5[%c0_6, %c0_7, %c0_8], %7 {strides = array<i32>} : memref<1x1x128xf32, #tpu.memory_space<vmem>>, vector<1x1x128xf32>,
    %9 = arith.mulf %2, %2 : vector<256x128xf32>
    %cst_9 = arith.constant dense<0.000000e+00> : vector<128xf32>
    %10 = vector.multi_reduction <add>, %9, %cst_9 [0] : vector<256x128xf32> to vector<128xf32>
    %11 = vector.shape_cast %10 : vector<128xf32> to vector<1x128xf32>
    %12 = vector.shape_cast %11 : vector<1x128xf32> to vector<1x1x128xf32>
    %c0_10 = arith.constant 0 : index
    %c0_11 = arith.constant 0 : index
    %c0_12 = arith.constant 0 : index
    %13 = vector.load %arg6[%c0_10, %c0_11, %c0_12] : memref<1x1x128xf32, #tpu.memory_space<vmem>>, vector<1x1x128xf32>
    tpu.vector_store %arg6[%c0_10, %c0_11, %c0_12], %12 {strides = array<i32>} : memref<1x1x128xf32, #tpu.memory_space<vmem>>, vector<1x1x128xf32>,
    return
  }
  func.func @transform_0(%arg0: i32, %arg1: i32) -> (i32, i32) {
    %c0_i32 = arith.constant 0 : i32
    %c0_i32_0 = arith.constant 0 : i32
    return %arg1, %c0_i32 : i32, i32
  }
  func.func @transform_1(%arg0: i32, %arg1: i32) -> (i32, i32) {
    %c0_i32 = arith.constant 0 : i32
    %c0_i32_0 = arith.constant 0 : i32
    return %c0_i32, %arg0 : i32, i32
  }
  func.func @transform_2(%arg0: i32, %arg1: i32) -> (i32, i32) {
    %c0_i32 = arith.constant 0 : i32
    return %arg1, %arg0 : i32, i32
  }
  func.func @transform_3(%arg0: i32, %arg1: i32) -> (i32, i32, i32) {
    %c0_i32 = arith.constant 0 : i32
    %c0_i32_0 = arith.constant 0 : i32
    return %arg1, %c0_i32, %arg0 : i32, i32, i32
  }
  func.func @transform_4(%arg0: i32, %arg1: i32) -> (i32, i32, i32) {
    %c0_i32 = arith.constant 0 : i32
    %c0_i32_0 = arith.constant 0 : i32
    return %arg1, %c0_i32, %arg0 : i32, i32, i32
  }
}

module attributes {stable_mosaic.version = 11 : i64} {
  func.func @_matmul_kernel(%arg0: i32, %arg1: i32, %arg2: memref<128x2048xbf16, #tpu.memory_space<vmem>>, %arg3: memref<2048x128xbf16, #tpu.memory_space<vmem>>, %arg4: memref<128x128xbf16, #tpu.memory_space<vmem>>, %arg5: memref<1x1x128xf32, #tpu.memory_space<vmem>>, %arg6: memref<1x1x128xf32, #tpu.memory_space<vmem>>) attributes {dimension_semantics = [#tpu.dimension_semantics<parallel>, #tpu.dimension_semantics<parallel>], iteration_bounds = array<i64: 2, 1>, scalar_prefetch = 0 : i64, scratch_operands = 0 : i64, tpu.core_type = #tpu.core_type<tc>, window_params = [{transform_indices = @transform_0, window_bounds = array<i64: 128, 2048>}, {transform_indices = @transform_1, window_bounds = array<i64: 2048, 128>}, {transform_indices = @transform_2, window_bounds = array<i64: 128, 128>}, {transform_indices = @transform_3, window_bounds = array<i64: 1, 1, 128>}, {transform_indices = @transform_4, window_bounds = array<i64: 1, 1, 128>}]} {
    %c0 = arith.constant 0 : index
    %c0_0 = arith.constant 0 : index
    %0 = vector.load %arg2[%c0, %c0_0] : memref<128x2048xbf16, #tpu.memory_space<vmem>>, vector<128x2048xbf16>
    %c0_1 = arith.constant 0 : index
    %c0_2 = arith.constant 0 : index
    %1 = vector.load %arg3[%c0_1, %c0_2] : memref<2048x128xbf16, #tpu.memory_space<vmem>>, vector<2048x128xbf16>
    %cst = arith.constant dense<0.000000e+00> : vector<128x128xf32>
    %2 = tpu.matmul %0, %1, %cst {dimension_numbers = #tpu.dot_dimension_numbers<[1], [0], [0], [1], [0, 0, 1, 1], [], []>} : vector<128x2048xbf16>, vector<2048x128xbf16>, vector<128x128xf32> -> vector<128x128xf32>
    %cst_3 = arith.constant 0.000000e+00 : f32
    %3 = vector.broadcast %cst_3 : f32 to vector<128x128xf32>
    %4 = arith.cmpf oge, %2, %3 : vector<128x128xf32>
    %cst_4 = arith.constant 2.000000e-01 : f32
    %5 = vector.broadcast %cst_4 : f32 to vector<128x128xf32>
    %6 = arith.mulf %5, %2 : vector<128x128xf32>
    %7 = arith.select %4, %2, %6 : vector<128x128xi1>, vector<128x128xf32>
    %8 = arith.truncf %7 : vector<128x128xf32> to vector<128x128xbf16>
    %c0_5 = arith.constant 0 : index
    %c0_6 = arith.constant 0 : index
    %9 = vector.load %arg4[%c0_5, %c0_6] : memref<128x128xbf16, #tpu.memory_space<vmem>>, vector<128x128xbf16>
    tpu.vector_store %arg4[%c0_5, %c0_6], %8 {strides = array<i32>} : memref<128x128xbf16, #tpu.memory_space<vmem>>, vector<128x128xbf16>,
    %cst_7 = arith.constant dense<0.000000e+00> : vector<128xf32>
    %10 = vector.multi_reduction <add>, %7, %cst_7 [0] : vector<128x128xf32> to vector<128xf32>
    %11 = vector.shape_cast %10 : vector<128xf32> to vector<1x128xf32>
    %12 = vector.shape_cast %11 : vector<1x128xf32> to vector<1x1x128xf32>
    %c0_8 = arith.constant 0 : index
    %c0_9 = arith.constant 0 : index
    %c0_10 = arith.constant 0 : index
    %13 = vector.load %arg5[%c0_8, %c0_9, %c0_10] : memref<1x1x128xf32, #tpu.memory_space<vmem>>, vector<1x1x128xf32>
    tpu.vector_store %arg5[%c0_8, %c0_9, %c0_10], %12 {strides = array<i32>} : memref<1x1x128xf32, #tpu.memory_space<vmem>>, vector<1x1x128xf32>,
    %14 = arith.mulf %7, %7 : vector<128x128xf32>
    %cst_11 = arith.constant dense<0.000000e+00> : vector<128xf32>
    %15 = vector.multi_reduction <add>, %14, %cst_11 [0] : vector<128x128xf32> to vector<128xf32>
    %16 = vector.shape_cast %15 : vector<128xf32> to vector<1x128xf32>
    %17 = vector.shape_cast %16 : vector<1x128xf32> to vector<1x1x128xf32>
    %c0_12 = arith.constant 0 : index
    %c0_13 = arith.constant 0 : index
    %c0_14 = arith.constant 0 : index
    %18 = vector.load %arg6[%c0_12, %c0_13, %c0_14] : memref<1x1x128xf32, #tpu.memory_space<vmem>>, vector<1x1x128xf32>
    tpu.vector_store %arg6[%c0_12, %c0_13, %c0_14], %17 {strides = array<i32>} : memref<1x1x128xf32, #tpu.memory_space<vmem>>, vector<1x1x128xf32>,
    return
  }
  func.func @transform_0(%arg0: i32, %arg1: i32) -> (i32, i32) {
    %c0_i32 = arith.constant 0 : i32
    %c0_i32_0 = arith.constant 0 : i32
    return %arg1, %c0_i32 : i32, i32
  }
  func.func @transform_1(%arg0: i32, %arg1: i32) -> (i32, i32) {
    %c0_i32 = arith.constant 0 : i32
    %c0_i32_0 = arith.constant 0 : i32
    return %c0_i32, %arg0 : i32, i32
  }
  func.func @transform_2(%arg0: i32, %arg1: i32) -> (i32, i32) {
    %c0_i32 = arith.constant 0 : i32
    return %arg1, %arg0 : i32, i32
  }
  func.func @transform_3(%arg0: i32, %arg1: i32) -> (i32, i32, i32) {
    %c0_i32 = arith.constant 0 : i32
    %c0_i32_0 = arith.constant 0 : i32
    return %arg1, %c0_i32, %arg0 : i32, i32, i32
  }
  func.func @transform_4(%arg0: i32, %arg1: i32) -> (i32, i32, i32) {
    %c0_i32 = arith.constant 0 : i32
    %c0_i32_0 = arith.constant 0 : i32
    return %arg1, %c0_i32, %arg0 : i32, i32, i32
  }
}

module attributes {stable_mosaic.version = 11 : i64} {
  func.func @_matmul_kernel(%arg0: i32, %arg1: i32, %arg2: memref<32x4096xbf16, #tpu.memory_space<vmem>>, %arg3: memref<4096x128xbf16, #tpu.memory_space<vmem>>, %arg4: memref<32x128xbf16, #tpu.memory_space<vmem>>, %arg5: memref<1x1x128xf32, #tpu.memory_space<vmem>>, %arg6: memref<1x1x128xf32, #tpu.memory_space<vmem>>) attributes {dimension_semantics = [#tpu.dimension_semantics<parallel>, #tpu.dimension_semantics<parallel>], iteration_bounds = array<i64: 4, 1>, scalar_prefetch = 0 : i64, scratch_operands = 0 : i64, tpu.core_type = #tpu.core_type<tc>, window_params = [{transform_indices = @transform_0, window_bounds = array<i64: 32, 4096>}, {transform_indices = @transform_1, window_bounds = array<i64: 4096, 128>}, {transform_indices = @transform_2, window_bounds = array<i64: 32, 128>}, {transform_indices = @transform_3, window_bounds = array<i64: 1, 1, 128>}, {transform_indices = @transform_4, window_bounds = array<i64: 1, 1, 128>}]} {
    %c0 = arith.constant 0 : index
    %c0_0 = arith.constant 0 : index
    %0 = vector.load %arg2[%c0, %c0_0] : memref<32x4096xbf16, #tpu.memory_space<vmem>>, vector<32x4096xbf16>
    %c0_1 = arith.constant 0 : index
    %c0_2 = arith.constant 0 : index
    %1 = vector.load %arg3[%c0_1, %c0_2] : memref<4096x128xbf16, #tpu.memory_space<vmem>>, vector<4096x128xbf16>
    %cst = arith.constant dense<0.000000e+00> : vector<32x128xf32>
    %2 = tpu.matmul %0, %1, %cst {dimension_numbers = #tpu.dot_dimension_numbers<[1], [0], [0], [1], [0, 0, 1, 1], [], []>} : vector<32x4096xbf16>, vector<4096x128xbf16>, vector<32x128xf32> -> vector<32x128xf32>
    %3 = arith.truncf %2 : vector<32x128xf32> to vector<32x128xbf16>
    %c0_3 = arith.constant 0 : index
    %c0_4 = arith.constant 0 : index
    %4 = vector.load %arg4[%c0_3, %c0_4] : memref<32x128xbf16, #tpu.memory_space<vmem>>, vector<32x128xbf16>
    tpu.vector_store %arg4[%c0_3, %c0_4], %3 {strides = array<i32>} : memref<32x128xbf16, #tpu.memory_space<vmem>>, vector<32x128xbf16>,
    %cst_5 = arith.constant dense<0.000000e+00> : vector<128xf32>
    %5 = vector.multi_reduction <add>, %2, %cst_5 [0] : vector<32x128xf32> to vector<128xf32>
    %6 = vector.shape_cast %5 : vector<128xf32> to vector<1x128xf32>
    %7 = vector.shape_cast %6 : vector<1x128xf32> to vector<1x1x128xf32>
    %c0_6 = arith.constant 0 : index
    %c0_7 = arith.constant 0 : index
    %c0_8 = arith.constant 0 : index
    %8 = vector.load %arg5[%c0_6, %c0_7, %c0_8] : memref<1x1x128xf32, #tpu.memory_space<vmem>>, vector<1x1x128xf32>
    tpu.vector_store %arg5[%c0_6, %c0_7, %c0_8], %7 {strides = array<i32>} : memref<1x1x128xf32, #tpu.memory_space<vmem>>, vector<1x1x128xf32>,
    %9 = arith.mulf %2, %2 : vector<32x128xf32>
    %cst_9 = arith.constant dense<0.000000e+00> : vector<128xf32>
    %10 = vector.multi_reduction <add>, %9, %cst_9 [0] : vector<32x128xf32> to vector<128xf32>
    %11 = vector.shape_cast %10 : vector<128xf32> to vector<1x128xf32>
    %12 = vector.shape_cast %11 : vector<1x128xf32> to vector<1x1x128xf32>
    %c0_10 = arith.constant 0 : index
    %c0_11 = arith.constant 0 : index
    %c0_12 = arith.constant 0 : index
    %13 = vector.load %arg6[%c0_10, %c0_11, %c0_12] : memref<1x1x128xf32, #tpu.memory_space<vmem>>, vector<1x1x128xf32>
    tpu.vector_store %arg6[%c0_10, %c0_11, %c0_12], %12 {strides = array<i32>} : memref<1x1x128xf32, #tpu.memory_space<vmem>>, vector<1x1x128xf32>,
    return
  }
  func.func @transform_0(%arg0: i32, %arg1: i32) -> (i32, i32) {
    %c0_i32 = arith.constant 0 : i32
    %c0_i32_0 = arith.constant 0 : i32
    return %arg1, %c0_i32 : i32, i32
  }
  func.func @transform_1(%arg0: i32, %arg1: i32) -> (i32, i32) {
    %c0_i32 = arith.constant 0 : i32
    %c0_i32_0 = arith.constant 0 : i32
    return %c0_i32, %arg0 : i32, i32
  }
  func.func @transform_2(%arg0: i32, %arg1: i32) -> (i32, i32) {
    %c0_i32 = arith.constant 0 : i32
    return %arg1, %arg0 : i32, i32
  }
  func.func @transform_3(%arg0: i32, %arg1: i32) -> (i32, i32, i32) {
    %c0_i32 = arith.constant 0 : i32
    %c0_i32_0 = arith.constant 0 : i32
    return %arg1, %c0_i32, %arg0 : i32, i32, i32
  }
  func.func @transform_4(%arg0: i32, %arg1: i32) -> (i32, i32, i32) {
    %c0_i32 = arith.constant 0 : i32
    %c0_i32_0 = arith.constant 0 : i32
    return %arg1, %c0_i32, %arg0 : i32, i32, i32
  }
}

</mosaic_0001>

<bundles_post_ra>
// kernel: discriminator_forward.4
= control target key start
LH: loop header
LB: loop body
LE: loop exit
PB: predicated region body
PF: predicated region fallthrough
CT: control target
= control target key end

     0   :  { %s1401_s9 = smov 0   ;;  %s1403_s10 = smov 0   ;;  %s1646_s0 = inlined_call_operand.vmem [shape: bf16[2048,48], index: 0, kind: input, shape index: {}]   ;;  %s1647_s1 = inlined_call_operand.vmem [shape: bf16[48,64], index: 1, kind: input, shape index: {}]   ;;  %s1648_s2 = inlined_call_operand.vmem [shape: bf16[2048,64], index: 2, kind: output, shape index: {}]  }
   0x1   :  { %s1405_s11 = smov 0  }
   0x2 LB: > { %s21_s12 = sadd.s32 1, %s1380_s10  ;;  %p1115_p0 = scmp.ge.s32.totalorder %s1384_s11, 1  ;;  %s1384_s11 = sphi %s1405_s11, %s12_s11   ;;  %s1380_s10 = sphi %s1403_s10, %s1650_s10   ;;  %s1376_s9 = sphi %s1401_s9, %s1649_s9  }
   0x3   : > { %p22_p1 = scmp.ge.s32.totalorder %s21_s12, 4  ;;  %p136_p2 = scmp.lt.s32.totalorder %s1384_s11, 5 }
   0x5   : > { %s1652_s12 = smov (%p22_p1, %s21_s12), 0  ;;  %p137_p3 = pnand %p1115_p0, %p136_p2 }
   0x6   : > { %s1116_s15 = sshll.u32 (!%p137_p3), %s1376_s9, 6 }
   0x7   : > { %140 = sbr.rel (%p137_p3) target bundleno = 284 (0x11c), region = 28  ;;  %p166_p4 = scmp.lt.s32.totalorder (!%p137_p3), %s1116_s15, 255 }
   0xc   : > { %v1328_v0 = vld [vmem:[%s1647_s1 + $0x10] sm:$0xff]  ;;  %v1327_v1 = vld [vmem:[%s1647_s1 + $0x8] sm:$0xff]  ;;  %s1654_s15 = smov (!%p166_p4, %s1116_s15), 255  ;;  %v1326_v2 = vld [vmem:[%s1647_s1] sm:$0xff]  ;;  %vm433_vm0 = vcmask 392192   ;;  %vm955_vm3 = vcmask 519168  }
   0xd   : > { %535 = vmatpush.bf16.msra.mxu0 %v1328_v0  ;;  %1329 = vmatpush.bf16.msra.mxu1 %v1328_v0  ;;  %s1117_s18 = sshll.u32 %s1654_s15, 2 }
   0xe   : > { %1330 = vmatpush.bf16.msra.mxu2 %v1328_v0  ;;  %1331 = vmatpush.bf16.msra.mxu3 %v1328_v0  ;;  %s1436_s23 = scalar_lea.vmem %s1646_s0, %s1117_s18  ;;  %s1507_s26 = scalar_lea.vmem %s1648_s2, %s1117_s18 }
   0xf   : > { %v1294_v3 = vld [vmem:[%s1436_s23] sm:$0xff]  ;;  %v1295_v7 = vld [vmem:[%s1436_s23 + $0x8] sm:$0xff]  ;;  %v1296_v11 = vld [vmem:[%s1436_s23 + $0x10] sm:$0xff] }
  0x10   : > { %v1302_v4 = vld [vmem:[%s1436_s23 + $0x40] sm:$0xff]  ;;  %v1303_v8 = vld [vmem:[%s1436_s23 + $0x48] sm:$0xff]  ;;  %v1304_v12 = vld [vmem:[%s1436_s23 + $0x50] sm:$0xff] }
  0x11   : > { %536 = vmatpush.bf16.msra.mxu0 %v1327_v1  ;;  %1332 = vmatpush.bf16.msra.mxu1 %v1327_v1  ;;  %v1310_v5 = vld [vmem:[%s1436_s23 + $0x80] sm:$0xff]  ;;  %v1311_v9 = vld [vmem:[%s1436_s23 + $0x88] sm:$0xff]  ;;  %v1312_v13 = vld [vmem:[%s1436_s23 + $0x90] sm:$0xff] }
  0x12   : > { %1333 = vmatpush.bf16.msra.mxu2 %v1327_v1  ;;  %1334 = vmatpush.bf16.msra.mxu3 %v1327_v1  ;;  %v1318_v6 = vld [vmem:[%s1436_s23 + $0xc0] sm:$0xff]  ;;  %v1319_v10 = vld [vmem:[%s1436_s23 + $0xc8] sm:$0xff]  ;;  %v1320_v14 = vld [vmem:[%s1436_s23 + $0xd0] sm:$0xff] }
  0x13   : > { %v1297_v15 = vld [vmem:[%s1436_s23 + $0x18] sm:$0xff]  ;;  %v1298_v19 = vld [vmem:[%s1436_s23 + $0x20] sm:$0xff]  ;;  %v1299_v23 = vld [vmem:[%s1436_s23 + $0x28] sm:$0xff] }
  0x14   : > { %v1305_v16 = vld [vmem:[%s1436_s23 + $0x58] sm:$0xff]  ;;  %v1306_v20 = vld [vmem:[%s1436_s23 + $0x60] sm:$0xff]  ;;  %v1307_v24 = vld [vmem:[%s1436_s23 + $0x68] sm:$0xff] }
  0x15   : > { %537 = vmatpush.bf16.msra.mxu0 %v1326_v2  ;;  %1335 = vmatpush.bf16.msra.mxu1 %v1326_v2  ;;  %v1313_v17 = vld [vmem:[%s1436_s23 + $0x98] sm:$0xff]  ;;  %v1314_v21 = vld [vmem:[%s1436_s23 + $0xa0] sm:$0xff]  ;;  %v1315_v25 = vld [vmem:[%s1436_s23 + $0xa8] sm:$0xff] }
  0x16   : > { %1336 = vmatpush.bf16.msra.mxu2 %v1326_v2  ;;  %1337 = vmatpush.bf16.msra.mxu3 %v1326_v2  ;;  %v1321_v18 = vld [vmem:[%s1436_s23 + $0xd8] sm:$0xff]  ;;  %v1322_v22 = vld [vmem:[%s1436_s23 + $0xe0] sm:$0xff]  ;;  %v1323_v26 = vld [vmem:[%s1436_s23 + $0xe8] sm:$0xff] }
  0x17   : > { %v1300_v27 = vld [vmem:[%s1436_s23 + $0x30] sm:$0xff]  ;;  %v1301_v31 = vld [vmem:[%s1436_s23 + $0x38] sm:$0xff] }
  0x18   : > { %1260 = vmatmul.msk.bf16.vlgmr.msra.gmra.mxu0 %vm433_vm0, %v1294_v3  ;;  %1268 = vmatmul.msk.bf16.vlgmr.msra.gmra.mxu1 %vm433_vm0, %v1302_v4  ;;  %v1308_v28 = vld [vmem:[%s1436_s23 + $0x70] sm:$0xff]  ;;  %v1309_v32 = vld [vmem:[%s1436_s23 + $0x78] sm:$0xff] }
  0x19   : > { %1276 = vmatmul.msk.bf16.vlgmr.msra.gmra.mxu2 %vm433_vm0, %v1310_v5  ;;  %1284 = vmatmul.msk.bf16.vlgmr.msra.gmra.mxu3 %vm433_vm0, %v1318_v6  ;;  %v1316_v29 = vld [vmem:[%s1436_s23 + $0xb0] sm:$0xff]  ;;  %v1317_v33 = vld [vmem:[%s1436_s23 + $0xb8] sm:$0xff] }
  0x1a   : > { %v1324_v30 = vld [vmem:[%s1436_s23 + $0xf0] sm:$0xff]  ;;  %v1325_v34 = vld [vmem:[%s1436_s23 + $0xf8] sm:$0xff] }
  0x28   : > { %1261 = vmatmul.msk.bf16.gmra.mxu0 %vm433_vm0, %v1295_v7  ;;  %1269 = vmatmul.msk.bf16.gmra.mxu1 %vm433_vm0, %v1303_v8 }
  0x29   : > { %1277 = vmatmul.msk.bf16.gmra.mxu2 %vm433_vm0, %v1311_v9  ;;  %1285 = vmatmul.msk.bf16.gmra.mxu3 %vm433_vm0, %v1319_v10 }
  0x38   : > { %1262 = vmatmul.msk.bf16.gmra.mxu0 %vm433_vm0, %v1296_v11  ;;  %1270 = vmatmul.msk.bf16.gmra.mxu1 %vm433_vm0, %v1304_v12 }
  0x39   : > { %1278 = vmatmul.msk.bf16.gmra.mxu2 %vm433_vm0, %v1312_v13  ;;  %1286 = vmatmul.msk.bf16.gmra.mxu3 %vm433_vm0, %v1320_v14 }
  0x48   : > { %1263 = vmatmul.msk.bf16.gmra.mxu0 %vm433_vm0, %v1297_v15  ;;  %1271 = vmatmul.msk.bf16.gmra.mxu1 %vm433_vm0, %v1305_v16 }
  0x49   : > { %1279 = vmatmul.msk.bf16.gmra.mxu2 %vm433_vm0, %v1313_v17  ;;  %1287 = vmatmul.msk.bf16.gmra.mxu3 %vm433_vm0, %v1321_v18 }
  0x58   : > { %1264 = vmatmul.msk.bf16.gmra.mxu0 %vm433_vm0, %v1298_v19  ;;  %1272 = vmatmul.msk.bf16.gmra.mxu1 %vm433_vm0, %v1306_v20 }
  0x59   : > { %1280 = vmatmul.msk.bf16.gmra.mxu2 %vm433_vm0, %v1314_v21  ;;  %1288 = vmatmul.msk.bf16.gmra.mxu3 %vm433_vm0, %v1322_v22 }
  0x68   : > { %1265 = vmatmul.msk.bf16.gmra.mxu0 %vm433_vm0, %v1299_v23  ;;  %1273 = vmatmul.msk.bf16.gmra.mxu1 %vm433_vm0, %v1307_v24 }
  0x69   : > { %1281 = vmatmul.msk.bf16.gmra.mxu2 %vm433_vm0, %v1315_v25  ;;  %1289 = vmatmul.msk.bf16.gmra.mxu3 %vm433_vm0, %v1323_v26 }
  0x78   : > { %1266 = vmatmul.msk.bf16.gmra.mxu0 %vm433_vm0, %v1300_v27  ;;  %1274 = vmatmul.msk.bf16.gmra.mxu1 %vm433_vm0, %v1308_v28 }
  0x79   : > { %1282 = vmatmul.msk.bf16.gmra.mxu2 %vm433_vm0, %v1316_v29  ;;  %1290 = vmatmul.msk.bf16.gmra.mxu3 %vm433_vm0, %v1324_v30 }
  0x88   : > { %1267 = vmatmul.msk.bf16.gmra.mxu0 %vm433_vm0, %v1301_v31  ;;  %1275 = vmatmul.msk.bf16.gmra.mxu1 %vm433_vm0, %v1309_v32 }
  0x89   : > { %1283 = vmatmul.msk.bf16.gmra.mxu2 %vm433_vm0, %v1317_v33  ;;  %1291 = vmatmul.msk.bf16.gmra.mxu3 %vm433_vm0, %v1325_v34 }
  0x95   : > { %v539_v35 = vpop.f32.mrf.mxu0  ;;  %v579_v36 = vpop.f32.mrf.mxu1 }
  0x96   : > { %vm699_vm1 = vcmp.ge.f32.partialorder %v539_v35, 0.0  ;;  %v763_v37 = vmul.f32 0.2, %v539_v35  ;;  %vm715_vm2 = vcmp.ge.f32.partialorder %v579_v36, 0.0  ;;  %v779_v38 = vmul.f32 0.2, %v579_v36 }
  0x98   : > { %v827_v39 = vsel %vm699_vm1, %v539_v35, %v763_v37  ;;  %v843_v40 = vsel %vm715_vm2, %v579_v36, %v779_v38 }
  0x99   : > { %v891_v41 = vpack.c.bf16 %v827_v39, %v827_v39  ;;  %v907_v42 = vpack.c.bf16 %v843_v40, %v843_v40 }
  0x9b   : > { %956 = vst.msk [vmem:[%s1507_s26] sm:$0xf] %vm955_vm3, %v891_v41 }
  0x9c   : > { %972 = vst.msk [vmem:[%s1507_s26 + $0x40] sm:$0xf] %vm955_vm3, %v907_v42  ;;  %v619_v43 = vpop.f32.mrf.mxu2  ;;  %v659_v44 = vpop.f32.mrf.mxu3 }
  0x9d   : > { %vm731_vm4 = vcmp.ge.f32.partialorder %v619_v43, 0.0  ;;  %v795_v45 = vmul.f32 0.2, %v619_v43  ;;  %vm747_vm5 = vcmp.ge.f32.partialorder %v659_v44, 0.0  ;;  %v811_v46 = vmul.f32 0.2, %v659_v44  ;;  %v541_v47 = vpop.f32.mrf.mxu0  ;;  %v581_v48 = vpop.f32.mrf.mxu1 }
  0x9e   : > { %vm700_vm6 = vcmp.ge.f32.partialorder %v541_v47, 0.0  ;;  %v764_v49 = vmul.f32 0.2, %v541_v47  ;;  %vm716_vm7 = vcmp.ge.f32.partialorder %v581_v48, 0.0  ;;  %v780_v50 = vmul.f32 0.2, %v581_v48 }
  0x9f   : > { %v859_v51 = vsel %vm731_vm4, %v619_v43, %v795_v45  ;;  %v875_v52 = vsel %vm747_vm5, %v659_v44, %v811_v46 }
  0xa0   : > { %v923_v53 = vpack.c.bf16 %v859_v51, %v859_v51  ;;  %v939_v54 = vpack.c.bf16 %v875_v52, %v875_v52  ;;  %v828_v55 = vsel %vm700_vm6, %v541_v47, %v764_v49  ;;  %v844_v56 = vsel %vm716_vm7, %v581_v48, %v780_v50 }
  0xa1   : > { %v892_v57 = vpack.c.bf16 %v828_v55, %v828_v55  ;;  %v908_v58 = vpack.c.bf16 %v844_v56, %v844_v56 }
  0xa2   : > { %988 = vst.msk [vmem:[%s1507_s26 + $0x80] sm:$0xf] %vm955_vm3, %v923_v53 }
  0xa3   : > { %1004 = vst.msk [vmem:[%s1507_s26 + $0xc0] sm:$0xf] %vm955_vm3, %v939_v54 }
  0xa4   : > { %957 = vst.msk [vmem:[%s1507_s26 + $0x4] sm:$0xf] %vm955_vm3, %v892_v57  ;;  %v621_v59 = vpop.f32.mrf.mxu2  ;;  %v661_v60 = vpop.f32.mrf.mxu3 }
  0xa5   : > { %973 = vst.msk [vmem:[%s1507_s26 + $0x44] sm:$0xf] %vm955_vm3, %v908_v58  ;;  %vm732_vm8 = vcmp.ge.f32.partialorder %v621_v59, 0.0  ;;  %v796_v61 = vmul.f32 0.2, %v621_v59  ;;  %vm748_vm9 = vcmp.ge.f32.partialorder %v661_v60, 0.0  ;;  %v544_v62 = vpop.f32.mrf.mxu0  ;;  %v584_v63 = vpop.f32.mrf.mxu1 }
  0xa6   : > { %v812_v0 = vmul.f32 0.2, %v661_v60  ;;  %vm701_vm10 = vcmp.ge.f32.partialorder %v544_v62, 0.0  ;;  %v765_v1 = vmul.f32 0.2, %v544_v62  ;;  %vm717_vm11 = vcmp.ge.f32.partialorder %v584_v63, 0.0 }
  0xa7   : > { %v860_v2 = vsel %vm732_vm8, %v621_v59, %v796_v61  ;;  %v781_v3 = vmul.f32 0.2, %v584_v63 }
  0xa8   : > { %v924_v4 = vpack.c.bf16 %v860_v2, %v860_v2  ;;  %v876_v5 = vsel %vm748_vm9, %v661_v60, %v812_v0  ;;  %v829_v6 = vsel %vm701_vm10, %v544_v62, %v765_v1 }
  0xa9   : > { %v940_v7 = vpack.c.bf16 %v876_v5, %v876_v5  ;;  %v893_v8 = vpack.c.bf16 %v829_v6, %v829_v6  ;;  %v845_v9 = vsel %vm717_vm11, %v584_v63, %v781_v3 }
  0xaa   : > { %989 = vst.msk [vmem:[%s1507_s26 + $0x84] sm:$0xf] %vm955_vm3, %v924_v4  ;;  %v909_v10 = vpack.c.bf16 %v845_v9, %v845_v9 }
  0xab   : > { %1005 = vst.msk [vmem:[%s1507_s26 + $0xc4] sm:$0xf] %vm955_vm3, %v940_v7 }
  0xac   : > { %958 = vst.msk [vmem:[%s1507_s26 + $0x8] sm:$0xf] %vm955_vm3, %v893_v8  ;;  %v624_v11 = vpop.f32.mrf.mxu2  ;;  %v664_v12 = vpop.f32.mrf.mxu3 }
  0xad   : > { %974 = vst.msk [vmem:[%s1507_s26 + $0x48] sm:$0xf] %vm955_vm3, %v909_v10  ;;  %vm733_vm12 = vcmp.ge.f32.partialorder %v624_v11, 0.0  ;;  %v797_v13 = vmul.f32 0.2, %v624_v11  ;;  %vm749_vm13 = vcmp.ge.f32.partialorder %v664_v12, 0.0  ;;  %v546_v14 = vpop.f32.mrf.mxu0  ;;  %v586_v15 = vpop.f32.mrf.mxu1 }
  0xae   : > { %v813_v16 = vmul.f32 0.2, %v664_v12  ;;  %vm702_vm14 = vcmp.ge.f32.partialorder %v546_v14, 0.0  ;;  %v766_v17 = vmul.f32 0.2, %v546_v14  ;;  %vm718_vm15 = vcmp.ge.f32.partialorder %v586_v15, 0.0 }
  0xaf   : > { %v861_v18 = vsel %vm733_vm12, %v624_v11, %v797_v13  ;;  %v782_v19 = vmul.f32 0.2, %v586_v15 }
  0xb0   : > { %v925_v20 = vpack.c.bf16 %v861_v18, %v861_v18  ;;  %v877_v21 = vsel %vm749_vm13, %v664_v12, %v813_v16  ;;  %v830_v22 = vsel %vm702_vm14, %v546_v14, %v766_v17 }
  0xb1   : > { %v941_v23 = vpack.c.bf16 %v877_v21, %v877_v21  ;;  %v894_v24 = vpack.c.bf16 %v830_v22, %v830_v22  ;;  %v846_v25 = vsel %vm718_vm15, %v586_v15, %v782_v19 }
  0xb2   : > { %990 = vst.msk [vmem:[%s1507_s26 + $0x88] sm:$0xf] %vm955_vm3, %v925_v20  ;;  %v910_v26 = vpack.c.bf16 %v846_v25, %v846_v25 }
  0xb3   : > { %1006 = vst.msk [vmem:[%s1507_s26 + $0xc8] sm:$0xf] %vm955_vm3, %v941_v23 }
  0xb4   : > { %959 = vst.msk [vmem:[%s1507_s26 + $0xc] sm:$0xf] %vm955_vm3, %v894_v24  ;;  %v626_v27 = vpop.f32.mrf.mxu2  ;;  %v666_v28 = vpop.f32.mrf.mxu3 }
  0xb5   : > { %975 = vst.msk [vmem:[%s1507_s26 + $0x4c] sm:$0xf] %vm955_vm3, %v910_v26  ;;  %vm734_vm0 = vcmp.ge.f32.partialorder %v626_v27, 0.0  ;;  %v798_v29 = vmul.f32 0.2, %v626_v27  ;;  %vm750_vm1 = vcmp.ge.f32.partialorder %v666_v28, 0.0  ;;  %v549_v30 = vpop.f32.mrf.mxu0  ;;  %v589_v31 = vpop.f32.mrf.mxu1 }
  0xb6   : > { %v814_v32 = vmul.f32 0.2, %v666_v28  ;;  %vm703_vm2 = vcmp.ge.f32.partialorder %v549_v30, 0.0  ;;  %v767_v33 = vmul.f32 0.2, %v549_v30  ;;  %vm719_vm4 = vcmp.ge.f32.partialorder %v589_v31, 0.0 }
  0xb7   : > { %v862_v34 = vsel %vm734_vm0, %v626_v27, %v798_v29  ;;  %v783_v35 = vmul.f32 0.2, %v589_v31 }
  0xb8   : > { %v926_v36 = vpack.c.bf16 %v862_v34, %v862_v34  ;;  %v878_v37 = vsel %vm750_vm1, %v666_v28, %v814_v32  ;;  %v831_v38 = vsel %vm703_vm2, %v549_v30, %v767_v33 }
  0xb9   : > { %v942_v39 = vpack.c.bf16 %v878_v37, %v878_v37  ;;  %v895_v40 = vpack.c.bf16 %v831_v38, %v831_v38  ;;  %v847_v41 = vsel %vm719_vm4, %v589_v31, %v783_v35 }
  0xba   : > { %991 = vst.msk [vmem:[%s1507_s26 + $0x8c] sm:$0xf] %vm955_vm3, %v926_v36  ;;  %v911_v42 = vpack.c.bf16 %v847_v41, %v847_v41 }
  0xbb   : > { %1007 = vst.msk [vmem:[%s1507_s26 + $0xcc] sm:$0xf] %vm955_vm3, %v942_v39 }
  0xbc   : > { %960 = vst.msk [vmem:[%s1507_s26 + $0x10] sm:$0xf] %vm955_vm3, %v895_v40  ;;  %v629_v43 = vpop.f32.mrf.mxu2  ;;  %v669_v44 = vpop.f32.mrf.mxu3 }
  0xbd   : > { %976 = vst.msk [vmem:[%s1507_s26 + $0x50] sm:$0xf] %vm955_vm3, %v911_v42  ;;  %vm735_vm5 = vcmp.ge.f32.partialorder %v629_v43, 0.0  ;;  %v799_v45 = vmul.f32 0.2, %v629_v43  ;;  %vm751_vm6 = vcmp.ge.f32.partialorder %v669_v44, 0.0  ;;  %v551_v46 = vpop.f32.mrf.mxu0  ;;  %v591_v47 = vpop.f32.mrf.mxu1 }
  0xbe   : > { %v815_v48 = vmul.f32 0.2, %v669_v44  ;;  %vm704_vm7 = vcmp.ge.f32.partialorder %v551_v46, 0.0  ;;  %v768_v49 = vmul.f32 0.2, %v551_v46  ;;  %vm720_vm8 = vcmp.ge.f32.partialorder %v591_v47, 0.0 }
  0xbf   : > { %v863_v50 = vsel %vm735_vm5, %v629_v43, %v799_v45  ;;  %v784_v51 = vmul.f32 0.2, %v591_v47 }
  0xc0   : > { %v927_v52 = vpack.c.bf16 %v863_v50, %v863_v50  ;;  %v879_v53 = vsel %vm751_vm6, %v669_v44, %v815_v48  ;;  %v832_v54 = vsel %vm704_vm7, %v551_v46, %v768_v49 }
  0xc1   : > { %v943_v55 = vpack.c.bf16 %v879_v53, %v879_v53  ;;  %v896_v56 = vpack.c.bf16 %v832_v54, %v832_v54  ;;  %v848_v57 = vsel %vm720_vm8, %v591_v47, %v784_v51 }
  0xc2   : > { %992 = vst.msk [vmem:[%s1507_s26 + $0x90] sm:$0xf] %vm955_vm3, %v927_v52  ;;  %v912_v58 = vpack.c.bf16 %v848_v57, %v848_v57 }
  0xc3   : > { %1008 = vst.msk [vmem:[%s1507_s26 + $0xd0] sm:$0xf] %vm955_vm3, %v943_v55 }
  0xc4   : > { %961 = vst.msk [vmem:[%s1507_s26 + $0x14] sm:$0xf] %vm955_vm3, %v896_v56  ;;  %v631_v59 = vpop.f32.mrf.mxu2  ;;  %v671_v60 = vpop.f32.mrf.mxu3 }
  0xc5   : > { %977 = vst.msk [vmem:[%s1507_s26 + $0x54] sm:$0xf] %vm955_vm3, %v912_v58  ;;  %vm736_vm9 = vcmp.ge.f32.partialorder %v631_v59, 0.0  ;;  %v800_v61 = vmul.f32 0.2, %v631_v59  ;;  %vm752_vm10 = vcmp.ge.f32.partialorder %v671_v60, 0.0  ;;  %v554_v62 = vpop.f32.mrf.mxu0  ;;  %v594_v63 = vpop.f32.mrf.mxu1 }
  0xc6   : > { %v816_v0 = vmul.f32 0.2, %v671_v60  ;;  %vm705_vm11 = vcmp.ge.f32.partialorder %v554_v62, 0.0  ;;  %v769_v1 = vmul.f32 0.2, %v554_v62  ;;  %vm721_vm12 = vcmp.ge.f32.partialorder %v594_v63, 0.0 }
  0xc7   : > { %v864_v2 = vsel %vm736_vm9, %v631_v59, %v800_v61  ;;  %v785_v3 = vmul.f32 0.2, %v594_v63 }
  0xc8   : > { %v928_v4 = vpack.c.bf16 %v864_v2, %v864_v2  ;;  %v880_v5 = vsel %vm752_vm10, %v671_v60, %v816_v0  ;;  %v833_v6 = vsel %vm705_vm11, %v554_v62, %v769_v1 }
  0xc9   : > { %v944_v7 = vpack.c.bf16 %v880_v5, %v880_v5  ;;  %v897_v8 = vpack.c.bf16 %v833_v6, %v833_v6  ;;  %v849_v9 = vsel %vm721_vm12, %v594_v63, %v785_v3 }
  0xca   : > { %993 = vst.msk [vmem:[%s1507_s26 + $0x94] sm:$0xf] %vm955_vm3, %v928_v4  ;;  %v913_v10 = vpack.c.bf16 %v849_v9, %v849_v9 }
  0xcb   : > { %1009 = vst.msk [vmem:[%s1507_s26 + $0xd4] sm:$0xf] %vm955_vm3, %v944_v7 }
  0xcc   : > { %962 = vst.msk [vmem:[%s1507_s26 + $0x18] sm:$0xf] %vm955_vm3, %v897_v8  ;;  %v634_v11 = vpop.f32.mrf.mxu2  ;;  %v674_v12 = vpop.f32.mrf.mxu3 }
  0xcd   : > { %978 = vst.msk [vmem:[%s1507_s26 + $0x58] sm:$0xf] %vm955_vm3, %v913_v10  ;;  %vm737_vm13 = vcmp.ge.f32.partialorder %v634_v11, 0.0  ;;  %v801_v13 = vmul.f32 0.2, %v634_v11  ;;  %vm753_vm14 = vcmp.ge.f32.partialorder %v674_v12, 0.0  ;;  %v556_v14 = vpop.f32.mrf.mxu0  ;;  %v596_v15 = vpop.f32.mrf.mxu1 }
  0xce   : > { %v817_v16 = vmul.f32 0.2, %v674_v12  ;;  %vm706_vm15 = vcmp.ge.f32.partialorder %v556_v14, 0.0  ;;  %v770_v17 = vmul.f32 0.2, %v556_v14  ;;  %vm722_vm0 = vcmp.ge.f32.partialorder %v596_v15, 0.0 }
  0xcf   : > { %v865_v18 = vsel %vm737_vm13, %v634_v11, %v801_v13  ;;  %v786_v19 = vmul.f32 0.2, %v596_v15 }
  0xd0   : > { %v929_v20 = vpack.c.bf16 %v865_v18, %v865_v18  ;;  %v881_v21 = vsel %vm753_vm14, %v674_v12, %v817_v16  ;;  %v834_v22 = vsel %vm706_vm15, %v556_v14, %v770_v17 }
  0xd1   : > { %v945_v23 = vpack.c.bf16 %v881_v21, %v881_v21  ;;  %v898_v24 = vpack.c.bf16 %v834_v22, %v834_v22  ;;  %v850_v25 = vsel %vm722_vm0, %v596_v15, %v786_v19 }
  0xd2   : > { %994 = vst.msk [vmem:[%s1507_s26 + $0x98] sm:$0xf] %vm955_vm3, %v929_v20  ;;  %v914_v26 = vpack.c.bf16 %v850_v25, %v850_v25 }
  0xd3   : > { %1010 = vst.msk [vmem:[%s1507_s26 + $0xd8] sm:$0xf] %vm955_vm3, %v945_v23 }
  0xd4   : > { %963 = vst.msk [vmem:[%s1507_s26 + $0x1c] sm:$0xf] %vm955_vm3, %v898_v24  ;;  %v636_v27 = vpop.f32.mrf.mxu2  ;;  %v676_v28 = vpop.f32.mrf.mxu3 }
  0xd5   : > { %979 = vst.msk [vmem:[%s1507_s26 + $0x5c] sm:$0xf] %vm955_vm3, %v914_v26  ;;  %vm738_vm1 = vcmp.ge.f32.partialorder %v636_v27, 0.0  ;;  %v802_v29 = vmul.f32 0.2, %v636_v27  ;;  %vm754_vm2 = vcmp.ge.f32.partialorder %v676_v28, 0.0  ;;  %v559_v30 = vpop.f32.mrf.mxu0  ;;  %v599_v31 = vpop.f32.mrf.mxu1 }
  0xd6   : > { %v818_v32 = vmul.f32 0.2, %v676_v28  ;;  %vm707_vm4 = vcmp.ge.f32.partialorder %v559_v30, 0.0  ;;  %v771_v33 = vmul.f32 0.2, %v559_v30  ;;  %vm723_vm5 = vcmp.ge.f32.partialorder %v599_v31, 0.0 }
  0xd7   : > { %v866_v34 = vsel %vm738_vm1, %v636_v27, %v802_v29  ;;  %v787_v35 = vmul.f32 0.2, %v599_v31 }
  0xd8   : > { %v930_v36 = vpack.c.bf16 %v866_v34, %v866_v34  ;;  %v882_v37 = vsel %vm754_vm2, %v676_v28, %v818_v32  ;;  %v835_v38 = vsel %vm707_vm4, %v559_v30, %v771_v33 }
  0xd9   : > { %v946_v39 = vpack.c.bf16 %v882_v37, %v882_v37  ;;  %v899_v40 = vpack.c.bf16 %v835_v38, %v835_v38  ;;  %v851_v41 = vsel %vm723_vm5, %v599_v31, %v787_v35 }
  0xda   : > { %995 = vst.msk [vmem:[%s1507_s26 + $0x9c] sm:$0xf] %vm955_vm3, %v930_v36  ;;  %v915_v42 = vpack.c.bf16 %v851_v41, %v851_v41 }
  0xdb   : > { %1011 = vst.msk [vmem:[%s1507_s26 + $0xdc] sm:$0xf] %vm955_vm3, %v946_v39 }
  0xdc   : > { %964 = vst.msk [vmem:[%s1507_s26 + $0x20] sm:$0xf] %vm955_vm3, %v899_v40  ;;  %v639_v43 = vpop.f32.mrf.mxu2  ;;  %v679_v44 = vpop.f32.mrf.mxu3 }
  0xdd   : > { %980 = vst.msk [vmem:[%s1507_s26 + $0x60] sm:$0xf] %vm955_vm3, %v915_v42  ;;  %vm739_vm6 = vcmp.ge.f32.partialorder %v639_v43, 0.0  ;;  %v803_v45 = vmul.f32 0.2, %v639_v43  ;;  %vm755_vm7 = vcmp.ge.f32.partialorder %v679_v44, 0.0  ;;  %v561_v46 = vpop.f32.mrf.mxu0  ;;  %v601_v47 = vpop.f32.mrf.mxu1 }
  0xde   : > { %v819_v48 = vmul.f32 0.2, %v679_v44  ;;  %vm708_vm8 = vcmp.ge.f32.partialorder %v561_v46, 0.0  ;;  %v772_v49 = vmul.f32 0.2, %v561_v46  ;;  %vm724_vm9 = vcmp.ge.f32.partialorder %v601_v47, 0.0 }
  0xdf   : > { %v867_v50 = vsel %vm739_vm6, %v639_v43, %v803_v45  ;;  %v788_v51 = vmul.f32 0.2, %v601_v47 }
  0xe0   : > { %v931_v52 = vpack.c.bf16 %v867_v50, %v867_v50  ;;  %v883_v53 = vsel %vm755_vm7, %v679_v44, %v819_v48  ;;  %v836_v54 = vsel %vm708_vm8, %v561_v46, %v772_v49 }
  0xe1   : > { %v947_v55 = vpack.c.bf16 %v883_v53, %v883_v53  ;;  %v900_v56 = vpack.c.bf16 %v836_v54, %v836_v54  ;;  %v852_v57 = vsel %vm724_vm9, %v601_v47, %v788_v51 }
  0xe2   : > { %996 = vst.msk [vmem:[%s1507_s26 + $0xa0] sm:$0xf] %vm955_vm3, %v931_v52  ;;  %v916_v58 = vpack.c.bf16 %v852_v57, %v852_v57 }
  0xe3   : > { %1012 = vst.msk [vmem:[%s1507_s26 + $0xe0] sm:$0xf] %vm955_vm3, %v947_v55 }
  0xe4   : > { %965 = vst.msk [vmem:[%s1507_s26 + $0x24] sm:$0xf] %vm955_vm3, %v900_v56  ;;  %v641_v59 = vpop.f32.mrf.mxu2  ;;  %v681_v60 = vpop.f32.mrf.mxu3 }
  0xe5   : > { %981 = vst.msk [vmem:[%s1507_s26 + $0x64] sm:$0xf] %vm955_vm3, %v916_v58  ;;  %vm740_vm10 = vcmp.ge.f32.partialorder %v641_v59, 0.0  ;;  %v804_v61 = vmul.f32 0.2, %v641_v59  ;;  %vm756_vm11 = vcmp.ge.f32.partialorder %v681_v60, 0.0  ;;  %v564_v62 = vpop.f32.mrf.mxu0  ;;  %v604_v63 = vpop.f32.mrf.mxu1 }
  0xe6   : > { %v820_v0 = vmul.f32 0.2, %v681_v60  ;;  %vm709_vm12 = vcmp.ge.f32.partialorder %v564_v62, 0.0  ;;  %v773_v1 = vmul.f32 0.2, %v564_v62  ;;  %vm725_vm13 = vcmp.ge.f32.partialorder %v604_v63, 0.0 }
  0xe7   : > { %v868_v2 = vsel %vm740_vm10, %v641_v59, %v804_v61  ;;  %v789_v3 = vmul.f32 0.2, %v604_v63 }
  0xe8   : > { %v932_v4 = vpack.c.bf16 %v868_v2, %v868_v2  ;;  %v884_v5 = vsel %vm756_vm11, %v681_v60, %v820_v0  ;;  %v837_v6 = vsel %vm709_vm12, %v564_v62, %v773_v1 }
  0xe9   : > { %v948_v7 = vpack.c.bf16 %v884_v5, %v884_v5  ;;  %v901_v8 = vpack.c.bf16 %v837_v6, %v837_v6  ;;  %v853_v9 = vsel %vm725_vm13, %v604_v63, %v789_v3 }
  0xea   : > { %997 = vst.msk [vmem:[%s1507_s26 + $0xa4] sm:$0xf] %vm955_vm3, %v932_v4  ;;  %v917_v10 = vpack.c.bf16 %v853_v9, %v853_v9 }
  0xeb   : > { %1013 = vst.msk [vmem:[%s1507_s26 + $0xe4] sm:$0xf] %vm955_vm3, %v948_v7 }
  0xec   : > { %966 = vst.msk [vmem:[%s1507_s26 + $0x28] sm:$0xf] %vm955_vm3, %v901_v8  ;;  %v644_v11 = vpop.f32.mrf.mxu2  ;;  %v684_v12 = vpop.f32.mrf.mxu3 }
  0xed   : > { %982 = vst.msk [vmem:[%s1507_s26 + $0x68] sm:$0xf] %vm955_vm3, %v917_v10  ;;  %vm741_vm14 = vcmp.ge.f32.partialorder %v644_v11, 0.0  ;;  %v805_v13 = vmul.f32 0.2, %v644_v11  ;;  %vm757_vm15 = vcmp.ge.f32.partialorder %v684_v12, 0.0  ;;  %v566_v14 = vpop.f32.mrf.mxu0  ;;  %v606_v15 = vpop.f32.mrf.mxu1 }
  0xee   : > { %v821_v16 = vmul.f32 0.2, %v684_v12  ;;  %vm710_vm0 = vcmp.ge.f32.partialorder %v566_v14, 0.0  ;;  %v774_v17 = vmul.f32 0.2, %v566_v14  ;;  %vm726_vm1 = vcmp.ge.f32.partialorder %v606_v15, 0.0 }
  0xef   : > { %v869_v18 = vsel %vm741_vm14, %v644_v11, %v805_v13  ;;  %v790_v19 = vmul.f32 0.2, %v606_v15 }
  0xf0   : > { %v933_v20 = vpack.c.bf16 %v869_v18, %v869_v18  ;;  %v885_v21 = vsel %vm757_vm15, %v684_v12, %v821_v16  ;;  %v838_v22 = vsel %vm710_vm0, %v566_v14, %v774_v17 }
  0xf1   : > { %v949_v23 = vpack.c.bf16 %v885_v21, %v885_v21  ;;  %v902_v24 = vpack.c.bf16 %v838_v22, %v838_v22  ;;  %v854_v25 = vsel %vm726_vm1, %v606_v15, %v790_v19 }
  0xf2   : > { %998 = vst.msk [vmem:[%s1507_s26 + $0xa8] sm:$0xf] %vm955_vm3, %v933_v20  ;;  %v918_v26 = vpack.c.bf16 %v854_v25, %v854_v25 }
  0xf3   : > { %1014 = vst.msk [vmem:[%s1507_s26 + $0xe8] sm:$0xf] %vm955_vm3, %v949_v23 }
  0xf4   : > { %967 = vst.msk [vmem:[%s1507_s26 + $0x2c] sm:$0xf] %vm955_vm3, %v902_v24  ;;  %v646_v27 = vpop.f32.mrf.mxu2  ;;  %v686_v28 = vpop.f32.mrf.mxu3 }
  0xf5   : > { %983 = vst.msk [vmem:[%s1507_s26 + $0x6c] sm:$0xf] %vm955_vm3, %v918_v26  ;;  %vm742_vm2 = vcmp.ge.f32.partialorder %v646_v27, 0.0  ;;  %v806_v29 = vmul.f32 0.2, %v646_v27  ;;  %vm758_vm4 = vcmp.ge.f32.partialorder %v686_v28, 0.0  ;;  %v569_v30 = vpop.f32.mrf.mxu0  ;;  %v609_v31 = vpop.f32.mrf.mxu1 }
  0xf6   : > { %v822_v32 = vmul.f32 0.2, %v686_v28  ;;  %vm711_vm5 = vcmp.ge.f32.partialorder %v569_v30, 0.0  ;;  %v775_v33 = vmul.f32 0.2, %v569_v30  ;;  %vm727_vm6 = vcmp.ge.f32.partialorder %v609_v31, 0.0 }
  0xf7   : > { %v870_v34 = vsel %vm742_vm2, %v646_v27, %v806_v29  ;;  %v791_v35 = vmul.f32 0.2, %v609_v31 }
  0xf8   : > { %v934_v36 = vpack.c.bf16 %v870_v34, %v870_v34  ;;  %v886_v37 = vsel %vm758_vm4, %v686_v28, %v822_v32  ;;  %v839_v38 = vsel %vm711_vm5, %v569_v30, %v775_v33 }
  0xf9   : > { %v950_v39 = vpack.c.bf16 %v886_v37, %v886_v37  ;;  %v903_v40 = vpack.c.bf16 %v839_v38, %v839_v38  ;;  %v855_v41 = vsel %vm727_vm6, %v609_v31, %v791_v35 }
  0xfa   : > { %999 = vst.msk [vmem:[%s1507_s26 + $0xac] sm:$0xf] %vm955_vm3, %v934_v36  ;;  %v919_v42 = vpack.c.bf16 %v855_v41, %v855_v41 }
  0xfb   : > { %1015 = vst.msk [vmem:[%s1507_s26 + $0xec] sm:$0xf] %vm955_vm3, %v950_v39 }
  0xfc   : > { %968 = vst.msk [vmem:[%s1507_s26 + $0x30] sm:$0xf] %vm955_vm3, %v903_v40  ;;  %v649_v43 = vpop.f32.mrf.mxu2  ;;  %v689_v44 = vpop.f32.mrf.mxu3 }
  0xfd   : > { %984 = vst.msk [vmem:[%s1507_s26 + $0x70] sm:$0xf] %vm955_vm3, %v919_v42  ;;  %vm743_vm7 = vcmp.ge.f32.partialorder %v649_v43, 0.0  ;;  %v807_v45 = vmul.f32 0.2, %v649_v43  ;;  %vm759_vm8 = vcmp.ge.f32.partialorder %v689_v44, 0.0  ;;  %v571_v46 = vpop.f32.mrf.mxu0  ;;  %v611_v47 = vpop.f32.mrf.mxu1 }
  0xfe   : > { %v823_v48 = vmul.f32 0.2, %v689_v44  ;;  %vm712_vm9 = vcmp.ge.f32.partialorder %v571_v46, 0.0  ;;  %v776_v49 = vmul.f32 0.2, %v571_v46  ;;  %vm728_vm10 = vcmp.ge.f32.partialorder %v611_v47, 0.0 }
  0xff   : > { %v871_v50 = vsel %vm743_vm7, %v649_v43, %v807_v45  ;;  %v792_v51 = vmul.f32 0.2, %v611_v47 }
 0x100   : > { %v935_v52 = vpack.c.bf16 %v871_v50, %v871_v50  ;;  %v887_v53 = vsel %vm759_vm8, %v689_v44, %v823_v48  ;;  %v840_v54 = vsel %vm712_vm9, %v571_v46, %v776_v49 }
 0x101   : > { %v951_v55 = vpack.c.bf16 %v887_v53, %v887_v53  ;;  %v904_v56 = vpack.c.bf16 %v840_v54, %v840_v54  ;;  %v856_v57 = vsel %vm728_vm10, %v611_v47, %v792_v51 }
 0x102   : > { %1000 = vst.msk [vmem:[%s1507_s26 + $0xb0] sm:$0xf] %vm955_vm3, %v935_v52  ;;  %v920_v58 = vpack.c.bf16 %v856_v57, %v856_v57 }
 0x103   : > { %1016 = vst.msk [vmem:[%s1507_s26 + $0xf0] sm:$0xf] %vm955_vm3, %v951_v55 }
 0x104   : > { %969 = vst.msk [vmem:[%s1507_s26 + $0x34] sm:$0xf] %vm955_vm3, %v904_v56  ;;  %v651_v59 = vpop.f32.mrf.mxu2  ;;  %v691_v60 = vpop.f32.mrf.mxu3 }
 0x105   : > { %985 = vst.msk [vmem:[%s1507_s26 + $0x74] sm:$0xf] %vm955_vm3, %v920_v58  ;;  %vm744_vm11 = vcmp.ge.f32.partialorder %v651_v59, 0.0  ;;  %v808_v61 = vmul.f32 0.2, %v651_v59  ;;  %vm760_vm12 = vcmp.ge.f32.partialorder %v691_v60, 0.0  ;;  %v574_v62 = vpop.f32.mrf.mxu0  ;;  %v614_v63 = vpop.f32.mrf.mxu1 }
 0x106   : > { %v824_v0 = vmul.f32 0.2, %v691_v60  ;;  %vm713_vm13 = vcmp.ge.f32.partialorder %v574_v62, 0.0  ;;  %v777_v1 = vmul.f32 0.2, %v574_v62  ;;  %vm729_vm14 = vcmp.ge.f32.partialorder %v614_v63, 0.0 }
 0x107   : > { %v872_v2 = vsel %vm744_vm11, %v651_v59, %v808_v61  ;;  %v793_v3 = vmul.f32 0.2, %v614_v63 }
 0x108   : > { %v936_v4 = vpack.c.bf16 %v872_v2, %v872_v2  ;;  %v888_v5 = vsel %vm760_vm12, %v691_v60, %v824_v0  ;;  %v841_v6 = vsel %vm713_vm13, %v574_v62, %v777_v1 }
 0x109   : > { %v952_v7 = vpack.c.bf16 %v888_v5, %v888_v5  ;;  %v905_v8 = vpack.c.bf16 %v841_v6, %v841_v6  ;;  %v857_v9 = vsel %vm729_vm14, %v614_v63, %v793_v3 }
 0x10a   : > { %1001 = vst.msk [vmem:[%s1507_s26 + $0xb4] sm:$0xf] %vm955_vm3, %v936_v4  ;;  %v921_v10 = vpack.c.bf16 %v857_v9, %v857_v9 }
 0x10b   : > { %1017 = vst.msk [vmem:[%s1507_s26 + $0xf4] sm:$0xf] %vm955_vm3, %v952_v7 }
 0x10c   : > { %970 = vst.msk [vmem:[%s1507_s26 + $0x38] sm:$0xf] %vm955_vm3, %v905_v8  ;;  %v654_v11 = vpop.f32.mrf.mxu2  ;;  %v694_v12 = vpop.f32.mrf.mxu3 }
 0x10d   : > { %986 = vst.msk [vmem:[%s1507_s26 + $0x78] sm:$0xf] %vm955_vm3, %v921_v10  ;;  %vm745_vm15 = vcmp.ge.f32.partialorder %v654_v11, 0.0  ;;  %v809_v13 = vmul.f32 0.2, %v654_v11  ;;  %vm761_vm0 = vcmp.ge.f32.partialorder %v694_v12, 0.0  ;;  %v576_v14 = vpop.f32.mrf.mxu0  ;;  %v616_v15 = vpop.f32.mrf.mxu1 }
 0x10e   : > { %v825_v16 = vmul.f32 0.2, %v694_v12  ;;  %vm714_vm1 = vcmp.ge.f32.partialorder %v576_v14, 0.0  ;;  %v778_v17 = vmul.f32 0.2, %v576_v14  ;;  %vm730_vm2 = vcmp.ge.f32.partialorder %v616_v15, 0.0 }
 0x10f   : > { %v873_v18 = vsel %vm745_vm15, %v654_v11, %v809_v13  ;;  %v794_v19 = vmul.f32 0.2, %v616_v15 }
 0x110   : > { %v937_v20 = vpack.c.bf16 %v873_v18, %v873_v18  ;;  %v889_v21 = vsel %vm761_vm0, %v694_v12, %v825_v16  ;;  %v842_v22 = vsel %vm714_vm1, %v576_v14, %v778_v17 }
 0x111   : > { %v953_v23 = vpack.c.bf16 %v889_v21, %v889_v21  ;;  %v906_v24 = vpack.c.bf16 %v842_v22, %v842_v22  ;;  %v858_v25 = vsel %vm730_vm2, %v616_v15, %v794_v19 }
 0x112   : > { %1002 = vst.msk [vmem:[%s1507_s26 + $0xb8] sm:$0xf] %vm955_vm3, %v937_v20  ;;  %v922_v26 = vpack.c.bf16 %v858_v25, %v858_v25 }
 0x113   : > { %1018 = vst.msk [vmem:[%s1507_s26 + $0xf8] sm:$0xf] %vm955_vm3, %v953_v23 }
 0x114   : > { %971 = vst.msk [vmem:[%s1507_s26 + $0x3c] sm:$0xf] %vm955_vm3, %v906_v24  ;;  %v656_v27 = vpop.f32.mrf.mxu2  ;;  %v696_v28 = vpop.f32.mrf.mxu3 }
 0x115   : > { %987 = vst.msk [vmem:[%s1507_s26 + $0x7c] sm:$0xf] %vm955_vm3, %v922_v26  ;;  %vm746_vm4 = vcmp.ge.f32.partialorder %v656_v27, 0.0  ;;  %v810_v29 = vmul.f32 0.2, %v656_v27  ;;  %vm762_vm5 = vcmp.ge.f32.partialorder %v696_v28, 0.0 }
 0x116   : > { %v826_v30 = vmul.f32 0.2, %v696_v28 }
 0x117   : > { %v874_v31 = vsel %vm746_vm4, %v656_v27, %v810_v29 }
 0x118   : > { %v938_v32 = vpack.c.bf16 %v874_v31, %v874_v31  ;;  %v890_v33 = vsel %vm762_vm5, %v696_v28, %v826_v30 }
 0x119   : > { %v954_v34 = vpack.c.bf16 %v890_v33, %v890_v33 }
 0x11a   : > { %1003 = vst.msk [vmem:[%s1507_s26 + $0xbc] sm:$0xf] %vm955_vm3, %v938_v32 }
 0x11b   : > { %1019 = vst.msk [vmem:[%s1507_s26 + $0xfc] sm:$0xf] %vm955_vm3, %v954_v34 }
 0x11c PF: > { %s12_s11 = sadd.s32 1, %s1384_s11   ;;  %s1649_s9 = smov %s1380_s10 }
 0x11d   : > { %p9_p5 = scmp.ge.s32.totalorder %s12_s11, 6   ;;  %s1650_s10 = smov %s1652_s12 }
 0x11f   :  { %11 = sbr.rel (!%p9_p5) target bundleno = 2 (0x2), region = 61 }

// kernel: discriminator_forward.5
= control target key start
LH: loop header
LB: loop body
LE: loop exit
PB: predicated region body
PF: predicated region fallthrough
CT: control target
= control target key end

     0   :  { %s3740_s15 = smov 0   ;;  %s3742_s16 = smov 0   ;;  %s4352_s0 = inlined_call_operand.vmem [shape: bf16[512,1024], index: 0, kind: input, shape index: {}]   ;;  %s4353_s1 = inlined_call_operand.vmem [shape: bf16[1024,128], index: 1, kind: input, shape index: {}]   ;;  %s4354_s2 = inlined_call_operand.vmem [shape: bf16[512,128], index: 2, kind: output, shape index: {0}]   ;;  %s4355_s3 = inlined_call_operand.vmem [shape: f32[2,1,128], index: 3, kind: output, shape index: {1}]   ;;  %s4356_s4 = inlined_call_operand.vmem [shape: f32[2,1,128], index: 4, kind: output, shape index: {2}]  }
   0x1   :  { %s3744_s17 = smov 0  }
   0x2 LB: > { %s24_s18 = sadd.s32 1, %s3709_s16  ;;  %p2603_p0 = scmp.ge.s32.totalorder %s3713_s17, 1  ;;  %s3713_s17 = sphi %s3744_s17, %s15_s17   ;;  %s3709_s16 = sphi %s3742_s16, %s4358_s16   ;;  %s3705_s15 = sphi %s3740_s15, %s4357_s15  }
   0x3   : > { %p25_p1 = scmp.ge.s32.totalorder %s24_s18, 2  ;;  %p196_p2 = scmp.lt.s32.totalorder %s3713_s17, 3 }
   0x5   : > { %s4360_s18 = smov (%p25_p1, %s24_s18), 0  ;;  %p197_p3 = pnand %p2603_p0, %p196_p2 }
   0x6   : > { %s2604_s21 = sshll.u32 (!%p197_p3), %s3705_s15, 5  ;;  %p262_p5 = scmp.lt.s32.totalorder (!%p197_p3), %s3705_s15, 1 }
   0x7   : > { %200 = sbr.rel (%p197_p3) target bundleno = 703 (0x2bf), region = 28  ;;  %p243_p4 = scmp.lt.s32.totalorder (!%p197_p3), %s2604_s21, 63 }
   0xc   : > { %v3515_v0 = vld [vmem:[%s4353_s1 + $0x38] sm:$0xff]  ;;  %v3514_v4 = vld [vmem:[%s4353_s1 + $0x30] sm:$0xff]  ;;  %v3513_v8 = vld [vmem:[%s4353_s1 + $0x28] sm:$0xff]  ;;  %s4362_s21 = smov (!%p243_p4, %s2604_s21), 63  ;;  %s4364_s15 = smov (!%p262_p5, %s3705_s15), 1 }
   0xd   : > { %v3523_v1 = vld [vmem:[%s4353_s1 + $0x78] sm:$0xff]  ;;  %1554 = vmatpush.bf16.msra.mxu0 %v3515_v0  ;;  %v3522_v5 = vld [vmem:[%s4353_s1 + $0x70] sm:$0xff]  ;;  %v3521_v9 = vld [vmem:[%s4353_s1 + $0x68] sm:$0xff]  ;;  %s3379_s25 = sshll.u32 %s4362_s21, 5  ;;  %s2608_s28 = sshll.u32 %s4362_s21, 2 }
   0xe   : > { %v3531_v2 = vld [vmem:[%s4353_s1 + $0xb8] sm:$0xff]  ;;  %1643 = vmatpush.bf16.msra.mxu1 %v3523_v1  ;;  %v3530_v6 = vld [vmem:[%s4353_s1 + $0xb0] sm:$0xff]  ;;  %v3529_v10 = vld [vmem:[%s4353_s1 + $0xa8] sm:$0xff]  ;;  %s3845_s6 = scalar_lea.vmem %s4352_s0, %s3379_s25  ;;  %s4240_s5 = scalar_lea.vmem %s4354_s2, %s2608_s28 }
   0xf   : > { %v3539_v3 = vld [vmem:[%s4353_s1 + $0xf8] sm:$0xff]  ;;  %1732 = vmatpush.bf16.msra.mxu2 %v3531_v2  ;;  %v3538_v7 = vld [vmem:[%s4353_s1 + $0xf0] sm:$0xff]  ;;  %v3537_v11 = vld [vmem:[%s4353_s1 + $0xe8] sm:$0xff]  ;;  %s267_s7 = scalar_lea.vmem %s4355_s3, %s4364_s15  ;;  %s273_s10 = scalar_lea.vmem %s4356_s4, %s4364_s15 }
  0x10   : > { %1821 = vmatpush.bf16.msra.mxu3 %v3539_v3  ;;  %v3512_v12 = vld [vmem:[%s4353_s1 + $0x20] sm:$0xff]  ;;  %v3511_v16 = vld [vmem:[%s4353_s1 + $0x18] sm:$0xff]  ;;  %v3510_v20 = vld [vmem:[%s4353_s1 + $0x10] sm:$0xff] }
  0x11   : > { %1555 = vmatpush.bf16.msra.mxu0 %v3514_v4  ;;  %v3520_v13 = vld [vmem:[%s4353_s1 + $0x60] sm:$0xff]  ;;  %v3519_v17 = vld [vmem:[%s4353_s1 + $0x58] sm:$0xff]  ;;  %v3518_v21 = vld [vmem:[%s4353_s1 + $0x50] sm:$0xff] }
  0x12   : > { %1644 = vmatpush.bf16.msra.mxu1 %v3522_v5  ;;  %v3528_v14 = vld [vmem:[%s4353_s1 + $0xa0] sm:$0xff]  ;;  %v3527_v18 = vld [vmem:[%s4353_s1 + $0x98] sm:$0xff]  ;;  %v3526_v22 = vld [vmem:[%s4353_s1 + $0x90] sm:$0xff] }
  0x13   : > { %1733 = vmatpush.bf16.msra.mxu2 %v3530_v6  ;;  %v3536_v15 = vld [vmem:[%s4353_s1 + $0xe0] sm:$0xff]  ;;  %v3535_v19 = vld [vmem:[%s4353_s1 + $0xd8] sm:$0xff]  ;;  %v3534_v23 = vld [vmem:[%s4353_s1 + $0xd0] sm:$0xff] }
  0x14   : > { %1822 = vmatpush.bf16.msra.mxu3 %v3538_v7  ;;  %v3509_v24 = vld [vmem:[%s4353_s1 + $0x8] sm:$0xff]  ;;  %v3508_v28 = vld [vmem:[%s4353_s1] sm:$0xff]  ;;  %v3563_v40 = vld [vmem:[%s4353_s1 + $0x1b8] sm:$0xff] }
  0x15   : > { %1556 = vmatpush.bf16.msra.mxu0 %v3513_v8  ;;  %v3517_v25 = vld [vmem:[%s4353_s1 + $0x48] sm:$0xff]  ;;  %v3516_v29 = vld [vmem:[%s4353_s1 + $0x40] sm:$0xff]  ;;  %v3547_v41 = vld [vmem:[%s4353_s1 + $0x138] sm:$0xff] }
  0x16   : > { %1645 = vmatpush.bf16.msra.mxu1 %v3521_v9  ;;  %v3525_v26 = vld [vmem:[%s4353_s1 + $0x88] sm:$0xff]  ;;  %v3524_v30 = vld [vmem:[%s4353_s1 + $0x80] sm:$0xff]  ;;  %v3571_v46 = vld [vmem:[%s4353_s1 + $0x1f8] sm:$0xff] }
  0x17   : > { %1734 = vmatpush.bf16.msra.mxu2 %v3529_v10  ;;  %v3533_v27 = vld [vmem:[%s4353_s1 + $0xc8] sm:$0xff]  ;;  %v3532_v31 = vld [vmem:[%s4353_s1 + $0xc0] sm:$0xff]  ;;  %v3555_v47 = vld [vmem:[%s4353_s1 + $0x178] sm:$0xff] }
  0x18   : > { %1823 = vmatpush.bf16.msra.mxu3 %v3537_v11  ;;  %v2611_v32 = vld [vmem:[%s3845_s6] sm:$0xf]  ;;  %v3380_v34 = vld [vmem:[%s3845_s6 + $0x4] sm:$0xf]  ;;  %v2619_v36 = vld [vmem:[%s3845_s6 + $0x8] sm:$0xf] }
  0x19   : > { %1557 = vmatpush.bf16.msra.mxu0 %v3512_v12  ;;  %v3384_v33 = vld [vmem:[%s3845_s6 + $0x1c] sm:$0xf0]  ;;  %v2613_v35 = vld [vmem:[%s3845_s6 + $0x20] sm:$0xf0]  ;;  %v3385_v37 = vld [vmem:[%s3845_s6 + $0x24] sm:$0xf0] }
  0x1a   : > { %1646 = vmatpush.bf16.msra.mxu1 %v3520_v13  ;;  %v3381_v38 = vld [vmem:[%s3845_s6 + $0xc] sm:$0xf]  ;;  %v2612_v42 = vor.u32 %v3384_v33, %v2611_v32  ;;  %v2616_v43 = vor.u32 %v3380_v34, %v2613_v35  ;;  %v2620_v44 = vor.u32 %v3385_v37, %v2619_v36  ;;  %v3562_v48 = vld [vmem:[%s4353_s1 + $0x1b0] sm:$0xff]  ;;  %v2643_v52 = vld [vmem:[%s3845_s6 + $0x40] sm:$0xf] }
  0x1b   : > { %1735 = vmatpush.bf16.msra.mxu2 %v3528_v14  ;;  %v2621_v39 = vld [vmem:[%s3845_s6 + $0x28] sm:$0xf0]  ;;  %v3546_v49 = vld [vmem:[%s4353_s1 + $0x130] sm:$0xff]  ;;  %v3392_v53 = vld [vmem:[%s3845_s6 + $0x5c] sm:$0xf0] }
  0x1c   : > { %1824 = vmatpush.bf16.msra.mxu3 %v3536_v15  ;;  %v2624_v45 = vor.u32 %v3381_v38, %v2621_v39  ;;  %v3570_v50 = vld [vmem:[%s4353_s1 + $0x1f0] sm:$0xff]  ;;  %v3388_v54 = vld [vmem:[%s3845_s6 + $0x44] sm:$0xf]  ;;  %v2651_v56 = vld [vmem:[%s3845_s6 + $0x48] sm:$0xf]  ;;  %v2644_v60 = vor.u32 %v3392_v53, %v2643_v52 }
  0x1d   : > { %1558 = vmatpush.bf16.msra.mxu0 %v3511_v16  ;;  %v3554_v51 = vld [vmem:[%s4353_s1 + $0x170] sm:$0xff]  ;;  %v2645_v55 = vld [vmem:[%s3845_s6 + $0x60] sm:$0xf0]  ;;  %v3393_v57 = vld [vmem:[%s3845_s6 + $0x64] sm:$0xf0] }
  0x1e   : > { %1647 = vmatpush.bf16.msra.mxu1 %v3519_v17  ;;  %v3389_v58 = vld [vmem:[%s3845_s6 + $0x4c] sm:$0xf]  ;;  %v2648_v61 = vor.u32 %v3388_v54, %v2645_v55  ;;  %v2652_v62 = vor.u32 %v3393_v57, %v2651_v56  ;;  %v2675_v0 = vld [vmem:[%s3845_s6 + $0x80] sm:$0xf]  ;;  %v3396_v2 = vld [vmem:[%s3845_s6 + $0x84] sm:$0xf] }
  0x1f   : > { %1736 = vmatpush.bf16.msra.mxu2 %v3527_v18  ;;  %v2653_v59 = vld [vmem:[%s3845_s6 + $0x68] sm:$0xf0]  ;;  %v3400_v1 = vld [vmem:[%s3845_s6 + $0x9c] sm:$0xf0]  ;;  %v2677_v3 = vld [vmem:[%s3845_s6 + $0xa0] sm:$0xf0] }
  0x20   : > { %1825 = vmatpush.bf16.msra.mxu3 %v3535_v19  ;;  %v2656_v63 = vor.u32 %v3389_v58, %v2653_v59  ;;  %v2683_v4 = vld [vmem:[%s3845_s6 + $0x88] sm:$0xf]  ;;  %v3397_v6 = vld [vmem:[%s3845_s6 + $0x8c] sm:$0xf]  ;;  %v2676_v8 = vor.u32 %v3400_v1, %v2675_v0  ;;  %v2680_v9 = vor.u32 %v3396_v2, %v2677_v3  ;;  %v2707_v16 = vld [vmem:[%s3845_s6 + $0xc0] sm:$0xf] }
  0x21   : > { %1559 = vmatpush.bf16.msra.mxu0 %v3510_v20  ;;  %v3401_v5 = vld [vmem:[%s3845_s6 + $0xa4] sm:$0xf0]  ;;  %v2685_v7 = vld [vmem:[%s3845_s6 + $0xa8] sm:$0xf0]  ;;  %v3408_v17 = vld [vmem:[%s3845_s6 + $0xdc] sm:$0xf0] }
  0x22   : > { %1648 = vmatpush.bf16.msra.mxu1 %v3518_v21  ;;  %v2684_v10 = vor.u32 %v3401_v5, %v2683_v4  ;;  %v2688_v11 = vor.u32 %v3397_v6, %v2685_v7  ;;  %v3561_v12 = vld [vmem:[%s4353_s1 + $0x1a8] sm:$0xff]  ;;  %v3404_v18 = vld [vmem:[%s3845_s6 + $0xc4] sm:$0xf]  ;;  %v2803_v56 = vld [vmem:[%s3845_s6 + $0x180] sm:$0xf] }
  0x23   : > { %1737 = vmatpush.bf16.msra.mxu2 %v3526_v22  ;;  %v3545_v13 = vld [vmem:[%s4353_s1 + $0x128] sm:$0xff]  ;;  %v2709_v19 = vld [vmem:[%s3845_s6 + $0xe0] sm:$0xf0]  ;;  %v3432_v57 = vld [vmem:[%s3845_s6 + $0x19c] sm:$0xf0] }
  0x24   : > { %1826 = vmatpush.bf16.msra.mxu3 %v3534_v23  ;;  %v3569_v14 = vld [vmem:[%s4353_s1 + $0x1e8] sm:$0xff]  ;;  %v3428_v58 = vld [vmem:[%s3845_s6 + $0x184] sm:$0xf]  ;;  %v2804_v0 = vor.u32 %v3432_v57, %v2803_v56  ;;  %v3559_v4 = vld [vmem:[%s4353_s1 + $0x198] sm:$0xff] }
  0x25   : > { %1560 = vmatpush.bf16.msra.mxu0 %v3509_v24  ;;  %v3553_v15 = vld [vmem:[%s4353_s1 + $0x168] sm:$0xff]  ;;  %v2708_v24 = vor.u32 %v3408_v17, %v2707_v16  ;;  %v2805_v59 = vld [vmem:[%s3845_s6 + $0x1a0] sm:$0xf0]  ;;  %v3543_v5 = vld [vmem:[%s4353_s1 + $0x118] sm:$0xff] }
  0x26   : > { %1649 = vmatpush.bf16.msra.mxu1 %v3517_v25  ;;  %v2715_v20 = vld [vmem:[%s3845_s6 + $0xc8] sm:$0xf]  ;;  %v3405_v22 = vld [vmem:[%s3845_s6 + $0xcc] sm:$0xf]  ;;  %v2712_v25 = vor.u32 %v3404_v18, %v2709_v19  ;;  %v2808_v1 = vor.u32 %v3428_v58, %v2805_v59  ;;  %v3567_v6 = vld [vmem:[%s4353_s1 + $0x1d8] sm:$0xff] }
  0x27   : > { %1738 = vmatpush.bf16.msra.mxu2 %v3525_v26  ;;  %v3409_v21 = vld [vmem:[%s3845_s6 + $0xe4] sm:$0xf0]  ;;  %v2717_v23 = vld [vmem:[%s3845_s6 + $0xe8] sm:$0xf0]  ;;  %v3551_v7 = vld [vmem:[%s4353_s1 + $0x158] sm:$0xff] }
  0x28   : > { %1827 = vmatpush.bf16.msra.mxu3 %v3533_v27  ;;  %v2716_v26 = vor.u32 %v3409_v21, %v2715_v20  ;;  %v2720_v27 = vor.u32 %v3405_v22, %v2717_v23  ;;  %v2747_v32 = vld [vmem:[%s3845_s6 + $0x108] sm:$0xf]  ;;  %v3413_v34 = vld [vmem:[%s3845_s6 + $0x10c] sm:$0xf]  ;;  %v2867_v20 = vld [vmem:[%s3845_s6 + $0x200] sm:$0xf] }
  0x29   : > { %1561 = vmatpush.bf16.msra.mxu0 %v3508_v28  ;;  %v2739_v28 = vld [vmem:[%s3845_s6 + $0x100] sm:$0xf]  ;;  %v3417_v33 = vld [vmem:[%s3845_s6 + $0x124] sm:$0xf0]  ;;  %v2749_v35 = vld [vmem:[%s3845_s6 + $0x128] sm:$0xf0] }
  0x2a   : > { %1650 = vmatpush.bf16.msra.mxu1 %v3516_v29  ;;  %v3416_v29 = vld [vmem:[%s3845_s6 + $0x11c] sm:$0xf0]  ;;  %v2748_v38 = vor.u32 %v3417_v33, %v2747_v32  ;;  %v2752_v39 = vor.u32 %v3413_v34, %v2749_v35  ;;  %v3444_v22 = vld [vmem:[%s3845_s6 + $0x204] sm:$0xf]  ;;  %v3558_v35 = vld [vmem:[%s4353_s1 + $0x190] sm:$0xff] }
  0x2b   : > { %1739 = vmatpush.bf16.msra.mxu2 %v3524_v30  ;;  %v3412_v30 = vld [vmem:[%s3845_s6 + $0x104] sm:$0xf]  ;;  %v2740_v36 = vor.u32 %v3416_v29, %v2739_v28  ;;  %v3448_v21 = vld [vmem:[%s3845_s6 + $0x21c] sm:$0xf0] }
  0x2c   : > { %1828 = vmatpush.bf16.msra.mxu3 %v3532_v31  ;;  %1562 = vmatmul.bf16.vlgmr.msra.gmra.mxu0 %v2612_v42  ;;  %v2741_v31 = vld [vmem:[%s3845_s6 + $0x120] sm:$0xf0]  ;;  %v2868_v28 = vor.u32 %v3448_v21, %v2867_v20 }
  0x2d   : > { %1910 = vmatpush.bf16.msrb.mxu0 %v3547_v41  ;;  %1651 = vmatmul.bf16.vlgmr.msra.gmra.mxu1 %v2616_v43  ;;  %v2744_v37 = vor.u32 %v3412_v30, %v2741_v31  ;;  %v3544_v41 = vld [vmem:[%s4353_s1 + $0x120] sm:$0xff] }
  0x2e   : > { %1740 = vmatmul.bf16.vlgmr.msra.gmra.mxu2 %v2620_v44  ;;  %1999 = vmatpush.bf16.msrb.mxu1 %v3555_v47  ;;  %v3568_v42 = vld [vmem:[%s4353_s1 + $0x1e0] sm:$0xff] }
  0x2f   : > { %2088 = vmatpush.bf16.msrb.mxu2 %v3563_v40  ;;  %1829 = vmatmul.bf16.vlgmr.msra.gmra.mxu3 %v2624_v45  ;;  %v3560_v40 = vld [vmem:[%s4353_s1 + $0x1a0] sm:$0xff] }
  0x30   : > { %2177 = vmatpush.bf16.msrb.mxu3 %v3571_v46  ;;  %v3552_v43 = vld [vmem:[%s4353_s1 + $0x160] sm:$0xff] }
  0x31   : > { %1911 = vmatpush.bf16.msrb.mxu0 %v3546_v49  ;;  %v2771_v44 = vld [vmem:[%s3845_s6 + $0x140] sm:$0xf]  ;;  %v3420_v46 = vld [vmem:[%s3845_s6 + $0x144] sm:$0xf]  ;;  %v3425_v49 = vld [vmem:[%s3845_s6 + $0x164] sm:$0xf0] }
  0x32   : > { %2000 = vmatpush.bf16.msrb.mxu1 %v3554_v51  ;;  %v3424_v45 = vld [vmem:[%s3845_s6 + $0x15c] sm:$0xf0]  ;;  %v2773_v47 = vld [vmem:[%s3845_s6 + $0x160] sm:$0xf0]  ;;  %v2781_v51 = vld [vmem:[%s3845_s6 + $0x168] sm:$0xf0] }
  0x33   : > { %2089 = vmatpush.bf16.msrb.mxu2 %v3562_v48  ;;  %v2779_v48 = vld [vmem:[%s3845_s6 + $0x148] sm:$0xf]  ;;  %v2772_v52 = vor.u32 %v3424_v45, %v2771_v44  ;;  %v2776_v53 = vor.u32 %v3420_v46, %v2773_v47  ;;  %v2869_v23 = vld [vmem:[%s3845_s6 + $0x220] sm:$0xf0]  ;;  %v3550_v45 = vld [vmem:[%s4353_s1 + $0x150] sm:$0xff] }
  0x34   : > { %2178 = vmatpush.bf16.msrb.mxu3 %v3570_v50  ;;  %v3421_v50 = vld [vmem:[%s3845_s6 + $0x14c] sm:$0xf]  ;;  %v2780_v54 = vor.u32 %v3425_v49, %v2779_v48  ;;  %v2872_v29 = vor.u32 %v3444_v22, %v2869_v23  ;;  %v2899_v46 = vld [vmem:[%s3845_s6 + $0x240] sm:$0xf]  ;;  %v3452_v48 = vld [vmem:[%s3845_s6 + $0x244] sm:$0xf] }
  0x35   : > { %1912 = vmatpush.bf16.msrb.mxu0 %v3545_v13  ;;  %v2784_v55 = vor.u32 %v3421_v50, %v2781_v51  ;;  %v3441_v13 = vld [vmem:[%s3845_s6 + $0x1e4] sm:$0xf0]  ;;  %v3456_v47 = vld [vmem:[%s3845_s6 + $0x25c] sm:$0xf0]  ;;  %v2901_v49 = vld [vmem:[%s3845_s6 + $0x260] sm:$0xf0] }
  0x36   : > { %2001 = vmatpush.bf16.msrb.mxu1 %v3553_v15  ;;  %v2845_v15 = vld [vmem:[%s3845_s6 + $0x1e8] sm:$0xf0]  ;;  %v2907_v50 = vld [vmem:[%s3845_s6 + $0x248] sm:$0xf]  ;;  %v2900_v56 = vor.u32 %v3456_v47, %v2899_v46  ;;  %v2904_v57 = vor.u32 %v3452_v48, %v2901_v49 }
  0x37   : > { %2090 = vmatpush.bf16.msrb.mxu2 %v3561_v12  ;;  %v2843_v12 = vld [vmem:[%s3845_s6 + $0x1c8] sm:$0xf]  ;;  %v2973_v46 = vld [vmem:[%s3845_s6 + $0x2e8] sm:$0xf0] }
  0x38   : > { %2179 = vmatpush.bf16.msrb.mxu3 %v3569_v14  ;;  %v3437_v14 = vld [vmem:[%s3845_s6 + $0x1cc] sm:$0xf]  ;;  %v2844_v18 = vor.u32 %v3441_v13, %v2843_v12  ;;  %v3457_v51 = vld [vmem:[%s3845_s6 + $0x264] sm:$0xf0] }
  0x39   : > { %1913 = vmatpush.bf16.msrb.mxu0 %v3544_v41  ;;  %v2848_v19 = vor.u32 %v3437_v14, %v2845_v15  ;;  %v2939_v12 = vld [vmem:[%s3845_s6 + $0x288] sm:$0xf]  ;;  %v3461_v14 = vld [vmem:[%s3845_s6 + $0x28c] sm:$0xf] }
  0x3a   : > { %2002 = vmatpush.bf16.msrb.mxu1 %v3552_v43  ;;  %v3465_v13 = vld [vmem:[%s3845_s6 + $0x2a4] sm:$0xf0]  ;;  %v2941_v15 = vld [vmem:[%s3845_s6 + $0x2a8] sm:$0xf0] }
  0x3b   : > { %2091 = vmatpush.bf16.msrb.mxu2 %v3560_v40  ;;  %v2940_v23 = vor.u32 %v3465_v13, %v2939_v12 }
  0x3c   : > { %1567 = vmatmul.bf16.gmra.mxu0 %v2644_v60  ;;  %2180 = vmatpush.bf16.msrb.mxu3 %v3568_v42  ;;  %v2811_v60 = vld [vmem:[%s3845_s6 + $0x188] sm:$0xf] }
  0x3d   : > { %1656 = vmatmul.bf16.gmra.mxu1 %v2648_v61  ;;  %v3433_v61 = vld [vmem:[%s3845_s6 + $0x1a4] sm:$0xf0]  ;;  %1914 = vmatpush.bf16.msrb.mxu0 %v3543_v5 }
  0x3e   : > { %1745 = vmatmul.bf16.gmra.mxu2 %v2652_v62  ;;  %v3429_v62 = vld [vmem:[%s3845_s6 + $0x18c] sm:$0xf]  ;;  %v2812_v2 = vor.u32 %v3433_v61, %v2811_v60  ;;  %2003 = vmatpush.bf16.msrb.mxu1 %v3551_v7  ;;  %v2908_v61 = vor.u32 %v3457_v51, %v2907_v50 }
  0x3f   : > { %1834 = vmatmul.bf16.gmra.mxu3 %v2656_v63  ;;  %v2813_v63 = vld [vmem:[%s3845_s6 + $0x1a8] sm:$0xf0]  ;;  %2092 = vmatpush.bf16.msrb.mxu2 %v3559_v4 }
  0x40   : > { %v2816_v3 = vor.u32 %v3429_v62, %v2813_v63  ;;  %2181 = vmatpush.bf16.msrb.mxu3 %v3567_v6 }
  0x42   : > { %2004 = vmatpush.bf16.msrb.mxu1 %v3550_v45  ;;  %v3469_v45 = vld [vmem:[%s3845_s6 + $0x2cc] sm:$0xf] }
  0x43   : > { %2093 = vmatpush.bf16.msrb.mxu2 %v3558_v35 }
  0x4c   : > { %1572 = vmatmul.bf16.gmra.mxu0 %v2676_v8  ;;  %v2835_v8 = vld [vmem:[%s3845_s6 + $0x1c0] sm:$0xf] }
  0x4d   : > { %1661 = vmatmul.bf16.gmra.mxu1 %v2680_v9  ;;  %v3440_v9 = vld [vmem:[%s3845_s6 + $0x1dc] sm:$0xf0] }
  0x4e   : > { %1750 = vmatmul.bf16.gmra.mxu2 %v2684_v10  ;;  %v3436_v10 = vld [vmem:[%s3845_s6 + $0x1c4] sm:$0xf]  ;;  %v2836_v16 = vor.u32 %v3440_v9, %v2835_v8  ;;  %v2931_v8 = vld [vmem:[%s3845_s6 + $0x280] sm:$0xf] }
  0x4f   : > { %1839 = vmatmul.bf16.gmra.mxu3 %v2688_v11  ;;  %v2837_v11 = vld [vmem:[%s3845_s6 + $0x1e0] sm:$0xf0]  ;;  %v3464_v9 = vld [vmem:[%s3845_s6 + $0x29c] sm:$0xf0] }
  0x50   : > { %v2840_v17 = vor.u32 %v3436_v10, %v2837_v11  ;;  %v3460_v10 = vld [vmem:[%s3845_s6 + $0x284] sm:$0xf] }
  0x51   : > { %v2933_v11 = vld [vmem:[%s3845_s6 + $0x2a0] sm:$0xf0] }
  0x5c   : > { %1577 = vmatmul.bf16.gmra.mxu0 %v2708_v24  ;;  %v2875_v24 = vld [vmem:[%s3845_s6 + $0x208] sm:$0xf] }
  0x5d   : > { %1666 = vmatmul.bf16.gmra.mxu1 %v2712_v25  ;;  %v3449_v25 = vld [vmem:[%s3845_s6 + $0x224] sm:$0xf0] }
  0x5e   : > { %1755 = vmatmul.bf16.gmra.mxu2 %v2716_v26  ;;  %v3445_v26 = vld [vmem:[%s3845_s6 + $0x20c] sm:$0xf]  ;;  %v2876_v32 = vor.u32 %v3449_v25, %v2875_v24  ;;  %v2944_v24 = vor.u32 %v3461_v14, %v2941_v15 }
  0x5f   : > { %1844 = vmatmul.bf16.gmra.mxu3 %v2720_v27  ;;  %v2877_v27 = vld [vmem:[%s3845_s6 + $0x228] sm:$0xf0] }
  0x60   : > { %v2880_v33 = vor.u32 %v3445_v26, %v2877_v27  ;;  %v3557_v27 = vld [vmem:[%s4353_s1 + $0x188] sm:$0xff] }
  0x61   : > { %2094 = vmatpush.bf16.msrb.mxu2 %v3557_v27 }
  0x6c   : > { %1582 = vmatmul.bf16.gmra.mxu0 %v2740_v36  ;;  %v3542_v36 = vld [vmem:[%s4353_s1 + $0x110] sm:$0xff] }
  0x6d   : > { %1671 = vmatmul.bf16.gmra.mxu1 %v2744_v37  ;;  %v3566_v37 = vld [vmem:[%s4353_s1 + $0x1d0] sm:$0xff]  ;;  %1915 = vmatpush.bf16.msrb.mxu0 %v3542_v36 }
  0x6e   : > { %1760 = vmatmul.bf16.gmra.mxu2 %v2748_v38  ;;  %2182 = vmatpush.bf16.msrb.mxu3 %v3566_v37  ;;  %v3549_v37 = vld [vmem:[%s4353_s1 + $0x148] sm:$0xff] }
  0x6f   : > { %1849 = vmatmul.bf16.gmra.mxu3 %v2752_v39  ;;  %2005 = vmatpush.bf16.msrb.mxu1 %v3549_v37  ;;  %v3484_v37 = vld [vmem:[%s3845_s6 + $0x344] sm:$0xf] }
  0x7c   : > { %1587 = vmatmul.bf16.gmra.mxu0 %v2772_v52  ;;  %v3453_v52 = vld [vmem:[%s3845_s6 + $0x24c] sm:$0xf] }
  0x7d   : > { %1676 = vmatmul.bf16.gmra.mxu1 %v2776_v53  ;;  %v2909_v53 = vld [vmem:[%s3845_s6 + $0x268] sm:$0xf0] }
  0x7e   : > { %1765 = vmatmul.bf16.gmra.mxu2 %v2780_v54  ;;  %v2912_v62 = vor.u32 %v3453_v52, %v2909_v53 }
  0x7f   : > { %1854 = vmatmul.bf16.gmra.mxu3 %v2784_v55 }
  0x8c   : > { %1592 = vmatmul.bf16.gmra.mxu0 %v2804_v0 }
  0x8d   : > { %1681 = vmatmul.bf16.gmra.mxu1 %v2808_v1 }
  0x8e   : > { %1770 = vmatmul.bf16.gmra.mxu2 %v2812_v2 }
  0x8f   : > { %1859 = vmatmul.bf16.gmra.mxu3 %v2816_v3 }
  0x9c   : > { %1597 = vmatmul.bf16.gmra.mxu0 %v2836_v16 }
  0x9d   : > { %1686 = vmatmul.bf16.gmra.mxu1 %v2840_v17 }
  0x9e   : > { %1775 = vmatmul.bf16.gmra.mxu2 %v2844_v18  ;;  %v2932_v18 = vor.u32 %v3464_v9, %v2931_v8  ;;  %v3481_v8 = vld [vmem:[%s3845_s6 + $0x324] sm:$0xf0]  ;;  %v3477_v9 = vld [vmem:[%s3845_s6 + $0x30c] sm:$0xf] }
  0x9f   : > { %1864 = vmatmul.bf16.gmra.mxu3 %v2848_v19  ;;  %v2936_v19 = vor.u32 %v3460_v10, %v2933_v11  ;;  %v3005_v10 = vld [vmem:[%s3845_s6 + $0x328] sm:$0xf0] }
  0xa9   : > { %v1563_v30 = vpop.f32.mrf.mxu0 }
  0xaa   : > { %v1652_v31 = vpop.f32.mrf.mxu1 }
  0xab   : > { %v1653_v34 = vadd.f32 %v1652_v31, %v1563_v30 }
  0xac   : > { %1602 = vmatmul.bf16.gmra.mxu0 %v2868_v28  ;;  %v3541_v28 = vld [vmem:[%s4353_s1 + $0x108] sm:$0xff] }
  0xad   : > { %1691 = vmatmul.bf16.gmra.mxu1 %v2872_v29  ;;  %v3565_v29 = vld [vmem:[%s4353_s1 + $0x1c8] sm:$0xff]  ;;  %1916 = vmatpush.bf16.msrb.mxu0 %v3541_v28 }
  0xae   : > { %1780 = vmatmul.bf16.gmra.mxu2 %v2876_v32  ;;  %2183 = vmatpush.bf16.msrb.mxu3 %v3565_v29 }
  0xaf   : > { %1869 = vmatmul.bf16.gmra.mxu3 %v2880_v33 }
  0xb1   : > { %v1741_v38 = vpop.f32.mrf.mxu2  ;;  %v1565_v41 = vpop.f32.mrf.mxu0 }
  0xb2   : > { %v1830_v39 = vpop.f32.mrf.mxu3  ;;  %v1742_v40 = vadd.f32 %v1741_v38, %v1653_v34  ;;  %v1654_v42 = vpop.f32.mrf.mxu1  ;;  %v2963_v38 = vld [vmem:[%s3845_s6 + $0x2c0] sm:$0xf] }
  0xb3   : > { %v1655_v43 = vadd.f32 %v1654_v42, %v1565_v41  ;;  %v2965_v41 = vld [vmem:[%s3845_s6 + $0x2e0] sm:$0xf0]  ;;  %v2971_v42 = vld [vmem:[%s3845_s6 + $0x2c8] sm:$0xf] }
  0xb4   : > { %v4006_v44 = vadd.f32 %v1830_v39, %v1742_v40  ;;  %v3472_v39 = vld [vmem:[%s3845_s6 + $0x2dc] sm:$0xf0]  ;;  %v3468_v40 = vld [vmem:[%s3845_s6 + $0x2c4] sm:$0xf] }
  0xb5   : > { %v2964_v49 = vor.u32 %v3472_v39, %v2963_v38  ;;  %v2968_v50 = vor.u32 %v3468_v40, %v2965_v41  ;;  %v3029_v38 = vld [vmem:[%s3845_s6 + $0x360] sm:$0xf0]  ;;  %v3035_v39 = vld [vmem:[%s3845_s6 + $0x348] sm:$0xf]  ;;  %v3485_v41 = vld [vmem:[%s3845_s6 + $0x34c] sm:$0xf] }
  0xb6   : > { %v3489_v40 = vld [vmem:[%s3845_s6 + $0x364] sm:$0xf0] }
  0xb9   : > { %v1743_v54 = vpop.f32.mrf.mxu2  ;;  %v1568_v59 = vpop.f32.mrf.mxu0 }
  0xba   : > { %v1832_v55 = vpop.f32.mrf.mxu3  ;;  %v1744_v58 = vadd.f32 %v1743_v54, %v1655_v43  ;;  %v1657_v60 = vpop.f32.mrf.mxu1  ;;  %v3473_v43 = vld [vmem:[%s3845_s6 + $0x2e4] sm:$0xf0] }
  0xbb   : > { %v1658_v63 = vadd.f32 %v1657_v60, %v1568_v59  ;;  %v2972_v54 = vor.u32 %v3473_v43, %v2971_v42  ;;  %v3037_v42 = vld [vmem:[%s3845_s6 + $0x368] sm:$0xf0] }
  0xbc   : > { %v4019_v0 = vadd.f32 %v1832_v55, %v1744_v58  ;;  %1607 = vmatmul.bf16.gmra.mxu0 %v2900_v56  ;;  %v2976_v55 = vor.u32 %v3469_v45, %v2973_v46 }
  0xbd   : > { %1696 = vmatmul.bf16.gmra.mxu1 %v2904_v57 }
  0xbe   : > { %1785 = vmatmul.bf16.gmra.mxu2 %v2908_v61 }
  0xbf   : > { %1874 = vmatmul.bf16.gmra.mxu3 %v2912_v62 }
  0xc1   : > { %v1746_v1 = vpop.f32.mrf.mxu2  ;;  %v1570_v4 = vpop.f32.mrf.mxu0 }
  0xc2   : > { %v1835_v2 = vpop.f32.mrf.mxu3  ;;  %v1747_v3 = vadd.f32 %v1746_v1, %v1658_v63  ;;  %v1659_v5 = vpop.f32.mrf.mxu1 }
  0xc3   : > { %v1660_v6 = vadd.f32 %v1659_v5, %v1570_v4  ;;  %v3476_v4 = vld [vmem:[%s3845_s6 + $0x304] sm:$0xf] }
  0xc4   : > { %v4021_v7 = vadd.f32 %v1835_v2, %v1747_v3  ;;  %v2995_v2 = vld [vmem:[%s3845_s6 + $0x300] sm:$0xf]  ;;  %v2997_v5 = vld [vmem:[%s3845_s6 + $0x320] sm:$0xf0] }
  0xc5   : > { %v3480_v3 = vld [vmem:[%s3845_s6 + $0x31c] sm:$0xf0]  ;;  %v3000_v14 = vor.u32 %v3476_v4, %v2997_v5  ;;  %v3061_v4 = vld [vmem:[%s3845_s6 + $0x3a0] sm:$0xf0]  ;;  %v3067_v5 = vld [vmem:[%s3845_s6 + $0x388] sm:$0xf] }
  0xc6   : > { %v2996_v13 = vor.u32 %v3480_v3, %v2995_v2  ;;  %v3496_v2 = vld [vmem:[%s3845_s6 + $0x39c] sm:$0xf0]  ;;  %v3492_v3 = vld [vmem:[%s3845_s6 + $0x384] sm:$0xf] }
  0xc9   : > { %v1748_v16 = vpop.f32.mrf.mxu2  ;;  %v1573_v21 = vpop.f32.mrf.mxu0 }
  0xca   : > { %v1837_v17 = vpop.f32.mrf.mxu3  ;;  %v1749_v20 = vadd.f32 %v1748_v16, %v1660_v6  ;;  %v1662_v22 = vpop.f32.mrf.mxu1  ;;  %v3003_v6 = vld [vmem:[%s3845_s6 + $0x308] sm:$0xf] }
  0xcb   : > { %v1663_v25 = vadd.f32 %v1662_v22, %v1573_v21  ;;  %v3556_v22 = vld [vmem:[%s4353_s1 + $0x180] sm:$0xff] }
  0xcc   : > { %v4031_v26 = vadd.f32 %v1837_v17, %v1749_v20  ;;  %1612 = vmatmul.bf16.gmra.mxu0 %v2932_v18  ;;  %v3004_v18 = vor.u32 %v3481_v8, %v3003_v6  ;;  %2095 = vmatpush.bf16.msrb.mxu2 %v3556_v22  ;;  %v3497_v6 = vld [vmem:[%s3845_s6 + $0x3a4] sm:$0xf0]  ;;  %v3493_v8 = vld [vmem:[%s3845_s6 + $0x38c] sm:$0xf] }
  0xcd   : > { %1701 = vmatmul.bf16.gmra.mxu1 %v2936_v19  ;;  %v3008_v19 = vor.u32 %v3477_v9, %v3005_v10  ;;  %v3069_v9 = vld [vmem:[%s3845_s6 + $0x3a8] sm:$0xf0] }
  0xce   : > { %1790 = vmatmul.bf16.gmra.mxu2 %v2940_v23  ;;  %v3540_v23 = vld [vmem:[%s4353_s1 + $0x100] sm:$0xff] }
  0xcf   : > { %1879 = vmatmul.bf16.gmra.mxu3 %v2944_v24  ;;  %v3564_v24 = vld [vmem:[%s4353_s1 + $0x1c0] sm:$0xff]  ;;  %1917 = vmatpush.bf16.msrb.mxu0 %v3540_v23 }
  0xd0   : > { %2184 = vmatpush.bf16.msrb.mxu3 %v3564_v24 }
  0xd1   : > { %v1751_v30 = vpop.f32.mrf.mxu2  ;;  %v1575_v33 = vpop.f32.mrf.mxu0 }
  0xd2   : > { %v1840_v31 = vpop.f32.mrf.mxu3  ;;  %v1752_v32 = vadd.f32 %v1751_v30, %v1663_v25  ;;  %v1664_v34 = vpop.f32.mrf.mxu1 }
  0xd3   : > { %v1665_v35 = vadd.f32 %v1664_v34, %v1575_v33  ;;  %v3548_v33 = vld [vmem:[%s4353_s1 + $0x140] sm:$0xff] }
  0xd4   : > { %v4042_v36 = vadd.f32 %v1840_v31, %v1752_v32  ;;  %v3027_v34 = vld [vmem:[%s3845_s6 + $0x340] sm:$0xf]  ;;  %2006 = vmatpush.bf16.msrb.mxu1 %v3548_v33  ;;  %v3500_v33 = vld [vmem:[%s3845_s6 + $0x3c4] sm:$0xf] }
  0xd9   : > { %v1753_v47 = vpop.f32.mrf.mxu2  ;;  %v1578_v52 = vpop.f32.mrf.mxu0 }
  0xda   : > { %v1842_v48 = vpop.f32.mrf.mxu3  ;;  %v1754_v51 = vadd.f32 %v1753_v47, %v1665_v35  ;;  %v1667_v53 = vpop.f32.mrf.mxu1  ;;  %v3488_v35 = vld [vmem:[%s3845_s6 + $0x35c] sm:$0xf0]  ;;  %v3032_v47 = vor.u32 %v3484_v37, %v3029_v38  ;;  %v3505_v37 = vld [vmem:[%s3845_s6 + $0x3e4] sm:$0xf0]  ;;  %v3501_v38 = vld [vmem:[%s3845_s6 + $0x3cc] sm:$0xf] }
  0xdb   : > { %v1668_v56 = vadd.f32 %v1667_v53, %v1578_v52  ;;  %v3028_v46 = vor.u32 %v3488_v35, %v3027_v34  ;;  %v3040_v52 = vor.u32 %v3485_v41, %v3037_v42  ;;  %v3093_v34 = vld [vmem:[%s3845_s6 + $0x3e0] sm:$0xf0]  ;;  %v3099_v35 = vld [vmem:[%s3845_s6 + $0x3c8] sm:$0xf] }
  0xdc   : > { %v4055_v57 = vadd.f32 %v1842_v48, %v1754_v51  ;;  %1617 = vmatmul.bf16.gmra.mxu0 %v2964_v49  ;;  %v3036_v51 = vor.u32 %v3489_v40, %v3035_v39  ;;  %v3101_v39 = vld [vmem:[%s3845_s6 + $0x3e8] sm:$0xf0] }
  0xdd   : > { %1706 = vmatmul.bf16.gmra.mxu1 %v2968_v50 }
  0xde   : > { %1795 = vmatmul.bf16.gmra.mxu2 %v2972_v54 }
  0xdf   : > { %1884 = vmatmul.bf16.gmra.mxu3 %v2976_v55 }
  0xe1   : > { %v1756_v58 = vpop.f32.mrf.mxu2  ;;  %v1580_v61 = vpop.f32.mrf.mxu0 }
  0xe2   : > { %v1845_v59 = vpop.f32.mrf.mxu3  ;;  %v1757_v60 = vadd.f32 %v1756_v58, %v1668_v56  ;;  %v1669_v62 = vpop.f32.mrf.mxu1 }
  0xe3   : > { %v1670_v63 = vadd.f32 %v1669_v62, %v1580_v61 }
  0xe4   : > { %v4057_v1 = vadd.f32 %v1845_v59, %v1757_v60 }
  0xe9   : > { %v1758_v11 = vpop.f32.mrf.mxu2  ;;  %v1583_v16 = vpop.f32.mrf.mxu0 }
  0xea   : > { %v1847_v12 = vpop.f32.mrf.mxu3  ;;  %v1759_v15 = vadd.f32 %v1758_v11, %v1670_v63  ;;  %v1672_v17 = vpop.f32.mrf.mxu1  ;;  %v3059_v63 = vld [vmem:[%s3845_s6 + $0x380] sm:$0xf] }
  0xeb   : > { %v1673_v20 = vadd.f32 %v1672_v17, %v1583_v16  ;;  %v3068_v17 = vor.u32 %v3497_v6, %v3067_v5  ;;  %v3387_v5 = vld [vmem:[%s3845_s6 + $0x34] sm:$0xf0]  ;;  %v3383_v6 = vld [vmem:[%s3845_s6 + $0x1c] sm:$0xf] }
  0xec   : > { %v4067_v21 = vadd.f32 %v1847_v12, %v1759_v15  ;;  %1622 = vmatmul.bf16.gmra.mxu0 %v2996_v13  ;;  %v3060_v12 = vor.u32 %v3496_v2, %v3059_v63  ;;  %v3064_v13 = vor.u32 %v3492_v3, %v3061_v4  ;;  %v3386_v63 = vld [vmem:[%s3845_s6 + $0x2c] sm:$0xf0]  ;;  %v3382_v2 = vld [vmem:[%s3845_s6 + $0x14] sm:$0xf]  ;;  %v2635_v4 = vld [vmem:[%s3845_s6 + $0x18] sm:$0xf] }
  0xed   : > { %1711 = vmatmul.bf16.gmra.mxu1 %v3000_v14  ;;  %v2629_v3 = vld [vmem:[%s3845_s6 + $0x30] sm:$0xf0] }
  0xee   : > { %1800 = vmatmul.bf16.gmra.mxu2 %v3004_v18  ;;  %v3072_v18 = vor.u32 %v3493_v8, %v3069_v9  ;;  %v2637_v8 = vld [vmem:[%s3845_s6 + $0x38] sm:$0xf0] }
  0xef   : > { %1889 = vmatmul.bf16.gmra.mxu3 %v3008_v19 }
  0xf1   : > { %v1761_v25 = vpop.f32.mrf.mxu2  ;;  %v1585_v29 = vpop.f32.mrf.mxu0 }
  0xf2   : > { %v1850_v27 = vpop.f32.mrf.mxu3  ;;  %v1762_v28 = vadd.f32 %v1761_v25, %v1673_v20  ;;  %v1674_v30 = vpop.f32.mrf.mxu1 }
  0xf3   : > { %v1675_v31 = vadd.f32 %v1674_v30, %v1585_v29  ;;  %v3091_v30 = vld [vmem:[%s3845_s6 + $0x3c0] sm:$0xf] }
  0xf4   : > { %v4078_v32 = vadd.f32 %v1850_v27, %v1762_v28 }
  0xf9   : > { %v1763_v43 = vpop.f32.mrf.mxu2  ;;  %v1588_v49 = vpop.f32.mrf.mxu0 }
  0xfa   : > { %v1852_v45 = vpop.f32.mrf.mxu3  ;;  %v1764_v48 = vadd.f32 %v1763_v43, %v1675_v31  ;;  %v1677_v50 = vpop.f32.mrf.mxu1  ;;  %v3504_v31 = vld [vmem:[%s3845_s6 + $0x3dc] sm:$0xf0]  ;;  %v3096_v43 = vor.u32 %v3500_v33, %v3093_v34  ;;  %v3394_v33 = vld [vmem:[%s3845_s6 + $0x6c] sm:$0xf0]  ;;  %v3390_v34 = vld [vmem:[%s3845_s6 + $0x54] sm:$0xf] }
  0xfb   : > { %v1678_v53 = vadd.f32 %v1677_v50, %v1588_v49  ;;  %v3092_v42 = vor.u32 %v3504_v31, %v3091_v30  ;;  %v3104_v49 = vor.u32 %v3501_v38, %v3101_v39  ;;  %v2659_v31 = vld [vmem:[%s3845_s6 + $0x50] sm:$0xf]  ;;  %v3395_v38 = vld [vmem:[%s3845_s6 + $0x74] sm:$0xf0]  ;;  %v3391_v39 = vld [vmem:[%s3845_s6 + $0x5c] sm:$0xf] }
  0xfc   : > { %v4091_v54 = vadd.f32 %v1852_v45, %v1764_v48  ;;  %1627 = vmatmul.bf16.gmra.mxu0 %v3028_v46  ;;  %v3100_v48 = vor.u32 %v3505_v37, %v3099_v35  ;;  %v2661_v35 = vld [vmem:[%s3845_s6 + $0x70] sm:$0xf0]  ;;  %v2667_v37 = vld [vmem:[%s3845_s6 + $0x58] sm:$0xf] }
  0xfd   : > { %1716 = vmatmul.bf16.gmra.mxu1 %v3032_v47 }
  0xfe   : > { %1805 = vmatmul.bf16.gmra.mxu2 %v3036_v51 }
  0xff   : > { %1894 = vmatmul.bf16.gmra.mxu3 %v3040_v52 }
 0x101   : > { %v1766_v55 = vpop.f32.mrf.mxu2  ;;  %v1590_v59 = vpop.f32.mrf.mxu0 }
 0x102   : > { %v1855_v56 = vpop.f32.mrf.mxu3  ;;  %v1767_v58 = vadd.f32 %v1766_v55, %v1678_v53  ;;  %v1679_v60 = vpop.f32.mrf.mxu1 }
 0x103   : > { %v1680_v61 = vadd.f32 %v1679_v60, %v1590_v59 }
 0x104   : > { %v4093_v62 = vadd.f32 %v1855_v56, %v1767_v58 }
 0x109   : > { %v1768_v10 = vpop.f32.mrf.mxu2  ;;  %v1593_v15 = vpop.f32.mrf.mxu0 }
 0x10a   : > { %v1857_v11 = vpop.f32.mrf.mxu3  ;;  %v1769_v14 = vadd.f32 %v1768_v10, %v1680_v61  ;;  %v1682_v16 = vpop.f32.mrf.mxu1  ;;  %v2627_v61 = vld [vmem:[%s3845_s6 + $0x10] sm:$0xf] }
 0x10b   : > { %v1683_v19 = vadd.f32 %v1682_v16, %v1593_v15  ;;  %v2636_v16 = vor.u32 %v3387_v5, %v2635_v4  ;;  %v3402_v4 = vld [vmem:[%s3845_s6 + $0xac] sm:$0xf0]  ;;  %v3398_v5 = vld [vmem:[%s3845_s6 + $0x94] sm:$0xf] }
 0x10c   : > { %v4103_v20 = vadd.f32 %v1857_v11, %v1769_v14  ;;  %1632 = vmatmul.bf16.gmra.mxu0 %v3060_v12  ;;  %v2628_v11 = vor.u32 %v3386_v63, %v2627_v61  ;;  %v2632_v12 = vor.u32 %v3382_v2, %v2629_v3  ;;  %v2691_v3 = vld [vmem:[%s3845_s6 + $0x90] sm:$0xf] }
 0x10d   : > { %1721 = vmatmul.bf16.gmra.mxu1 %v3064_v13 }
 0x10e   : > { %1810 = vmatmul.bf16.gmra.mxu2 %v3068_v17  ;;  %v2640_v17 = vor.u32 %v3383_v6, %v2637_v8  ;;  %v2693_v6 = vld [vmem:[%s3845_s6 + $0xb0] sm:$0xf0]  ;;  %v2699_v8 = vld [vmem:[%s3845_s6 + $0x98] sm:$0xf] }
 0x10f   : > { %1899 = vmatmul.bf16.gmra.mxu3 %v3072_v18 }
 0x111   : > { %v1771_v22 = vpop.f32.mrf.mxu2  ;;  %v1595_v25 = vpop.f32.mrf.mxu0 }
 0x112   : > { %v1860_v23 = vpop.f32.mrf.mxu3  ;;  %v1772_v24 = vadd.f32 %v1771_v22, %v1683_v19  ;;  %v1684_v27 = vpop.f32.mrf.mxu1 }
 0x113   : > { %v1685_v28 = vadd.f32 %v1684_v27, %v1595_v25 }
 0x114   : > { %v4105_v29 = vadd.f32 %v1860_v23, %v1772_v24 }
 0x119   : > { %v1773_v40 = vpop.f32.mrf.mxu2  ;;  %v1598_v46 = vpop.f32.mrf.mxu0 }
 0x11a   : > { %v1862_v41 = vpop.f32.mrf.mxu3  ;;  %v1774_v45 = vadd.f32 %v1773_v40, %v1685_v28  ;;  %v1687_v47 = vpop.f32.mrf.mxu1  ;;  %v2669_v40 = vld [vmem:[%s3845_s6 + $0x78] sm:$0xf0] }
 0x11b   : > { %v1688_v50 = vadd.f32 %v1687_v47, %v1598_v46 }
 0x11c   : > { %v4115_v51 = vadd.f32 %v1862_v41, %v1774_v45  ;;  %1637 = vmatmul.bf16.gmra.mxu0 %v3092_v42  ;;  %v2664_v45 = vor.u32 %v3390_v34, %v2661_v35 }
 0x11d   : > { %1726 = vmatmul.bf16.gmra.mxu1 %v3096_v43  ;;  %v2660_v43 = vor.u32 %v3394_v33, %v2659_v31 }
 0x11e   : > { %1815 = vmatmul.bf16.gmra.mxu2 %v3100_v48 }
 0x11f   : > { %1904 = vmatmul.bf16.gmra.mxu3 %v3104_v49  ;;  %v2668_v49 = vor.u32 %v3395_v38, %v2667_v37  ;;  %v2723_v38 = vld [vmem:[%s3845_s6 + $0xd0] sm:$0xf] }
 0x121   : > { %v1776_v52 = vpop.f32.mrf.mxu2  ;;  %v1600_v56 = vpop.f32.mrf.mxu0 }
 0x122   : > { %v1865_v53 = vpop.f32.mrf.mxu3  ;;  %v1777_v55 = vadd.f32 %v1776_v52, %v1688_v50  ;;  %v1689_v58 = vpop.f32.mrf.mxu1  ;;  %v2672_v50 = vor.u32 %v3391_v39, %v2669_v40  ;;  %v3410_v39 = vld [vmem:[%s3845_s6 + $0xec] sm:$0xf0]  ;;  %v3406_v40 = vld [vmem:[%s3845_s6 + $0xd4] sm:$0xf] }
 0x123   : > { %v1690_v59 = vadd.f32 %v1689_v58, %v1600_v56 }
 0x124   : > { %v4117_v60 = vadd.f32 %v1865_v53, %v1777_v55 }
 0x129   : > { %v1778_v9 = vpop.f32.mrf.mxu2  ;;  %v1603_v14 = vpop.f32.mrf.mxu0 }
 0x12a   : > { %v1867_v10 = vpop.f32.mrf.mxu3  ;;  %v1779_v13 = vadd.f32 %v1778_v9, %v1690_v59  ;;  %v1692_v15 = vpop.f32.mrf.mxu1  ;;  %v3403_v9 = vld [vmem:[%s3845_s6 + $0xb4] sm:$0xf0] }
 0x12b   : > { %v1693_v18 = vadd.f32 %v1692_v15, %v1603_v14  ;;  %v2692_v14 = vor.u32 %v3402_v4, %v2691_v3  ;;  %v2696_v15 = vor.u32 %v3398_v5, %v2693_v6 }
 0x12c   : > { %v4127_v19 = vadd.f32 %v1867_v10, %v1779_v13  ;;  %1918 = vmatmul.bf16.vlgmr.msrb.gmra.mxu0 %v2628_v11  ;;  %v3399_v10 = vld [vmem:[%s3845_s6 + $0x9c] sm:$0xf] }
 0x12d   : > { %2007 = vmatmul.bf16.vlgmr.msrb.gmra.mxu1 %v2632_v12  ;;  %v2701_v11 = vld [vmem:[%s3845_s6 + $0xb8] sm:$0xf0] }
 0x12e   : > { %2096 = vmatmul.bf16.vlgmr.msrb.gmra.mxu2 %v2636_v16 }
 0x12f   : > { %2185 = vmatmul.bf16.vlgmr.msrb.gmra.mxu3 %v2640_v17 }
 0x131   : > { %v1781_v22 = vpop.f32.mrf.mxu2  ;;  %v1605_v25 = vpop.f32.mrf.mxu0 }
 0x132   : > { %v1870_v23 = vpop.f32.mrf.mxu3  ;;  %v1782_v24 = vadd.f32 %v1781_v22, %v1693_v18  ;;  %v1694_v27 = vpop.f32.mrf.mxu1  ;;  %v2700_v22 = vor.u32 %v3403_v9, %v2699_v8 }
 0x133   : > { %v1695_v28 = vadd.f32 %v1694_v27, %v1605_v25 }
 0x134   : > { %v4129_v30 = vadd.f32 %v1870_v23, %v1782_v24  ;;  %v2704_v23 = vor.u32 %v3399_v10, %v2701_v11  ;;  %v2755_v11 = vld [vmem:[%s3845_s6 + $0x110] sm:$0xf] }
 0x139   : > { %v1783_v41 = vpop.f32.mrf.mxu2  ;;  %v1608_v47 = vpop.f32.mrf.mxu0 }
 0x13a   : > { %v1872_v42 = vpop.f32.mrf.mxu3  ;;  %v1784_v46 = vadd.f32 %v1783_v41, %v1695_v28  ;;  %v1697_v48 = vpop.f32.mrf.mxu1  ;;  %v2725_v41 = vld [vmem:[%s3845_s6 + $0xf0] sm:$0xf0] }
 0x13b   : > { %v1698_v52 = vadd.f32 %v1697_v48, %v1608_v47 }
 0x13c   : > { %v4139_v53 = vadd.f32 %v1872_v42, %v1784_v46  ;;  %1923 = vmatmul.bf16.gmra.mxu0 %v2660_v43  ;;  %v2731_v42 = vld [vmem:[%s3845_s6 + $0xd8] sm:$0xf]  ;;  %v2733_v46 = vld [vmem:[%s3845_s6 + $0xf8] sm:$0xf0] }
 0x13d   : > { %2012 = vmatmul.bf16.gmra.mxu1 %v2664_v45  ;;  %v3411_v43 = vld [vmem:[%s3845_s6 + $0xf4] sm:$0xf0]  ;;  %v3407_v45 = vld [vmem:[%s3845_s6 + $0xdc] sm:$0xf] }
 0x13e   : > { %2101 = vmatmul.bf16.gmra.mxu2 %v2668_v49  ;;  %v2724_v49 = vor.u32 %v3410_v39, %v2723_v38 }
 0x13f   : > { %2190 = vmatmul.bf16.gmra.mxu3 %v2672_v50  ;;  %v2728_v50 = vor.u32 %v3406_v40, %v2725_v41 }
 0x141   : > { %v1786_v55 = vpop.f32.mrf.mxu2  ;;  %v1610_v59 = vpop.f32.mrf.mxu0 }
 0x142   : > { %v1875_v56 = vpop.f32.mrf.mxu3  ;;  %v1787_v58 = vadd.f32 %v1786_v55, %v1698_v52  ;;  %v1699_v61 = vpop.f32.mrf.mxu1 }
 0x143   : > { %v1700_v63 = vadd.f32 %v1699_v61, %v1610_v59  ;;  %v2736_v59 = vor.u32 %v3407_v45, %v2733_v46 }
 0x144   : > { %v4141_v2 = vadd.f32 %v1875_v56, %v1787_v58  ;;  %v2732_v58 = vor.u32 %v3411_v43, %v2731_v42 }
 0x149   : > { %v1788_v12 = vpop.f32.mrf.mxu2  ;;  %v1613_v17 = vpop.f32.mrf.mxu0 }
 0x14a   : > { %v1877_v13 = vpop.f32.mrf.mxu3  ;;  %v1789_v16 = vadd.f32 %v1788_v12, %v1700_v63  ;;  %v1702_v18 = vpop.f32.mrf.mxu1  ;;  %v3418_v12 = vld [vmem:[%s3845_s6 + $0x12c] sm:$0xf0] }
 0x14b   : > { %v1703_v24 = vadd.f32 %v1702_v18, %v1613_v17  ;;  %v3415_v17 = vld [vmem:[%s3845_s6 + $0x11c] sm:$0xf] }
 0x14c   : > { %v4151_v25 = vadd.f32 %v1877_v13, %v1789_v16  ;;  %1928 = vmatmul.bf16.gmra.mxu0 %v2692_v14  ;;  %v3414_v13 = vld [vmem:[%s3845_s6 + $0x114] sm:$0xf]  ;;  %v3419_v16 = vld [vmem:[%s3845_s6 + $0x134] sm:$0xf0]  ;;  %v2765_v18 = vld [vmem:[%s3845_s6 + $0x138] sm:$0xf0] }
 0x14d   : > { %2017 = vmatmul.bf16.gmra.mxu1 %v2696_v15  ;;  %v2757_v14 = vld [vmem:[%s3845_s6 + $0x130] sm:$0xf0]  ;;  %v2763_v15 = vld [vmem:[%s3845_s6 + $0x118] sm:$0xf] }
 0x14e   : > { %2106 = vmatmul.bf16.gmra.mxu2 %v2700_v22 }
 0x14f   : > { %2195 = vmatmul.bf16.gmra.mxu3 %v2704_v23 }
 0x151   : > { %v1791_v27 = vpop.f32.mrf.mxu2  ;;  %v1615_v33 = vpop.f32.mrf.mxu0 }
 0x152   : > { %v1880_v28 = vpop.f32.mrf.mxu3  ;;  %v1792_v31 = vadd.f32 %v1791_v27, %v1703_v24  ;;  %v1704_v34 = vpop.f32.mrf.mxu1  ;;  %v2756_v24 = vor.u32 %v3418_v12, %v2755_v11  ;;  %v2760_v27 = vor.u32 %v3414_v13, %v2757_v14 }
 0x153   : > { %v1705_v35 = vadd.f32 %v1704_v34, %v1615_v33  ;;  %v2764_v34 = vor.u32 %v3419_v16, %v2763_v15 }
 0x154   : > { %v4153_v37 = vadd.f32 %v1880_v28, %v1792_v31 }
 0x159   : > { %v1793_v47 = vpop.f32.mrf.mxu2  ;;  %v1618_v55 = vpop.f32.mrf.mxu0 }
 0x15a   : > { %v1882_v48 = vpop.f32.mrf.mxu3  ;;  %v1794_v52 = vadd.f32 %v1793_v47, %v1705_v35  ;;  %v1707_v56 = vpop.f32.mrf.mxu1  ;;  %v2768_v35 = vor.u32 %v3415_v17, %v2765_v18 }
 0x15b   : > { %v1708_v61 = vadd.f32 %v1707_v56, %v1618_v55  ;;  %v2795_v55 = vld [vmem:[%s3845_s6 + $0x158] sm:$0xf] }
 0x15c   : > { %v4163_v63 = vadd.f32 %v1882_v48, %v1794_v52  ;;  %1933 = vmatmul.bf16.gmra.mxu0 %v2724_v49  ;;  %v2787_v48 = vld [vmem:[%s3845_s6 + $0x150] sm:$0xf]  ;;  %v2789_v52 = vld [vmem:[%s3845_s6 + $0x170] sm:$0xf0]  ;;  %v3427_v56 = vld [vmem:[%s3845_s6 + $0x174] sm:$0xf0] }
 0x15d   : > { %2022 = vmatmul.bf16.gmra.mxu1 %v2728_v50  ;;  %v3426_v49 = vld [vmem:[%s3845_s6 + $0x16c] sm:$0xf0]  ;;  %v3422_v50 = vld [vmem:[%s3845_s6 + $0x154] sm:$0xf]  ;;  %v2796_v11 = vor.u32 %v3427_v56, %v2795_v55 }
 0x15e   : > { %2111 = vmatmul.bf16.gmra.mxu2 %v2732_v58  ;;  %v3423_v58 = vld [vmem:[%s3845_s6 + $0x15c] sm:$0xf] }
 0x15f   : > { %2200 = vmatmul.bf16.gmra.mxu3 %v2736_v59  ;;  %v2797_v59 = vld [vmem:[%s3845_s6 + $0x178] sm:$0xf0] }
 0x160   : > { %v2800_v12 = vor.u32 %v3423_v58, %v2797_v59 }
 0x161   : > { %v1796_v3 = vpop.f32.mrf.mxu2  ;;  %v1620_v6 = vpop.f32.mrf.mxu0 }
 0x162   : > { %v1885_v4 = vpop.f32.mrf.mxu3  ;;  %v1797_v5 = vadd.f32 %v1796_v3, %v1708_v61  ;;  %v1709_v8 = vpop.f32.mrf.mxu1 }
 0x163   : > { %v1710_v9 = vadd.f32 %v1709_v8, %v1620_v6 }
 0x164   : > { %v4165_v10 = vadd.f32 %v1885_v4, %v1797_v5  ;;  %v2788_v4 = vor.u32 %v3426_v49, %v2787_v48  ;;  %v2792_v5 = vor.u32 %v3422_v50, %v2789_v52 }
 0x169   : > { %v1798_v22 = vpop.f32.mrf.mxu2  ;;  %v1623_v31 = vpop.f32.mrf.mxu0 }
 0x16a   : > { %v1887_v23 = vpop.f32.mrf.mxu3  ;;  %v1799_v28 = vadd.f32 %v1798_v22, %v1710_v9  ;;  %v1712_v33 = vpop.f32.mrf.mxu1 }
 0x16b   : > { %v1713_v38 = vadd.f32 %v1712_v33, %v1623_v31  ;;  %v3430_v31 = vld [vmem:[%s3845_s6 + $0x194] sm:$0xf] }
 0x16c   : > { %v4175_v39 = vadd.f32 %v1887_v23, %v1799_v28  ;;  %1938 = vmatmul.bf16.gmra.mxu0 %v2756_v24  ;;  %v3434_v28 = vld [vmem:[%s3845_s6 + $0x1ac] sm:$0xf0]  ;;  %v2821_v33 = vld [vmem:[%s3845_s6 + $0x1b0] sm:$0xf0] }
 0x16d   : > { %2027 = vmatmul.bf16.gmra.mxu1 %v2760_v27  ;;  %v2819_v27 = vld [vmem:[%s3845_s6 + $0x190] sm:$0xf] }
 0x16e   : > { %2116 = vmatmul.bf16.gmra.mxu2 %v2764_v34  ;;  %v2827_v34 = vld [vmem:[%s3845_s6 + $0x198] sm:$0xf] }
 0x16f   : > { %2205 = vmatmul.bf16.gmra.mxu3 %v2768_v35  ;;  %v3435_v35 = vld [vmem:[%s3845_s6 + $0x1b4] sm:$0xf0] }
 0x170   : > { %v2828_v50 = vor.u32 %v3435_v35, %v2827_v34 }
 0x171   : > { %v1801_v40 = vpop.f32.mrf.mxu2  ;;  %v1625_v43 = vpop.f32.mrf.mxu0 }
 0x172   : > { %v1890_v41 = vpop.f32.mrf.mxu3  ;;  %v1802_v42 = vadd.f32 %v1801_v40, %v1713_v38  ;;  %v1714_v45 = vpop.f32.mrf.mxu1  ;;  %v3431_v38 = vld [vmem:[%s3845_s6 + $0x19c] sm:$0xf] }
 0x173   : > { %v1715_v46 = vadd.f32 %v1714_v45, %v1625_v43  ;;  %v2829_v40 = vld [vmem:[%s3845_s6 + $0x1b8] sm:$0xf0]  ;;  %v2820_v43 = vor.u32 %v3434_v28, %v2819_v27  ;;  %v2824_v45 = vor.u32 %v3430_v31, %v2821_v33 }
 0x174   : > { %v4177_v47 = vadd.f32 %v1890_v41, %v1802_v42  ;;  %v2832_v52 = vor.u32 %v3431_v38, %v2829_v40 }
 0x179   : > { %v1803_v61 = vpop.f32.mrf.mxu2  ;;  %v1628_v8 = vpop.f32.mrf.mxu0 }
 0x17a   : > { %v1892_v3 = vpop.f32.mrf.mxu3  ;;  %v1804_v6 = vadd.f32 %v1803_v61, %v1715_v46  ;;  %v1717_v9 = vpop.f32.mrf.mxu1 }
 0x17b   : > { %v1718_v13 = vadd.f32 %v1717_v9, %v1628_v8  ;;  %v2851_v8 = vld [vmem:[%s3845_s6 + $0x1d0] sm:$0xf] }
 0x17c   : > { %v4187_v14 = vadd.f32 %v1892_v3, %v1804_v6  ;;  %1943 = vmatmul.bf16.gmra.mxu0 %v2788_v4  ;;  %v3442_v9 = vld [vmem:[%s3845_s6 + $0x1ec] sm:$0xf0] }
 0x17d   : > { %2032 = vmatmul.bf16.gmra.mxu1 %v2792_v5 }
 0x17e   : > { %2121 = vmatmul.bf16.gmra.mxu2 %v2796_v11  ;;  %v3438_v11 = vld [vmem:[%s3845_s6 + $0x1d4] sm:$0xf] }
 0x17f   : > { %2210 = vmatmul.bf16.gmra.mxu3 %v2800_v12  ;;  %v2853_v12 = vld [vmem:[%s3845_s6 + $0x1f0] sm:$0xf0] }
 0x180   : > { %v2856_v27 = vor.u32 %v3438_v11, %v2853_v12 }
 0x181   : > { %v1806_v15 = vpop.f32.mrf.mxu2  ;;  %v1630_v18 = vpop.f32.mrf.mxu0 }
 0x182   : > { %v1895_v16 = vpop.f32.mrf.mxu3  ;;  %v1807_v17 = vadd.f32 %v1806_v15, %v1718_v13  ;;  %v1719_v22 = vpop.f32.mrf.mxu1  ;;  %v2859_v13 = vld [vmem:[%s3845_s6 + $0x1d8] sm:$0xf] }
 0x183   : > { %v1720_v23 = vadd.f32 %v1719_v22, %v1630_v18  ;;  %v3443_v15 = vld [vmem:[%s3845_s6 + $0x1f4] sm:$0xf0] }
 0x184   : > { %v4189_v24 = vadd.f32 %v1895_v16, %v1807_v17  ;;  %v3439_v16 = vld [vmem:[%s3845_s6 + $0x1dc] sm:$0xf]  ;;  %v2860_v34 = vor.u32 %v3443_v15, %v2859_v13 }
 0x185   : > { %v2861_v17 = vld [vmem:[%s3845_s6 + $0x1f8] sm:$0xf0] }
 0x186   : > { %v2864_v35 = vor.u32 %v3439_v16, %v2861_v17 }
 0x189   : > { %v1808_v41 = vpop.f32.mrf.mxu2  ;;  %v1633_v48 = vpop.f32.mrf.mxu0 }
 0x18a   : > { %v1897_v42 = vpop.f32.mrf.mxu3  ;;  %v1809_v46 = vadd.f32 %v1808_v41, %v1720_v23  ;;  %v1722_v49 = vpop.f32.mrf.mxu1  ;;  %v2852_v23 = vor.u32 %v3442_v9, %v2851_v8 }
 0x18b   : > { %v1723_v55 = vadd.f32 %v1722_v49, %v1633_v48 }
 0x18c   : > { %v4199_v56 = vadd.f32 %v1897_v42, %v1809_v46  ;;  %1948 = vmatmul.bf16.gmra.mxu0 %v2820_v43 }
 0x18d   : > { %2037 = vmatmul.bf16.gmra.mxu1 %v2824_v45 }
 0x18e   : > { %2126 = vmatmul.bf16.gmra.mxu2 %v2828_v50  ;;  %v2883_v50 = vld [vmem:[%s3845_s6 + $0x210] sm:$0xf] }
 0x18f   : > { %2215 = vmatmul.bf16.gmra.mxu3 %v2832_v52  ;;  %v3450_v52 = vld [vmem:[%s3845_s6 + $0x22c] sm:$0xf0] }
 0x190   : > { %v2884_v9 = vor.u32 %v3450_v52, %v2883_v50  ;;  %v2925_v50 = vld [vmem:[%s3845_s6 + $0x278] sm:$0xf0] }
 0x191   : > { %v1811_v58 = vpop.f32.mrf.mxu2  ;;  %v1635_v3 = vpop.f32.mrf.mxu0 }
 0x192   : > { %v1900_v59 = vpop.f32.mrf.mxu3  ;;  %v1812_v61 = vadd.f32 %v1811_v58, %v1723_v55  ;;  %v1724_v4 = vpop.f32.mrf.mxu1  ;;  %v3446_v55 = vld [vmem:[%s3845_s6 + $0x214] sm:$0xf] }
 0x193   : > { %v1725_v5 = vadd.f32 %v1724_v4, %v1635_v3  ;;  %v2885_v58 = vld [vmem:[%s3845_s6 + $0x230] sm:$0xf0]  ;;  %v3447_v3 = vld [vmem:[%s3845_s6 + $0x21c] sm:$0xf] }
 0x194   : > { %v4201_v6 = vadd.f32 %v1900_v59, %v1812_v61  ;;  %v2891_v59 = vld [vmem:[%s3845_s6 + $0x218] sm:$0xf]  ;;  %v2893_v4 = vld [vmem:[%s3845_s6 + $0x238] sm:$0xf0]  ;;  %v2888_v11 = vor.u32 %v3446_v55, %v2885_v58 }
 0x195   : > { %v3451_v61 = vld [vmem:[%s3845_s6 + $0x234] sm:$0xf0]  ;;  %v2896_v17 = vor.u32 %v3447_v3, %v2893_v4 }
 0x196   : > { %v2892_v16 = vor.u32 %v3451_v61, %v2891_v59 }
 0x199   : > { %v1813_v18 = vpop.f32.mrf.mxu2  ;;  %v1638_v31 = vpop.f32.mrf.mxu0 }
 0x19a   : > { %v1902_v22 = vpop.f32.mrf.mxu3  ;;  %v1814_v28 = vadd.f32 %v1813_v18, %v1725_v5  ;;  %v1727_v33 = vpop.f32.mrf.mxu1 }
 0x19b   : > { %v1728_v38 = vadd.f32 %v1727_v33, %v1638_v31 }
 0x19c   : > { %v4211_v40 = vadd.f32 %v1902_v22, %v1814_v28  ;;  %1953 = vmatmul.bf16.gmra.mxu0 %v2852_v23 }
 0x19d   : > { %2042 = vmatmul.bf16.gmra.mxu1 %v2856_v27 }
 0x19e   : > { %2131 = vmatmul.bf16.gmra.mxu2 %v2860_v34 }
 0x19f   : > { %2220 = vmatmul.bf16.gmra.mxu3 %v2864_v35 }
 0x1a1   : > { %v1816_v41 = vpop.f32.mrf.mxu2  ;;  %v1640_v45 = vpop.f32.mrf.mxu0 }
 0x1a2   : > { %v1905_v42 = vpop.f32.mrf.mxu3  ;;  %v1817_v43 = vadd.f32 %v1816_v41, %v1728_v38  ;;  %v1729_v46 = vpop.f32.mrf.mxu1  ;;  %v2915_v38 = vld [vmem:[%s3845_s6 + $0x250] sm:$0xf] }
 0x1a3   : > { %v1730_v48 = vadd.f32 %v1729_v46, %v1640_v45  ;;  %v3458_v41 = vld [vmem:[%s3845_s6 + $0x26c] sm:$0xf0]  ;;  %v2923_v45 = vld [vmem:[%s3845_s6 + $0x258] sm:$0xf] }
 0x1a4   : > { %v4213_v49 = vadd.f32 %v1905_v42, %v1817_v43  ;;  %v3454_v42 = vld [vmem:[%s3845_s6 + $0x254] sm:$0xf]  ;;  %v3459_v46 = vld [vmem:[%s3845_s6 + $0x274] sm:$0xf0]  ;;  %v2916_v59 = vor.u32 %v3458_v41, %v2915_v38  ;;  %v3466_v38 = vld [vmem:[%s3845_s6 + $0x2ac] sm:$0xf0] }
 0x1a5   : > { %v2917_v43 = vld [vmem:[%s3845_s6 + $0x270] sm:$0xf0] }
 0x1a6   : > { %v2920_v61 = vor.u32 %v3454_v42, %v2917_v43  ;;  %v3462_v43 = vld [vmem:[%s3845_s6 + $0x294] sm:$0xf] }
 0x1a9   : > { %v1818_v5 = vpop.f32.mrf.mxu2  ;;  %v1919_v13 = vpop.f32.mrf.mxu0 }
 0x1aa   : > { %v1907_v8 = vpop.f32.mrf.mxu3  ;;  %v1819_v12 = vadd.f32 %v1818_v5, %v1730_v48  ;;  %v2008_v15 = vpop.f32.mrf.mxu1  ;;  %v1920_v22 = vadd.f32 %v1919_v13, %v4006_v44  ;;  %v3455_v48 = vld [vmem:[%s3845_s6 + $0x25c] sm:$0xf]  ;;  %v2924_v5 = vor.u32 %v3459_v46, %v2923_v45  ;;  %v2949_v45 = vld [vmem:[%s3845_s6 + $0x2b0] sm:$0xf0]  ;;  %v2955_v46 = vld [vmem:[%s3845_s6 + $0x298] sm:$0xf] }
 0x1ac   : > { %v4223_v18 = vadd.f32 %v1907_v8, %v1819_v12  ;;  %1958 = vmatmul.bf16.gmra.mxu0 %v2884_v9  ;;  %v2009_v33 = vadd.f32 %v2008_v15, %v1920_v22  ;;  %v2928_v8 = vor.u32 %v3455_v48, %v2925_v50  ;;  %v3467_v48 = vld [vmem:[%s3845_s6 + $0x2b4] sm:$0xf0]  ;;  %v3463_v50 = vld [vmem:[%s3845_s6 + $0x29c] sm:$0xf] }
 0x1ad   : > { %2047 = vmatmul.bf16.gmra.mxu1 %v2888_v11 }
 0x1ae   : > { %2136 = vmatmul.bf16.gmra.mxu2 %v2892_v16 }
 0x1af   : > { %2225 = vmatmul.bf16.gmra.mxu3 %v2896_v17 }
 0x1b1   : > { %v2097_v23 = vpop.f32.mrf.mxu2  ;;  %v1921_v28 = vpop.f32.mrf.mxu0 }
 0x1b2   : > { %v2186_v27 = vpop.f32.mrf.mxu3  ;;  %v2010_v31 = vpop.f32.mrf.mxu1  ;;  %v1922_v34 = vadd.f32 %v1921_v28, %v4019_v0  ;;  %v2098_v35 = vadd.f32 %v2097_v23, %v2009_v33 }
 0x1b4   : > { %v2011_v52 = vadd.f32 %v2010_v31, %v1922_v34  ;;  %v2187_v55 = vadd.f32 %v2186_v27, %v2098_v35  ;;  %v2947_v35 = vld [vmem:[%s3845_s6 + $0x290] sm:$0xf] }
 0x1b6   : > { %v2368_v12 = vmul.f32 %v2187_v55, %v2187_v55 }
 0x1b9   : > { %v2099_v44 = vpop.f32.mrf.mxu2  ;;  %v1924_v4 = vpop.f32.mrf.mxu0 }
 0x1ba   : > { %v2188_v58 = vpop.f32.mrf.mxu3  ;;  %v2100_v3 = vadd.f32 %v2099_v44, %v2011_v52  ;;  %v2013_v0 = vpop.f32.mrf.mxu1  ;;  %v1925_v11 = vadd.f32 %v1924_v4, %v4021_v7  ;;  %v2957_v52 = vld [vmem:[%s3845_s6 + $0x2b8] sm:$0xf0] }
 0x1bc   : > { %v2189_v9 = vadd.f32 %v2188_v58, %v2100_v3  ;;  %1963 = vmatmul.bf16.gmra.mxu0 %v2916_v59  ;;  %v2014_v17 = vadd.f32 %v2013_v0, %v1925_v11  ;;  %v2952_v3 = vor.u32 %v3462_v43, %v2949_v45  ;;  %v2987_v43 = vld [vmem:[%s3845_s6 + $0x2d8] sm:$0xf] }
 0x1bd   : > { %2052 = vmatmul.bf16.gmra.mxu1 %v2920_v61  ;;  %v2948_v61 = vor.u32 %v3466_v38, %v2947_v35  ;;  %v3475_v45 = vld [vmem:[%s3845_s6 + $0x2f4] sm:$0xf0] }
 0x1be   : > { %v3575_v13 = vpack.c.bf16 %v2189_v9, %v2187_v55  ;;  %v2330_v15 = vadd.f32 %v2189_v9, %v2187_v55  ;;  %v2369_v16 = vmul.f32 %v2189_v9, %v2189_v9  ;;  %2141 = vmatmul.bf16.gmra.mxu2 %v2924_v5  ;;  %v2956_v5 = vor.u32 %v3467_v48, %v2955_v46  ;;  %v3471_v46 = vld [vmem:[%s3845_s6 + $0x2dc] sm:$0xf] }
 0x1bf   : > { %2230 = vmatmul.bf16.gmra.mxu3 %v2928_v8  ;;  %v2960_v8 = vor.u32 %v3463_v50, %v2957_v52  ;;  %v2989_v48 = vld [vmem:[%s3845_s6 + $0x2f8] sm:$0xf0] }
 0x1c0   : > { %3576 = vst [vmem:[%s4240_s5] sm:$0xff] %v3575_v13   ;;  %v2400_v7 = vadd.f32 %v2369_v16, %v2368_v12 }
 0x1c1   : > { %v2102_v22 = vpop.f32.mrf.mxu2  ;;  %v1926_v28 = vpop.f32.mrf.mxu0 }
 0x1c2   : > { %v2191_v23 = vpop.f32.mrf.mxu3  ;;  %v2103_v27 = vadd.f32 %v2102_v22, %v2014_v17  ;;  %v2015_v31 = vpop.f32.mrf.mxu1  ;;  %v1927_v34 = vadd.f32 %v1926_v28, %v4031_v26 }
 0x1c4   : > { %v2192_v33 = vadd.f32 %v2191_v23, %v2103_v27  ;;  %v2016_v44 = vadd.f32 %v2015_v31, %v1927_v34  ;;  %v3474_v34 = vld [vmem:[%s3845_s6 + $0x2ec] sm:$0xf0] }
 0x1c6   : > { %v2331_v41 = vadd.f32 %v2330_v15, %v2192_v33  ;;  %v2370_v42 = vmul.f32 %v2192_v33, %v2192_v33 }
 0x1c8   : > { %v2401_v55 = vadd.f32 %v2400_v7, %v2370_v42  ;;  %v2981_v42 = vld [vmem:[%s3845_s6 + $0x2f0] sm:$0xf0] }
 0x1c9   : > { %v2104_v58 = vpop.f32.mrf.mxu2  ;;  %v1929_v0 = vpop.f32.mrf.mxu0 }
 0x1ca   : > { %v2193_v59 = vpop.f32.mrf.mxu3  ;;  %v2105_v4 = vadd.f32 %v2104_v58, %v2016_v44  ;;  %v2018_v26 = vpop.f32.mrf.mxu1  ;;  %v1930_v11 = vadd.f32 %v1929_v0, %v4042_v36  ;;  %v2992_v0 = vor.u32 %v3471_v46, %v2989_v48 }
 0x1cc   : > { %v2194_v9 = vadd.f32 %v2193_v59, %v2105_v4  ;;  %1968 = vmatmul.bf16.gmra.mxu0 %v2948_v61  ;;  %v2019_v7 = vadd.f32 %v2018_v26, %v1930_v11  ;;  %v2988_v4 = vor.u32 %v3475_v45, %v2987_v43 }
 0x1cd   : > { %2057 = vmatmul.bf16.gmra.mxu1 %v2952_v3 }
 0x1ce   : > { %v3580_v12 = vpack.c.bf16 %v2194_v9, %v2192_v33  ;;  %v2332_v13 = vadd.f32 %v2331_v41, %v2194_v9  ;;  %v2371_v15 = vmul.f32 %v2194_v9, %v2194_v9  ;;  %2146 = vmatmul.bf16.gmra.mxu2 %v2956_v5  ;;  %v2979_v33 = vld [vmem:[%s3845_s6 + $0x2d0] sm:$0xf]  ;;  %v3470_v41 = vld [vmem:[%s3845_s6 + $0x2d4] sm:$0xf] }
 0x1cf   : > { %2235 = vmatmul.bf16.gmra.mxu3 %v2960_v8  ;;  %v2980_v58 = vor.u32 %v3474_v34, %v2979_v33  ;;  %v2984_v59 = vor.u32 %v3470_v41, %v2981_v42  ;;  %v3478_v33 = vld [vmem:[%s3845_s6 + $0x314] sm:$0xf]  ;;  %v3479_v41 = vld [vmem:[%s3845_s6 + $0x31c] sm:$0xf] }
 0x1d0   : > { %3652 = vst [vmem:[%s4240_s5 + $0x8] sm:$0xff] %v3580_v12   ;;  %v2402_v16 = vadd.f32 %v2401_v55, %v2371_v15  ;;  %v3013_v34 = vld [vmem:[%s3845_s6 + $0x330] sm:$0xf0]  ;;  %v3021_v42 = vld [vmem:[%s3845_s6 + $0x338] sm:$0xf0] }
 0x1d1   : > { %v2107_v17 = vpop.f32.mrf.mxu2  ;;  %v1931_v23 = vpop.f32.mrf.mxu0 }
 0x1d2   : > { %v2196_v36 = vpop.f32.mrf.mxu3  ;;  %v2108_v22 = vadd.f32 %v2107_v17, %v2019_v7  ;;  %v2020_v27 = vpop.f32.mrf.mxu1  ;;  %v1932_v31 = vadd.f32 %v1931_v23, %v4055_v57  ;;  %v3011_v23 = vld [vmem:[%s3845_s6 + $0x310] sm:$0xf] }
 0x1d4   : > { %v2197_v28 = vadd.f32 %v2196_v36, %v2108_v22  ;;  %v2021_v52 = vadd.f32 %v2020_v27, %v1932_v31  ;;  %v3482_v27 = vld [vmem:[%s3845_s6 + $0x32c] sm:$0xf0] }
 0x1d6   : > { %v2333_v35 = vadd.f32 %v2332_v13, %v2197_v28  ;;  %v2372_v38 = vmul.f32 %v2197_v28, %v2197_v28 }
 0x1d8   : > { %v2403_v50 = vadd.f32 %v2402_v16, %v2372_v38  ;;  %v3483_v38 = vld [vmem:[%s3845_s6 + $0x334] sm:$0xf0] }
 0x1d9   : > { %v2109_v55 = vpop.f32.mrf.mxu2  ;;  %v1934_v3 = vpop.f32.mrf.mxu0 }
 0x1da   : > { %v2198_v44 = vpop.f32.mrf.mxu3  ;;  %v2110_v61 = vadd.f32 %v2109_v55, %v2021_v52  ;;  %v2023_v57 = vpop.f32.mrf.mxu1  ;;  %v1935_v5 = vadd.f32 %v1934_v3, %v4057_v1  ;;  %v3016_v52 = vor.u32 %v3478_v33, %v3013_v34 }
 0x1dc   : > { %v2199_v26 = vadd.f32 %v2198_v44, %v2110_v61  ;;  %1973 = vmatmul.bf16.gmra.mxu0 %v2980_v58  ;;  %v2024_v13 = vadd.f32 %v2023_v57, %v1935_v5 }
 0x1dd   : > { %2062 = vmatmul.bf16.gmra.mxu1 %v2984_v59  ;;  %v3024_v59 = vor.u32 %v3479_v41, %v3021_v42 }
 0x1de   : > { %v3585_v8 = vpack.c.bf16 %v2199_v26, %v2197_v28  ;;  %v2334_v9 = vadd.f32 %v2333_v35, %v2199_v26  ;;  %v2373_v11 = vmul.f32 %v2199_v26, %v2199_v26  ;;  %2151 = vmatmul.bf16.gmra.mxu2 %v2988_v4  ;;  %v3019_v35 = vld [vmem:[%s3845_s6 + $0x318] sm:$0xf] }
 0x1df   : > { %2240 = vmatmul.bf16.gmra.mxu3 %v2992_v0  ;;  %v3020_v58 = vor.u32 %v3483_v38, %v3019_v35 }
 0x1e0   : > { %3653 = vst [vmem:[%s4240_s5 + $0x10] sm:$0xff] %v3585_v8   ;;  %v2404_v12 = vadd.f32 %v2403_v50, %v2373_v11  ;;  %v3012_v50 = vor.u32 %v3482_v27, %v3011_v23  ;;  %v3051_v23 = vld [vmem:[%s3845_s6 + $0x358] sm:$0xf] }
 0x1e1   : > { %v2112_v15 = vpop.f32.mrf.mxu2  ;;  %v1936_v7 = vpop.f32.mrf.mxu0  ;;  %v3491_v27 = vld [vmem:[%s3845_s6 + $0x374] sm:$0xf0] }
 0x1e2   : > { %v2201_v1 = vpop.f32.mrf.mxu3  ;;  %v2113_v16 = vadd.f32 %v2112_v15, %v2024_v13  ;;  %v2025_v17 = vpop.f32.mrf.mxu1  ;;  %v1937_v22 = vadd.f32 %v1936_v7, %v4067_v21 }
 0x1e4   : > { %v2202_v36 = vadd.f32 %v2201_v1, %v2113_v16  ;;  %v2026_v45 = vadd.f32 %v2025_v17, %v1937_v22  ;;  %v3043_v1 = vld [vmem:[%s3845_s6 + $0x350] sm:$0xf]  ;;  %v3045_v22 = vld [vmem:[%s3845_s6 + $0x370] sm:$0xf0] }
 0x1e5   : > { %v3490_v16 = vld [vmem:[%s3845_s6 + $0x36c] sm:$0xf0] }
 0x1e6   : > { %v2335_v28 = vadd.f32 %v2334_v9, %v2202_v36  ;;  %v2374_v31 = vmul.f32 %v2202_v36, %v2202_v36  ;;  %v3044_v41 = vor.u32 %v3490_v16, %v3043_v1  ;;  %v3495_v1 = vld [vmem:[%s3845_s6 + $0x39c] sm:$0xf] }
 0x1e7   : > { %v3085_v16 = vld [vmem:[%s3845_s6 + $0x3b8] sm:$0xf0] }
 0x1e8   : > { %v2405_v43 = vadd.f32 %v2404_v12, %v2374_v31  ;;  %v3053_v31 = vld [vmem:[%s3845_s6 + $0x378] sm:$0xf0] }
 0x1e9   : > { %v2114_v46 = vpop.f32.mrf.mxu2  ;;  %v1939_v44 = vpop.f32.mrf.mxu0 }
 0x1ea   : > { %v2203_v48 = vpop.f32.mrf.mxu3  ;;  %v2115_v55 = vadd.f32 %v2114_v46, %v2026_v45  ;;  %v2028_v21 = vpop.f32.mrf.mxu1  ;;  %v1940_v3 = vadd.f32 %v1939_v44, %v4078_v32  ;;  %v3052_v46 = vor.u32 %v3491_v27, %v3051_v23 }
 0x1ec   : > { %v2204_v61 = vadd.f32 %v2203_v48, %v2115_v55  ;;  %1978 = vmatmul.bf16.gmra.mxu0 %v3012_v50  ;;  %v2029_v5 = vadd.f32 %v2028_v21, %v1940_v3 }
 0x1ed   : > { %2067 = vmatmul.bf16.gmra.mxu1 %v3016_v52 }
 0x1ee   : > { %v3590_v57 = vpack.c.bf16 %v2204_v61, %v2202_v36  ;;  %v2336_v4 = vadd.f32 %v2335_v28, %v2204_v61  ;;  %v2375_v0 = vmul.f32 %v2204_v61, %v2204_v61  ;;  %2156 = vmatmul.bf16.gmra.mxu2 %v3020_v58  ;;  %v3486_v36 = vld [vmem:[%s3845_s6 + $0x354] sm:$0xf]  ;;  %v3487_v28 = vld [vmem:[%s3845_s6 + $0x35c] sm:$0xf] }
 0x1ef   : > { %2245 = vmatmul.bf16.gmra.mxu3 %v3024_v59  ;;  %v3048_v42 = vor.u32 %v3486_v36, %v3045_v22  ;;  %v3056_v48 = vor.u32 %v3487_v28, %v3053_v31 }
 0x1f0   : > { %3654 = vst [vmem:[%s4240_s5 + $0x18] sm:$0xff] %v3590_v57   ;;  %v2406_v26 = vadd.f32 %v2405_v43, %v2375_v0 }
 0x1f1   : > { %v2117_v8 = vpop.f32.mrf.mxu2  ;;  %v1941_v11 = vpop.f32.mrf.mxu0 }
 0x1f2   : > { %v2206_v32 = vpop.f32.mrf.mxu3  ;;  %v2118_v9 = vadd.f32 %v2117_v8, %v2029_v5  ;;  %v2030_v12 = vpop.f32.mrf.mxu1  ;;  %v1942_v15 = vadd.f32 %v1941_v11, %v4091_v54  ;;  %v3075_v5 = vld [vmem:[%s3845_s6 + $0x390] sm:$0xf]  ;;  %v3494_v11 = vld [vmem:[%s3845_s6 + $0x394] sm:$0xf] }
 0x1f3   : > { %v3498_v8 = vld [vmem:[%s3845_s6 + $0x3ac] sm:$0xf0] }
 0x1f4   : > { %v2207_v13 = vadd.f32 %v2206_v32, %v2118_v9  ;;  %v2031_v34 = vadd.f32 %v2030_v12, %v1942_v15  ;;  %v3077_v12 = vld [vmem:[%s3845_s6 + $0x3b0] sm:$0xf0]  ;;  %v3499_v15 = vld [vmem:[%s3845_s6 + $0x3b4] sm:$0xf0]  ;;  %v3076_v23 = vor.u32 %v3498_v8, %v3075_v5 }
 0x1f5   : > { %v3080_v27 = vor.u32 %v3494_v11, %v3077_v12 }
 0x1f6   : > { %v2337_v7 = vadd.f32 %v2336_v4, %v2207_v13  ;;  %v2376_v17 = vmul.f32 %v2207_v13, %v2207_v13 }
 0x1f8   : > { %v2407_v33 = vadd.f32 %v2406_v26, %v2376_v17 }
 0x1f9   : > { %v2119_v35 = vpop.f32.mrf.mxu2  ;;  %v1944_v45 = vpop.f32.mrf.mxu0 }
 0x1fa   : > { %v2208_v38 = vpop.f32.mrf.mxu3  ;;  %v2120_v43 = vadd.f32 %v2119_v35, %v2031_v34  ;;  %v2033_v54 = vpop.f32.mrf.mxu1  ;;  %v1945_v52 = vadd.f32 %v1944_v45, %v4093_v62  ;;  %v3088_v34 = vor.u32 %v3495_v1, %v3085_v16 }
 0x1fc   : > { %v2209_v50 = vadd.f32 %v2208_v38, %v2120_v43  ;;  %1983 = vmatmul.bf16.gmra.mxu0 %v3044_v41  ;;  %v2034_v59 = vadd.f32 %v2033_v54, %v1945_v52 }
 0x1fd   : > { %2072 = vmatmul.bf16.gmra.mxu1 %v3048_v42 }
 0x1fe   : > { %v3595_v55 = vpack.c.bf16 %v2209_v50, %v2207_v13  ;;  %v2338_v44 = vadd.f32 %v2337_v7, %v2209_v50  ;;  %v2377_v21 = vmul.f32 %v2209_v50, %v2209_v50  ;;  %2161 = vmatmul.bf16.gmra.mxu2 %v3052_v46  ;;  %v3083_v13 = vld [vmem:[%s3845_s6 + $0x398] sm:$0xf] }
 0x1ff   : > { %2250 = vmatmul.bf16.gmra.mxu3 %v3056_v48 }
 0x200   : > { %3655 = vst [vmem:[%s4240_s5 + $0x20] sm:$0xff] %v3595_v55   ;;  %v2408_v58 = vadd.f32 %v2407_v33, %v2377_v21  ;;  %v3084_v33 = vor.u32 %v3499_v15, %v3083_v13  ;;  %v3107_v21 = vld [vmem:[%s3845_s6 + $0x3d0] sm:$0xf] }
 0x201   : > { %v2122_v61 = vpop.f32.mrf.mxu2  ;;  %v1946_v57 = vpop.f32.mrf.mxu0 }
 0x202   : > { %v2211_v62 = vpop.f32.mrf.mxu3  ;;  %v2123_v3 = vadd.f32 %v2122_v61, %v2034_v59  ;;  %v2035_v4 = vpop.f32.mrf.mxu1  ;;  %v1947_v26 = vadd.f32 %v1946_v57, %v4103_v20  ;;  %v3115_v57 = vld [vmem:[%s3845_s6 + $0x3d8] sm:$0xf] }
 0x204   : > { %v2212_v0 = vadd.f32 %v2211_v62, %v2123_v3  ;;  %v2036_v17 = vadd.f32 %v2035_v4, %v1947_v26  ;;  %v3502_v62 = vld [vmem:[%s3845_s6 + $0x3d4] sm:$0xf]  ;;  %v3507_v4 = vld [vmem:[%s3845_s6 + $0x3f4] sm:$0xf0]  ;;  %v3117_v26 = vld [vmem:[%s3845_s6 + $0x3f8] sm:$0xf0] }
 0x205   : > { %v3109_v3 = vld [vmem:[%s3845_s6 + $0x3f0] sm:$0xf0]  ;;  %v3116_v1 = vor.u32 %v3507_v4, %v3115_v57 }
 0x206   : > { %v2339_v32 = vadd.f32 %v2338_v44, %v2212_v0  ;;  %v2378_v9 = vmul.f32 %v2212_v0, %v2212_v0  ;;  %v3112_v12 = vor.u32 %v3502_v62, %v3109_v3 }
 0x208   : > { %v2409_v7 = vadd.f32 %v2408_v58, %v2378_v9  ;;  %v3506_v58 = vld [vmem:[%s3845_s6 + $0x3ec] sm:$0xf0] }
 0x209   : > { %v2124_v36 = vpop.f32.mrf.mxu2  ;;  %v1949_v31 = vpop.f32.mrf.mxu0  ;;  %v3108_v11 = vor.u32 %v3506_v58, %v3107_v21 }
 0x20a   : > { %v2213_v22 = vpop.f32.mrf.mxu3  ;;  %v2125_v28 = vadd.f32 %v2124_v36, %v2036_v17  ;;  %v2038_v20 = vpop.f32.mrf.mxu1  ;;  %v1950_v38 = vadd.f32 %v1949_v31, %v4105_v29 }
 0x20c   : > { %v2214_v35 = vadd.f32 %v2213_v22, %v2125_v28  ;;  %1988 = vmatmul.bf16.gmra.mxu0 %v3076_v23  ;;  %v2039_v54 = vadd.f32 %v2038_v20, %v1950_v38 }
 0x20d   : > { %2077 = vmatmul.bf16.gmra.mxu1 %v3080_v27 }
 0x20e   : > { %v3600_v41 = vpack.c.bf16 %v2214_v35, %v2212_v0  ;;  %v2340_v42 = vadd.f32 %v2339_v32, %v2214_v35  ;;  %v2379_v43 = vmul.f32 %v2214_v35, %v2214_v35  ;;  %2166 = vmatmul.bf16.gmra.mxu2 %v3084_v33  ;;  %v3503_v0 = vld [vmem:[%s3845_s6 + $0x3dc] sm:$0xf] }
 0x20f   : > { %2255 = vmatmul.bf16.gmra.mxu3 %v3088_v34  ;;  %v3120_v16 = vor.u32 %v3503_v0, %v3117_v26 }
 0x210   : > { %3656 = vst [vmem:[%s4240_s5 + $0x28] sm:$0xff] %v3600_v41   ;;  %v2410_v45 = vadd.f32 %v2409_v7, %v2379_v43 }
 0x211   : > { %v2127_v46 = vpop.f32.mrf.mxu2  ;;  %v1951_v50 = vpop.f32.mrf.mxu0 }
 0x212   : > { %v2216_v29 = vpop.f32.mrf.mxu3  ;;  %v2128_v48 = vadd.f32 %v2127_v46, %v2039_v54  ;;  %v2040_v52 = vpop.f32.mrf.mxu1  ;;  %v1952_v44 = vadd.f32 %v1951_v50, %v4115_v51 }
 0x214   : > { %v2217_v55 = vadd.f32 %v2216_v29, %v2128_v48  ;;  %v2041_v8 = vadd.f32 %v2040_v52, %v1952_v44 }
 0x216   : > { %v2341_v59 = vadd.f32 %v2340_v42, %v2217_v55  ;;  %v2380_v61 = vmul.f32 %v2217_v55, %v2217_v55 }
 0x218   : > { %v2411_v5 = vadd.f32 %v2410_v45, %v2380_v61 }
 0x219   : > { %v2129_v32 = vpop.f32.mrf.mxu2  ;;  %v1954_v15 = vpop.f32.mrf.mxu0 }
 0x21a   : > { %v2218_v9 = vpop.f32.mrf.mxu3  ;;  %v2130_v13 = vadd.f32 %v2129_v32, %v2041_v8  ;;  %v2043_v51 = vpop.f32.mrf.mxu1  ;;  %v1955_v17 = vadd.f32 %v1954_v15, %v4117_v60 }
 0x21c   : > { %v2219_v7 = vadd.f32 %v2218_v9, %v2130_v13  ;;  %1993 = vmatmul.bf16.gmra.mxu0 %v3108_v11  ;;  %v2044_v28 = vadd.f32 %v2043_v51, %v1955_v17 }
 0x21d   : > { %2082 = vmatmul.bf16.gmra.mxu1 %v3112_v12 }
 0x21e   : > { %v3605_v36 = vpack.c.bf16 %v2219_v7, %v2217_v55  ;;  %v2342_v22 = vadd.f32 %v2341_v59, %v2219_v7  ;;  %v2381_v23 = vmul.f32 %v2219_v7, %v2219_v7  ;;  %2171 = vmatmul.bf16.gmra.mxu2 %v3116_v1 }
 0x21f   : > { %2260 = vmatmul.bf16.gmra.mxu3 %v3120_v16 }
 0x220   : > { %3657 = vst [vmem:[%s4240_s5 + $0x30] sm:$0xff] %v3605_v36   ;;  %v2412_v27 = vadd.f32 %v2411_v5, %v2381_v23 }
 0x221   : > { %v2132_v31 = vpop.f32.mrf.mxu2  ;;  %v1956_v34 = vpop.f32.mrf.mxu0 }
 0x222   : > { %v2221_v20 = vpop.f32.mrf.mxu3  ;;  %v2133_v33 = vadd.f32 %v2132_v31, %v2044_v28  ;;  %v2045_v35 = vpop.f32.mrf.mxu1  ;;  %v1957_v41 = vadd.f32 %v1956_v34, %v4127_v19 }
 0x224   : > { %v2222_v38 = vadd.f32 %v2221_v20, %v2133_v33  ;;  %v2046_v45 = vadd.f32 %v2045_v35, %v1957_v41 }
 0x226   : > { %v2343_v60 = vadd.f32 %v2342_v22, %v2222_v38  ;;  %v2382_v42 = vmul.f32 %v2222_v38, %v2222_v38 }
 0x228   : > { %v2413_v43 = vadd.f32 %v2412_v27, %v2382_v42 }
 0x229   : > { %v2134_v54 = vpop.f32.mrf.mxu2  ;;  %v1959_v48 = vpop.f32.mrf.mxu0 }
 0x22a   : > { %v2223_v46 = vpop.f32.mrf.mxu3  ;;  %v2135_v29 = vadd.f32 %v2134_v54, %v2046_v45  ;;  %v2048_v50 = vpop.f32.mrf.mxu1  ;;  %v1960_v55 = vadd.f32 %v1959_v48, %v4129_v30 }
 0x22c   : > { %v2224_v52 = vadd.f32 %v2223_v46, %v2135_v29  ;;  %v2049_v61 = vadd.f32 %v2048_v50, %v1960_v55 }
 0x22e   : > { %v3610_v44 = vpack.c.bf16 %v2224_v52, %v2222_v38  ;;  %v2344_v21 = vadd.f32 %v2343_v60, %v2224_v52  ;;  %v2383_v58 = vmul.f32 %v2224_v52, %v2224_v52 }
 0x230   : > { %3658 = vst [vmem:[%s4240_s5 + $0x38] sm:$0xff] %v3610_v44   ;;  %v2414_v59 = vadd.f32 %v2413_v43, %v2383_v58 }
 0x231   : > { %v2137_v62 = vpop.f32.mrf.mxu2  ;;  %v1961_v57 = vpop.f32.mrf.mxu0 }
 0x232   : > { %v2226_v19 = vpop.f32.mrf.mxu3  ;;  %v2138_v3 = vadd.f32 %v2137_v62, %v2049_v61  ;;  %v2050_v4 = vpop.f32.mrf.mxu1  ;;  %v1962_v26 = vadd.f32 %v1961_v57, %v4139_v53 }
 0x234   : > { %v2227_v0 = vadd.f32 %v2226_v19, %v2138_v3  ;;  %v2051_v9 = vadd.f32 %v2050_v4, %v1962_v26 }
 0x236   : > { %v2345_v5 = vadd.f32 %v2344_v21, %v2227_v0  ;;  %v2384_v8 = vmul.f32 %v2227_v0, %v2227_v0 }
 0x238   : > { %v2415_v32 = vadd.f32 %v2414_v59, %v2384_v8 }
 0x239   : > { %v2139_v30 = vpop.f32.mrf.mxu2  ;;  %v1964_v13 = vpop.f32.mrf.mxu0 }
 0x23a   : > { %v2228_v11 = vpop.f32.mrf.mxu3  ;;  %v2140_v12 = vadd.f32 %v2139_v30, %v2051_v9  ;;  %v2053_v15 = vpop.f32.mrf.mxu1  ;;  %v1965_v1 = vadd.f32 %v1964_v13, %v4141_v2 }
 0x23c   : > { %v2229_v51 = vadd.f32 %v2228_v11, %v2140_v12  ;;  %v2054_v22 = vadd.f32 %v2053_v15, %v1965_v1 }
 0x23e   : > { %v3615_v16 = vpack.c.bf16 %v2229_v51, %v2227_v0  ;;  %v2346_v7 = vadd.f32 %v2345_v5, %v2229_v51  ;;  %v2385_v17 = vmul.f32 %v2229_v51, %v2229_v51 }
 0x240   : > { %3659 = vst [vmem:[%s4240_s5 + $0x40] sm:$0xff] %v3615_v16   ;;  %v2416_v36 = vadd.f32 %v2415_v32, %v2385_v17 }
 0x241   : > { %v2142_v23 = vpop.f32.mrf.mxu2  ;;  %v1966_v28 = vpop.f32.mrf.mxu0 }
 0x242   : > { %v2231_v53 = vpop.f32.mrf.mxu3  ;;  %v2143_v27 = vadd.f32 %v2142_v23, %v2054_v22  ;;  %v2055_v31 = vpop.f32.mrf.mxu1  ;;  %v1967_v33 = vadd.f32 %v1966_v28, %v4151_v25 }
 0x244   : > { %v2232_v20 = vadd.f32 %v2231_v53, %v2143_v27  ;;  %v2056_v41 = vadd.f32 %v2055_v31, %v1967_v33 }
 0x246   : > { %v2347_v34 = vadd.f32 %v2346_v7, %v2232_v20  ;;  %v2386_v35 = vmul.f32 %v2232_v20, %v2232_v20 }
 0x248   : > { %v2417_v38 = vadd.f32 %v2416_v36, %v2386_v35 }
 0x249   : > { %v2144_v2 = vpop.f32.mrf.mxu2  ;;  %v1969_v43 = vpop.f32.mrf.mxu0 }
 0x24a   : > { %v2233_v60 = vpop.f32.mrf.mxu3  ;;  %v2145_v42 = vadd.f32 %v2144_v2, %v2056_v41  ;;  %v2058_v45 = vpop.f32.mrf.mxu1  ;;  %v1970_v46 = vadd.f32 %v1969_v43, %v4153_v37 }
 0x24c   : > { %v2234_v54 = vadd.f32 %v2233_v60, %v2145_v42  ;;  %v2059_v55 = vadd.f32 %v2058_v45, %v1970_v46 }
 0x24e   : > { %v3620_v29 = vpack.c.bf16 %v2234_v54, %v2232_v20  ;;  %v2348_v48 = vadd.f32 %v2347_v34, %v2234_v54  ;;  %v2387_v50 = vmul.f32 %v2234_v54, %v2234_v54 }
 0x250   : > { %3660 = vst [vmem:[%s4240_s5 + $0x48] sm:$0xff] %v3620_v29   ;;  %v2418_v52 = vadd.f32 %v2417_v38, %v2387_v50 }
 0x251   : > { %v2147_v44 = vpop.f32.mrf.mxu2  ;;  %v1971_v58 = vpop.f32.mrf.mxu0 }
 0x252   : > { %v2236_v25 = vpop.f32.mrf.mxu3  ;;  %v2148_v21 = vadd.f32 %v2147_v44, %v2059_v55  ;;  %v2060_v59 = vpop.f32.mrf.mxu1  ;;  %v1972_v62 = vadd.f32 %v1971_v58, %v4163_v63 }
 0x254   : > { %v2237_v61 = vadd.f32 %v2236_v25, %v2148_v21  ;;  %v2061_v4 = vadd.f32 %v2060_v59, %v1972_v62 }
 0x256   : > { %v2349_v19 = vadd.f32 %v2348_v48, %v2237_v61  ;;  %v2388_v3 = vmul.f32 %v2237_v61, %v2237_v61 }
 0x258   : > { %v2419_v57 = vadd.f32 %v2418_v52, %v2388_v3 }
 0x259   : > { %v2149_v37 = vpop.f32.mrf.mxu2  ;;  %v1974_v5 = vpop.f32.mrf.mxu0 }
 0x25a   : > { %v2238_v0 = vpop.f32.mrf.mxu3  ;;  %v2150_v26 = vadd.f32 %v2149_v37, %v2061_v4  ;;  %v2063_v8 = vpop.f32.mrf.mxu1  ;;  %v1975_v9 = vadd.f32 %v1974_v5, %v4165_v10 }
 0x25c   : > { %v2239_v32 = vadd.f32 %v2238_v0, %v2150_v26  ;;  %v2064_v15 = vadd.f32 %v2063_v8, %v1975_v9 }
 0x25e   : > { %v3625_v30 = vpack.c.bf16 %v2239_v32, %v2237_v61  ;;  %v2350_v11 = vadd.f32 %v2349_v19, %v2239_v32  ;;  %v2389_v12 = vmul.f32 %v2239_v32, %v2239_v32 }
 0x260   : > { %3661 = vst [vmem:[%s4240_s5 + $0x50] sm:$0xff] %v3625_v30   ;;  %v2420_v13 = vadd.f32 %v2419_v57, %v2389_v12 }
 0x261   : > { %v2152_v51 = vpop.f32.mrf.mxu2  ;;  %v1976_v16 = vpop.f32.mrf.mxu0 }
 0x262   : > { %v2241_v63 = vpop.f32.mrf.mxu3  ;;  %v2153_v1 = vadd.f32 %v2152_v51, %v2064_v15  ;;  %v2065_v7 = vpop.f32.mrf.mxu1  ;;  %v1977_v36 = vadd.f32 %v1976_v16, %v4175_v39 }
 0x264   : > { %v2242_v17 = vadd.f32 %v2241_v63, %v2153_v1  ;;  %v2066_v27 = vadd.f32 %v2065_v7, %v1977_v36 }
 0x266   : > { %v2351_v22 = vadd.f32 %v2350_v11, %v2242_v17  ;;  %v2390_v23 = vmul.f32 %v2242_v17, %v2242_v17 }
 0x268   : > { %v2421_v53 = vadd.f32 %v2420_v13, %v2390_v23 }
 0x269   : > { %v2154_v10 = vpop.f32.mrf.mxu2  ;;  %v1979_v20 = vpop.f32.mrf.mxu0 }
 0x26a   : > { %v2243_v28 = vpop.f32.mrf.mxu3  ;;  %v2155_v31 = vadd.f32 %v2154_v10, %v2066_v27  ;;  %v2068_v33 = vpop.f32.mrf.mxu1  ;;  %v1980_v35 = vadd.f32 %v1979_v20, %v4177_v47 }
 0x26c   : > { %v2244_v34 = vadd.f32 %v2243_v28, %v2155_v31  ;;  %v2069_v42 = vadd.f32 %v2068_v33, %v1980_v35 }
 0x26e   : > { %v3630_v38 = vpack.c.bf16 %v2244_v34, %v2242_v17  ;;  %v2352_v41 = vadd.f32 %v2351_v22, %v2244_v34  ;;  %v2391_v2 = vmul.f32 %v2244_v34, %v2244_v34 }
 0x270   : > { %3662 = vst [vmem:[%s4240_s5 + $0x58] sm:$0xff] %v3630_v38   ;;  %v2422_v60 = vadd.f32 %v2421_v53, %v2391_v2 }
 0x271   : > { %v2157_v43 = vpop.f32.mrf.mxu2  ;;  %v1981_v54 = vpop.f32.mrf.mxu0 }
 0x272   : > { %v2246_v39 = vpop.f32.mrf.mxu3  ;;  %v2158_v45 = vadd.f32 %v2157_v43, %v2069_v42  ;;  %v2070_v46 = vpop.f32.mrf.mxu1  ;;  %v1982_v48 = vadd.f32 %v1981_v54, %v4187_v14 }
 0x274   : > { %v2247_v29 = vadd.f32 %v2246_v39, %v2158_v45  ;;  %v2071_v44 = vadd.f32 %v2070_v46, %v1982_v48 }
 0x276   : > { %v2353_v50 = vadd.f32 %v2352_v41, %v2247_v29  ;;  %v2392_v52 = vmul.f32 %v2247_v29, %v2247_v29 }
 0x278   : > { %v2423_v55 = vadd.f32 %v2422_v60, %v2392_v52 }
 0x279   : > { %v2159_v47 = vpop.f32.mrf.mxu2  ;;  %v1984_v58 = vpop.f32.mrf.mxu0 }
 0x27a   : > { %v2248_v25 = vpop.f32.mrf.mxu3  ;;  %v2160_v21 = vadd.f32 %v2159_v47, %v2071_v44  ;;  %v2073_v59 = vpop.f32.mrf.mxu1  ;;  %v1985_v62 = vadd.f32 %v1984_v58, %v4189_v24 }
 0x27c   : > { %v2249_v61 = vadd.f32 %v2248_v25, %v2160_v21  ;;  %v2074_v37 = vadd.f32 %v2073_v59, %v1985_v62 }
 0x27e   : > { %v3635_v19 = vpack.c.bf16 %v2249_v61, %v2247_v29  ;;  %v2354_v3 = vadd.f32 %v2353_v50, %v2249_v61  ;;  %v2393_v57 = vmul.f32 %v2249_v61, %v2249_v61 }
 0x280   : > { %3663 = vst [vmem:[%s4240_s5 + $0x60] sm:$0xff] %v3635_v19   ;;  %v2424_v4 = vadd.f32 %v2423_v55, %v2393_v57 }
 0x281   : > { %v2162_v0 = vpop.f32.mrf.mxu2  ;;  %v1986_v5 = vpop.f32.mrf.mxu0 }
 0x282   : > { %v2251_v14 = vpop.f32.mrf.mxu3  ;;  %v2163_v26 = vadd.f32 %v2162_v0, %v2074_v37  ;;  %v2075_v8 = vpop.f32.mrf.mxu1  ;;  %v1987_v9 = vadd.f32 %v1986_v5, %v4199_v56 }
 0x284   : > { %v2252_v32 = vadd.f32 %v2251_v14, %v2163_v26  ;;  %v2076_v13 = vadd.f32 %v2075_v8, %v1987_v9 }
 0x286   : > { %v2355_v30 = vadd.f32 %v2354_v3, %v2252_v32  ;;  %v2394_v11 = vmul.f32 %v2252_v32, %v2252_v32 }
 0x288   : > { %v2425_v12 = vadd.f32 %v2424_v4, %v2394_v11 }
 0x289   : > { %v2164_v24 = vpop.f32.mrf.mxu2  ;;  %v1989_v63 = vpop.f32.mrf.mxu0 }
 0x28a   : > { %v2253_v15 = vpop.f32.mrf.mxu3  ;;  %v2165_v51 = vadd.f32 %v2164_v24, %v2076_v13  ;;  %v2078_v1 = vpop.f32.mrf.mxu1  ;;  %v1990_v7 = vadd.f32 %v1989_v63, %v4201_v6 }
 0x28c   : > { %v2254_v16 = vadd.f32 %v2253_v15, %v2165_v51  ;;  %v2079_v53 = vadd.f32 %v2078_v1, %v1990_v7 }
 0x28e   : > { %v3640_v17 = vpack.c.bf16 %v2254_v16, %v2252_v32  ;;  %v2356_v36 = vadd.f32 %v2355_v30, %v2254_v16  ;;  %v2395_v22 = vmul.f32 %v2254_v16, %v2254_v16 }
 0x290   : > { %3664 = vst [vmem:[%s4240_s5 + $0x68] sm:$0xff] %v3640_v17   ;;  %v2426_v23 = vadd.f32 %v2425_v12, %v2395_v22 }
 0x291   : > { %v2167_v27 = vpop.f32.mrf.mxu2  ;;  %v1991_v28 = vpop.f32.mrf.mxu0 }
 0x292   : > { %v2256_v56 = vpop.f32.mrf.mxu3  ;;  %v2168_v10 = vadd.f32 %v2167_v27, %v2079_v53  ;;  %v2080_v31 = vpop.f32.mrf.mxu1  ;;  %v1992_v33 = vadd.f32 %v1991_v28, %v4211_v40 }
 0x294   : > { %v2257_v20 = vadd.f32 %v2256_v56, %v2168_v10  ;;  %v2081_v41 = vadd.f32 %v2080_v31, %v1992_v33 }
 0x296   : > { %v2357_v34 = vadd.f32 %v2356_v36, %v2257_v20  ;;  %v2396_v35 = vmul.f32 %v2257_v20, %v2257_v20 }
 0x298   : > { %v2427_v38 = vadd.f32 %v2426_v23, %v2396_v35 }
 0x299   : > { %v2169_v6 = vpop.f32.mrf.mxu2  ;;  %v1994_v42 = vpop.f32.mrf.mxu0 }
 0x29a   : > { %v2258_v2 = vpop.f32.mrf.mxu3  ;;  %v2170_v60 = vadd.f32 %v2169_v6, %v2081_v41  ;;  %v1995_v39 = vadd.f32 %v1994_v42, %v4213_v49  ;;  %v2083_v45 = vpop.f32.mrf.mxu1 }
 0x29c   : > { %v2259_v43 = vadd.f32 %v2258_v2, %v2170_v60  ;;  %v2084_v50 = vadd.f32 %v2083_v45, %v1995_v39 }
 0x29e   : > { %v3645_v54 = vpack.c.bf16 %v2259_v43, %v2257_v20  ;;  %v2358_v46 = vadd.f32 %v2357_v34, %v2259_v43  ;;  %v2397_v29 = vmul.f32 %v2259_v43, %v2259_v43 }
 0x2a0   : > { %3665 = vst [vmem:[%s4240_s5 + $0x70] sm:$0xff] %v3645_v54   ;;  %v2428_v48 = vadd.f32 %v2427_v38, %v2397_v29 }
 0x2a1   : > { %v2172_v52 = vpop.f32.mrf.mxu2  ;;  %v1996_v44 = vpop.f32.mrf.mxu0 }
 0x2a2   : > { %v2261_v40 = vpop.f32.mrf.mxu3  ;;  %v2173_v55 = vadd.f32 %v2172_v52, %v2084_v50  ;;  %v1997_v25 = vadd.f32 %v1996_v44, %v4223_v18  ;;  %v2085_v59 = vpop.f32.mrf.mxu1 }
 0x2a4   : > { %v2262_v47 = vadd.f32 %v2261_v40, %v2173_v55  ;;  %v2086_v61 = vadd.f32 %v2085_v59, %v1997_v25 }
 0x2a6   : > { %v2359_v21 = vadd.f32 %v2358_v46, %v2262_v47  ;;  %v2398_v58 = vmul.f32 %v2262_v47, %v2262_v47 }
 0x2a8   : > { %v2429_v49 = vadd.f32 %v2428_v48, %v2398_v58 }
 0x2a9   : > { %v2174_v62 = vpop.f32.mrf.mxu2 }
 0x2aa   : > { %v2175_v19 = vadd.f32 %v2174_v62, %v2086_v61  ;;  %v2263_v3 = vpop.f32.mrf.mxu3 }
 0x2ac   : > { %v2264_v57 = vadd.f32 %v2263_v3, %v2175_v19 }
 0x2ae   : > { %v3650_v4 = vpack.c.bf16 %v2264_v57, %v2262_v47  ;;  %v2360_v37 = vadd.f32 %v2359_v21, %v2264_v57  ;;  %v2399_v0 = vmul.f32 %v2264_v57, %v2264_v57 }
 0x2b0   : > { %3666 = vst [vmem:[%s4240_s5 + $0x78] sm:$0xff] %v3650_v4   ;;  %v2361_v14 = vrot.slane %v2360_v37, 4  ;;  %v2430_v26 = vadd.f32 %v2429_v49, %v2399_v0 }
 0x2b2   : > { %v2362_v5 = vadd.f32 %v2361_v14, %v2360_v37  ;;  %v2431_v18 = vrot.slane %v2430_v26, 4 }
 0x2b4   : > { %v2363_v8 = vrot.slane %v2362_v5, 2  ;;  %v2432_v32 = vadd.f32 %v2431_v18, %v2430_v26 }
 0x2b6   : > { %v2364_v9 = vadd.f32 %v2363_v8, %v2362_v5  ;;  %v2433_v30 = vrot.slane %v2432_v32, 2 }
 0x2b8   : > { %v2365_v11 = vrot.slane %v2364_v9, 1  ;;  %v2434_v12 = vadd.f32 %v2433_v30, %v2432_v32 }
 0x2ba   : > { %v2366_v13 = vadd.f32 %v2365_v11, %v2364_v9  ;;  %v2435_v24 = vrot.slane %v2434_v12, 1 }
 0x2bc   : > { %2367 = vst [vmem:[%s267_s7] sm:$0x1] %v2366_v13  ;;  %v2436_v15 = vadd.f32 %v2435_v24, %v2434_v12 }
 0x2be   : > { %2437 = vst [vmem:[%s273_s10] sm:$0x1] %v2436_v15 }
 0x2bf PF: > { %s15_s17 = sadd.s32 1, %s3713_s17   ;;  %s4357_s15 = smov %s3709_s16 }
 0x2c0   : > { %p12_p6 = scmp.ge.s32.totalorder %s15_s17, 4   ;;  %s4358_s16 = smov %s4360_s18 }
 0x2c2   :  { %14 = sbr.rel (!%p12_p6) target bundleno = 2 (0x2), region = 85 }

// kernel: mul.14
= control target key start
LH: loop header
LB: loop body
LE: loop exit
PB: predicated region body
PF: predicated region fallthrough
CT: control target
= control target key end

     0   :  { %s34_s0 = inlined_call_operand.vmem [shape: f32[256], index: 0, kind: input, shape index: {}]   ;;  %s35_s1 = inlined_call_operand.vmem [shape: f32[256], index: 1, kind: input, shape index: {}]   ;;  %s36_s2 = inlined_call_operand.vmem [shape: f32[256], index: 2, kind: output, shape index: {}]  }
   0x1   :  { %v3_v0 = vld [vmem:[%s34_s0] sm:$0x3] }
   0x2   :  { %v4_v1 = vld [vmem:[%s35_s1] sm:$0x3] }
   0x3   :  { %v7_v2 = vmul.f32 %v4_v1, %v3_v0 }
   0x5   :  { %9 = vst [vmem:[%s36_s2] sm:$0x3] %v7_v2 }

// kernel: discriminator_forward.6
= control target key start
LH: loop header
LB: loop body
LE: loop exit
PB: predicated region body
PF: predicated region fallthrough
CT: control target
= control target key end

     0   :  { %s6829_s15 = smov 0   ;;  %s6831_s16 = smov 0   ;;  %s8497_s0 = inlined_call_operand.vmem [shape: bf16[128,2048], index: 0, kind: input, shape index: {}]   ;;  %s8498_s1 = inlined_call_operand.vmem [shape: bf16[2048,256], index: 1, kind: input, shape index: {}]   ;;  %s8499_s2 = inlined_call_operand.vmem [shape: bf16[128,256], index: 2, kind: output, shape index: {0}]   ;;  %s8500_s3 = inlined_call_operand.vmem [shape: f32[1,1,256], index: 3, kind: output, shape index: {1}]   ;;  %s8501_s4 = inlined_call_operand.vmem [shape: f32[1,1,256], index: 4, kind: output, shape index: {2}]  }
   0x1   :  { %s6833_s17 = smov 0   ;;  %s6835_s18 = smov 0  }
   0x2   :  { %s6837_s19 = smov 0  }
   0x3 LB: > { %s27_s20 = sadd.s32 1, %s6798_s18  ;;  %s5383_s21 = sadd.s32 4294967295, %s6802_s19   ;;  %s6802_s19 = sphi %s6837_s19, %s15_s19   ;;  %s6798_s18 = sphi %s6835_s18, %s8506_s18   ;;  %s6794_s17 = sphi %s6833_s17, %s8505_s17   ;;  %s6790_s16 = sphi %s6831_s16, %s8504_s16   ;;  %s6786_s15 = sphi %s6829_s15, %s8503_s15  }
   0x4   : > { %p29_p0 = scmp.ge.s32.totalorder %s27_s20, 2  ;;  %p67_p1 = scmp.ne.s32.totalorder %s6790_s16, %s6786_s15 }
   0x5   : > { %p68_p2 = scmp.eq.s32.totalorder %s6802_s19, 0  ;;  %p99_p4 = scmp.eq.s32.totalorder %s5383_s21, 1 }
   0x6   : > { %s8508_s20 = smov (%p29_p0, %s27_s20), 0  ;;  %s60_s23 = sadd.s32 1, %s6790_s16 }
   0x7   : > { %p69_p3 = por %p68_p2, %p67_p1  ;;  %s57_s22 = ssub.s32 %s6798_s18, %s8508_s20 }
   0x8   : > { %p58_p5 = scmp.eq.s32.totalorder %s57_s22, 0  ;;  %p6864_p6 = por %p99_p4, %p67_p1 }
   0x9   : > { %p5387_p7 = scmp.ge.s32.totalorder %s6802_s19, 2 }
   0xa   : > { %s6869_s25 = scalar_select %p58_p5, %s6790_s16, %s60_s23  }
   0xb   : > { %187 = sbr.rel (%p5387_p7) target bundleno = 276 (0x114), region = 20 }
  0x10   : > { %190 = sbr.rel (!%p69_p3) target bundleno = 276 (0x114), region = 24  ;;  %s192_s26 = sand.u32 (%p69_p3), 1, %s6790_s16  }
  0x11   : > { %s5389_s27 = sshll.u32 (%p69_p3), %s6798_s18, 2  ;;  %s5388_s28 = sshll.u32 (%p69_p3), %s192_s26, 10 }
  0x12   : > { %s6877_s5 = scalar_lea.vmem (%p69_p3), %s8498_s1, %s5389_s27  ;;  %s6881_s6 = scalar_lea.vmem (%p69_p3), [#allocation2], %s5388_s28 }
  0x13   : > { %v213_v0 = vld [vmem:[%s6877_s5] sm:$0xf] (%p69_p3)  ;;  %v215_v1 = vld [vmem:[%s6877_s5 + $0x8] sm:$0xf] (%p69_p3)  ;;  %v217_v2 = vld [vmem:[%s6877_s5 + $0x10] sm:$0xf] (%p69_p3) }
  0x14   : > { %214 = vst [vmem:[%s6881_s6] sm:$0xf] (%p69_p3), %v213_v0  ;;  %v219_v3 = vld [vmem:[%s6877_s5 + $0x18] sm:$0xf] (%p69_p3)  ;;  %v221_v4 = vld [vmem:[%s6877_s5 + $0x20] sm:$0xf] (%p69_p3) }
  0x15   : > { %216 = vst [vmem:[%s6881_s6 + $0x4] sm:$0xf] %v215_v1  ;;  %v223_v5 = vld [vmem:[%s6877_s5 + $0x28] sm:$0xf]  ;;  %v225_v6 = vld [vmem:[%s6877_s5 + $0x30] sm:$0xf] }
  0x16   : > { %218 = vst [vmem:[%s6881_s6 + $0x8] sm:$0xf] %v217_v2  ;;  %v227_v7 = vld [vmem:[%s6877_s5 + $0x38] sm:$0xf]  ;;  %v229_v8 = vld [vmem:[%s6877_s5 + $0x40] sm:$0xf] }
  0x17   : > { %220 = vst [vmem:[%s6881_s6 + $0xc] sm:$0xf] %v219_v3  ;;  %v231_v9 = vld [vmem:[%s6877_s5 + $0x48] sm:$0xf]  ;;  %v233_v10 = vld [vmem:[%s6877_s5 + $0x50] sm:$0xf] }
  0x18   : > { %222 = vst [vmem:[%s6881_s6 + $0x10] sm:$0xf] %v221_v4  ;;  %v235_v11 = vld [vmem:[%s6877_s5 + $0x58] sm:$0xf]  ;;  %v237_v12 = vld [vmem:[%s6877_s5 + $0x60] sm:$0xf] }
  0x19   : > { %224 = vst [vmem:[%s6881_s6 + $0x14] sm:$0xf] %v223_v5  ;;  %v239_v13 = vld [vmem:[%s6877_s5 + $0x68] sm:$0xf]  ;;  %v241_v14 = vld [vmem:[%s6877_s5 + $0x70] sm:$0xf] }
  0x1a   : > { %226 = vst [vmem:[%s6881_s6 + $0x18] sm:$0xf] %v225_v6  ;;  %v243_v15 = vld [vmem:[%s6877_s5 + $0x78] sm:$0xf]  ;;  %v245_v16 = vld [vmem:[%s6877_s5 + $0x80] sm:$0xf] }
  0x1b   : > { %228 = vst [vmem:[%s6881_s6 + $0x1c] sm:$0xf] %v227_v7  ;;  %v247_v17 = vld [vmem:[%s6877_s5 + $0x88] sm:$0xf]  ;;  %v249_v18 = vld [vmem:[%s6877_s5 + $0x90] sm:$0xf] }
  0x1c   : > { %230 = vst [vmem:[%s6881_s6 + $0x20] sm:$0xf] %v229_v8  ;;  %v251_v19 = vld [vmem:[%s6877_s5 + $0x98] sm:$0xf]  ;;  %v253_v20 = vld [vmem:[%s6877_s5 + $0xa0] sm:$0xf] }
  0x1d   : > { %232 = vst [vmem:[%s6881_s6 + $0x24] sm:$0xf] %v231_v9  ;;  %v255_v21 = vld [vmem:[%s6877_s5 + $0xa8] sm:$0xf]  ;;  %v257_v22 = vld [vmem:[%s6877_s5 + $0xb0] sm:$0xf] }
  0x1e   : > { %234 = vst [vmem:[%s6881_s6 + $0x28] sm:$0xf] %v233_v10  ;;  %v259_v23 = vld [vmem:[%s6877_s5 + $0xb8] sm:$0xf]  ;;  %v261_v24 = vld [vmem:[%s6877_s5 + $0xc0] sm:$0xf] }
  0x1f   : > { %236 = vst [vmem:[%s6881_s6 + $0x2c] sm:$0xf] %v235_v11  ;;  %v263_v25 = vld [vmem:[%s6877_s5 + $0xc8] sm:$0xf]  ;;  %v265_v26 = vld [vmem:[%s6877_s5 + $0xd0] sm:$0xf] }
  0x20   : > { %238 = vst [vmem:[%s6881_s6 + $0x30] sm:$0xf] %v237_v12  ;;  %v267_v27 = vld [vmem:[%s6877_s5 + $0xd8] sm:$0xf]  ;;  %v269_v28 = vld [vmem:[%s6877_s5 + $0xe0] sm:$0xf] }
  0x21   : > { %240 = vst [vmem:[%s6881_s6 + $0x34] sm:$0xf] %v239_v13  ;;  %v271_v29 = vld [vmem:[%s6877_s5 + $0xe8] sm:$0xf]  ;;  %v273_v30 = vld [vmem:[%s6877_s5 + $0xf0] sm:$0xf] }
  0x22   : > { %242 = vst [vmem:[%s6881_s6 + $0x38] sm:$0xf] %v241_v14  ;;  %v275_v31 = vld [vmem:[%s6877_s5 + $0xf8] sm:$0xf]  ;;  %v277_v32 = vld [vmem:[%s6877_s5 + $0x100] sm:$0xf] }
  0x23   : > { %244 = vst [vmem:[%s6881_s6 + $0x3c] sm:$0xf] %v243_v15  ;;  %v279_v33 = vld [vmem:[%s6877_s5 + $0x108] sm:$0xf]  ;;  %v281_v34 = vld [vmem:[%s6877_s5 + $0x110] sm:$0xf] }
  0x24   : > { %246 = vst [vmem:[%s6881_s6 + $0x40] sm:$0xf] %v245_v16  ;;  %v283_v35 = vld [vmem:[%s6877_s5 + $0x118] sm:$0xf]  ;;  %v285_v36 = vld [vmem:[%s6877_s5 + $0x120] sm:$0xf] }
  0x25   : > { %248 = vst [vmem:[%s6881_s6 + $0x44] sm:$0xf] %v247_v17  ;;  %v287_v37 = vld [vmem:[%s6877_s5 + $0x128] sm:$0xf]  ;;  %v289_v38 = vld [vmem:[%s6877_s5 + $0x130] sm:$0xf] }
  0x26   : > { %250 = vst [vmem:[%s6881_s6 + $0x48] sm:$0xf] %v249_v18  ;;  %v291_v39 = vld [vmem:[%s6877_s5 + $0x138] sm:$0xf]  ;;  %v293_v40 = vld [vmem:[%s6877_s5 + $0x140] sm:$0xf] }
  0x27   : > { %252 = vst [vmem:[%s6881_s6 + $0x4c] sm:$0xf] %v251_v19  ;;  %v295_v41 = vld [vmem:[%s6877_s5 + $0x148] sm:$0xf]  ;;  %v297_v42 = vld [vmem:[%s6877_s5 + $0x150] sm:$0xf] }
  0x28   : > { %254 = vst [vmem:[%s6881_s6 + $0x50] sm:$0xf] %v253_v20  ;;  %v299_v43 = vld [vmem:[%s6877_s5 + $0x158] sm:$0xf]  ;;  %v301_v44 = vld [vmem:[%s6877_s5 + $0x160] sm:$0xf] }
  0x29   : > { %256 = vst [vmem:[%s6881_s6 + $0x54] sm:$0xf] %v255_v21  ;;  %v303_v45 = vld [vmem:[%s6877_s5 + $0x168] sm:$0xf]  ;;  %v305_v46 = vld [vmem:[%s6877_s5 + $0x170] sm:$0xf] }
  0x2a   : > { %258 = vst [vmem:[%s6881_s6 + $0x58] sm:$0xf] %v257_v22  ;;  %v307_v47 = vld [vmem:[%s6877_s5 + $0x178] sm:$0xf]  ;;  %v309_v48 = vld [vmem:[%s6877_s5 + $0x180] sm:$0xf] }
  0x2b   : > { %260 = vst [vmem:[%s6881_s6 + $0x5c] sm:$0xf] %v259_v23  ;;  %v311_v49 = vld [vmem:[%s6877_s5 + $0x188] sm:$0xf]  ;;  %v313_v50 = vld [vmem:[%s6877_s5 + $0x190] sm:$0xf] }
  0x2c   : > { %262 = vst [vmem:[%s6881_s6 + $0x60] sm:$0xf] %v261_v24  ;;  %v315_v51 = vld [vmem:[%s6877_s5 + $0x198] sm:$0xf]  ;;  %v317_v52 = vld [vmem:[%s6877_s5 + $0x1a0] sm:$0xf] }
  0x2d   : > { %264 = vst [vmem:[%s6881_s6 + $0x64] sm:$0xf] %v263_v25  ;;  %v319_v53 = vld [vmem:[%s6877_s5 + $0x1a8] sm:$0xf]  ;;  %v321_v54 = vld [vmem:[%s6877_s5 + $0x1b0] sm:$0xf] }
  0x2e   : > { %266 = vst [vmem:[%s6881_s6 + $0x68] sm:$0xf] %v265_v26  ;;  %v323_v55 = vld [vmem:[%s6877_s5 + $0x1b8] sm:$0xf]  ;;  %v325_v56 = vld [vmem:[%s6877_s5 + $0x1c0] sm:$0xf] }
  0x2f   : > { %268 = vst [vmem:[%s6881_s6 + $0x6c] sm:$0xf] %v267_v27  ;;  %v327_v57 = vld [vmem:[%s6877_s5 + $0x1c8] sm:$0xf]  ;;  %v329_v58 = vld [vmem:[%s6877_s5 + $0x1d0] sm:$0xf] }
  0x30   : > { %270 = vst [vmem:[%s6881_s6 + $0x70] sm:$0xf] %v269_v28  ;;  %v331_v59 = vld [vmem:[%s6877_s5 + $0x1d8] sm:$0xf]  ;;  %v333_v60 = vld [vmem:[%s6877_s5 + $0x1e0] sm:$0xf] }
  0x31   : > { %272 = vst [vmem:[%s6881_s6 + $0x74] sm:$0xf] %v271_v29  ;;  %v335_v61 = vld [vmem:[%s6877_s5 + $0x1e8] sm:$0xf]  ;;  %v337_v62 = vld [vmem:[%s6877_s5 + $0x1f0] sm:$0xf] }
  0x32   : > { %274 = vst [vmem:[%s6881_s6 + $0x78] sm:$0xf] %v273_v30  ;;  %v339_v63 = vld [vmem:[%s6877_s5 + $0x1f8] sm:$0xf]  ;;  %v341_v0 = vld [vmem:[%s6877_s5 + $0x200] sm:$0xf] }
  0x33   : > { %276 = vst [vmem:[%s6881_s6 + $0x7c] sm:$0xf] %v275_v31  ;;  %v343_v1 = vld [vmem:[%s6877_s5 + $0x208] sm:$0xf]  ;;  %v345_v2 = vld [vmem:[%s6877_s5 + $0x210] sm:$0xf] }
  0x34   : > { %278 = vst [vmem:[%s6881_s6 + $0x80] sm:$0xf] %v277_v32  ;;  %v347_v3 = vld [vmem:[%s6877_s5 + $0x218] sm:$0xf]  ;;  %v349_v4 = vld [vmem:[%s6877_s5 + $0x220] sm:$0xf] }
  0x35   : > { %280 = vst [vmem:[%s6881_s6 + $0x84] sm:$0xf] %v279_v33  ;;  %v351_v5 = vld [vmem:[%s6877_s5 + $0x228] sm:$0xf]  ;;  %v353_v6 = vld [vmem:[%s6877_s5 + $0x230] sm:$0xf] }
  0x36   : > { %282 = vst [vmem:[%s6881_s6 + $0x88] sm:$0xf] %v281_v34  ;;  %v355_v7 = vld [vmem:[%s6877_s5 + $0x238] sm:$0xf]  ;;  %v357_v8 = vld [vmem:[%s6877_s5 + $0x240] sm:$0xf] }
  0x37   : > { %284 = vst [vmem:[%s6881_s6 + $0x8c] sm:$0xf] %v283_v35  ;;  %v359_v9 = vld [vmem:[%s6877_s5 + $0x248] sm:$0xf]  ;;  %v361_v10 = vld [vmem:[%s6877_s5 + $0x250] sm:$0xf] }
  0x38   : > { %286 = vst [vmem:[%s6881_s6 + $0x90] sm:$0xf] %v285_v36  ;;  %v363_v11 = vld [vmem:[%s6877_s5 + $0x258] sm:$0xf]  ;;  %v365_v12 = vld [vmem:[%s6877_s5 + $0x260] sm:$0xf] }
  0x39   : > { %288 = vst [vmem:[%s6881_s6 + $0x94] sm:$0xf] %v287_v37  ;;  %v367_v13 = vld [vmem:[%s6877_s5 + $0x268] sm:$0xf]  ;;  %v369_v14 = vld [vmem:[%s6877_s5 + $0x270] sm:$0xf] }
  0x3a   : > { %290 = vst [vmem:[%s6881_s6 + $0x98] sm:$0xf] %v289_v38  ;;  %v371_v15 = vld [vmem:[%s6877_s5 + $0x278] sm:$0xf]  ;;  %v373_v16 = vld [vmem:[%s6877_s5 + $0x280] sm:$0xf] }
  0x3b   : > { %292 = vst [vmem:[%s6881_s6 + $0x9c] sm:$0xf] %v291_v39  ;;  %v375_v17 = vld [vmem:[%s6877_s5 + $0x288] sm:$0xf]  ;;  %v377_v18 = vld [vmem:[%s6877_s5 + $0x290] sm:$0xf] }
  0x3c   : > { %294 = vst [vmem:[%s6881_s6 + $0xa0] sm:$0xf] %v293_v40  ;;  %v379_v19 = vld [vmem:[%s6877_s5 + $0x298] sm:$0xf]  ;;  %v381_v20 = vld [vmem:[%s6877_s5 + $0x2a0] sm:$0xf] }
  0x3d   : > { %296 = vst [vmem:[%s6881_s6 + $0xa4] sm:$0xf] %v295_v41  ;;  %v383_v21 = vld [vmem:[%s6877_s5 + $0x2a8] sm:$0xf]  ;;  %v385_v22 = vld [vmem:[%s6877_s5 + $0x2b0] sm:$0xf] }
  0x3e   : > { %298 = vst [vmem:[%s6881_s6 + $0xa8] sm:$0xf] %v297_v42  ;;  %v387_v23 = vld [vmem:[%s6877_s5 + $0x2b8] sm:$0xf]  ;;  %v389_v24 = vld [vmem:[%s6877_s5 + $0x2c0] sm:$0xf] }
  0x3f   : > { %300 = vst [vmem:[%s6881_s6 + $0xac] sm:$0xf] %v299_v43  ;;  %v391_v25 = vld [vmem:[%s6877_s5 + $0x2c8] sm:$0xf]  ;;  %v393_v26 = vld [vmem:[%s6877_s5 + $0x2d0] sm:$0xf] }
  0x40   : > { %302 = vst [vmem:[%s6881_s6 + $0xb0] sm:$0xf] %v301_v44  ;;  %v395_v27 = vld [vmem:[%s6877_s5 + $0x2d8] sm:$0xf]  ;;  %v397_v28 = vld [vmem:[%s6877_s5 + $0x2e0] sm:$0xf] }
  0x41   : > { %304 = vst [vmem:[%s6881_s6 + $0xb4] sm:$0xf] %v303_v45  ;;  %v399_v29 = vld [vmem:[%s6877_s5 + $0x2e8] sm:$0xf]  ;;  %v401_v30 = vld [vmem:[%s6877_s5 + $0x2f0] sm:$0xf] }
  0x42   : > { %306 = vst [vmem:[%s6881_s6 + $0xb8] sm:$0xf] %v305_v46  ;;  %v403_v31 = vld [vmem:[%s6877_s5 + $0x2f8] sm:$0xf]  ;;  %v405_v32 = vld [vmem:[%s6877_s5 + $0x300] sm:$0xf] }
  0x43   : > { %308 = vst [vmem:[%s6881_s6 + $0xbc] sm:$0xf] %v307_v47  ;;  %v407_v33 = vld [vmem:[%s6877_s5 + $0x308] sm:$0xf]  ;;  %v409_v34 = vld [vmem:[%s6877_s5 + $0x310] sm:$0xf] }
  0x44   : > { %310 = vst [vmem:[%s6881_s6 + $0xc0] sm:$0xf] %v309_v48  ;;  %v411_v35 = vld [vmem:[%s6877_s5 + $0x318] sm:$0xf]  ;;  %v413_v36 = vld [vmem:[%s6877_s5 + $0x320] sm:$0xf] }
  0x45   : > { %312 = vst [vmem:[%s6881_s6 + $0xc4] sm:$0xf] %v311_v49  ;;  %v415_v37 = vld [vmem:[%s6877_s5 + $0x328] sm:$0xf]  ;;  %v417_v38 = vld [vmem:[%s6877_s5 + $0x330] sm:$0xf] }
  0x46   : > { %314 = vst [vmem:[%s6881_s6 + $0xc8] sm:$0xf] %v313_v50  ;;  %v419_v39 = vld [vmem:[%s6877_s5 + $0x338] sm:$0xf]  ;;  %v421_v40 = vld [vmem:[%s6877_s5 + $0x340] sm:$0xf] }
  0x47   : > { %316 = vst [vmem:[%s6881_s6 + $0xcc] sm:$0xf] %v315_v51  ;;  %v423_v41 = vld [vmem:[%s6877_s5 + $0x348] sm:$0xf]  ;;  %v425_v42 = vld [vmem:[%s6877_s5 + $0x350] sm:$0xf] }
  0x48   : > { %318 = vst [vmem:[%s6881_s6 + $0xd0] sm:$0xf] %v317_v52  ;;  %v427_v43 = vld [vmem:[%s6877_s5 + $0x358] sm:$0xf]  ;;  %v429_v44 = vld [vmem:[%s6877_s5 + $0x360] sm:$0xf] }
  0x49   : > { %320 = vst [vmem:[%s6881_s6 + $0xd4] sm:$0xf] %v319_v53  ;;  %v431_v45 = vld [vmem:[%s6877_s5 + $0x368] sm:$0xf]  ;;  %v433_v46 = vld [vmem:[%s6877_s5 + $0x370] sm:$0xf] }
  0x4a   : > { %322 = vst [vmem:[%s6881_s6 + $0xd8] sm:$0xf] %v321_v54  ;;  %v435_v47 = vld [vmem:[%s6877_s5 + $0x378] sm:$0xf]  ;;  %v437_v48 = vld [vmem:[%s6877_s5 + $0x380] sm:$0xf] }
  0x4b   : > { %324 = vst [vmem:[%s6881_s6 + $0xdc] sm:$0xf] %v323_v55  ;;  %v439_v49 = vld [vmem:[%s6877_s5 + $0x388] sm:$0xf]  ;;  %v441_v50 = vld [vmem:[%s6877_s5 + $0x390] sm:$0xf] }
  0x4c   : > { %326 = vst [vmem:[%s6881_s6 + $0xe0] sm:$0xf] %v325_v56  ;;  %v443_v51 = vld [vmem:[%s6877_s5 + $0x398] sm:$0xf]  ;;  %v445_v52 = vld [vmem:[%s6877_s5 + $0x3a0] sm:$0xf] }
  0x4d   : > { %328 = vst [vmem:[%s6881_s6 + $0xe4] sm:$0xf] %v327_v57  ;;  %v447_v53 = vld [vmem:[%s6877_s5 + $0x3a8] sm:$0xf]  ;;  %v449_v54 = vld [vmem:[%s6877_s5 + $0x3b0] sm:$0xf] }
  0x4e   : > { %330 = vst [vmem:[%s6881_s6 + $0xe8] sm:$0xf] %v329_v58  ;;  %v451_v55 = vld [vmem:[%s6877_s5 + $0x3b8] sm:$0xf]  ;;  %v453_v56 = vld [vmem:[%s6877_s5 + $0x3c0] sm:$0xf] }
  0x4f   : > { %332 = vst [vmem:[%s6881_s6 + $0xec] sm:$0xf] %v331_v59  ;;  %v455_v57 = vld [vmem:[%s6877_s5 + $0x3c8] sm:$0xf]  ;;  %v457_v58 = vld [vmem:[%s6877_s5 + $0x3d0] sm:$0xf] }
  0x50   : > { %334 = vst [vmem:[%s6881_s6 + $0xf0] sm:$0xf] %v333_v60  ;;  %v459_v59 = vld [vmem:[%s6877_s5 + $0x3d8] sm:$0xf]  ;;  %v461_v60 = vld [vmem:[%s6877_s5 + $0x3e0] sm:$0xf] }
  0x51   : > { %336 = vst [vmem:[%s6881_s6 + $0xf4] sm:$0xf] %v335_v61  ;;  %v463_v61 = vld [vmem:[%s6877_s5 + $0x3e8] sm:$0xf] }
  0x52   : > { %338 = vst [vmem:[%s6881_s6 + $0xf8] sm:$0xf] %v337_v62  ;;  %v465_v62 = vld [vmem:[%s6877_s5 + $0x3f0] sm:$0xf] }
  0x53   : > { %340 = vst [vmem:[%s6881_s6 + $0xfc] sm:$0xf] %v339_v63  ;;  %v467_v63 = vld [vmem:[%s6877_s5 + $0x3f8] sm:$0xf] }
  0x54   : > { %342 = vst [vmem:[%s6881_s6 + $0x100] sm:$0xf] %v341_v0  ;;  %v469_v0 = vld [vmem:[%s6877_s5 + $0x400] sm:$0xf] }
  0x55   : > { %344 = vst [vmem:[%s6881_s6 + $0x104] sm:$0xf] %v343_v1  ;;  %v471_v1 = vld [vmem:[%s6877_s5 + $0x408] sm:$0xf] }
  0x56   : > { %346 = vst [vmem:[%s6881_s6 + $0x108] sm:$0xf] %v345_v2  ;;  %v473_v2 = vld [vmem:[%s6877_s5 + $0x410] sm:$0xf] }
  0x57   : > { %348 = vst [vmem:[%s6881_s6 + $0x10c] sm:$0xf] %v347_v3  ;;  %v475_v3 = vld [vmem:[%s6877_s5 + $0x418] sm:$0xf] }
  0x58   : > { %350 = vst [vmem:[%s6881_s6 + $0x110] sm:$0xf] %v349_v4  ;;  %v477_v4 = vld [vmem:[%s6877_s5 + $0x420] sm:$0xf] }
  0x59   : > { %352 = vst [vmem:[%s6881_s6 + $0x114] sm:$0xf] %v351_v5  ;;  %v479_v5 = vld [vmem:[%s6877_s5 + $0x428] sm:$0xf] }
  0x5a   : > { %354 = vst [vmem:[%s6881_s6 + $0x118] sm:$0xf] %v353_v6  ;;  %v481_v6 = vld [vmem:[%s6877_s5 + $0x430] sm:$0xf] }
  0x5b   : > { %356 = vst [vmem:[%s6881_s6 + $0x11c] sm:$0xf] %v355_v7  ;;  %v483_v7 = vld [vmem:[%s6877_s5 + $0x438] sm:$0xf] }
  0x5c   : > { %358 = vst [vmem:[%s6881_s6 + $0x120] sm:$0xf] %v357_v8  ;;  %v485_v8 = vld [vmem:[%s6877_s5 + $0x440] sm:$0xf] }
  0x5d   : > { %360 = vst [vmem:[%s6881_s6 + $0x124] sm:$0xf] %v359_v9  ;;  %v487_v9 = vld [vmem:[%s6877_s5 + $0x448] sm:$0xf] }
  0x5e   : > { %362 = vst [vmem:[%s6881_s6 + $0x128] sm:$0xf] %v361_v10  ;;  %v489_v10 = vld [vmem:[%s6877_s5 + $0x450] sm:$0xf] }
  0x5f   : > { %364 = vst [vmem:[%s6881_s6 + $0x12c] sm:$0xf] %v363_v11  ;;  %v491_v11 = vld [vmem:[%s6877_s5 + $0x458] sm:$0xf] }
  0x60   : > { %366 = vst [vmem:[%s6881_s6 + $0x130] sm:$0xf] %v365_v12  ;;  %v493_v12 = vld [vmem:[%s6877_s5 + $0x460] sm:$0xf] }
  0x61   : > { %368 = vst [vmem:[%s6881_s6 + $0x134] sm:$0xf] %v367_v13  ;;  %v495_v13 = vld [vmem:[%s6877_s5 + $0x468] sm:$0xf] }
  0x62   : > { %370 = vst [vmem:[%s6881_s6 + $0x138] sm:$0xf] %v369_v14  ;;  %v497_v14 = vld [vmem:[%s6877_s5 + $0x470] sm:$0xf] }
  0x63   : > { %372 = vst [vmem:[%s6881_s6 + $0x13c] sm:$0xf] %v371_v15  ;;  %v499_v15 = vld [vmem:[%s6877_s5 + $0x478] sm:$0xf] }
  0x64   : > { %374 = vst [vmem:[%s6881_s6 + $0x140] sm:$0xf] %v373_v16  ;;  %v501_v16 = vld [vmem:[%s6877_s5 + $0x480] sm:$0xf] }
  0x65   : > { %376 = vst [vmem:[%s6881_s6 + $0x144] sm:$0xf] %v375_v17  ;;  %v503_v17 = vld [vmem:[%s6877_s5 + $0x488] sm:$0xf] }
  0x66   : > { %378 = vst [vmem:[%s6881_s6 + $0x148] sm:$0xf] %v377_v18  ;;  %v505_v18 = vld [vmem:[%s6877_s5 + $0x490] sm:$0xf] }
  0x67   : > { %380 = vst [vmem:[%s6881_s6 + $0x14c] sm:$0xf] %v379_v19  ;;  %v507_v19 = vld [vmem:[%s6877_s5 + $0x498] sm:$0xf] }
  0x68   : > { %382 = vst [vmem:[%s6881_s6 + $0x150] sm:$0xf] %v381_v20  ;;  %v509_v20 = vld [vmem:[%s6877_s5 + $0x4a0] sm:$0xf] }
  0x69   : > { %384 = vst [vmem:[%s6881_s6 + $0x154] sm:$0xf] %v383_v21  ;;  %v511_v21 = vld [vmem:[%s6877_s5 + $0x4a8] sm:$0xf] }
  0x6a   : > { %386 = vst [vmem:[%s6881_s6 + $0x158] sm:$0xf] %v385_v22  ;;  %v513_v22 = vld [vmem:[%s6877_s5 + $0x4b0] sm:$0xf] }
  0x6b   : > { %388 = vst [vmem:[%s6881_s6 + $0x15c] sm:$0xf] %v387_v23  ;;  %v515_v23 = vld [vmem:[%s6877_s5 + $0x4b8] sm:$0xf] }
  0x6c   : > { %390 = vst [vmem:[%s6881_s6 + $0x160] sm:$0xf] %v389_v24  ;;  %v517_v24 = vld [vmem:[%s6877_s5 + $0x4c0] sm:$0xf] }
  0x6d   : > { %392 = vst [vmem:[%s6881_s6 + $0x164] sm:$0xf] %v391_v25  ;;  %v519_v25 = vld [vmem:[%s6877_s5 + $0x4c8] sm:$0xf] }
  0x6e   : > { %394 = vst [vmem:[%s6881_s6 + $0x168] sm:$0xf] %v393_v26  ;;  %v521_v26 = vld [vmem:[%s6877_s5 + $0x4d0] sm:$0xf] }
  0x6f   : > { %396 = vst [vmem:[%s6881_s6 + $0x16c] sm:$0xf] %v395_v27  ;;  %v523_v27 = vld [vmem:[%s6877_s5 + $0x4d8] sm:$0xf] }
  0x70   : > { %398 = vst [vmem:[%s6881_s6 + $0x170] sm:$0xf] %v397_v28  ;;  %v525_v28 = vld [vmem:[%s6877_s5 + $0x4e0] sm:$0xf] }
  0x71   : > { %400 = vst [vmem:[%s6881_s6 + $0x174] sm:$0xf] %v399_v29  ;;  %v527_v29 = vld [vmem:[%s6877_s5 + $0x4e8] sm:$0xf] }
  0x72   : > { %402 = vst [vmem:[%s6881_s6 + $0x178] sm:$0xf] %v401_v30  ;;  %v529_v30 = vld [vmem:[%s6877_s5 + $0x4f0] sm:$0xf] }
  0x73   : > { %404 = vst [vmem:[%s6881_s6 + $0x17c] sm:$0xf] %v403_v31  ;;  %v531_v31 = vld [vmem:[%s6877_s5 + $0x4f8] sm:$0xf] }
  0x74   : > { %406 = vst [vmem:[%s6881_s6 + $0x180] sm:$0xf] %v405_v32  ;;  %v533_v32 = vld [vmem:[%s6877_s5 + $0x500] sm:$0xf] }
  0x75   : > { %408 = vst [vmem:[%s6881_s6 + $0x184] sm:$0xf] %v407_v33  ;;  %v535_v33 = vld [vmem:[%s6877_s5 + $0x508] sm:$0xf] }
  0x76   : > { %410 = vst [vmem:[%s6881_s6 + $0x188] sm:$0xf] %v409_v34  ;;  %v537_v34 = vld [vmem:[%s6877_s5 + $0x510] sm:$0xf] }
  0x77   : > { %412 = vst [vmem:[%s6881_s6 + $0x18c] sm:$0xf] %v411_v35  ;;  %v539_v35 = vld [vmem:[%s6877_s5 + $0x518] sm:$0xf] }
  0x78   : > { %414 = vst [vmem:[%s6881_s6 + $0x190] sm:$0xf] %v413_v36  ;;  %v541_v36 = vld [vmem:[%s6877_s5 + $0x520] sm:$0xf] }
  0x79   : > { %416 = vst [vmem:[%s6881_s6 + $0x194] sm:$0xf] %v415_v37  ;;  %v543_v37 = vld [vmem:[%s6877_s5 + $0x528] sm:$0xf] }
  0x7a   : > { %418 = vst [vmem:[%s6881_s6 + $0x198] sm:$0xf] %v417_v38  ;;  %v545_v38 = vld [vmem:[%s6877_s5 + $0x530] sm:$0xf] }
  0x7b   : > { %420 = vst [vmem:[%s6881_s6 + $0x19c] sm:$0xf] %v419_v39  ;;  %v547_v39 = vld [vmem:[%s6877_s5 + $0x538] sm:$0xf] }
  0x7c   : > { %422 = vst [vmem:[%s6881_s6 + $0x1a0] sm:$0xf] %v421_v40  ;;  %v549_v40 = vld [vmem:[%s6877_s5 + $0x540] sm:$0xf] }
  0x7d   : > { %424 = vst [vmem:[%s6881_s6 + $0x1a4] sm:$0xf] %v423_v41  ;;  %v551_v41 = vld [vmem:[%s6877_s5 + $0x548] sm:$0xf] }
  0x7e   : > { %426 = vst [vmem:[%s6881_s6 + $0x1a8] sm:$0xf] %v425_v42  ;;  %v553_v42 = vld [vmem:[%s6877_s5 + $0x550] sm:$0xf] }
  0x7f   : > { %428 = vst [vmem:[%s6881_s6 + $0x1ac] sm:$0xf] %v427_v43  ;;  %v555_v43 = vld [vmem:[%s6877_s5 + $0x558] sm:$0xf] }
  0x80   : > { %430 = vst [vmem:[%s6881_s6 + $0x1b0] sm:$0xf] %v429_v44  ;;  %v557_v44 = vld [vmem:[%s6877_s5 + $0x560] sm:$0xf] }
  0x81   : > { %432 = vst [vmem:[%s6881_s6 + $0x1b4] sm:$0xf] %v431_v45  ;;  %v559_v45 = vld [vmem:[%s6877_s5 + $0x568] sm:$0xf] }
  0x82   : > { %434 = vst [vmem:[%s6881_s6 + $0x1b8] sm:$0xf] %v433_v46  ;;  %v561_v46 = vld [vmem:[%s6877_s5 + $0x570] sm:$0xf] }
  0x83   : > { %436 = vst [vmem:[%s6881_s6 + $0x1bc] sm:$0xf] %v435_v47  ;;  %v563_v47 = vld [vmem:[%s6877_s5 + $0x578] sm:$0xf] }
  0x84   : > { %438 = vst [vmem:[%s6881_s6 + $0x1c0] sm:$0xf] %v437_v48  ;;  %v565_v48 = vld [vmem:[%s6877_s5 + $0x580] sm:$0xf] }
  0x85   : > { %440 = vst [vmem:[%s6881_s6 + $0x1c4] sm:$0xf] %v439_v49  ;;  %v567_v49 = vld [vmem:[%s6877_s5 + $0x588] sm:$0xf] }
  0x86   : > { %442 = vst [vmem:[%s6881_s6 + $0x1c8] sm:$0xf] %v441_v50  ;;  %v569_v50 = vld [vmem:[%s6877_s5 + $0x590] sm:$0xf] }
  0x87   : > { %444 = vst [vmem:[%s6881_s6 + $0x1cc] sm:$0xf] %v443_v51  ;;  %v571_v51 = vld [vmem:[%s6877_s5 + $0x598] sm:$0xf] }
  0x88   : > { %446 = vst [vmem:[%s6881_s6 + $0x1d0] sm:$0xf] %v445_v52  ;;  %v573_v52 = vld [vmem:[%s6877_s5 + $0x5a0] sm:$0xf] }
  0x89   : > { %448 = vst [vmem:[%s6881_s6 + $0x1d4] sm:$0xf] %v447_v53  ;;  %v575_v53 = vld [vmem:[%s6877_s5 + $0x5a8] sm:$0xf] }
  0x8a   : > { %450 = vst [vmem:[%s6881_s6 + $0x1d8] sm:$0xf] %v449_v54  ;;  %v577_v54 = vld [vmem:[%s6877_s5 + $0x5b0] sm:$0xf] }
  0x8b   : > { %452 = vst [vmem:[%s6881_s6 + $0x1dc] sm:$0xf] %v451_v55  ;;  %v579_v55 = vld [vmem:[%s6877_s5 + $0x5b8] sm:$0xf] }
  0x8c   : > { %454 = vst [vmem:[%s6881_s6 + $0x1e0] sm:$0xf] %v453_v56  ;;  %v581_v56 = vld [vmem:[%s6877_s5 + $0x5c0] sm:$0xf] }
  0x8d   : > { %456 = vst [vmem:[%s6881_s6 + $0x1e4] sm:$0xf] %v455_v57  ;;  %v583_v57 = vld [vmem:[%s6877_s5 + $0x5c8] sm:$0xf] }
  0x8e   : > { %458 = vst [vmem:[%s6881_s6 + $0x1e8] sm:$0xf] %v457_v58  ;;  %v585_v58 = vld [vmem:[%s6877_s5 + $0x5d0] sm:$0xf] }
  0x8f   : > { %460 = vst [vmem:[%s6881_s6 + $0x1ec] sm:$0xf] %v459_v59  ;;  %v587_v59 = vld [vmem:[%s6877_s5 + $0x5d8] sm:$0xf] }
  0x90   : > { %462 = vst [vmem:[%s6881_s6 + $0x1f0] sm:$0xf] %v461_v60  ;;  %v589_v60 = vld [vmem:[%s6877_s5 + $0x5e0] sm:$0xf] }
  0x91   : > { %464 = vst [vmem:[%s6881_s6 + $0x1f4] sm:$0xf] %v463_v61  ;;  %v591_v61 = vld [vmem:[%s6877_s5 + $0x5e8] sm:$0xf] }
  0x92   : > { %466 = vst [vmem:[%s6881_s6 + $0x1f8] sm:$0xf] %v465_v62  ;;  %v593_v62 = vld [vmem:[%s6877_s5 + $0x5f0] sm:$0xf] }
  0x93   : > { %468 = vst [vmem:[%s6881_s6 + $0x1fc] sm:$0xf] %v467_v63  ;;  %v595_v63 = vld [vmem:[%s6877_s5 + $0x5f8] sm:$0xf] }
  0x94   : > { %470 = vst [vmem:[%s6881_s6 + $0x200] sm:$0xf] %v469_v0  ;;  %v597_v0 = vld [vmem:[%s6877_s5 + $0x600] sm:$0xf] }
  0x95   : > { %472 = vst [vmem:[%s6881_s6 + $0x204] sm:$0xf] %v471_v1  ;;  %v599_v1 = vld [vmem:[%s6877_s5 + $0x608] sm:$0xf] }
  0x96   : > { %474 = vst [vmem:[%s6881_s6 + $0x208] sm:$0xf] %v473_v2  ;;  %v601_v2 = vld [vmem:[%s6877_s5 + $0x610] sm:$0xf] }
  0x97   : > { %476 = vst [vmem:[%s6881_s6 + $0x20c] sm:$0xf] %v475_v3  ;;  %v603_v3 = vld [vmem:[%s6877_s5 + $0x618] sm:$0xf] }
  0x98   : > { %478 = vst [vmem:[%s6881_s6 + $0x210] sm:$0xf] %v477_v4  ;;  %v605_v4 = vld [vmem:[%s6877_s5 + $0x620] sm:$0xf] }
  0x99   : > { %480 = vst [vmem:[%s6881_s6 + $0x214] sm:$0xf] %v479_v5  ;;  %v607_v5 = vld [vmem:[%s6877_s5 + $0x628] sm:$0xf] }
  0x9a   : > { %482 = vst [vmem:[%s6881_s6 + $0x218] sm:$0xf] %v481_v6  ;;  %v609_v6 = vld [vmem:[%s6877_s5 + $0x630] sm:$0xf] }
  0x9b   : > { %484 = vst [vmem:[%s6881_s6 + $0x21c] sm:$0xf] %v483_v7  ;;  %v611_v7 = vld [vmem:[%s6877_s5 + $0x638] sm:$0xf] }
  0x9c   : > { %486 = vst [vmem:[%s6881_s6 + $0x220] sm:$0xf] %v485_v8  ;;  %v613_v8 = vld [vmem:[%s6877_s5 + $0x640] sm:$0xf] }
  0x9d   : > { %488 = vst [vmem:[%s6881_s6 + $0x224] sm:$0xf] %v487_v9  ;;  %v615_v9 = vld [vmem:[%s6877_s5 + $0x648] sm:$0xf] }
  0x9e   : > { %490 = vst [vmem:[%s6881_s6 + $0x228] sm:$0xf] %v489_v10  ;;  %v617_v10 = vld [vmem:[%s6877_s5 + $0x650] sm:$0xf] }
  0x9f   : > { %492 = vst [vmem:[%s6881_s6 + $0x22c] sm:$0xf] %v491_v11  ;;  %v619_v11 = vld [vmem:[%s6877_s5 + $0x658] sm:$0xf] }
  0xa0   : > { %494 = vst [vmem:[%s6881_s6 + $0x230] sm:$0xf] %v493_v12  ;;  %v621_v12 = vld [vmem:[%s6877_s5 + $0x660] sm:$0xf] }
  0xa1   : > { %496 = vst [vmem:[%s6881_s6 + $0x234] sm:$0xf] %v495_v13  ;;  %v623_v13 = vld [vmem:[%s6877_s5 + $0x668] sm:$0xf] }
  0xa2   : > { %498 = vst [vmem:[%s6881_s6 + $0x238] sm:$0xf] %v497_v14  ;;  %v625_v14 = vld [vmem:[%s6877_s5 + $0x670] sm:$0xf] }
  0xa3   : > { %500 = vst [vmem:[%s6881_s6 + $0x23c] sm:$0xf] %v499_v15  ;;  %v627_v15 = vld [vmem:[%s6877_s5 + $0x678] sm:$0xf] }
  0xa4   : > { %502 = vst [vmem:[%s6881_s6 + $0x240] sm:$0xf] %v501_v16  ;;  %v629_v16 = vld [vmem:[%s6877_s5 + $0x680] sm:$0xf] }
  0xa5   : > { %504 = vst [vmem:[%s6881_s6 + $0x244] sm:$0xf] %v503_v17  ;;  %v631_v17 = vld [vmem:[%s6877_s5 + $0x688] sm:$0xf] }
  0xa6   : > { %506 = vst [vmem:[%s6881_s6 + $0x248] sm:$0xf] %v505_v18  ;;  %v633_v18 = vld [vmem:[%s6877_s5 + $0x690] sm:$0xf] }
  0xa7   : > { %508 = vst [vmem:[%s6881_s6 + $0x24c] sm:$0xf] %v507_v19  ;;  %v635_v19 = vld [vmem:[%s6877_s5 + $0x698] sm:$0xf] }
  0xa8   : > { %510 = vst [vmem:[%s6881_s6 + $0x250] sm:$0xf] %v509_v20  ;;  %v637_v20 = vld [vmem:[%s6877_s5 + $0x6a0] sm:$0xf] }
  0xa9   : > { %512 = vst [vmem:[%s6881_s6 + $0x254] sm:$0xf] %v511_v21  ;;  %v639_v21 = vld [vmem:[%s6877_s5 + $0x6a8] sm:$0xf] }
  0xaa   : > { %514 = vst [vmem:[%s6881_s6 + $0x258] sm:$0xf] %v513_v22  ;;  %v641_v22 = vld [vmem:[%s6877_s5 + $0x6b0] sm:$0xf] }
  0xab   : > { %516 = vst [vmem:[%s6881_s6 + $0x25c] sm:$0xf] %v515_v23  ;;  %v643_v23 = vld [vmem:[%s6877_s5 + $0x6b8] sm:$0xf] }
  0xac   : > { %518 = vst [vmem:[%s6881_s6 + $0x260] sm:$0xf] %v517_v24  ;;  %v645_v24 = vld [vmem:[%s6877_s5 + $0x6c0] sm:$0xf] }
  0xad   : > { %520 = vst [vmem:[%s6881_s6 + $0x264] sm:$0xf] %v519_v25  ;;  %v647_v25 = vld [vmem:[%s6877_s5 + $0x6c8] sm:$0xf] }
  0xae   : > { %522 = vst [vmem:[%s6881_s6 + $0x268] sm:$0xf] %v521_v26  ;;  %v649_v26 = vld [vmem:[%s6877_s5 + $0x6d0] sm:$0xf] }
  0xaf   : > { %524 = vst [vmem:[%s6881_s6 + $0x26c] sm:$0xf] %v523_v27  ;;  %v651_v27 = vld [vmem:[%s6877_s5 + $0x6d8] sm:$0xf] }
  0xb0   : > { %526 = vst [vmem:[%s6881_s6 + $0x270] sm:$0xf] %v525_v28  ;;  %v653_v28 = vld [vmem:[%s6877_s5 + $0x6e0] sm:$0xf] }
  0xb1   : > { %528 = vst [vmem:[%s6881_s6 + $0x274] sm:$0xf] %v527_v29  ;;  %v655_v29 = vld [vmem:[%s6877_s5 + $0x6e8] sm:$0xf] }
  0xb2   : > { %530 = vst [vmem:[%s6881_s6 + $0x278] sm:$0xf] %v529_v30  ;;  %v657_v30 = vld [vmem:[%s6877_s5 + $0x6f0] sm:$0xf] }
  0xb3   : > { %532 = vst [vmem:[%s6881_s6 + $0x27c] sm:$0xf] %v531_v31  ;;  %v659_v31 = vld [vmem:[%s6877_s5 + $0x6f8] sm:$0xf] }
  0xb4   : > { %534 = vst [vmem:[%s6881_s6 + $0x280] sm:$0xf] %v533_v32  ;;  %v661_v32 = vld [vmem:[%s6877_s5 + $0x700] sm:$0xf] }
  0xb5   : > { %536 = vst [vmem:[%s6881_s6 + $0x284] sm:$0xf] %v535_v33  ;;  %v663_v33 = vld [vmem:[%s6877_s5 + $0x708] sm:$0xf] }
  0xb6   : > { %538 = vst [vmem:[%s6881_s6 + $0x288] sm:$0xf] %v537_v34  ;;  %v665_v34 = vld [vmem:[%s6877_s5 + $0x710] sm:$0xf] }
  0xb7   : > { %540 = vst [vmem:[%s6881_s6 + $0x28c] sm:$0xf] %v539_v35  ;;  %v667_v35 = vld [vmem:[%s6877_s5 + $0x718] sm:$0xf] }
  0xb8   : > { %542 = vst [vmem:[%s6881_s6 + $0x290] sm:$0xf] %v541_v36  ;;  %v669_v36 = vld [vmem:[%s6877_s5 + $0x720] sm:$0xf] }
  0xb9   : > { %544 = vst [vmem:[%s6881_s6 + $0x294] sm:$0xf] %v543_v37  ;;  %v671_v37 = vld [vmem:[%s6877_s5 + $0x728] sm:$0xf] }
  0xba   : > { %546 = vst [vmem:[%s6881_s6 + $0x298] sm:$0xf] %v545_v38  ;;  %v673_v38 = vld [vmem:[%s6877_s5 + $0x730] sm:$0xf] }
  0xbb   : > { %548 = vst [vmem:[%s6881_s6 + $0x29c] sm:$0xf] %v547_v39  ;;  %v675_v39 = vld [vmem:[%s6877_s5 + $0x738] sm:$0xf] }
  0xbc   : > { %550 = vst [vmem:[%s6881_s6 + $0x2a0] sm:$0xf] %v549_v40  ;;  %v677_v40 = vld [vmem:[%s6877_s5 + $0x740] sm:$0xf] }
  0xbd   : > { %552 = vst [vmem:[%s6881_s6 + $0x2a4] sm:$0xf] %v551_v41  ;;  %v679_v41 = vld [vmem:[%s6877_s5 + $0x748] sm:$0xf] }
  0xbe   : > { %554 = vst [vmem:[%s6881_s6 + $0x2a8] sm:$0xf] %v553_v42  ;;  %v681_v42 = vld [vmem:[%s6877_s5 + $0x750] sm:$0xf] }
  0xbf   : > { %556 = vst [vmem:[%s6881_s6 + $0x2ac] sm:$0xf] %v555_v43  ;;  %v683_v43 = vld [vmem:[%s6877_s5 + $0x758] sm:$0xf] }
  0xc0   : > { %558 = vst [vmem:[%s6881_s6 + $0x2b0] sm:$0xf] %v557_v44  ;;  %v685_v44 = vld [vmem:[%s6877_s5 + $0x760] sm:$0xf] }
  0xc1   : > { %560 = vst [vmem:[%s6881_s6 + $0x2b4] sm:$0xf] %v559_v45  ;;  %v687_v45 = vld [vmem:[%s6877_s5 + $0x768] sm:$0xf] }
  0xc2   : > { %562 = vst [vmem:[%s6881_s6 + $0x2b8] sm:$0xf] %v561_v46  ;;  %v689_v46 = vld [vmem:[%s6877_s5 + $0x770] sm:$0xf] }
  0xc3   : > { %564 = vst [vmem:[%s6881_s6 + $0x2bc] sm:$0xf] %v563_v47  ;;  %v691_v47 = vld [vmem:[%s6877_s5 + $0x778] sm:$0xf] }
  0xc4   : > { %566 = vst [vmem:[%s6881_s6 + $0x2c0] sm:$0xf] %v565_v48  ;;  %v693_v48 = vld [vmem:[%s6877_s5 + $0x780] sm:$0xf] }
  0xc5   : > { %568 = vst [vmem:[%s6881_s6 + $0x2c4] sm:$0xf] %v567_v49  ;;  %v695_v49 = vld [vmem:[%s6877_s5 + $0x788] sm:$0xf] }
  0xc6   : > { %570 = vst [vmem:[%s6881_s6 + $0x2c8] sm:$0xf] %v569_v50  ;;  %v697_v50 = vld [vmem:[%s6877_s5 + $0x790] sm:$0xf] }
  0xc7   : > { %572 = vst [vmem:[%s6881_s6 + $0x2cc] sm:$0xf] %v571_v51  ;;  %v699_v51 = vld [vmem:[%s6877_s5 + $0x798] sm:$0xf] }
  0xc8   : > { %574 = vst [vmem:[%s6881_s6 + $0x2d0] sm:$0xf] %v573_v52  ;;  %v701_v52 = vld [vmem:[%s6877_s5 + $0x7a0] sm:$0xf] }
  0xc9   : > { %576 = vst [vmem:[%s6881_s6 + $0x2d4] sm:$0xf] %v575_v53  ;;  %v703_v53 = vld [vmem:[%s6877_s5 + $0x7a8] sm:$0xf] }
  0xca   : > { %578 = vst [vmem:[%s6881_s6 + $0x2d8] sm:$0xf] %v577_v54  ;;  %v705_v54 = vld [vmem:[%s6877_s5 + $0x7b0] sm:$0xf] }
  0xcb   : > { %580 = vst [vmem:[%s6881_s6 + $0x2dc] sm:$0xf] %v579_v55  ;;  %v707_v55 = vld [vmem:[%s6877_s5 + $0x7b8] sm:$0xf] }
  0xcc   : > { %582 = vst [vmem:[%s6881_s6 + $0x2e0] sm:$0xf] %v581_v56  ;;  %v709_v56 = vld [vmem:[%s6877_s5 + $0x7c0] sm:$0xf] }
  0xcd   : > { %584 = vst [vmem:[%s6881_s6 + $0x2e4] sm:$0xf] %v583_v57  ;;  %v711_v57 = vld [vmem:[%s6877_s5 + $0x7c8] sm:$0xf] }
  0xce   : > { %586 = vst [vmem:[%s6881_s6 + $0x2e8] sm:$0xf] %v585_v58  ;;  %v713_v58 = vld [vmem:[%s6877_s5 + $0x7d0] sm:$0xf] }
  0xcf   : > { %588 = vst [vmem:[%s6881_s6 + $0x2ec] sm:$0xf] %v587_v59  ;;  %v715_v59 = vld [vmem:[%s6877_s5 + $0x7d8] sm:$0xf] }
  0xd0   : > { %590 = vst [vmem:[%s6881_s6 + $0x2f0] sm:$0xf] %v589_v60  ;;  %v717_v60 = vld [vmem:[%s6877_s5 + $0x7e0] sm:$0xf] }
  0xd1   : > { %592 = vst [vmem:[%s6881_s6 + $0x2f4] sm:$0xf] %v591_v61  ;;  %v719_v61 = vld [vmem:[%s6877_s5 + $0x7e8] sm:$0xf] }
  0xd2   : > { %594 = vst [vmem:[%s6881_s6 + $0x2f8] sm:$0xf] %v593_v62  ;;  %v721_v62 = vld [vmem:[%s6877_s5 + $0x7f0] sm:$0xf] }
  0xd3   : > { %596 = vst [vmem:[%s6881_s6 + $0x2fc] sm:$0xf] %v595_v63  ;;  %v723_v63 = vld [vmem:[%s6877_s5 + $0x7f8] sm:$0xf] }
  0xd4   : > { %598 = vst [vmem:[%s6881_s6 + $0x300] sm:$0xf] %v597_v0 }
  0xd5   : > { %600 = vst [vmem:[%s6881_s6 + $0x304] sm:$0xf] %v599_v1 }
  0xd6   : > { %602 = vst [vmem:[%s6881_s6 + $0x308] sm:$0xf] %v601_v2 }
  0xd7   : > { %604 = vst [vmem:[%s6881_s6 + $0x30c] sm:$0xf] %v603_v3 }
  0xd8   : > { %606 = vst [vmem:[%s6881_s6 + $0x310] sm:$0xf] %v605_v4 }
  0xd9   : > { %608 = vst [vmem:[%s6881_s6 + $0x314] sm:$0xf] %v607_v5 }
  0xda   : > { %610 = vst [vmem:[%s6881_s6 + $0x318] sm:$0xf] %v609_v6 }
  0xdb   : > { %612 = vst [vmem:[%s6881_s6 + $0x31c] sm:$0xf] %v611_v7 }
  0xdc   : > { %614 = vst [vmem:[%s6881_s6 + $0x320] sm:$0xf] %v613_v8 }
  0xdd   : > { %616 = vst [vmem:[%s6881_s6 + $0x324] sm:$0xf] %v615_v9 }
  0xde   : > { %618 = vst [vmem:[%s6881_s6 + $0x328] sm:$0xf] %v617_v10 }
  0xdf   : > { %620 = vst [vmem:[%s6881_s6 + $0x32c] sm:$0xf] %v619_v11 }
  0xe0   : > { %622 = vst [vmem:[%s6881_s6 + $0x330] sm:$0xf] %v621_v12 }
  0xe1   : > { %624 = vst [vmem:[%s6881_s6 + $0x334] sm:$0xf] %v623_v13 }
  0xe2   : > { %626 = vst [vmem:[%s6881_s6 + $0x338] sm:$0xf] %v625_v14 }
  0xe3   : > { %628 = vst [vmem:[%s6881_s6 + $0x33c] sm:$0xf] %v627_v15 }
  0xe4   : > { %630 = vst [vmem:[%s6881_s6 + $0x340] sm:$0xf] %v629_v16 }
  0xe5   : > { %632 = vst [vmem:[%s6881_s6 + $0x344] sm:$0xf] %v631_v17 }
  0xe6   : > { %634 = vst [vmem:[%s6881_s6 + $0x348] sm:$0xf] %v633_v18 }
  0xe7   : > { %636 = vst [vmem:[%s6881_s6 + $0x34c] sm:$0xf] %v635_v19 }
  0xe8   : > { %638 = vst [vmem:[%s6881_s6 + $0x350] sm:$0xf] %v637_v20 }
  0xe9   : > { %640 = vst [vmem:[%s6881_s6 + $0x354] sm:$0xf] %v639_v21 }
  0xea   : > { %642 = vst [vmem:[%s6881_s6 + $0x358] sm:$0xf] %v641_v22 }
  0xeb   : > { %644 = vst [vmem:[%s6881_s6 + $0x35c] sm:$0xf] %v643_v23 }
  0xec   : > { %646 = vst [vmem:[%s6881_s6 + $0x360] sm:$0xf] %v645_v24 }
  0xed   : > { %648 = vst [vmem:[%s6881_s6 + $0x364] sm:$0xf] %v647_v25 }
  0xee   : > { %650 = vst [vmem:[%s6881_s6 + $0x368] sm:$0xf] %v649_v26 }
  0xef   : > { %652 = vst [vmem:[%s6881_s6 + $0x36c] sm:$0xf] %v651_v27 }
  0xf0   : > { %654 = vst [vmem:[%s6881_s6 + $0x370] sm:$0xf] %v653_v28 }
  0xf1   : > { %656 = vst [vmem:[%s6881_s6 + $0x374] sm:$0xf] %v655_v29 }
  0xf2   : > { %658 = vst [vmem:[%s6881_s6 + $0x378] sm:$0xf] %v657_v30 }
  0xf3   : > { %660 = vst [vmem:[%s6881_s6 + $0x37c] sm:$0xf] %v659_v31 }
  0xf4   : > { %662 = vst [vmem:[%s6881_s6 + $0x380] sm:$0xf] %v661_v32 }
  0xf5   : > { %664 = vst [vmem:[%s6881_s6 + $0x384] sm:$0xf] %v663_v33 }
  0xf6   : > { %666 = vst [vmem:[%s6881_s6 + $0x388] sm:$0xf] %v665_v34 }
  0xf7   : > { %668 = vst [vmem:[%s6881_s6 + $0x38c] sm:$0xf] %v667_v35 }
  0xf8   : > { %670 = vst [vmem:[%s6881_s6 + $0x390] sm:$0xf] %v669_v36 }
  0xf9   : > { %672 = vst [vmem:[%s6881_s6 + $0x394] sm:$0xf] %v671_v37 }
  0xfa   : > { %674 = vst [vmem:[%s6881_s6 + $0x398] sm:$0xf] %v673_v38 }
  0xfb   : > { %676 = vst [vmem:[%s6881_s6 + $0x39c] sm:$0xf] %v675_v39 }
  0xfc   : > { %678 = vst [vmem:[%s6881_s6 + $0x3a0] sm:$0xf] %v677_v40 }
  0xfd   : > { %680 = vst [vmem:[%s6881_s6 + $0x3a4] sm:$0xf] %v679_v41 }
  0xfe   : > { %682 = vst [vmem:[%s6881_s6 + $0x3a8] sm:$0xf] %v681_v42 }
  0xff   : > { %684 = vst [vmem:[%s6881_s6 + $0x3ac] sm:$0xf] %v683_v43 }
 0x100   : > { %686 = vst [vmem:[%s6881_s6 + $0x3b0] sm:$0xf] %v685_v44 }
 0x101   : > { %688 = vst [vmem:[%s6881_s6 + $0x3b4] sm:$0xf] %v687_v45 }
 0x102   : > { %690 = vst [vmem:[%s6881_s6 + $0x3b8] sm:$0xf] %v689_v46 }
 0x103   : > { %692 = vst [vmem:[%s6881_s6 + $0x3bc] sm:$0xf] %v691_v47 }
 0x104   : > { %694 = vst [vmem:[%s6881_s6 + $0x3c0] sm:$0xf] %v693_v48 }
 0x105   : > { %696 = vst [vmem:[%s6881_s6 + $0x3c4] sm:$0xf] %v695_v49 }
 0x106   : > { %698 = vst [vmem:[%s6881_s6 + $0x3c8] sm:$0xf] %v697_v50 }
 0x107   : > { %700 = vst [vmem:[%s6881_s6 + $0x3cc] sm:$0xf] %v699_v51 }
 0x108   : > { %702 = vst [vmem:[%s6881_s6 + $0x3d0] sm:$0xf] %v701_v52 }
 0x109   : > { %704 = vst [vmem:[%s6881_s6 + $0x3d4] sm:$0xf] %v703_v53 }
 0x10a   : > { %706 = vst [vmem:[%s6881_s6 + $0x3d8] sm:$0xf] %v705_v54 }
 0x10b   : > { %708 = vst [vmem:[%s6881_s6 + $0x3dc] sm:$0xf] %v707_v55 }
 0x10c   : > { %710 = vst [vmem:[%s6881_s6 + $0x3e0] sm:$0xf] %v709_v56 }
 0x10d   : > { %712 = vst [vmem:[%s6881_s6 + $0x3e4] sm:$0xf] %v711_v57 }
 0x10e   : > { %714 = vst [vmem:[%s6881_s6 + $0x3e8] sm:$0xf] %v713_v58 }
 0x10f   : > { %716 = vst [vmem:[%s6881_s6 + $0x3ec] sm:$0xf] %v715_v59 }
 0x110   : > { %718 = vst [vmem:[%s6881_s6 + $0x3f0] sm:$0xf] %v717_v60 }
 0x111   : > { %720 = vst [vmem:[%s6881_s6 + $0x3f4] sm:$0xf] %v719_v61 }
 0x112   : > { %722 = vst [vmem:[%s6881_s6 + $0x3f8] sm:$0xf] %v721_v62 }
 0x113   : > { %724 = vst [vmem:[%s6881_s6 + $0x3fc] sm:$0xf] %v723_v63 }
 0x114 PF: > { %p5390_p8 = scmp.ge.s32.totalorder %s6802_s19, 1  ;;  %p2309_p9 = scmp.lt.s32.totalorder %s6802_s19, 3 }
 0x116   : > { %p2310_p10 = pnand %p5390_p8, %p2309_p9 }
 0x117   : > { %s2316_s7 = sand.u32 (!%p2310_p10), 1, %s6786_s15   ;;  %p2370_p11 = scmp.lt.s32.totalorder (!%p2310_p10), %s6794_s17, 1 }
 0x118   : > { %2313 = sbr.rel (%p2310_p10) target bundleno = 979 (0x3d3), region = 76  ;;  %s5391_s8 = sshll.u32 (!%p2310_p10), %s2316_s7, 10 }
 0x119   : > { %s7398_s9 = scalar_lea.vmem (!%p2310_p10), [#allocation2], %s5391_s8  ;;  %s5392_s23 = sshll.u32 (!%p2310_p10), %s2316_s7, 6 }
 0x11a   : > { %s8429_s26 = scalar_lea.vmem (!%p2310_p10), [#allocation3], %s5392_s23 }
 0x11d   : > { %v6556_v0 = vld [vmem:[%s7398_s9 + $0x38] sm:$0xff]  ;;  %v6555_v4 = vld [vmem:[%s7398_s9 + $0x30] sm:$0xff]  ;;  %v6554_v8 = vld [vmem:[%s7398_s9 + $0x28] sm:$0xff]  ;;  %s2371_s15 = scalar_select %p2370_p11, %s6794_s17, 1 }
 0x11e   : > { %v6564_v1 = vld [vmem:[%s7398_s9 + $0x78] sm:$0xff]  ;;  %4174 = vmatpush.bf16.msra.mxu0 %v6556_v0  ;;  %v6563_v5 = vld [vmem:[%s7398_s9 + $0x70] sm:$0xff]  ;;  %v6562_v9 = vld [vmem:[%s7398_s9 + $0x68] sm:$0xff]  ;;  %s6418_s5 = sshll.u32 (%p6864_p6), %s6794_s17, 2 }
 0x11f   : > { %v6572_v2 = vld [vmem:[%s7398_s9 + $0xb8] sm:$0xff]  ;;  %4223 = vmatpush.bf16.msra.mxu1 %v6564_v1  ;;  %v6571_v6 = vld [vmem:[%s7398_s9 + $0xb0] sm:$0xff]  ;;  %v6570_v10 = vld [vmem:[%s7398_s9 + $0xa8] sm:$0xff]  ;;  %s2381_s30 = scalar_lea.vmem %s8501_s4, %s2371_s15  ;;  %s5123_s10 = scalar_lea.vmem (%p6864_p6), %s8499_s2, %s6418_s5 }
 0x120   : > { %v6580_v3 = vld [vmem:[%s7398_s9 + $0xf8] sm:$0xff]  ;;  %4272 = vmatpush.bf16.msra.mxu2 %v6572_v2  ;;  %v6579_v7 = vld [vmem:[%s7398_s9 + $0xf0] sm:$0xff]  ;;  %v6578_v11 = vld [vmem:[%s7398_s9 + $0xe8] sm:$0xff] }
 0x121   : > { %4321 = vmatpush.bf16.msra.mxu3 %v6580_v3  ;;  %v6553_v12 = vld [vmem:[%s7398_s9 + $0x20] sm:$0xff]  ;;  %v6552_v16 = vld [vmem:[%s7398_s9 + $0x18] sm:$0xff]  ;;  %v6551_v20 = vld [vmem:[%s7398_s9 + $0x10] sm:$0xff] }
 0x122   : > { %4175 = vmatpush.bf16.msra.mxu0 %v6555_v4  ;;  %v6561_v13 = vld [vmem:[%s7398_s9 + $0x60] sm:$0xff]  ;;  %v6560_v17 = vld [vmem:[%s7398_s9 + $0x58] sm:$0xff]  ;;  %v6559_v21 = vld [vmem:[%s7398_s9 + $0x50] sm:$0xff] }
 0x123   : > { %4224 = vmatpush.bf16.msra.mxu1 %v6563_v5  ;;  %v6569_v14 = vld [vmem:[%s7398_s9 + $0xa0] sm:$0xff]  ;;  %v6568_v18 = vld [vmem:[%s7398_s9 + $0x98] sm:$0xff]  ;;  %v6567_v22 = vld [vmem:[%s7398_s9 + $0x90] sm:$0xff] }
 0x124   : > { %4273 = vmatpush.bf16.msra.mxu2 %v6571_v6  ;;  %v6577_v15 = vld [vmem:[%s7398_s9 + $0xe0] sm:$0xff]  ;;  %v6576_v19 = vld [vmem:[%s7398_s9 + $0xd8] sm:$0xff]  ;;  %v6575_v23 = vld [vmem:[%s7398_s9 + $0xd0] sm:$0xff] }
 0x125   : > { %4322 = vmatpush.bf16.msra.mxu3 %v6579_v7  ;;  %v6550_v24 = vld [vmem:[%s7398_s9 + $0x8] sm:$0xff]  ;;  %v6549_v28 = vld [vmem:[%s7398_s9] sm:$0xff]  ;;  %v6604_v40 = vld [vmem:[%s7398_s9 + $0x1b8] sm:$0xff] }
 0x126   : > { %4176 = vmatpush.bf16.msra.mxu0 %v6554_v8  ;;  %v6558_v25 = vld [vmem:[%s7398_s9 + $0x48] sm:$0xff]  ;;  %v5395_v29 = vld [vmem:[%s8497_s0] sm:$0xf]  ;;  %v6421_v34 = vld [vmem:[%s8497_s0 + $0x4] sm:$0xf] }
 0x127   : > { %4225 = vmatpush.bf16.msra.mxu1 %v6562_v9  ;;  %v6566_v26 = vld [vmem:[%s7398_s9 + $0x88] sm:$0xff]  ;;  %v6429_v30 = vld [vmem:[%s8497_s0 + $0x3c] sm:$0xf0]  ;;  %v5397_v35 = vld [vmem:[%s8497_s0 + $0x40] sm:$0xf0] }
 0x128   : > { %4274 = vmatpush.bf16.msra.mxu2 %v6570_v10  ;;  %v6574_v27 = vld [vmem:[%s7398_s9 + $0xc8] sm:$0xff]  ;;  %v6557_v31 = vld [vmem:[%s7398_s9 + $0x40] sm:$0xff]  ;;  %v6588_v41 = vld [vmem:[%s7398_s9 + $0x138] sm:$0xff]  ;;  %v5396_v42 = vor.u32 %v6429_v30, %v5395_v29  ;;  %v5400_v43 = vor.u32 %v6421_v34, %v5397_v35 }
 0x129   : > { %4323 = vmatpush.bf16.msra.mxu3 %v6578_v11  ;;  %v6565_v32 = vld [vmem:[%s7398_s9 + $0x80] sm:$0xff]  ;;  %v5403_v36 = vld [vmem:[%s8497_s0 + $0x8] sm:$0xf]  ;;  %v6422_v38 = vld [vmem:[%s8497_s0 + $0xc] sm:$0xf] }
 0x12a   : > { %4177 = vmatpush.bf16.msra.mxu0 %v6553_v12  ;;  %v6573_v33 = vld [vmem:[%s7398_s9 + $0xc0] sm:$0xff]  ;;  %v6430_v37 = vld [vmem:[%s8497_s0 + $0x44] sm:$0xf0]  ;;  %v5405_v39 = vld [vmem:[%s8497_s0 + $0x48] sm:$0xf0] }
 0x12b   : > { %4226 = vmatpush.bf16.msra.mxu1 %v6561_v13  ;;  %v5404_v44 = vor.u32 %v6430_v37, %v5403_v36  ;;  %v5408_v45 = vor.u32 %v6422_v38, %v5405_v39  ;;  %v6612_v46 = vld [vmem:[%s7398_s9 + $0x1f8] sm:$0xff]  ;;  %v6603_v48 = vld [vmem:[%s7398_s9 + $0x1b0] sm:$0xff]  ;;  %v6602_v52 = vld [vmem:[%s7398_s9 + $0x1a8] sm:$0xff] }
 0x12c   : > { %4275 = vmatpush.bf16.msra.mxu2 %v6569_v14  ;;  %v6596_v47 = vld [vmem:[%s7398_s9 + $0x178] sm:$0xff]  ;;  %v6587_v49 = vld [vmem:[%s7398_s9 + $0x130] sm:$0xff]  ;;  %v6586_v53 = vld [vmem:[%s7398_s9 + $0x128] sm:$0xff] }
 0x12d   : > { %4324 = vmatpush.bf16.msra.mxu3 %v6577_v15  ;;  %v6611_v50 = vld [vmem:[%s7398_s9 + $0x1f0] sm:$0xff]  ;;  %v6610_v54 = vld [vmem:[%s7398_s9 + $0x1e8] sm:$0xff]  ;;  %v5459_v56 = vld [vmem:[%s8497_s0 + $0x80] sm:$0xf] }
 0x12e   : > { %4178 = vmatpush.bf16.msra.mxu0 %v6552_v16  ;;  %v6595_v51 = vld [vmem:[%s7398_s9 + $0x170] sm:$0xff]  ;;  %v6594_v55 = vld [vmem:[%s7398_s9 + $0x168] sm:$0xff]  ;;  %v6445_v57 = vld [vmem:[%s8497_s0 + $0xbc] sm:$0xf0] }
 0x12f   : > { %4227 = vmatpush.bf16.msra.mxu1 %v6560_v17  ;;  %v6437_v58 = vld [vmem:[%s8497_s0 + $0x84] sm:$0xf]  ;;  %v5467_v60 = vld [vmem:[%s8497_s0 + $0x88] sm:$0xf]  ;;  %v6438_v62 = vld [vmem:[%s8497_s0 + $0x8c] sm:$0xf]  ;;  %v5460_v0 = vor.u32 %v6445_v57, %v5459_v56 }
 0x130   : > { %4276 = vmatpush.bf16.msra.mxu2 %v6568_v18  ;;  %v5461_v59 = vld [vmem:[%s8497_s0 + $0xc0] sm:$0xf0]  ;;  %v6446_v61 = vld [vmem:[%s8497_s0 + $0xc4] sm:$0xf0]  ;;  %v5469_v63 = vld [vmem:[%s8497_s0 + $0xc8] sm:$0xf0] }
 0x131   : > { %4325 = vmatpush.bf16.msra.mxu3 %v6576_v19  ;;  %v5464_v1 = vor.u32 %v6437_v58, %v5461_v59  ;;  %v5468_v2 = vor.u32 %v6446_v61, %v5467_v60  ;;  %v5472_v3 = vor.u32 %v6438_v62, %v5469_v63  ;;  %v6601_v4 = vld [vmem:[%s7398_s9 + $0x1a0] sm:$0xff]  ;;  %v5531_v12 = vld [vmem:[%s8497_s0 + $0x108] sm:$0xf]  ;;  %v6454_v14 = vld [vmem:[%s8497_s0 + $0x10c] sm:$0xf] }
 0x132   : > { %4179 = vmatpush.bf16.msra.mxu0 %v6551_v20  ;;  %v6585_v5 = vld [vmem:[%s7398_s9 + $0x120] sm:$0xff]  ;;  %v6462_v13 = vld [vmem:[%s8497_s0 + $0x144] sm:$0xf0]  ;;  %v5533_v15 = vld [vmem:[%s8497_s0 + $0x148] sm:$0xf0] }
 0x133   : > { %4228 = vmatpush.bf16.msra.mxu1 %v6559_v21  ;;  %v6609_v6 = vld [vmem:[%s7398_s9 + $0x1e0] sm:$0xff]  ;;  %v5532_v18 = vor.u32 %v6462_v13, %v5531_v12  ;;  %v5536_v19 = vor.u32 %v6454_v14, %v5533_v15  ;;  %v6600_v20 = vld [vmem:[%s7398_s9 + $0x198] sm:$0xff]  ;;  %v6478_v29 = vld [vmem:[%s8497_s0 + $0x1c4] sm:$0xf0] }
 0x134   : > { %4277 = vmatpush.bf16.msra.mxu2 %v6567_v22  ;;  %v6593_v7 = vld [vmem:[%s7398_s9 + $0x160] sm:$0xff]  ;;  %v6584_v21 = vld [vmem:[%s7398_s9 + $0x118] sm:$0xff]  ;;  %v6470_v30 = vld [vmem:[%s8497_s0 + $0x18c] sm:$0xf] }
 0x135   : > { %4326 = vmatpush.bf16.msra.mxu3 %v6575_v23  ;;  %v5523_v8 = vld [vmem:[%s8497_s0 + $0x100] sm:$0xf]  ;;  %v6453_v10 = vld [vmem:[%s8497_s0 + $0x104] sm:$0xf]  ;;  %v6608_v22 = vld [vmem:[%s7398_s9 + $0x1d8] sm:$0xff] }
 0x136   : > { %4180 = vmatpush.bf16.msra.mxu0 %v6550_v24  ;;  %v6461_v9 = vld [vmem:[%s8497_s0 + $0x13c] sm:$0xf0]  ;;  %v5525_v11 = vld [vmem:[%s8497_s0 + $0x140] sm:$0xf0]  ;;  %v6592_v23 = vld [vmem:[%s7398_s9 + $0x158] sm:$0xff] }
 0x137   : > { %4229 = vmatpush.bf16.msra.mxu1 %v6558_v25  ;;  %v5524_v16 = vor.u32 %v6461_v9, %v5523_v8  ;;  %v5528_v17 = vor.u32 %v6453_v10, %v5525_v11  ;;  %v5587_v24 = vld [vmem:[%s8497_s0 + $0x180] sm:$0xf]  ;;  %v6599_v36 = vld [vmem:[%s7398_s9 + $0x190] sm:$0xff]  ;;  %v6501_v58 = vld [vmem:[%s8497_s0 + $0x284] sm:$0xf] }
 0x138   : > { %4278 = vmatpush.bf16.msra.mxu2 %v6566_v26  ;;  %v6477_v25 = vld [vmem:[%s8497_s0 + $0x1bc] sm:$0xf0]  ;;  %v6469_v26 = vld [vmem:[%s8497_s0 + $0x184] sm:$0xf]  ;;  %v6583_v37 = vld [vmem:[%s7398_s9 + $0x110] sm:$0xff] }
 0x139   : > { %4327 = vmatpush.bf16.msra.mxu3 %v6574_v27  ;;  %v5589_v27 = vld [vmem:[%s8497_s0 + $0x1c0] sm:$0xf0]  ;;  %v6607_v38 = vld [vmem:[%s7398_s9 + $0x1d0] sm:$0xff]  ;;  %v5715_v56 = vld [vmem:[%s8497_s0 + $0x280] sm:$0xf] }
 0x13a   : > { %4181 = vmatpush.bf16.msra.mxu0 %v6549_v28  ;;  %v5595_v28 = vld [vmem:[%s8497_s0 + $0x188] sm:$0xf]  ;;  %v6591_v39 = vld [vmem:[%s7398_s9 + $0x150] sm:$0xff]  ;;  %v6509_v57 = vld [vmem:[%s8497_s0 + $0x2bc] sm:$0xf0] }
 0x13b   : > { %4230 = vmatpush.bf16.msra.mxu1 %v6557_v31  ;;  %v5597_v31 = vld [vmem:[%s8497_s0 + $0x1c8] sm:$0xf0]  ;;  %v5596_v34 = vor.u32 %v6478_v29, %v5595_v28  ;;  %v5717_v59 = vld [vmem:[%s8497_s0 + $0x2c0] sm:$0xf0]  ;;  %v5723_v60 = vld [vmem:[%s8497_s0 + $0x288] sm:$0xf] }
 0x13c   : > { %4279 = vmatpush.bf16.msra.mxu2 %v6565_v32  ;;  %v5588_v32 = vor.u32 %v6477_v25, %v5587_v24  ;;  %v5600_v35 = vor.u32 %v6470_v30, %v5597_v31  ;;  %v6510_v61 = vld [vmem:[%s8497_s0 + $0x2c4] sm:$0xf0]  ;;  %v6502_v62 = vld [vmem:[%s8497_s0 + $0x28c] sm:$0xf]  ;;  %v5779_v8 = vld [vmem:[%s8497_s0 + $0x300] sm:$0xf] }
 0x13d   : > { %4328 = vmatpush.bf16.msra.mxu3 %v6573_v33  ;;  %4182 = vmatmul.bf16.vlgmr.msra.gmra.mxu0 %v5396_v42  ;;  %v5592_v33 = vor.u32 %v6469_v26, %v5589_v27  ;;  %v6485_v42 = vld [vmem:[%s8497_s0 + $0x204] sm:$0xf]  ;;  %v5725_v63 = vld [vmem:[%s8497_s0 + $0x2c8] sm:$0xf0]  ;;  %v6525_v9 = vld [vmem:[%s8497_s0 + $0x33c] sm:$0xf0] }
 0x13e   : > { %4370 = vmatpush.bf16.msrb.mxu0 %v6588_v41  ;;  %4231 = vmatmul.bf16.vlgmr.msra.gmra.mxu1 %v5400_v43  ;;  %v6493_v41 = vld [vmem:[%s8497_s0 + $0x23c] sm:$0xf0]  ;;  %v5653_v43 = vld [vmem:[%s8497_s0 + $0x240] sm:$0xf0]  ;;  %v5787_v12 = vld [vmem:[%s8497_s0 + $0x308] sm:$0xf] }
 0x13f   : > { %4280 = vmatmul.bf16.vlgmr.msra.gmra.mxu2 %v5404_v44  ;;  %4419 = vmatpush.bf16.msrb.mxu1 %v6596_v47  ;;  %v5659_v44 = vld [vmem:[%s8497_s0 + $0x208] sm:$0xf]  ;;  %v5661_v47 = vld [vmem:[%s8497_s0 + $0x248] sm:$0xf0]  ;;  %v6517_v10 = vld [vmem:[%s8497_s0 + $0x304] sm:$0xf] }
 0x140   : > { %4468 = vmatpush.bf16.msrb.mxu2 %v6604_v40  ;;  %4329 = vmatmul.bf16.vlgmr.msra.gmra.mxu3 %v5408_v45  ;;  %v5651_v40 = vld [vmem:[%s8497_s0 + $0x200] sm:$0xf]  ;;  %v6494_v45 = vld [vmem:[%s8497_s0 + $0x244] sm:$0xf0]  ;;  %v5781_v11 = vld [vmem:[%s8497_s0 + $0x340] sm:$0xf0] }
 0x141   : > { %4517 = vmatpush.bf16.msrb.mxu3 %v6612_v46  ;;  %v6486_v46 = vld [vmem:[%s8497_s0 + $0x20c] sm:$0xf]  ;;  %v6526_v13 = vld [vmem:[%s8497_s0 + $0x344] sm:$0xf0]  ;;  %v5843_v24 = vld [vmem:[%s8497_s0 + $0x380] sm:$0xf] }
 0x142   : > { %4371 = vmatpush.bf16.msrb.mxu0 %v6587_v49  ;;  %v5656_v49 = vor.u32 %v6485_v42, %v5653_v43  ;;  %v6518_v14 = vld [vmem:[%s8497_s0 + $0x30c] sm:$0xf]  ;;  %v6541_v25 = vld [vmem:[%s8497_s0 + $0x3bc] sm:$0xf0]  ;;  %v6533_v26 = vld [vmem:[%s8497_s0 + $0x384] sm:$0xf] }
 0x143   : > { %4420 = vmatpush.bf16.msrb.mxu1 %v6595_v51  ;;  %v5664_v51 = vor.u32 %v6486_v46, %v5661_v47  ;;  %v5789_v15 = vld [vmem:[%s8497_s0 + $0x348] sm:$0xf0]  ;;  %v5845_v27 = vld [vmem:[%s8497_s0 + $0x3c0] sm:$0xf0]  ;;  %v5851_v28 = vld [vmem:[%s8497_s0 + $0x388] sm:$0xf] }
 0x144   : > { %4469 = vmatpush.bf16.msrb.mxu2 %v6603_v48  ;;  %v5652_v48 = vor.u32 %v6493_v41, %v5651_v40  ;;  %v6542_v29 = vld [vmem:[%s8497_s0 + $0x3c4] sm:$0xf0]  ;;  %v6534_v30 = vld [vmem:[%s8497_s0 + $0x38c] sm:$0xf]  ;;  %v5411_v40 = vld [vmem:[%s8497_s0 + $0x10] sm:$0xf] }
 0x145   : > { %4518 = vmatpush.bf16.msrb.mxu3 %v6611_v50  ;;  %v5660_v50 = vor.u32 %v6494_v45, %v5659_v44  ;;  %v5853_v31 = vld [vmem:[%s8497_s0 + $0x3c8] sm:$0xf0]  ;;  %v6431_v41 = vld [vmem:[%s8497_s0 + $0x4c] sm:$0xf0]  ;;  %v6423_v42 = vld [vmem:[%s8497_s0 + $0x14] sm:$0xf] }
 0x146   : > { %4372 = vmatpush.bf16.msrb.mxu0 %v6586_v53  ;;  %v6582_v53 = vld [vmem:[%s7398_s9 + $0x108] sm:$0xff]  ;;  %v5413_v43 = vld [vmem:[%s8497_s0 + $0x50] sm:$0xf0]  ;;  %v5419_v44 = vld [vmem:[%s8497_s0 + $0x18] sm:$0xf] }
 0x147   : > { %4421 = vmatpush.bf16.msrb.mxu1 %v6594_v55  ;;  %v6590_v55 = vld [vmem:[%s7398_s9 + $0x148] sm:$0xff]  ;;  %v6432_v45 = vld [vmem:[%s8497_s0 + $0x54] sm:$0xf0]  ;;  %v6424_v46 = vld [vmem:[%s8497_s0 + $0x1c] sm:$0xf] }
 0x148   : > { %4470 = vmatpush.bf16.msrb.mxu2 %v6602_v52  ;;  %v6598_v52 = vld [vmem:[%s7398_s9 + $0x188] sm:$0xff]  ;;  %v5421_v47 = vld [vmem:[%s8497_s0 + $0x58] sm:$0xf0] }
 0x149   : > { %4519 = vmatpush.bf16.msrb.mxu3 %v6610_v54  ;;  %v6606_v54 = vld [vmem:[%s7398_s9 + $0x1c8] sm:$0xff] }
 0x14a   : > { %4373 = vmatpush.bf16.msrb.mxu0 %v6585_v5  ;;  %v6581_v5 = vld [vmem:[%s7398_s9 + $0x100] sm:$0xff] }
 0x14b   : > { %4422 = vmatpush.bf16.msrb.mxu1 %v6593_v7  ;;  %v6589_v7 = vld [vmem:[%s7398_s9 + $0x140] sm:$0xff] }
 0x14c   : > { %4471 = vmatpush.bf16.msrb.mxu2 %v6601_v4  ;;  %v6597_v4 = vld [vmem:[%s7398_s9 + $0x180] sm:$0xff] }
 0x14d   : > { %4187 = vmatmul.bf16.gmra.mxu0 %v5460_v0  ;;  %4520 = vmatpush.bf16.msrb.mxu3 %v6609_v6  ;;  %v5716_v0 = vor.u32 %v6509_v57, %v5715_v56  ;;  %v6605_v6 = vld [vmem:[%s7398_s9 + $0x1c0] sm:$0xff]  ;;  %v6618_v56 = vld [vmem:[%s7398_s9 + $0x228] sm:$0xff] }
 0x14e   : > { %4236 = vmatmul.bf16.gmra.mxu1 %v5464_v1  ;;  %4374 = vmatpush.bf16.msrb.mxu0 %v6584_v21  ;;  %v5720_v1 = vor.u32 %v6501_v58, %v5717_v59  ;;  %v6620_v21 = vld [vmem:[%s7398_s9 + $0x238] sm:$0xff]  ;;  %v6642_v57 = vld [vmem:[%s7398_s9 + $0x2e8] sm:$0xff] }
 0x14f   : > { %4285 = vmatmul.bf16.gmra.mxu2 %v5468_v2  ;;  %4423 = vmatpush.bf16.msrb.mxu1 %v6592_v23  ;;  %v5724_v2 = vor.u32 %v6510_v61, %v5723_v60  ;;  %v6628_v23 = vld [vmem:[%s7398_s9 + $0x278] sm:$0xff] }
 0x150   : > { %4334 = vmatmul.bf16.gmra.mxu3 %v5472_v3  ;;  %4472 = vmatpush.bf16.msrb.mxu2 %v6600_v20  ;;  %v5728_v3 = vor.u32 %v6502_v62, %v5725_v63  ;;  %v6636_v20 = vld [vmem:[%s7398_s9 + $0x2b8] sm:$0xff] }
 0x151   : > { %4521 = vmatpush.bf16.msrb.mxu3 %v6608_v22  ;;  %v6644_v22 = vld [vmem:[%s7398_s9 + $0x2f8] sm:$0xff] }
 0x152   : > { %4375 = vmatpush.bf16.msrb.mxu0 %v6583_v37  ;;  %v6619_v37 = vld [vmem:[%s7398_s9 + $0x230] sm:$0xff] }
 0x153   : > { %4424 = vmatpush.bf16.msrb.mxu1 %v6591_v39  ;;  %v6627_v39 = vld [vmem:[%s7398_s9 + $0x270] sm:$0xff] }
 0x154   : > { %4473 = vmatpush.bf16.msrb.mxu2 %v6599_v36  ;;  %v6635_v36 = vld [vmem:[%s7398_s9 + $0x2b0] sm:$0xff] }
 0x155   : > { %4522 = vmatpush.bf16.msrb.mxu3 %v6607_v38  ;;  %v6643_v38 = vld [vmem:[%s7398_s9 + $0x2f0] sm:$0xff] }
 0x156   : > { %4376 = vmatpush.bf16.msrb.mxu0 %v6582_v53  ;;  %v5424_v53 = vor.u32 %v6424_v46, %v5421_v47 }
 0x157   : > { %4425 = vmatpush.bf16.msrb.mxu1 %v6590_v55  ;;  %v6634_v55 = vld [vmem:[%s7398_s9 + $0x2a8] sm:$0xff] }
 0x158   : > { %4474 = vmatpush.bf16.msrb.mxu2 %v6598_v52  ;;  %v5420_v52 = vor.u32 %v6432_v45, %v5419_v44 }
 0x159   : > { %4523 = vmatpush.bf16.msrb.mxu3 %v6606_v54 }
 0x15a   : > { %4377 = vmatpush.bf16.msrb.mxu0 %v6581_v5  ;;  %v5477_v5 = vld [vmem:[%s8497_s0 + $0xd0] sm:$0xf0] }
 0x15b   : > { %4426 = vmatpush.bf16.msrb.mxu1 %v6589_v7  ;;  %v6448_v7 = vld [vmem:[%s8497_s0 + $0xd4] sm:$0xf0] }
 0x15c   : > { %4475 = vmatpush.bf16.msrb.mxu2 %v6597_v4  ;;  %v6439_v4 = vld [vmem:[%s8497_s0 + $0x94] sm:$0xf] }
 0x15d   : > { %4192 = vmatmul.bf16.gmra.mxu0 %v5524_v16  ;;  %4524 = vmatpush.bf16.msrb.mxu3 %v6605_v6  ;;  %v5780_v16 = vor.u32 %v6525_v9, %v5779_v8  ;;  %v5483_v6 = vld [vmem:[%s8497_s0 + $0x98] sm:$0xf]  ;;  %v6440_v8 = vld [vmem:[%s8497_s0 + $0x9c] sm:$0xf] }
 0x15e   : > { %4241 = vmatmul.bf16.gmra.mxu1 %v5528_v17  ;;  %v5784_v17 = vor.u32 %v6517_v10, %v5781_v11  ;;  %4566 = vmatpush.bf16.msra.mxu0 %v6620_v21  ;;  %v5485_v9 = vld [vmem:[%s8497_s0 + $0xd8] sm:$0xf0]  ;;  %v6633_v21 = vld [vmem:[%s7398_s9 + $0x2a0] sm:$0xff] }
 0x15f   : > { %4290 = vmatmul.bf16.gmra.mxu2 %v5532_v18  ;;  %v5788_v18 = vor.u32 %v6526_v13, %v5787_v12  ;;  %4615 = vmatpush.bf16.msra.mxu1 %v6628_v23  ;;  %v5480_v13 = vor.u32 %v6439_v4, %v5477_v5  ;;  %v6641_v23 = vld [vmem:[%s7398_s9 + $0x2e0] sm:$0xff]  ;;  %v6480_v4 = vld [vmem:[%s8497_s0 + $0x1d4] sm:$0xf0]  ;;  %v6472_v5 = vld [vmem:[%s8497_s0 + $0x19c] sm:$0xf] }
 0x160   : > { %4339 = vmatmul.bf16.gmra.mxu3 %v5536_v19  ;;  %v5792_v19 = vor.u32 %v6518_v14, %v5789_v15  ;;  %4664 = vmatpush.bf16.msra.mxu2 %v6636_v20 }
 0x161   : > { %4713 = vmatpush.bf16.msra.mxu3 %v6644_v22  ;;  %v6617_v22 = vld [vmem:[%s7398_s9 + $0x220] sm:$0xff] }
 0x162   : > { %4567 = vmatpush.bf16.msra.mxu0 %v6619_v37  ;;  %v6464_v37 = vld [vmem:[%s8497_s0 + $0x154] sm:$0xf0] }
 0x163   : > { %4616 = vmatpush.bf16.msra.mxu1 %v6627_v39  ;;  %v5549_v39 = vld [vmem:[%s8497_s0 + $0x158] sm:$0xf0] }
 0x164   : > { %4665 = vmatpush.bf16.msra.mxu2 %v6635_v36  ;;  %v5547_v36 = vld [vmem:[%s8497_s0 + $0x118] sm:$0xf] }
 0x165   : > { %4714 = vmatpush.bf16.msra.mxu3 %v6643_v38  ;;  %v6456_v38 = vld [vmem:[%s8497_s0 + $0x11c] sm:$0xf]  ;;  %v5548_v47 = vor.u32 %v6464_v37, %v5547_v36  ;;  %v6496_v36 = vld [vmem:[%s8497_s0 + $0x254] sm:$0xf0] }
 0x166   : > { %4568 = vmatpush.bf16.msra.mxu0 %v6618_v56  ;;  %v6488_v37 = vld [vmem:[%s8497_s0 + $0x21c] sm:$0xf] }
 0x168   : > { %4666 = vmatpush.bf16.msra.mxu2 %v6634_v55 }
 0x169   : > { %4715 = vmatpush.bf16.msra.mxu3 %v6642_v57 }
 0x16a   : > { %4569 = vmatpush.bf16.msra.mxu0 %v6617_v22 }
 0x16c   : > { %4667 = vmatpush.bf16.msra.mxu2 %v6633_v21  ;;  %v6639_v21 = vld [vmem:[%s7398_s9 + $0x2d0] sm:$0xff] }
 0x16d   : > { %4197 = vmatmul.bf16.gmra.mxu0 %v5588_v32  ;;  %v5844_v32 = vor.u32 %v6541_v25, %v5843_v24  ;;  %4716 = vmatpush.bf16.msra.mxu3 %v6641_v23 }
 0x16e   : > { %4246 = vmatmul.bf16.gmra.mxu1 %v5592_v33  ;;  %v5848_v33 = vor.u32 %v6533_v26, %v5845_v27 }
 0x16f   : > { %4295 = vmatmul.bf16.gmra.mxu2 %v5596_v34  ;;  %v5852_v34 = vor.u32 %v6542_v29, %v5851_v28 }
 0x170   : > { %4344 = vmatmul.bf16.gmra.mxu3 %v5600_v35  ;;  %v5856_v35 = vor.u32 %v6534_v30, %v5853_v31  ;;  %v6625_v31 = vld [vmem:[%s7398_s9 + $0x260] sm:$0xff] }
 0x17d   : > { %4202 = vmatmul.bf16.gmra.mxu0 %v5652_v48  ;;  %v5412_v48 = vor.u32 %v6431_v41, %v5411_v40 }
 0x17e   : > { %4251 = vmatmul.bf16.gmra.mxu1 %v5656_v49  ;;  %v5416_v49 = vor.u32 %v6423_v42, %v5413_v43 }
 0x17f   : > { %4300 = vmatmul.bf16.gmra.mxu2 %v5660_v50 }
 0x180   : > { %4349 = vmatmul.bf16.gmra.mxu3 %v5664_v51 }
 0x18d   : > { %4207 = vmatmul.bf16.gmra.mxu0 %v5716_v0 }
 0x18e   : > { %4256 = vmatmul.bf16.gmra.mxu1 %v5720_v1  ;;  %v6626_v1 = vld [vmem:[%s7398_s9 + $0x268] sm:$0xff] }
 0x18f   : > { %4305 = vmatmul.bf16.gmra.mxu2 %v5724_v2  ;;  %v5475_v2 = vld [vmem:[%s8497_s0 + $0x90] sm:$0xf]  ;;  %4617 = vmatpush.bf16.msra.mxu1 %v6626_v1  ;;  %v6471_v1 = vld [vmem:[%s8497_s0 + $0x194] sm:$0xf] }
 0x190   : > { %4354 = vmatmul.bf16.gmra.mxu3 %v5728_v3  ;;  %v6447_v3 = vld [vmem:[%s8497_s0 + $0xcc] sm:$0xf0] }
 0x191   : > { %v5476_v12 = vor.u32 %v6447_v3, %v5475_v2  ;;  %v5605_v2 = vld [vmem:[%s8497_s0 + $0x1d0] sm:$0xf0]  ;;  %v5611_v3 = vld [vmem:[%s8497_s0 + $0x198] sm:$0xf] }
 0x193   : > { %4618 = vmatpush.bf16.msra.mxu1 %v6625_v31  ;;  %v5667_v31 = vld [vmem:[%s8497_s0 + $0x210] sm:$0xf] }
 0x19d   : > { %4212 = vmatmul.bf16.gmra.mxu0 %v5780_v16 }
 0x19e   : > { %4261 = vmatmul.bf16.gmra.mxu1 %v5784_v17  ;;  %v5484_v17 = vor.u32 %v6448_v7, %v5483_v6  ;;  %v5613_v6 = vld [vmem:[%s8497_s0 + $0x1d8] sm:$0xf0] }
 0x19f   : > { %4310 = vmatmul.bf16.gmra.mxu2 %v5788_v18  ;;  %v5488_v18 = vor.u32 %v6440_v8, %v5485_v9 }
 0x1a0   : > { %4359 = vmatmul.bf16.gmra.mxu3 %v5792_v19 }
 0x1ad   : > { %4217 = vmatmul.bf16.gmra.mxu0 %v5844_v32  ;;  %v5539_v32 = vld [vmem:[%s8497_s0 + $0x110] sm:$0xf] }
 0x1ae   : > { %4266 = vmatmul.bf16.gmra.mxu1 %v5848_v33  ;;  %v6463_v33 = vld [vmem:[%s8497_s0 + $0x14c] sm:$0xf0] }
 0x1af   : > { %4315 = vmatmul.bf16.gmra.mxu2 %v5852_v34  ;;  %v6455_v34 = vld [vmem:[%s8497_s0 + $0x114] sm:$0xf]  ;;  %v5540_v42 = vor.u32 %v6463_v33, %v5539_v32  ;;  %v6495_v32 = vld [vmem:[%s8497_s0 + $0x24c] sm:$0xf0] }
 0x1b0   : > { %4364 = vmatmul.bf16.gmra.mxu3 %v5856_v35  ;;  %v5541_v35 = vld [vmem:[%s8497_s0 + $0x150] sm:$0xf0] }
 0x1b1   : > { %v5544_v43 = vor.u32 %v6455_v34, %v5541_v35  ;;  %v6487_v33 = vld [vmem:[%s8497_s0 + $0x214] sm:$0xf]  ;;  %v5675_v35 = vld [vmem:[%s8497_s0 + $0x218] sm:$0xf] }
 0x1b2   : > { %v5669_v34 = vld [vmem:[%s8497_s0 + $0x250] sm:$0xf0] }
 0x1ba   : > { %v4183_v50 = vpop.f32.mrf.mxu0 }
 0x1bb   : > { %v4232_v51 = vpop.f32.mrf.mxu1 }
 0x1bc   : > { %v4233_v54 = vadd.f32 %v4232_v51, %v4183_v50  ;;  %v6632_v51 = vld [vmem:[%s7398_s9 + $0x298] sm:$0xff] }
 0x1bd   : > { %4378 = vmatmul.bf16.vlgmr.msrb.gmra.mxu0 %v5412_v48  ;;  %v5552_v48 = vor.u32 %v6456_v38, %v5549_v39  ;;  %4668 = vmatpush.bf16.msra.mxu2 %v6632_v51  ;;  %v5677_v38 = vld [vmem:[%s8497_s0 + $0x258] sm:$0xf0]  ;;  %v6630_v51 = vld [vmem:[%s7398_s9 + $0x288] sm:$0xff] }
 0x1be   : > { %4427 = vmatmul.bf16.vlgmr.msrb.gmra.mxu1 %v5416_v49 }
 0x1bf   : > { %4476 = vmatmul.bf16.vlgmr.msrb.gmra.mxu2 %v5420_v52  ;;  %v6616_v52 = vld [vmem:[%s7398_s9 + $0x218] sm:$0xff] }
 0x1c0   : > { %4525 = vmatmul.bf16.vlgmr.msrb.gmra.mxu3 %v5424_v53  ;;  %v6640_v53 = vld [vmem:[%s7398_s9 + $0x2d8] sm:$0xff]  ;;  %4570 = vmatpush.bf16.msra.mxu0 %v6616_v52  ;;  %v6614_v52 = vld [vmem:[%s7398_s9 + $0x208] sm:$0xff] }
 0x1c1   : > { %4717 = vmatpush.bf16.msra.mxu3 %v6640_v53  ;;  %v6638_v53 = vld [vmem:[%s7398_s9 + $0x2c8] sm:$0xff] }
 0x1c2   : > { %v4281_v58 = vpop.f32.mrf.mxu2  ;;  %v4185_v61 = vpop.f32.mrf.mxu0 }
 0x1c3   : > { %v4330_v59 = vpop.f32.mrf.mxu3  ;;  %v4282_v60 = vadd.f32 %v4281_v58, %v4233_v54  ;;  %v4234_v62 = vpop.f32.mrf.mxu1 }
 0x1c4   : > { %v4235_v63 = vadd.f32 %v4234_v62, %v4185_v61  ;;  %v6624_v61 = vld [vmem:[%s7398_s9 + $0x258] sm:$0xff]  ;;  %v5603_v62 = vld [vmem:[%s8497_s0 + $0x190] sm:$0xf] }
 0x1c5   : > { %v7691_v0 = vadd.f32 %v4330_v59, %v4282_v60  ;;  %4619 = vmatpush.bf16.msra.mxu1 %v6624_v61  ;;  %4718 = vmatpush.bf16.msra.mxu3 %v6639_v21  ;;  %v6629_v21 = vld [vmem:[%s7398_s9 + $0x280] sm:$0xff] }
 0x1c9   : > { %4719 = vmatpush.bf16.msra.mxu3 %v6638_v53 }
 0x1ca   : > { %v4283_v10 = vpop.f32.mrf.mxu2  ;;  %v4188_v15 = vpop.f32.mrf.mxu0 }
 0x1cb   : > { %v4332_v11 = vpop.f32.mrf.mxu3  ;;  %v4284_v14 = vadd.f32 %v4283_v10, %v4235_v63  ;;  %v4237_v16 = vpop.f32.mrf.mxu1  ;;  %v6479_v63 = vld [vmem:[%s8497_s0 + $0x1cc] sm:$0xf0]  ;;  %v5608_v10 = vor.u32 %v6471_v1, %v5605_v2  ;;  %v6503_v2 = vld [vmem:[%s8497_s0 + $0x294] sm:$0xf] }
 0x1cc   : > { %v4238_v19 = vadd.f32 %v4237_v16, %v4188_v15  ;;  %v5604_v9 = vor.u32 %v6479_v63, %v5603_v62  ;;  %v5616_v15 = vor.u32 %v6472_v5, %v5613_v6  ;;  %v6622_v62 = vld [vmem:[%s7398_s9 + $0x248] sm:$0xff]  ;;  %v5731_v63 = vld [vmem:[%s8497_s0 + $0x290] sm:$0xf]  ;;  %v6512_v5 = vld [vmem:[%s8497_s0 + $0x2d4] sm:$0xf0] }
 0x1cd   : > { %v7718_v20 = vadd.f32 %v4332_v11, %v4284_v14  ;;  %4383 = vmatmul.bf16.gmra.mxu0 %v5476_v12  ;;  %v5612_v14 = vor.u32 %v6480_v4, %v5611_v3  ;;  %v6511_v1 = vld [vmem:[%s8497_s0 + $0x2cc] sm:$0xf0]  ;;  %v5733_v3 = vld [vmem:[%s8497_s0 + $0x2d0] sm:$0xf0]  ;;  %v5739_v4 = vld [vmem:[%s8497_s0 + $0x298] sm:$0xf] }
 0x1ce   : > { %4432 = vmatmul.bf16.gmra.mxu1 %v5480_v13  ;;  %v6504_v6 = vld [vmem:[%s8497_s0 + $0x29c] sm:$0xf] }
 0x1cf   : > { %4481 = vmatmul.bf16.gmra.mxu2 %v5484_v17 }
 0x1d0   : > { %4530 = vmatmul.bf16.gmra.mxu3 %v5488_v18  ;;  %v6631_v18 = vld [vmem:[%s7398_s9 + $0x290] sm:$0xff] }
 0x1d1   : > { %4669 = vmatpush.bf16.msra.mxu2 %v6631_v18 }
 0x1d2   : > { %v4286_v24 = vpop.f32.mrf.mxu2  ;;  %v4190_v27 = vpop.f32.mrf.mxu0 }
 0x1d3   : > { %v4335_v25 = vpop.f32.mrf.mxu3  ;;  %v4287_v26 = vadd.f32 %v4286_v24, %v4238_v19  ;;  %v4239_v28 = vpop.f32.mrf.mxu1  ;;  %v6615_v19 = vld [vmem:[%s7398_s9 + $0x210] sm:$0xff] }
 0x1d4   : > { %v4240_v29 = vadd.f32 %v4239_v28, %v4190_v27  ;;  %4571 = vmatpush.bf16.msra.mxu0 %v6615_v19 }
 0x1d5   : > { %v7723_v30 = vadd.f32 %v4335_v25, %v4287_v26  ;;  %4670 = vmatpush.bf16.msra.mxu2 %v6630_v51 }
 0x1d8   : > { %4572 = vmatpush.bf16.msra.mxu0 %v6614_v52 }
 0x1d9   : > { %4671 = vmatpush.bf16.msra.mxu2 %v6629_v21 }
 0x1da   : > { %v4288_v40 = vpop.f32.mrf.mxu2  ;;  %v4193_v45 = vpop.f32.mrf.mxu0 }
 0x1db   : > { %v4337_v41 = vpop.f32.mrf.mxu3  ;;  %v4289_v44 = vadd.f32 %v4288_v40, %v4240_v29  ;;  %v4242_v46 = vpop.f32.mrf.mxu1  ;;  %v6623_v29 = vld [vmem:[%s7398_s9 + $0x250] sm:$0xff] }
 0x1dc   : > { %v4243_v49 = vadd.f32 %v4242_v46, %v4193_v45  ;;  %4620 = vmatpush.bf16.msra.mxu1 %v6623_v29  ;;  %v5676_v46 = vor.u32 %v6496_v36, %v5675_v35  ;;  %v6527_v35 = vld [vmem:[%s8497_s0 + $0x34c] sm:$0xf0]  ;;  %v6519_v36 = vld [vmem:[%s8497_s0 + $0x314] sm:$0xf] }
 0x1dd   : > { %v7750_v50 = vadd.f32 %v4337_v41, %v4289_v44  ;;  %4388 = vmatmul.bf16.gmra.mxu0 %v5540_v42  ;;  %v5668_v41 = vor.u32 %v6495_v32, %v5667_v31  ;;  %v5672_v42 = vor.u32 %v6487_v33, %v5669_v34  ;;  %v6621_v33 = vld [vmem:[%s7398_s9 + $0x240] sm:$0xff]  ;;  %v5795_v34 = vld [vmem:[%s8497_s0 + $0x310] sm:$0xf] }
 0x1de   : > { %4437 = vmatmul.bf16.gmra.mxu1 %v5544_v43 }
 0x1df   : > { %4486 = vmatmul.bf16.gmra.mxu2 %v5548_v47  ;;  %v5680_v47 = vor.u32 %v6488_v37, %v5677_v38  ;;  %v5797_v37 = vld [vmem:[%s8497_s0 + $0x350] sm:$0xf0]  ;;  %v5803_v38 = vld [vmem:[%s8497_s0 + $0x318] sm:$0xf] }
 0x1e0   : > { %4535 = vmatmul.bf16.gmra.mxu3 %v5552_v48  ;;  %4621 = vmatpush.bf16.msra.mxu1 %v6622_v62 }
 0x1e2   : > { %v4291_v54 = vpop.f32.mrf.mxu2  ;;  %v4195_v57 = vpop.f32.mrf.mxu0 }
 0x1e3   : > { %v4340_v55 = vpop.f32.mrf.mxu3  ;;  %v4292_v56 = vadd.f32 %v4291_v54, %v4243_v49  ;;  %v4244_v58 = vpop.f32.mrf.mxu1 }
 0x1e4   : > { %v4245_v59 = vadd.f32 %v4244_v58, %v4195_v57  ;;  %4622 = vmatpush.bf16.msra.mxu1 %v6621_v33 }
 0x1e5   : > { %v7755_v60 = vadd.f32 %v4340_v55, %v4292_v56 }
 0x1ea   : > { %v4293_v7 = vpop.f32.mrf.mxu2  ;;  %v4198_v12 = vpop.f32.mrf.mxu0 }
 0x1eb   : > { %v4342_v8 = vpop.f32.mrf.mxu3  ;;  %v4294_v11 = vadd.f32 %v4293_v7, %v4245_v59  ;;  %v4247_v13 = vpop.f32.mrf.mxu1  ;;  %v5741_v7 = vld [vmem:[%s8497_s0 + $0x2d8] sm:$0xf0] }
 0x1ec   : > { %v4248_v16 = vadd.f32 %v4247_v13, %v4198_v12 }
 0x1ed   : > { %v7782_v17 = vadd.f32 %v4342_v8, %v4294_v11  ;;  %4393 = vmatmul.bf16.gmra.mxu0 %v5604_v9  ;;  %v5736_v11 = vor.u32 %v6503_v2, %v5733_v3 }
 0x1ee   : > { %4442 = vmatmul.bf16.gmra.mxu1 %v5608_v10  ;;  %v5732_v10 = vor.u32 %v6511_v1, %v5731_v63 }
 0x1ef   : > { %4491 = vmatmul.bf16.gmra.mxu2 %v5612_v14 }
 0x1f0   : > { %4540 = vmatmul.bf16.gmra.mxu3 %v5616_v15  ;;  %v5740_v15 = vor.u32 %v6512_v5, %v5739_v4  ;;  %v6660_v4 = vld [vmem:[%s7398_s9 + $0x378] sm:$0xff]  ;;  %v5859_v5 = vld [vmem:[%s8497_s0 + $0x390] sm:$0xf] }
 0x1f1   : > { %4811 = vmatpush.bf16.msrb.mxu1 %v6660_v4  ;;  %v6666_v4 = vld [vmem:[%s7398_s9 + $0x3a8] sm:$0xff] }
 0x1f2   : > { %v4296_v22 = vpop.f32.mrf.mxu2  ;;  %v4200_v25 = vpop.f32.mrf.mxu0 }
 0x1f3   : > { %v4345_v23 = vpop.f32.mrf.mxu3  ;;  %v4297_v24 = vadd.f32 %v4296_v22, %v4248_v16  ;;  %v4249_v26 = vpop.f32.mrf.mxu1  ;;  %v5744_v16 = vor.u32 %v6504_v6, %v5741_v7  ;;  %v6613_v22 = vld [vmem:[%s7398_s9 + $0x200] sm:$0xff]  ;;  %v6543_v6 = vld [vmem:[%s8497_s0 + $0x3cc] sm:$0xf0]  ;;  %v6535_v7 = vld [vmem:[%s8497_s0 + $0x394] sm:$0xf] }
 0x1f4   : > { %v4250_v27 = vadd.f32 %v4249_v26, %v4200_v25  ;;  %4573 = vmatpush.bf16.msra.mxu0 %v6613_v22 }
 0x1f5   : > { %v7787_v28 = vadd.f32 %v4345_v23, %v4297_v24  ;;  %v6637_v23 = vld [vmem:[%s7398_s9 + $0x2c0] sm:$0xff] }
 0x1f6   : > { %4720 = vmatpush.bf16.msra.mxu3 %v6637_v23 }
 0x1fa   : > { %v4298_v39 = vpop.f32.mrf.mxu2  ;;  %v4203_v44 = vpop.f32.mrf.mxu0 }
 0x1fb   : > { %v4347_v40 = vpop.f32.mrf.mxu3  ;;  %v4299_v43 = vadd.f32 %v4298_v39, %v4250_v27  ;;  %v4252_v45 = vpop.f32.mrf.mxu1  ;;  %v6528_v39 = vld [vmem:[%s8497_s0 + $0x354] sm:$0xf0] }
 0x1fc   : > { %v4253_v48 = vadd.f32 %v4252_v45, %v4203_v44  ;;  %v5796_v44 = vor.u32 %v6527_v35, %v5795_v34  ;;  %v5800_v45 = vor.u32 %v6519_v36, %v5797_v37  ;;  %v5804_v51 = vor.u32 %v6528_v39, %v5803_v38 }
 0x1fd   : > { %v7814_v49 = vadd.f32 %v4347_v40, %v4299_v43  ;;  %4398 = vmatmul.bf16.gmra.mxu0 %v5668_v41  ;;  %v6520_v40 = vld [vmem:[%s8497_s0 + $0x31c] sm:$0xf] }
 0x1fe   : > { %4447 = vmatmul.bf16.gmra.mxu1 %v5672_v42  ;;  %v5805_v41 = vld [vmem:[%s8497_s0 + $0x358] sm:$0xf0] }
 0x1ff   : > { %4496 = vmatmul.bf16.gmra.mxu2 %v5676_v46  ;;  %v5808_v52 = vor.u32 %v6520_v40, %v5805_v41  ;;  %v6659_v40 = vld [vmem:[%s7398_s9 + $0x370] sm:$0xff]  ;;  %v5427_v41 = vld [vmem:[%s8497_s0 + $0x20] sm:$0xf] }
 0x200   : > { %4545 = vmatmul.bf16.gmra.mxu3 %v5680_v47  ;;  %4812 = vmatpush.bf16.msrb.mxu1 %v6659_v40 }
 0x202   : > { %v4301_v54 = vpop.f32.mrf.mxu2  ;;  %v4205_v57 = vpop.f32.mrf.mxu0 }
 0x203   : > { %v4350_v55 = vpop.f32.mrf.mxu3  ;;  %v4302_v56 = vadd.f32 %v4301_v54, %v4253_v48  ;;  %v4254_v58 = vpop.f32.mrf.mxu1 }
 0x204   : > { %v4255_v59 = vadd.f32 %v4254_v58, %v4205_v57  ;;  %v6676_v57 = vld [vmem:[%s7398_s9 + $0x3f8] sm:$0xff] }
 0x205   : > { %v7819_v61 = vadd.f32 %v4350_v55, %v4302_v56  ;;  %v6668_v55 = vld [vmem:[%s7398_s9 + $0x3b8] sm:$0xff]  ;;  %4909 = vmatpush.bf16.msrb.mxu3 %v6676_v57 }
 0x206   : > { %v6652_v56 = vld [vmem:[%s7398_s9 + $0x338] sm:$0xff]  ;;  %4860 = vmatpush.bf16.msrb.mxu2 %v6668_v55 }
 0x207   : > { %4762 = vmatpush.bf16.msrb.mxu0 %v6652_v56 }
 0x20a   : > { %v4303_v8 = vpop.f32.mrf.mxu2  ;;  %v4208_v13 = vpop.f32.mrf.mxu0 }
 0x20b   : > { %v4352_v9 = vpop.f32.mrf.mxu3  ;;  %v4304_v12 = vadd.f32 %v4303_v8, %v4255_v59  ;;  %v4257_v14 = vpop.f32.mrf.mxu1  ;;  %v5861_v8 = vld [vmem:[%s8497_s0 + $0x3d0] sm:$0xf0] }
 0x20c   : > { %v4258_v18 = vadd.f32 %v4257_v14, %v4208_v13 }
 0x20d   : > { %v7846_v19 = vadd.f32 %v4352_v9, %v4304_v12  ;;  %4403 = vmatmul.bf16.gmra.mxu0 %v5732_v10  ;;  %v5867_v9 = vld [vmem:[%s8497_s0 + $0x398] sm:$0xf]  ;;  %v5869_v12 = vld [vmem:[%s8497_s0 + $0x3d8] sm:$0xf0] }
 0x20e   : > { %4452 = vmatmul.bf16.gmra.mxu1 %v5736_v11  ;;  %v6544_v10 = vld [vmem:[%s8497_s0 + $0x3d4] sm:$0xf0]  ;;  %v6536_v11 = vld [vmem:[%s8497_s0 + $0x39c] sm:$0xf] }
 0x20f   : > { %4501 = vmatmul.bf16.gmra.mxu2 %v5740_v15  ;;  %v5860_v15 = vor.u32 %v6543_v6, %v5859_v5  ;;  %v5868_v23 = vor.u32 %v6544_v10, %v5867_v9  ;;  %v6650_v5 = vld [vmem:[%s7398_s9 + $0x328] sm:$0xff] }
 0x210   : > { %4550 = vmatmul.bf16.gmra.mxu3 %v5744_v16  ;;  %v5864_v16 = vor.u32 %v6535_v7, %v5861_v8  ;;  %v6674_v6 = vld [vmem:[%s7398_s9 + $0x3e8] sm:$0xff] }
 0x212   : > { %v4306_v24 = vpop.f32.mrf.mxu2  ;;  %v4210_v27 = vpop.f32.mrf.mxu0 }
 0x213   : > { %v4355_v25 = vpop.f32.mrf.mxu3  ;;  %v4307_v26 = vadd.f32 %v4306_v24, %v4258_v18  ;;  %v4259_v29 = vpop.f32.mrf.mxu1  ;;  %v5872_v24 = vor.u32 %v6536_v11, %v5869_v12 }
 0x214   : > { %v4260_v31 = vadd.f32 %v4259_v29, %v4210_v27  ;;  %v6667_v27 = vld [vmem:[%s7398_s9 + $0x3b0] sm:$0xff] }
 0x215   : > { %v7851_v32 = vadd.f32 %v4355_v25, %v4307_v26  ;;  %v6651_v29 = vld [vmem:[%s7398_s9 + $0x330] sm:$0xff]  ;;  %4861 = vmatpush.bf16.msrb.mxu2 %v6667_v27 }
 0x216   : > { %4763 = vmatpush.bf16.msrb.mxu0 %v6651_v29 }
 0x219   : > { %4862 = vmatpush.bf16.msrb.mxu2 %v6666_v4 }
 0x21a   : > { %v4308_v42 = vpop.f32.mrf.mxu2  ;;  %v4213_v47 = vpop.f32.mrf.mxu0  ;;  %4764 = vmatpush.bf16.msrb.mxu0 %v6650_v5 }
 0x21b   : > { %v4357_v43 = vpop.f32.mrf.mxu3  ;;  %v4309_v46 = vadd.f32 %v4308_v42, %v4260_v31  ;;  %v4262_v48 = vpop.f32.mrf.mxu1  ;;  %v6675_v31 = vld [vmem:[%s7398_s9 + $0x3f0] sm:$0xff]  ;;  %v6433_v42 = vld [vmem:[%s8497_s0 + $0x5c] sm:$0xf0] }
 0x21c   : > { %v4263_v53 = vadd.f32 %v4262_v48, %v4213_v47  ;;  %4910 = vmatpush.bf16.msrb.mxu3 %v6675_v31  ;;  %v6426_v47 = vld [vmem:[%s8497_s0 + $0x2c] sm:$0xf] }
 0x21d   : > { %v7878_v54 = vadd.f32 %v4357_v43, %v4309_v46  ;;  %4408 = vmatmul.bf16.gmra.mxu0 %v5796_v44  ;;  %v6425_v43 = vld [vmem:[%s8497_s0 + $0x24] sm:$0xf]  ;;  %v6434_v46 = vld [vmem:[%s8497_s0 + $0x64] sm:$0xf0]  ;;  %v5437_v48 = vld [vmem:[%s8497_s0 + $0x68] sm:$0xf0] }
 0x21e   : > { %4457 = vmatmul.bf16.gmra.mxu1 %v5800_v45  ;;  %v5429_v44 = vld [vmem:[%s8497_s0 + $0x60] sm:$0xf0]  ;;  %v5435_v45 = vld [vmem:[%s8497_s0 + $0x28] sm:$0xf] }
 0x21f   : > { %4506 = vmatmul.bf16.gmra.mxu2 %v5804_v51  ;;  %v5432_v55 = vor.u32 %v6425_v43, %v5429_v44  ;;  %v6649_v43 = vld [vmem:[%s7398_s9 + $0x320] sm:$0xff] }
 0x220   : > { %4555 = vmatmul.bf16.gmra.mxu3 %v5808_v52  ;;  %v6673_v44 = vld [vmem:[%s7398_s9 + $0x3e0] sm:$0xff]  ;;  %4765 = vmatpush.bf16.msrb.mxu0 %v6649_v43 }
 0x221   : > { %4911 = vmatpush.bf16.msrb.mxu3 %v6674_v6 }
 0x222   : > { %v4311_v58 = vpop.f32.mrf.mxu2  ;;  %v4215_v63 = vpop.f32.mrf.mxu0 }
 0x223   : > { %v4360_v59 = vpop.f32.mrf.mxu3  ;;  %v4312_v62 = vadd.f32 %v4311_v58, %v4263_v53  ;;  %v4264_v1 = vpop.f32.mrf.mxu1  ;;  %v5428_v53 = vor.u32 %v6433_v42, %v5427_v41  ;;  %v6665_v42 = vld [vmem:[%s7398_s9 + $0x3a0] sm:$0xff] }
 0x224   : > { %v4265_v2 = vadd.f32 %v4264_v1, %v4215_v63  ;;  %4863 = vmatpush.bf16.msrb.mxu2 %v6665_v42 }
 0x225   : > { %v7883_v3 = vadd.f32 %v4360_v59, %v4312_v62  ;;  %v5436_v59 = vor.u32 %v6434_v46, %v5435_v45  ;;  %v5440_v62 = vor.u32 %v6426_v47, %v5437_v48  ;;  %4912 = vmatpush.bf16.msrb.mxu3 %v6673_v44 }
 0x22a   : > { %v4313_v13 = vpop.f32.mrf.mxu2  ;;  %v4218_v21 = vpop.f32.mrf.mxu0 }
 0x22b   : > { %v4362_v14 = vpop.f32.mrf.mxu3  ;;  %v4314_v18 = vadd.f32 %v4313_v13, %v4265_v2  ;;  %v4267_v22 = vpop.f32.mrf.mxu1  ;;  %v6658_v13 = vld [vmem:[%s7398_s9 + $0x368] sm:$0xff] }
 0x22c   : > { %v4268_v25 = vadd.f32 %v4267_v22, %v4218_v21  ;;  %v5499_v21 = vld [vmem:[%s8497_s0 + $0xa8] sm:$0xf]  ;;  %4813 = vmatpush.bf16.msrb.mxu1 %v6658_v13 }
 0x22d   : > { %v7910_v26 = vadd.f32 %v4362_v14, %v4314_v18  ;;  %4413 = vmatmul.bf16.gmra.mxu0 %v5860_v15  ;;  %v5491_v15 = vld [vmem:[%s8497_s0 + $0xa0] sm:$0xf]  ;;  %v6441_v18 = vld [vmem:[%s8497_s0 + $0xa4] sm:$0xf]  ;;  %v6450_v22 = vld [vmem:[%s8497_s0 + $0xe4] sm:$0xf0] }
 0x22e   : > { %4462 = vmatmul.bf16.gmra.mxu1 %v5864_v16  ;;  %v6449_v16 = vld [vmem:[%s8497_s0 + $0xdc] sm:$0xf0] }
 0x22f   : > { %4511 = vmatmul.bf16.gmra.mxu2 %v5868_v23  ;;  %v6442_v23 = vld [vmem:[%s8497_s0 + $0xac] sm:$0xf]  ;;  %v5492_v29 = vor.u32 %v6449_v16, %v5491_v15  ;;  %v6664_v16 = vld [vmem:[%s7398_s9 + $0x398] sm:$0xff] }
 0x230   : > { %4560 = vmatmul.bf16.gmra.mxu3 %v5872_v24  ;;  %v5501_v24 = vld [vmem:[%s8497_s0 + $0xe8] sm:$0xf0]  ;;  %4864 = vmatpush.bf16.msrb.mxu2 %v6664_v16 }
 0x232   : > { %v4316_v33 = vpop.f32.mrf.mxu2  ;;  %v4220_v36 = vpop.f32.mrf.mxu0 }
 0x233   : > { %v4365_v34 = vpop.f32.mrf.mxu3  ;;  %v4317_v35 = vadd.f32 %v4316_v33, %v4268_v25  ;;  %v4269_v37 = vpop.f32.mrf.mxu1 }
 0x234   : > { %v4270_v38 = vadd.f32 %v4269_v37, %v4220_v36  ;;  %v5500_v36 = vor.u32 %v6450_v22, %v5499_v21  ;;  %v5504_v37 = vor.u32 %v6442_v23, %v5501_v24 }
 0x235   : > { %v7915_v39 = vadd.f32 %v4365_v34, %v4317_v35 }
 0x23a   : > { %v4318_v51 = vpop.f32.mrf.mxu2  ;;  %v4379_v57 = vpop.f32.mrf.mxu0 }
 0x23b   : > { %v4367_v52 = vpop.f32.mrf.mxu3  ;;  %v4319_v56 = vadd.f32 %v4318_v51, %v4270_v38  ;;  %v4428_v58 = vpop.f32.mrf.mxu1  ;;  %v4380_v63 = vadd.f32 %v4379_v57, %v7691_v0  ;;  %v6465_v57 = vld [vmem:[%s8497_s0 + $0x15c] sm:$0xf0] }
 0x23d   : > { %v7943_v1 = vadd.f32 %v4367_v52, %v4319_v56  ;;  %v4429_v2 = vadd.f32 %v4428_v58, %v4380_v63  ;;  %4574 = vmatmul.bf16.vlgmr.msra.gmra.mxu0 %v5428_v53  ;;  %v6657_v53 = vld [vmem:[%s7398_s9 + $0x360] sm:$0xff]  ;;  %v6458_v63 = vld [vmem:[%s8497_s0 + $0x12c] sm:$0xf] }
 0x23e   : > { %4623 = vmatmul.bf16.vlgmr.msra.gmra.mxu1 %v5432_v55  ;;  %v5555_v56 = vld [vmem:[%s8497_s0 + $0x120] sm:$0xf]  ;;  %v6457_v58 = vld [vmem:[%s8497_s0 + $0x124] sm:$0xf] }
 0x23f   : > { %4672 = vmatmul.bf16.vlgmr.msra.gmra.mxu2 %v5436_v59  ;;  %v5563_v59 = vld [vmem:[%s8497_s0 + $0x128] sm:$0xf]  ;;  %4814 = vmatpush.bf16.msrb.mxu1 %v6657_v53  ;;  %v5556_v6 = vor.u32 %v6465_v57, %v5555_v56  ;;  %v6663_v57 = vld [vmem:[%s7398_s9 + $0x390] sm:$0xff] }
 0x240   : > { %4721 = vmatmul.bf16.vlgmr.msra.gmra.mxu3 %v5440_v62  ;;  %v6466_v62 = vld [vmem:[%s8497_s0 + $0x164] sm:$0xf0]  ;;  %4865 = vmatpush.bf16.msrb.mxu2 %v6663_v57 }
 0x242   : > { %v4477_v7 = vpop.f32.mrf.mxu2  ;;  %v4381_v10 = vpop.f32.mrf.mxu0 }
 0x243   : > { %v4526_v8 = vpop.f32.mrf.mxu3  ;;  %v4478_v9 = vadd.f32 %v4477_v7, %v4429_v2  ;;  %v4430_v11 = vpop.f32.mrf.mxu1  ;;  %v4382_v0 = vadd.f32 %v4381_v10, %v7718_v20  ;;  %v5493_v20 = vld [vmem:[%s8497_s0 + $0xe0] sm:$0xf0]  ;;  %v5565_v2 = vld [vmem:[%s8497_s0 + $0x168] sm:$0xf0] }
 0x244   : > { %v5496_v31 = vor.u32 %v6441_v18, %v5493_v20  ;;  %v6648_v18 = vld [vmem:[%s7398_s9 + $0x318] sm:$0xff] }
 0x245   : > { %v7949_v12 = vadd.f32 %v4526_v8, %v4478_v9  ;;  %v4431_v14 = vadd.f32 %v4430_v11, %v4382_v0  ;;  %v5564_v11 = vor.u32 %v6466_v62, %v5563_v59  ;;  %v5568_v0 = vor.u32 %v6458_v63, %v5565_v2  ;;  %v6672_v20 = vld [vmem:[%s7398_s9 + $0x3d8] sm:$0xff]  ;;  %4766 = vmatpush.bf16.msrb.mxu0 %v6648_v18 }
 0x246   : > { %4913 = vmatpush.bf16.msrb.mxu3 %v6672_v20 }
 0x24a   : > { %v4479_v25 = vpop.f32.mrf.mxu2  ;;  %v4384_v34 = vpop.f32.mrf.mxu0 }
 0x24b   : > { %v4528_v27 = vpop.f32.mrf.mxu3  ;;  %v4480_v33 = vadd.f32 %v4479_v25, %v4431_v14  ;;  %v4433_v35 = vpop.f32.mrf.mxu1  ;;  %v4385_v38 = vadd.f32 %v4384_v34, %v7723_v30  ;;  %v6481_v34 = vld [vmem:[%s8497_s0 + $0x1dc] sm:$0xf0] }
 0x24d   : > { %v7977_v40 = vadd.f32 %v4528_v27, %v4480_v33  ;;  %v4434_v41 = vadd.f32 %v4433_v35, %v4385_v38  ;;  %4579 = vmatmul.bf16.gmra.mxu0 %v5492_v29  ;;  %v6656_v29 = vld [vmem:[%s7398_s9 + $0x358] sm:$0xff]  ;;  %v5619_v33 = vld [vmem:[%s8497_s0 + $0x1a0] sm:$0xf]  ;;  %v6473_v35 = vld [vmem:[%s8497_s0 + $0x1a4] sm:$0xf] }
 0x24e   : > { %4628 = vmatmul.bf16.gmra.mxu1 %v5496_v31  ;;  %v6474_v38 = vld [vmem:[%s8497_s0 + $0x1ac] sm:$0xf]  ;;  %v5620_v44 = vor.u32 %v6481_v34, %v5619_v33 }
 0x24f   : > { %4677 = vmatmul.bf16.gmra.mxu2 %v5500_v36  ;;  %v5627_v36 = vld [vmem:[%s8497_s0 + $0x1a8] sm:$0xf]  ;;  %4815 = vmatpush.bf16.msrb.mxu1 %v6656_v29 }
 0x250   : > { %4726 = vmatmul.bf16.gmra.mxu3 %v5504_v37  ;;  %v6482_v37 = vld [vmem:[%s8497_s0 + $0x1e4] sm:$0xf0] }
 0x251   : > { %v6662_v34 = vld [vmem:[%s7398_s9 + $0x388] sm:$0xff] }
 0x252   : > { %v4482_v45 = vpop.f32.mrf.mxu2  ;;  %v4386_v48 = vpop.f32.mrf.mxu0  ;;  %4866 = vmatpush.bf16.msrb.mxu2 %v6662_v34 }
 0x253   : > { %v4531_v46 = vpop.f32.mrf.mxu3  ;;  %v4483_v47 = vadd.f32 %v4482_v45, %v4434_v41  ;;  %v4435_v51 = vpop.f32.mrf.mxu1  ;;  %v4387_v30 = vadd.f32 %v4386_v48, %v7750_v50  ;;  %v5557_v50 = vld [vmem:[%s8497_s0 + $0x160] sm:$0xf0]  ;;  %v5629_v41 = vld [vmem:[%s8497_s0 + $0x1e8] sm:$0xf0] }
 0x254   : > { %v5560_v7 = vor.u32 %v6457_v58, %v5557_v50  ;;  %v6647_v58 = vld [vmem:[%s7398_s9 + $0x310] sm:$0xff] }
 0x255   : > { %v7983_v52 = vadd.f32 %v4531_v46, %v4483_v47  ;;  %v4436_v55 = vadd.f32 %v4435_v51, %v4387_v30  ;;  %v5628_v51 = vor.u32 %v6482_v37, %v5627_v36  ;;  %v5632_v30 = vor.u32 %v6474_v38, %v5629_v41  ;;  %v6671_v50 = vld [vmem:[%s7398_s9 + $0x3d0] sm:$0xff]  ;;  %4767 = vmatpush.bf16.msrb.mxu0 %v6647_v58 }
 0x256   : > { %4914 = vmatpush.bf16.msrb.mxu3 %v6671_v50 }
 0x25a   : > { %v4484_v4 = vpop.f32.mrf.mxu2  ;;  %v4389_v9 = vpop.f32.mrf.mxu0 }
 0x25b   : > { %v4533_v5 = vpop.f32.mrf.mxu3  ;;  %v4485_v8 = vadd.f32 %v4484_v4, %v4436_v55  ;;  %v4438_v10 = vpop.f32.mrf.mxu1  ;;  %v4390_v13 = vadd.f32 %v4389_v9, %v7755_v60  ;;  %v6497_v9 = vld [vmem:[%s8497_s0 + $0x25c] sm:$0xf0] }
 0x25d   : > { %v8011_v14 = vadd.f32 %v4533_v5, %v4485_v8  ;;  %v4439_v15 = vadd.f32 %v4438_v10, %v4390_v13  ;;  %4584 = vmatmul.bf16.gmra.mxu0 %v5556_v6  ;;  %v6655_v6 = vld [vmem:[%s7398_s9 + $0x350] sm:$0xff]  ;;  %v5683_v8 = vld [vmem:[%s8497_s0 + $0x220] sm:$0xf]  ;;  %v6489_v10 = vld [vmem:[%s8497_s0 + $0x224] sm:$0xf] }
 0x25e   : > { %4633 = vmatmul.bf16.gmra.mxu1 %v5560_v7  ;;  %v6490_v13 = vld [vmem:[%s8497_s0 + $0x22c] sm:$0xf]  ;;  %v5684_v20 = vor.u32 %v6497_v9, %v5683_v8  ;;  %v6661_v9 = vld [vmem:[%s7398_s9 + $0x380] sm:$0xff] }
 0x25f   : > { %4682 = vmatmul.bf16.gmra.mxu2 %v5564_v11  ;;  %v5691_v11 = vld [vmem:[%s8497_s0 + $0x228] sm:$0xf]  ;;  %4816 = vmatpush.bf16.msrb.mxu1 %v6655_v6 }
 0x260   : > { %4731 = vmatmul.bf16.gmra.mxu3 %v5568_v0  ;;  %v6498_v0 = vld [vmem:[%s8497_s0 + $0x264] sm:$0xf0]  ;;  %4867 = vmatpush.bf16.msrb.mxu2 %v6661_v9 }
 0x262   : > { %v4487_v21 = vpop.f32.mrf.mxu2  ;;  %v4391_v24 = vpop.f32.mrf.mxu0 }
 0x263   : > { %v4536_v22 = vpop.f32.mrf.mxu3  ;;  %v4488_v23 = vadd.f32 %v4487_v21, %v4439_v15  ;;  %v4440_v25 = vpop.f32.mrf.mxu1  ;;  %v4392_v60 = vadd.f32 %v4391_v24, %v7782_v17  ;;  %v5621_v17 = vld [vmem:[%s8497_s0 + $0x1e0] sm:$0xf0]  ;;  %v5693_v15 = vld [vmem:[%s8497_s0 + $0x268] sm:$0xf0] }
 0x264   : > { %v5624_v45 = vor.u32 %v6473_v35, %v5621_v17  ;;  %v6646_v35 = vld [vmem:[%s7398_s9 + $0x308] sm:$0xff] }
 0x265   : > { %v8017_v27 = vadd.f32 %v4536_v22, %v4488_v23  ;;  %v4441_v31 = vadd.f32 %v4440_v25, %v4392_v60  ;;  %v5692_v25 = vor.u32 %v6498_v0, %v5691_v11  ;;  %v5696_v60 = vor.u32 %v6490_v13, %v5693_v15  ;;  %v6670_v17 = vld [vmem:[%s7398_s9 + $0x3c8] sm:$0xff]  ;;  %4768 = vmatpush.bf16.msrb.mxu0 %v6646_v35 }
 0x266   : > { %4915 = vmatpush.bf16.msrb.mxu3 %v6670_v17 }
 0x26a   : > { %v4489_v42 = vpop.f32.mrf.mxu2  ;;  %v4394_v47 = vpop.f32.mrf.mxu0 }
 0x26b   : > { %v4538_v43 = vpop.f32.mrf.mxu3  ;;  %v4490_v46 = vadd.f32 %v4489_v42, %v4441_v31  ;;  %v4443_v48 = vpop.f32.mrf.mxu1  ;;  %v4395_v53 = vadd.f32 %v4394_v47, %v7787_v28  ;;  %v6513_v47 = vld [vmem:[%s8497_s0 + $0x2dc] sm:$0xf0] }
 0x26d   : > { %v8045_v55 = vadd.f32 %v4538_v43, %v4490_v46  ;;  %v4444_v56 = vadd.f32 %v4443_v48, %v4395_v53  ;;  %4589 = vmatmul.bf16.gmra.mxu0 %v5620_v44  ;;  %v6654_v44 = vld [vmem:[%s7398_s9 + $0x348] sm:$0xff]  ;;  %v5747_v46 = vld [vmem:[%s8497_s0 + $0x2a0] sm:$0xf]  ;;  %v6505_v48 = vld [vmem:[%s8497_s0 + $0x2a4] sm:$0xf] }
 0x26e   : > { %4638 = vmatmul.bf16.gmra.mxu1 %v5624_v45  ;;  %v6506_v53 = vld [vmem:[%s8497_s0 + $0x2ac] sm:$0xf]  ;;  %v5748_v50 = vor.u32 %v6513_v47, %v5747_v46 }
 0x26f   : > { %4687 = vmatmul.bf16.gmra.mxu2 %v5628_v51  ;;  %v5755_v51 = vld [vmem:[%s8497_s0 + $0x2a8] sm:$0xf]  ;;  %4817 = vmatpush.bf16.msrb.mxu1 %v6654_v44 }
 0x270   : > { %4736 = vmatmul.bf16.gmra.mxu3 %v5632_v30  ;;  %v6514_v30 = vld [vmem:[%s8497_s0 + $0x2e4] sm:$0xf0] }
 0x272   : > { %v4492_v59 = vpop.f32.mrf.mxu2  ;;  %v4396_v2 = vpop.f32.mrf.mxu0 }
 0x273   : > { %v4541_v62 = vpop.f32.mrf.mxu3  ;;  %v4493_v63 = vadd.f32 %v4492_v59, %v4444_v56  ;;  %v4445_v4 = vpop.f32.mrf.mxu1  ;;  %v4397_v28 = vadd.f32 %v4396_v2, %v7814_v49  ;;  %v5685_v49 = vld [vmem:[%s8497_s0 + $0x260] sm:$0xf0]  ;;  %v5757_v56 = vld [vmem:[%s8497_s0 + $0x2e8] sm:$0xf0] }
 0x274   : > { %v5688_v21 = vor.u32 %v6489_v10, %v5685_v49  ;;  %v6645_v10 = vld [vmem:[%s7398_s9 + $0x300] sm:$0xff] }
 0x275   : > { %v8051_v5 = vadd.f32 %v4541_v62, %v4493_v63  ;;  %v4446_v7 = vadd.f32 %v4445_v4, %v4397_v28  ;;  %v5756_v4 = vor.u32 %v6514_v30, %v5755_v51  ;;  %v5760_v28 = vor.u32 %v6506_v53, %v5757_v56  ;;  %v6669_v49 = vld [vmem:[%s7398_s9 + $0x3c0] sm:$0xff]  ;;  %4769 = vmatpush.bf16.msrb.mxu0 %v6645_v10 }
 0x276   : > { %4916 = vmatpush.bf16.msrb.mxu3 %v6669_v49 }
 0x27a   : > { %v4494_v16 = vpop.f32.mrf.mxu2  ;;  %v4399_v23 = vpop.f32.mrf.mxu0 }
 0x27b   : > { %v4543_v18 = vpop.f32.mrf.mxu3  ;;  %v4495_v22 = vadd.f32 %v4494_v16, %v4446_v7  ;;  %v4448_v24 = vpop.f32.mrf.mxu1  ;;  %v4400_v29 = vadd.f32 %v4399_v23, %v7819_v61  ;;  %v6529_v23 = vld [vmem:[%s8497_s0 + $0x35c] sm:$0xf0] }
 0x27d   : > { %v8079_v31 = vadd.f32 %v4543_v18, %v4495_v22  ;;  %v4449_v33 = vadd.f32 %v4448_v24, %v4400_v29  ;;  %4594 = vmatmul.bf16.gmra.mxu0 %v5684_v20  ;;  %v6653_v20 = vld [vmem:[%s7398_s9 + $0x340] sm:$0xff]  ;;  %v6522_v29 = vld [vmem:[%s8497_s0 + $0x32c] sm:$0xf]  ;;  %s2374_s9 = scalar_lea.vmem %s8500_s3, %s2371_s15 }
 0x27e   : > { %4643 = vmatmul.bf16.gmra.mxu1 %v5688_v21  ;;  %v5811_v22 = vld [vmem:[%s8497_s0 + $0x320] sm:$0xf]  ;;  %v6521_v24 = vld [vmem:[%s8497_s0 + $0x324] sm:$0xf] }
 0x27f   : > { %4692 = vmatmul.bf16.gmra.mxu2 %v5692_v25  ;;  %v5819_v25 = vld [vmem:[%s8497_s0 + $0x328] sm:$0xf]  ;;  %4818 = vmatpush.bf16.msrb.mxu1 %v6653_v20  ;;  %v5812_v17 = vor.u32 %v6529_v23, %v5811_v22 }
 0x280   : > { %4741 = vmatmul.bf16.gmra.mxu3 %v5696_v60  ;;  %v6530_v60 = vld [vmem:[%s8497_s0 + $0x364] sm:$0xf0] }
 0x282   : > { %v4497_v36 = vpop.f32.mrf.mxu2  ;;  %v4401_v41 = vpop.f32.mrf.mxu0 }
 0x283   : > { %v4546_v37 = vpop.f32.mrf.mxu3  ;;  %v4498_v38 = vadd.f32 %v4497_v36, %v4449_v33  ;;  %v4450_v42 = vpop.f32.mrf.mxu1  ;;  %v4402_v61 = vadd.f32 %v4401_v41, %v7846_v19  ;;  %v5749_v19 = vld [vmem:[%s8497_s0 + $0x2e0] sm:$0xf0]  ;;  %v5821_v33 = vld [vmem:[%s8497_s0 + $0x368] sm:$0xf0] }
 0x284   : > { %v5752_v59 = vor.u32 %v6505_v48, %v5749_v19 }
 0x285   : > { %v8085_v43 = vadd.f32 %v4546_v37, %v4498_v38  ;;  %v4451_v45 = vadd.f32 %v4450_v42, %v4402_v61  ;;  %v5820_v42 = vor.u32 %v6530_v60, %v5819_v25  ;;  %v5824_v61 = vor.u32 %v6522_v29, %v5821_v33  ;;  %v6435_v60 = vld [vmem:[%s8497_s0 + $0x6c] sm:$0xf0]  ;;  %v6427_v29 = vld [vmem:[%s8497_s0 + $0x34] sm:$0xf] }
 0x286   : > { %v5445_v33 = vld [vmem:[%s8497_s0 + $0x70] sm:$0xf0] }
 0x28a   : > { %v4499_v57 = vpop.f32.mrf.mxu2  ;;  %v4404_v63 = vpop.f32.mrf.mxu0 }
 0x28b   : > { %v4548_v58 = vpop.f32.mrf.mxu3  ;;  %v4500_v62 = vadd.f32 %v4499_v57, %v4451_v45  ;;  %v4453_v2 = vpop.f32.mrf.mxu1  ;;  %v4405_v6 = vadd.f32 %v4404_v63, %v7851_v32  ;;  %v6538_v63 = vld [vmem:[%s8497_s0 + $0x3ac] sm:$0xf] }
 0x28d   : > { %v8113_v7 = vadd.f32 %v4548_v58, %v4500_v62  ;;  %v4454_v8 = vadd.f32 %v4453_v2, %v4405_v6  ;;  %4599 = vmatmul.bf16.gmra.mxu0 %v5748_v50  ;;  %v6545_v58 = vld [vmem:[%s8497_s0 + $0x3dc] sm:$0xf0]  ;;  %v6537_v50 = vld [vmem:[%s8497_s0 + $0x3a4] sm:$0xf]  ;;  %v6546_v62 = vld [vmem:[%s8497_s0 + $0x3e4] sm:$0xf0] }
 0x28e   : > { %4648 = vmatmul.bf16.gmra.mxu1 %v5752_v59  ;;  %v5877_v59 = vld [vmem:[%s8497_s0 + $0x3e0] sm:$0xf0]  ;;  %v5885_v2 = vld [vmem:[%s8497_s0 + $0x3e8] sm:$0xf0] }
 0x28f   : > { %4697 = vmatmul.bf16.gmra.mxu2 %v5756_v4 }
 0x290   : > { %4746 = vmatmul.bf16.gmra.mxu3 %v5760_v28 }
 0x292   : > { %v4502_v11 = vpop.f32.mrf.mxu2  ;;  %v4406_v15 = vpop.f32.mrf.mxu0 }
 0x293   : > { %v4551_v0 = vpop.f32.mrf.mxu3  ;;  %v4503_v13 = vadd.f32 %v4502_v11, %v4454_v8  ;;  %v4455_v16 = vpop.f32.mrf.mxu1  ;;  %v4407_v32 = vadd.f32 %v4406_v15, %v7878_v54  ;;  %v5813_v54 = vld [vmem:[%s8497_s0 + $0x360] sm:$0xf0]  ;;  %v5880_v8 = vor.u32 %v6537_v50, %v5877_v59 }
 0x294   : > { %v5816_v36 = vor.u32 %v6521_v24, %v5813_v54 }
 0x295   : > { %v8119_v18 = vadd.f32 %v4551_v0, %v4503_v13  ;;  %v4456_v21 = vadd.f32 %v4455_v16, %v4407_v32  ;;  %v5888_v0 = vor.u32 %v6538_v63, %v5885_v2  ;;  %v6443_v63 = vld [vmem:[%s8497_s0 + $0xb4] sm:$0xf] }
 0x296   : > { %v5509_v2 = vld [vmem:[%s8497_s0 + $0xf0] sm:$0xf0] }
 0x29a   : > { %v4504_v34 = vpop.f32.mrf.mxu2  ;;  %v4409_v38 = vpop.f32.mrf.mxu0 }
 0x29b   : > { %v4553_v35 = vpop.f32.mrf.mxu3  ;;  %v4505_v37 = vadd.f32 %v4504_v34, %v4456_v21  ;;  %v4458_v41 = vpop.f32.mrf.mxu1  ;;  %v4410_v44 = vadd.f32 %v4409_v38, %v7883_v3  ;;  %v5875_v3 = vld [vmem:[%s8497_s0 + $0x3a0] sm:$0xf]  ;;  %v6436_v34 = vld [vmem:[%s8497_s0 + $0x74] sm:$0xf0] }
 0x29c   : > { %v5876_v6 = vor.u32 %v6545_v58, %v5875_v3 }
 0x29d   : > { %v8147_v45 = vadd.f32 %v4553_v35, %v4505_v37  ;;  %v4459_v46 = vadd.f32 %v4458_v41, %v4410_v44  ;;  %4604 = vmatmul.bf16.gmra.mxu0 %v5812_v17  ;;  %v6428_v35 = vld [vmem:[%s8497_s0 + $0x3c] sm:$0xf]  ;;  %v5448_v41 = vor.u32 %v6427_v29, %v5445_v33 }
 0x29e   : > { %4653 = vmatmul.bf16.gmra.mxu1 %v5816_v36  ;;  %v5453_v17 = vld [vmem:[%s8497_s0 + $0x78] sm:$0xf0] }
 0x29f   : > { %4702 = vmatmul.bf16.gmra.mxu2 %v5820_v42 }
 0x2a0   : > { %4751 = vmatmul.bf16.gmra.mxu3 %v5824_v61 }
 0x2a2   : > { %v4507_v47 = vpop.f32.mrf.mxu2  ;;  %v4411_v51 = vpop.f32.mrf.mxu0 }
 0x2a3   : > { %v4556_v48 = vpop.f32.mrf.mxu3  ;;  %v4508_v19 = vadd.f32 %v4507_v47, %v4459_v46  ;;  %v4460_v30 = vpop.f32.mrf.mxu1  ;;  %v4412_v53 = vadd.f32 %v4411_v51, %v7910_v26  ;;  %v5883_v26 = vld [vmem:[%s8497_s0 + $0x3a8] sm:$0xf]  ;;  %v5456_v47 = vor.u32 %v6428_v35, %v5453_v17  ;;  %v6459_v35 = vld [vmem:[%s8497_s0 + $0x134] sm:$0xf] }
 0x2a4   : > { %v5884_v11 = vor.u32 %v6546_v62, %v5883_v26  ;;  %v6451_v62 = vld [vmem:[%s8497_s0 + $0xec] sm:$0xf0]  ;;  %v5573_v17 = vld [vmem:[%s8497_s0 + $0x170] sm:$0xf0] }
 0x2a5   : > { %v8150_v56 = vadd.f32 %v4556_v48, %v4508_v19  ;;  %v4461_v57 = vadd.f32 %v4460_v30, %v4412_v53 }
 0x2aa   : > { %v4509_v4 = vpop.f32.mrf.mxu2  ;;  %v4414_v10 = vpop.f32.mrf.mxu0 }
 0x2ab   : > { %v4558_v28 = vpop.f32.mrf.mxu3  ;;  %v4510_v9 = vadd.f32 %v4509_v4, %v4461_v57  ;;  %v4463_v49 = vpop.f32.mrf.mxu1  ;;  %v4415_v13 = vadd.f32 %v4414_v10, %v7915_v39  ;;  %v5443_v39 = vld [vmem:[%s8497_s0 + $0x30] sm:$0xf]  ;;  %v6452_v4 = vld [vmem:[%s8497_s0 + $0xf4] sm:$0xf0] }
 0x2ac   : > { %v5444_v38 = vor.u32 %v6435_v60, %v5443_v39 }
 0x2ad   : > { %v8177_v15 = vadd.f32 %v4558_v28, %v4510_v9  ;;  %v4464_v16 = vadd.f32 %v4463_v49, %v4415_v13  ;;  %4609 = vmatmul.bf16.gmra.mxu0 %v5876_v6  ;;  %v6444_v28 = vld [vmem:[%s8497_s0 + $0xbc] sm:$0xf]  ;;  %v5512_v49 = vor.u32 %v6443_v63, %v5509_v2 }
 0x2ae   : > { %4658 = vmatmul.bf16.gmra.mxu1 %v5880_v8  ;;  %v5517_v6 = vld [vmem:[%s8497_s0 + $0xf8] sm:$0xf0] }
 0x2af   : > { %4707 = vmatmul.bf16.gmra.mxu2 %v5884_v11 }
 0x2b0   : > { %4756 = vmatmul.bf16.gmra.mxu3 %v5888_v0 }
 0x2b2   : > { %v4512_v32 = vpop.f32.mrf.mxu2  ;;  %v4416_v22 = vpop.f32.mrf.mxu0 }
 0x2b3   : > { %v4561_v20 = vpop.f32.mrf.mxu3  ;;  %v4513_v21 = vadd.f32 %v4512_v32, %v4464_v16  ;;  %v4465_v23 = vpop.f32.mrf.mxu1  ;;  %v4417_v24 = vadd.f32 %v4416_v22, %v7943_v1  ;;  %v5451_v1 = vld [vmem:[%s8497_s0 + $0x38] sm:$0xf]  ;;  %v5520_v32 = vor.u32 %v6444_v28, %v5517_v6  ;;  %v6475_v28 = vld [vmem:[%s8497_s0 + $0x1b4] sm:$0xf] }
 0x2b4   : > { %v5452_v46 = vor.u32 %v6436_v34, %v5451_v1  ;;  %v6467_v34 = vld [vmem:[%s8497_s0 + $0x16c] sm:$0xf0]  ;;  %v5637_v6 = vld [vmem:[%s8497_s0 + $0x1f0] sm:$0xf0] }
 0x2b5   : > { %v8180_v54 = vadd.f32 %v4561_v20, %v4513_v21  ;;  %v4466_v25 = vadd.f32 %v4465_v23, %v4417_v24 }
 0x2ba   : > { %v4514_v36 = vpop.f32.mrf.mxu2  ;;  %v4575_v61 = vpop.f32.mrf.mxu0 }
 0x2bb   : > { %v4563_v37 = vpop.f32.mrf.mxu3  ;;  %v4515_v42 = vadd.f32 %v4514_v36, %v4466_v25  ;;  %v4624_v44 = vpop.f32.mrf.mxu1  ;;  %v4576_v48 = vadd.f32 %v4575_v61, %v7949_v12  ;;  %v5507_v12 = vld [vmem:[%s8497_s0 + $0xb0] sm:$0xf]  ;;  %v6468_v36 = vld [vmem:[%s8497_s0 + $0x174] sm:$0xf0] }
 0x2bc   : > { %v5508_v10 = vor.u32 %v6451_v62, %v5507_v12 }
 0x2bd   : > { %v8207_v19 = vadd.f32 %v4563_v37, %v4515_v42  ;;  %v4625_v51 = vadd.f32 %v4624_v44, %v4576_v48  ;;  %4770 = vmatmul.bf16.vlgmr.msrb.gmra.mxu0 %v5444_v38  ;;  %v6460_v37 = vld [vmem:[%s8497_s0 + $0x13c] sm:$0xf]  ;;  %v5576_v44 = vor.u32 %v6459_v35, %v5573_v17 }
 0x2be   : > { %4819 = vmatmul.bf16.vlgmr.msrb.gmra.mxu1 %v5448_v41  ;;  %v5581_v38 = vld [vmem:[%s8497_s0 + $0x178] sm:$0xf0] }
 0x2bf   : > { %4868 = vmatmul.bf16.vlgmr.msrb.gmra.mxu2 %v5452_v46 }
 0x2c0   : > { %4917 = vmatmul.bf16.vlgmr.msrb.gmra.mxu3 %v5456_v47 }
 0x2c2   : > { %v4673_v30 = vpop.f32.mrf.mxu2  ;;  %v4577_v3 = vpop.f32.mrf.mxu0 }
 0x2c3   : > { %v4722_v53 = vpop.f32.mrf.mxu3  ;;  %v4674_v57 = vadd.f32 %v4673_v30, %v4625_v51  ;;  %v4626_v58 = vpop.f32.mrf.mxu1  ;;  %v4578_v50 = vadd.f32 %v4577_v3, %v7977_v40  ;;  %v5515_v40 = vld [vmem:[%s8497_s0 + $0xb8] sm:$0xf]  ;;  %v5584_v30 = vor.u32 %v6460_v37, %v5581_v38  ;;  %v6491_v37 = vld [vmem:[%s8497_s0 + $0x234] sm:$0xf] }
 0x2c4   : > { %v5516_v16 = vor.u32 %v6452_v4, %v5515_v40  ;;  %v6483_v4 = vld [vmem:[%s8497_s0 + $0x1ec] sm:$0xf0]  ;;  %v5701_v38 = vld [vmem:[%s8497_s0 + $0x270] sm:$0xf0] }
 0x2c5   : > { %v8210_v59 = vadd.f32 %v4722_v53, %v4674_v57  ;;  %v4627_v26 = vadd.f32 %v4626_v58, %v4578_v50 }
 0x2ca   : > { %v4675_v8 = vpop.f32.mrf.mxu2  ;;  %v4580_v0 = vpop.f32.mrf.mxu0 }
 0x2cb   : > { %v4724_v9 = vpop.f32.mrf.mxu3  ;;  %v4676_v11 = vadd.f32 %v4675_v8, %v4627_v26  ;;  %v4629_v13 = vpop.f32.mrf.mxu1  ;;  %v4581_v20 = vadd.f32 %v4580_v0, %v7983_v52  ;;  %v5571_v52 = vld [vmem:[%s8497_s0 + $0x130] sm:$0xf]  ;;  %v6484_v8 = vld [vmem:[%s8497_s0 + $0x1f4] sm:$0xf0] }
 0x2cc   : > { %v5572_v61 = vor.u32 %v6467_v34, %v5571_v52 }
 0x2cd   : > { %v8237_v21 = vadd.f32 %v4724_v9, %v4676_v11  ;;  %v4630_v22 = vadd.f32 %v4629_v13, %v4581_v20  ;;  %4775 = vmatmul.bf16.gmra.mxu0 %v5508_v10  ;;  %v6476_v9 = vld [vmem:[%s8497_s0 + $0x1bc] sm:$0xf]  ;;  %v5640_v13 = vor.u32 %v6475_v28, %v5637_v6 }
 0x2ce   : > { %4824 = vmatmul.bf16.gmra.mxu1 %v5512_v49  ;;  %v5645_v10 = vld [vmem:[%s8497_s0 + $0x1f8] sm:$0xf0] }
 0x2cf   : > { %4873 = vmatmul.bf16.gmra.mxu2 %v5516_v16 }
 0x2d0   : > { %4922 = vmatmul.bf16.gmra.mxu3 %v5520_v32 }
 0x2d2   : > { %v4678_v23 = vpop.f32.mrf.mxu2  ;;  %v4582_v39 = vpop.f32.mrf.mxu0 }
 0x2d3   : > { %v4727_v24 = vpop.f32.mrf.mxu3  ;;  %v4679_v25 = vadd.f32 %v4678_v23, %v4630_v22  ;;  %v4631_v60 = vpop.f32.mrf.mxu1  ;;  %v4583_v29 = vadd.f32 %v4582_v39, %v8011_v14  ;;  %v5579_v14 = vld [vmem:[%s8497_s0 + $0x138] sm:$0xf]  ;;  %v5648_v23 = vor.u32 %v6476_v9, %v5645_v10  ;;  %v6507_v9 = vld [vmem:[%s8497_s0 + $0x2b4] sm:$0xf] }
 0x2d4   : > { %v5580_v51 = vor.u32 %v6468_v36, %v5579_v14  ;;  %v6499_v36 = vld [vmem:[%s8497_s0 + $0x26c] sm:$0xf0]  ;;  %v5765_v10 = vld [vmem:[%s8497_s0 + $0x2f0] sm:$0xf0] }
 0x2d5   : > { %v8240_v33 = vadd.f32 %v4727_v24, %v4679_v25  ;;  %v4632_v1 = vadd.f32 %v4631_v60, %v4583_v29 }
 0x2da   : > { %v4680_v41 = vpop.f32.mrf.mxu2  ;;  %v4585_v47 = vpop.f32.mrf.mxu0 }
 0x2db   : > { %v4729_v42 = vpop.f32.mrf.mxu3  ;;  %v4681_v46 = vadd.f32 %v4680_v41, %v4632_v1  ;;  %v4634_v48 = vpop.f32.mrf.mxu1  ;;  %v4586_v53 = vadd.f32 %v4585_v47, %v8017_v27  ;;  %v5635_v27 = vld [vmem:[%s8497_s0 + $0x1b0] sm:$0xf]  ;;  %v6500_v41 = vld [vmem:[%s8497_s0 + $0x274] sm:$0xf0] }
 0x2dc   : > { %v5636_v0 = vor.u32 %v6483_v4, %v5635_v27 }
 0x2dd   : > { %v8267_v57 = vadd.f32 %v4729_v42, %v4681_v46  ;;  %v4635_v3 = vadd.f32 %v4634_v48, %v4586_v53  ;;  %4780 = vmatmul.bf16.gmra.mxu0 %v5572_v61  ;;  %v6492_v42 = vld [vmem:[%s8497_s0 + $0x23c] sm:$0xf]  ;;  %v5704_v48 = vor.u32 %v6491_v37, %v5701_v38 }
 0x2de   : > { %4829 = vmatmul.bf16.gmra.mxu1 %v5576_v44  ;;  %v5709_v61 = vld [vmem:[%s8497_s0 + $0x278] sm:$0xf0] }
 0x2df   : > { %4878 = vmatmul.bf16.gmra.mxu2 %v5580_v51 }
 0x2e0   : > { %4927 = vmatmul.bf16.gmra.mxu3 %v5584_v30 }
 0x2e2   : > { %v4683_v58 = vpop.f32.mrf.mxu2  ;;  %v4587_v12 = vpop.f32.mrf.mxu0 }
 0x2e3   : > { %v4732_v50 = vpop.f32.mrf.mxu3  ;;  %v4684_v26 = vadd.f32 %v4683_v58, %v4635_v3  ;;  %v4636_v62 = vpop.f32.mrf.mxu1  ;;  %v4588_v63 = vadd.f32 %v4587_v12, %v8045_v55  ;;  %v5643_v55 = vld [vmem:[%s8497_s0 + $0x1b8] sm:$0xf]  ;;  %v5712_v58 = vor.u32 %v6492_v42, %v5709_v61  ;;  %v6523_v42 = vld [vmem:[%s8497_s0 + $0x334] sm:$0xf] }
 0x2e4   : > { %v5644_v22 = vor.u32 %v6484_v8, %v5643_v55  ;;  %v6515_v8 = vld [vmem:[%s8497_s0 + $0x2ec] sm:$0xf0]  ;;  %v5829_v61 = vld [vmem:[%s8497_s0 + $0x370] sm:$0xf0] }
 0x2e5   : > { %v8270_v2 = vadd.f32 %v4732_v50, %v4684_v26  ;;  %v4637_v40 = vadd.f32 %v4636_v62, %v4588_v63 }
 0x2ea   : > { %v4685_v49 = vpop.f32.mrf.mxu2  ;;  %v4590_v32 = vpop.f32.mrf.mxu0 }
 0x2eb   : > { %v4734_v11 = vpop.f32.mrf.mxu3  ;;  %v4686_v16 = vadd.f32 %v4685_v49, %v4637_v40  ;;  %v4639_v20 = vpop.f32.mrf.mxu1  ;;  %v4591_v24 = vadd.f32 %v4590_v32, %v8051_v5  ;;  %v5699_v5 = vld [vmem:[%s8497_s0 + $0x230] sm:$0xf]  ;;  %v6516_v49 = vld [vmem:[%s8497_s0 + $0x2f4] sm:$0xf0] }
 0x2ec   : > { %v5700_v47 = vor.u32 %v6499_v36, %v5699_v5 }
 0x2ed   : > { %v8297_v25 = vadd.f32 %v4734_v11, %v4686_v16  ;;  %v4640_v39 = vadd.f32 %v4639_v20, %v4591_v24  ;;  %4785 = vmatmul.bf16.gmra.mxu0 %v5636_v0  ;;  %v6508_v11 = vld [vmem:[%s8497_s0 + $0x2bc] sm:$0xf]  ;;  %v5768_v20 = vor.u32 %v6507_v9, %v5765_v10 }
 0x2ee   : > { %4834 = vmatmul.bf16.gmra.mxu1 %v5640_v13  ;;  %v5773_v0 = vld [vmem:[%s8497_s0 + $0x2f8] sm:$0xf0] }
 0x2ef   : > { %4883 = vmatmul.bf16.gmra.mxu2 %v5644_v22 }
 0x2f0   : > { %4932 = vmatmul.bf16.gmra.mxu3 %v5648_v23 }
 0x2f2   : > { %v4688_v60 = vpop.f32.mrf.mxu2  ;;  %v4592_v52 = vpop.f32.mrf.mxu0 }
 0x2f3   : > { %v4737_v29 = vpop.f32.mrf.mxu3  ;;  %v4689_v1 = vadd.f32 %v4688_v60, %v4640_v39  ;;  %v4641_v34 = vpop.f32.mrf.mxu1  ;;  %v4593_v35 = vadd.f32 %v4592_v52, %v8079_v31  ;;  %v5707_v31 = vld [vmem:[%s8497_s0 + $0x238] sm:$0xf]  ;;  %v5776_v60 = vor.u32 %v6508_v11, %v5773_v0  ;;  %v6539_v11 = vld [vmem:[%s8497_s0 + $0x3b4] sm:$0xf] }
 0x2f4   : > { %v5708_v3 = vor.u32 %v6500_v41, %v5707_v31  ;;  %v6531_v41 = vld [vmem:[%s8497_s0 + $0x36c] sm:$0xf0]  ;;  %v5893_v0 = vld [vmem:[%s8497_s0 + $0x3f0] sm:$0xf0] }
 0x2f5   : > { %v8300_v17 = vadd.f32 %v4737_v29, %v4689_v1  ;;  %v4642_v14 = vadd.f32 %v4641_v34, %v4593_v35 }
 0x2fa   : > { %v4690_v44 = vpop.f32.mrf.mxu2  ;;  %v4595_v30 = vpop.f32.mrf.mxu0 }
 0x2fb   : > { %v4739_v46 = vpop.f32.mrf.mxu3  ;;  %v4691_v51 = vadd.f32 %v4690_v44, %v4642_v14  ;;  %v4644_v53 = vpop.f32.mrf.mxu1  ;;  %v4596_v50 = vadd.f32 %v4595_v30, %v8085_v43  ;;  %v5763_v43 = vld [vmem:[%s8497_s0 + $0x2b0] sm:$0xf]  ;;  %v6532_v44 = vld [vmem:[%s8497_s0 + $0x374] sm:$0xf0] }
 0x2fc   : > { %v5764_v32 = vor.u32 %v6515_v8, %v5763_v43 }
 0x2fd   : > { %v8327_v26 = vadd.f32 %v4739_v46, %v4691_v51  ;;  %v4645_v12 = vadd.f32 %v4644_v53, %v4596_v50  ;;  %4790 = vmatmul.bf16.gmra.mxu0 %v5700_v47  ;;  %v6524_v46 = vld [vmem:[%s8497_s0 + $0x33c] sm:$0xf]  ;;  %v5832_v53 = vor.u32 %v6523_v42, %v5829_v61 }
 0x2fe   : > { %4839 = vmatmul.bf16.gmra.mxu1 %v5704_v48  ;;  %v5837_v47 = vld [vmem:[%s8497_s0 + $0x378] sm:$0xf0] }
 0x2ff   : > { %4888 = vmatmul.bf16.gmra.mxu2 %v5708_v3 }
 0x300   : > { %4937 = vmatmul.bf16.gmra.mxu3 %v5712_v58 }
 0x302   : > { %v4693_v62 = vpop.f32.mrf.mxu2  ;;  %v4597_v27 = vpop.f32.mrf.mxu0 }
 0x303   : > { %v4742_v63 = vpop.f32.mrf.mxu3  ;;  %v4694_v40 = vadd.f32 %v4693_v62, %v4645_v12  ;;  %v4646_v4 = vpop.f32.mrf.mxu1  ;;  %v4598_v28 = vadd.f32 %v4597_v27, %v8113_v7  ;;  %v5771_v7 = vld [vmem:[%s8497_s0 + $0x2b8] sm:$0xf]  ;;  %v5840_v62 = vor.u32 %v6524_v46, %v5837_v47 }
 0x304   : > { %v5772_v39 = vor.u32 %v6516_v49, %v5771_v7  ;;  %v6547_v49 = vld [vmem:[%s8497_s0 + $0x3ec] sm:$0xf0] }
 0x305   : > { %v8330_v6 = vadd.f32 %v4742_v63, %v4694_v40  ;;  %v4647_v55 = vadd.f32 %v4646_v4, %v4598_v28 }
 0x30a   : > { %v4695_v13 = vpop.f32.mrf.mxu2  ;;  %v4600_v23 = vpop.f32.mrf.mxu0 }
 0x30b   : > { %v4744_v16 = vpop.f32.mrf.mxu3  ;;  %v4696_v22 = vadd.f32 %v4695_v13, %v4647_v55  ;;  %v4649_v24 = vpop.f32.mrf.mxu1  ;;  %v4601_v29 = vadd.f32 %v4600_v23, %v8119_v18  ;;  %v5827_v18 = vld [vmem:[%s8497_s0 + $0x330] sm:$0xf]  ;;  %v6548_v13 = vld [vmem:[%s8497_s0 + $0x3f4] sm:$0xf0] }
 0x30c   : > { %v5828_v30 = vor.u32 %v6531_v41, %v5827_v18 }
 0x30d   : > { %v8357_v1 = vadd.f32 %v4744_v16, %v4696_v22  ;;  %v4650_v52 = vadd.f32 %v4649_v24, %v4601_v29  ;;  %4795 = vmatmul.bf16.gmra.mxu0 %v5764_v32  ;;  %v6540_v16 = vld [vmem:[%s8497_s0 + $0x3bc] sm:$0xf]  ;;  %v5896_v24 = vor.u32 %v6539_v11, %v5893_v0 }
 0x30e   : > { %4844 = vmatmul.bf16.gmra.mxu1 %v5768_v20  ;;  %v5901_v32 = vld [vmem:[%s8497_s0 + $0x3f8] sm:$0xf0] }
 0x30f   : > { %4893 = vmatmul.bf16.gmra.mxu2 %v5772_v39 }
 0x310   : > { %4942 = vmatmul.bf16.gmra.mxu3 %v5776_v60 }
 0x312   : > { %v4698_v34 = vpop.f32.mrf.mxu2  ;;  %v4602_v5 = vpop.f32.mrf.mxu0 }
 0x313   : > { %v4747_v35 = vpop.f32.mrf.mxu3  ;;  %v4699_v14 = vadd.f32 %v4698_v34, %v4650_v52  ;;  %v4651_v36 = vpop.f32.mrf.mxu1  ;;  %v4603_v37 = vadd.f32 %v4602_v5, %v8147_v45  ;;  %v5835_v45 = vld [vmem:[%s8497_s0 + $0x338] sm:$0xf]  ;;  %v5904_v34 = vor.u32 %v6540_v16, %v5901_v32 }
 0x314   : > { %v5836_v12 = vor.u32 %v6532_v44, %v5835_v45 }
 0x315   : > { %v8360_v38 = vadd.f32 %v4747_v35, %v4699_v14  ;;  %v4652_v31 = vadd.f32 %v4651_v36, %v4603_v37 }
 0x31a   : > { %v4700_v48 = vpop.f32.mrf.mxu2  ;;  %v4605_v58 = vpop.f32.mrf.mxu0 }
 0x31b   : > { %v4749_v51 = vpop.f32.mrf.mxu3  ;;  %v4701_v3 = vadd.f32 %v4700_v48, %v4652_v31  ;;  %v4654_v50 = vpop.f32.mrf.mxu1  ;;  %v4606_v63 = vadd.f32 %v4605_v58, %v8150_v56  ;;  %v5891_v56 = vld [vmem:[%s8497_s0 + $0x3b0] sm:$0xf] }
 0x31c   : > { %v5892_v23 = vor.u32 %v6547_v49, %v5891_v56 }
 0x31d   : > { %v8387_v40 = vadd.f32 %v4749_v51, %v4701_v3  ;;  %v4655_v27 = vadd.f32 %v4654_v50, %v4606_v63  ;;  %4800 = vmatmul.bf16.gmra.mxu0 %v5828_v30 }
 0x31e   : > { %4849 = vmatmul.bf16.gmra.mxu1 %v5832_v53 }
 0x31f   : > { %4898 = vmatmul.bf16.gmra.mxu2 %v5836_v12 }
 0x320   : > { %4947 = vmatmul.bf16.gmra.mxu3 %v5840_v62 }
 0x322   : > { %v4703_v4 = vpop.f32.mrf.mxu2  ;;  %v4607_v43 = vpop.f32.mrf.mxu0 }
 0x323   : > { %v4752_v28 = vpop.f32.mrf.mxu3  ;;  %v4704_v55 = vadd.f32 %v4703_v4, %v4655_v27  ;;  %v4656_v8 = vpop.f32.mrf.mxu1  ;;  %v4608_v9 = vadd.f32 %v4607_v43, %v8177_v15  ;;  %v5899_v15 = vld [vmem:[%s8497_s0 + $0x3b8] sm:$0xf] }
 0x324   : > { %v5900_v52 = vor.u32 %v6548_v13, %v5899_v15 }
 0x325   : > { %v8390_v10 = vadd.f32 %v4752_v28, %v4704_v55  ;;  %v4657_v7 = vadd.f32 %v4656_v8, %v4608_v9 }
 0x32a   : > { %v4705_v20 = vpop.f32.mrf.mxu2  ;;  %v4610_v60 = vpop.f32.mrf.mxu0 }
 0x32b   : > { %v4754_v22 = vpop.f32.mrf.mxu3  ;;  %v4706_v39 = vadd.f32 %v4705_v20, %v4657_v7  ;;  %v4659_v29 = vpop.f32.mrf.mxu1  ;;  %v4611_v35 = vadd.f32 %v4610_v60, %v8180_v54 }
 0x32d   : > { %v8417_v14 = vadd.f32 %v4754_v22, %v4706_v39  ;;  %v4660_v5 = vadd.f32 %v4659_v29, %v4611_v35  ;;  %4805 = vmatmul.bf16.gmra.mxu0 %v5892_v23 }
 0x32e   : > { %4854 = vmatmul.bf16.gmra.mxu1 %v5896_v24 }
 0x32f   : > { %4903 = vmatmul.bf16.gmra.mxu2 %v5900_v52 }
 0x330   : > { %4952 = vmatmul.bf16.gmra.mxu3 %v5904_v34 }
 0x332   : > { %v4708_v36 = vpop.f32.mrf.mxu2  ;;  %v4612_v18 = vpop.f32.mrf.mxu0 }
 0x333   : > { %v4757_v37 = vpop.f32.mrf.mxu3  ;;  %v4709_v31 = vadd.f32 %v4708_v36, %v4660_v5  ;;  %v4661_v41 = vpop.f32.mrf.mxu1  ;;  %v4613_v42 = vadd.f32 %v4612_v18, %v8207_v19 }
 0x335   : > { %v8420_v61 = vadd.f32 %v4757_v37, %v4709_v31  ;;  %v4662_v45 = vadd.f32 %v4661_v41, %v4613_v42 }
 0x33a   : > { %v4710_v44 = vpop.f32.mrf.mxu2  ;;  %v4771_v47 = vpop.f32.mrf.mxu0 }
 0x33b   : > { %v4759_v46 = vpop.f32.mrf.mxu3  ;;  %v4711_v54 = vadd.f32 %v4710_v44, %v4662_v45  ;;  %v4820_v48 = vpop.f32.mrf.mxu1  ;;  %v4772_v30 = vadd.f32 %v4771_v47, %v8210_v59 }
 0x33d   : > { %v8422_v51 = vadd.f32 %v4759_v46, %v4711_v54  ;;  %v4821_v53 = vadd.f32 %v4820_v48, %v4772_v30 }
 0x342   : > { %v4869_v3 = vpop.f32.mrf.mxu2  ;;  %v4773_v12 = vpop.f32.mrf.mxu0 }
 0x343   : > { %v4918_v58 = vpop.f32.mrf.mxu3  ;;  %v4870_v50 = vadd.f32 %v4869_v3, %v4821_v53  ;;  %v4822_v62 = vpop.f32.mrf.mxu1  ;;  %v4774_v19 = vadd.f32 %v4773_v12, %v8237_v21 }
 0x345   : > { %v4919_v63 = vadd.f32 %v4918_v58, %v4870_v50  ;;  %v4823_v27 = vadd.f32 %v4822_v62, %v4774_v19 }
 0x347   : > { %v4974_v55 = vmul.f32 0.2, %v4919_v63  ;;  %vm4958_vm0 = vcmp.ge.f32.partialorder %v4919_v63, 0.0 }
 0x349   : > { %v4990_v56 = vsel %vm4958_vm0, %v4919_v63, %v4974_v55 }
 0x34a   : > { %v4871_v4 = vpop.f32.mrf.mxu2  ;;  %v4776_v8 = vpop.f32.mrf.mxu0  ;;  %v5060_v21 = vmul.f32 %v4990_v56, %v4990_v56 }
 0x34b   : > { %v4920_v28 = vpop.f32.mrf.mxu3  ;;  %v4872_v43 = vadd.f32 %v4871_v4, %v4823_v27  ;;  %v4825_v9 = vpop.f32.mrf.mxu1  ;;  %v4777_v59 = vadd.f32 %v4776_v8, %v8240_v33 }
 0x34d   : > { %v4921_v7 = vadd.f32 %v4920_v28, %v4872_v43  ;;  %v4826_v0 = vadd.f32 %v4825_v9, %v4777_v59 }
 0x34f   : > { %vm4959_vm1 = vcmp.ge.f32.partialorder %v4921_v7, 0.0  ;;  %v4975_v49 = vmul.f32 0.2, %v4921_v7 }
 0x351   : > { %v4991_v11 = vsel %vm4959_vm1, %v4921_v7, %v4975_v49 }
 0x352   : > { %v6680_v15 = vpack.c.bf16 %v4991_v11, %v4990_v56  ;;  %v5038_v13 = vadd.f32 %v4991_v11, %v4990_v56  ;;  %v5061_v16 = vmul.f32 %v4991_v11, %v4991_v11  ;;  %v4874_v32 = vpop.f32.mrf.mxu2  ;;  %v4778_v23 = vpop.f32.mrf.mxu0 }
 0x353   : > { %v4923_v20 = vpop.f32.mrf.mxu3  ;;  %v4875_v22 = vadd.f32 %v4874_v32, %v4826_v0  ;;  %v4827_v24 = vpop.f32.mrf.mxu1  ;;  %v4779_v60 = vadd.f32 %v4778_v23, %v8267_v57 }
 0x354   : > { %6681 = vst [vmem:[%s8429_s26] sm:$0xff] %v6680_v15   ;;  %v5076_v33 = vadd.f32 %v5061_v16, %v5060_v21 }
 0x355   : > { %v4924_v39 = vadd.f32 %v4923_v20, %v4875_v22  ;;  %v4828_v34 = vadd.f32 %v4827_v24, %v4779_v60 }
 0x357   : > { %vm4960_vm2 = vcmp.ge.f32.partialorder %v4924_v39, 0.0  ;;  %v4976_v29 = vmul.f32 0.2, %v4924_v39 }
 0x359   : > { %v4992_v52 = vsel %vm4960_vm2, %v4924_v39, %v4976_v29 }
 0x35a   : > { %v5039_v35 = vadd.f32 %v5038_v13, %v4992_v52  ;;  %v5062_v5 = vmul.f32 %v4992_v52, %v4992_v52  ;;  %v4876_v36 = vpop.f32.mrf.mxu2  ;;  %v4781_v18 = vpop.f32.mrf.mxu0 }
 0x35b   : > { %v4925_v37 = vpop.f32.mrf.mxu3  ;;  %v4877_v31 = vadd.f32 %v4876_v36, %v4828_v34  ;;  %v4830_v41 = vpop.f32.mrf.mxu1  ;;  %v4782_v44 = vadd.f32 %v4781_v18, %v8270_v2 }
 0x35c   : > { %v5077_v42 = vadd.f32 %v5076_v33, %v5062_v5 }
 0x35d   : > { %v4926_v45 = vadd.f32 %v4925_v37, %v4877_v31  ;;  %v4831_v57 = vadd.f32 %v4830_v41, %v4782_v44 }
 0x35f   : > { %vm4961_vm3 = vcmp.ge.f32.partialorder %v4926_v45, 0.0  ;;  %v4977_v46 = vmul.f32 0.2, %v4926_v45 }
 0x361   : > { %v4993_v54 = vsel %vm4961_vm3, %v4926_v45, %v4977_v46 }
 0x362   : > { %v6685_v47 = vpack.c.bf16 %v4993_v54, %v4992_v52  ;;  %v5040_v48 = vadd.f32 %v5039_v35, %v4993_v54  ;;  %v5063_v30 = vmul.f32 %v4993_v54, %v4993_v54  ;;  %v4879_v53 = vpop.f32.mrf.mxu2  ;;  %v4783_v50 = vpop.f32.mrf.mxu0 }
 0x363   : > { %v4928_v3 = vpop.f32.mrf.mxu3  ;;  %v4880_v58 = vadd.f32 %v4879_v53, %v4831_v57  ;;  %v4832_v12 = vpop.f32.mrf.mxu1  ;;  %v4784_v63 = vadd.f32 %v4783_v50, %v8297_v25 }
 0x364   : > { %6717 = vst [vmem:[%s8429_s26 + $0x8] sm:$0xff] %v6685_v47   ;;  %v5078_v62 = vadd.f32 %v5077_v42, %v5063_v30 }
 0x365   : > { %v4929_v19 = vadd.f32 %v4928_v3, %v4880_v58  ;;  %v4833_v4 = vadd.f32 %v4832_v12, %v4784_v63 }
 0x367   : > { %vm4962_vm4 = vcmp.ge.f32.partialorder %v4929_v19, 0.0  ;;  %v4978_v27 = vmul.f32 0.2, %v4929_v19 }
 0x369   : > { %v4994_v2 = vsel %vm4962_vm4, %v4929_v19, %v4978_v27 }
 0x36a   : > { %v5041_v28 = vadd.f32 %v5040_v48, %v4994_v2  ;;  %v5064_v55 = vmul.f32 %v4994_v2, %v4994_v2  ;;  %v4881_v43 = vpop.f32.mrf.mxu2  ;;  %v4786_v7 = vpop.f32.mrf.mxu0 }
 0x36b   : > { %v4930_v8 = vpop.f32.mrf.mxu3  ;;  %v4882_v9 = vadd.f32 %v4881_v43, %v4833_v4  ;;  %v4835_v59 = vpop.f32.mrf.mxu1  ;;  %v4787_v11 = vadd.f32 %v4786_v7, %v8300_v17 }
 0x36c   : > { %v5079_v56 = vadd.f32 %v5078_v62, %v5064_v55 }
 0x36d   : > { %v4931_v49 = vadd.f32 %v4930_v8, %v4882_v9  ;;  %v4836_v25 = vadd.f32 %v4835_v59, %v4787_v11 }
 0x36f   : > { %vm4963_vm5 = vcmp.ge.f32.partialorder %v4931_v49, 0.0  ;;  %v4979_v0 = vmul.f32 0.2, %v4931_v49 }
 0x371   : > { %v4995_v21 = vsel %vm4963_vm5, %v4931_v49, %v4979_v0 }
 0x372   : > { %v6690_v15 = vpack.c.bf16 %v4995_v21, %v4994_v2  ;;  %v5042_v13 = vadd.f32 %v5041_v28, %v4995_v21  ;;  %v5065_v16 = vmul.f32 %v4995_v21, %v4995_v21  ;;  %v4884_v32 = vpop.f32.mrf.mxu2  ;;  %v4788_v23 = vpop.f32.mrf.mxu0 }
 0x373   : > { %v4933_v20 = vpop.f32.mrf.mxu3  ;;  %v4885_v22 = vadd.f32 %v4884_v32, %v4836_v25  ;;  %v4837_v24 = vpop.f32.mrf.mxu1  ;;  %v4789_v60 = vadd.f32 %v4788_v23, %v8327_v26 }
 0x374   : > { %6718 = vst [vmem:[%s8429_s26 + $0x10] sm:$0xff] %v6690_v15   ;;  %v5080_v33 = vadd.f32 %v5079_v56, %v5065_v16 }
 0x375   : > { %v4934_v39 = vadd.f32 %v4933_v20, %v4885_v22  ;;  %v4838_v52 = vadd.f32 %v4837_v24, %v4789_v60 }
 0x377   : > { %vm4964_vm6 = vcmp.ge.f32.partialorder %v4934_v39, 0.0  ;;  %v4980_v29 = vmul.f32 0.2, %v4934_v39 }
 0x379   : > { %v4996_v17 = vsel %vm4964_vm6, %v4934_v39, %v4980_v29 }
 0x37a   : > { %v5043_v34 = vadd.f32 %v5042_v13, %v4996_v17  ;;  %v5066_v35 = vmul.f32 %v4996_v17, %v4996_v17  ;;  %v4886_v5 = vpop.f32.mrf.mxu2  ;;  %v4791_v31 = vpop.f32.mrf.mxu0 }
 0x37b   : > { %v4935_v36 = vpop.f32.mrf.mxu3  ;;  %v4887_v37 = vadd.f32 %v4886_v5, %v4838_v52  ;;  %v4840_v18 = vpop.f32.mrf.mxu1  ;;  %v4792_v45 = vadd.f32 %v4791_v31, %v8330_v6 }
 0x37c   : > { %v5081_v41 = vadd.f32 %v5080_v33, %v5066_v35 }
 0x37d   : > { %v4936_v42 = vadd.f32 %v4935_v36, %v4887_v37  ;;  %v4841_v26 = vadd.f32 %v4840_v18, %v4792_v45 }
 0x37f   : > { %vm4965_vm7 = vcmp.ge.f32.partialorder %v4936_v42, 0.0  ;;  %v4981_v44 = vmul.f32 0.2, %v4936_v42 }
 0x381   : > { %v4997_v46 = vsel %vm4965_vm7, %v4936_v42, %v4981_v44 }
 0x382   : > { %v6695_v54 = vpack.c.bf16 %v4997_v46, %v4996_v17  ;;  %v5044_v57 = vadd.f32 %v5043_v34, %v4997_v46  ;;  %v5067_v47 = vmul.f32 %v4997_v46, %v4997_v46  ;;  %v4889_v48 = vpop.f32.mrf.mxu2  ;;  %v4793_v3 = vpop.f32.mrf.mxu0 }
 0x383   : > { %v4938_v30 = vpop.f32.mrf.mxu3  ;;  %v4890_v53 = vadd.f32 %v4889_v48, %v4841_v26  ;;  %v4842_v58 = vpop.f32.mrf.mxu1  ;;  %v4794_v62 = vadd.f32 %v4793_v3, %v8357_v1 }
 0x384   : > { %6719 = vst [vmem:[%s8429_s26 + $0x18] sm:$0xff] %v6695_v54   ;;  %v5082_v50 = vadd.f32 %v5081_v41, %v5067_v47 }
 0x385   : > { %v4939_v12 = vadd.f32 %v4938_v30, %v4890_v53  ;;  %v4843_v63 = vadd.f32 %v4842_v58, %v4794_v62 }
 0x387   : > { %vm4966_vm8 = vcmp.ge.f32.partialorder %v4939_v12, 0.0  ;;  %v4982_v19 = vmul.f32 0.2, %v4939_v12 }
 0x389   : > { %v4998_v6 = vsel %vm4966_vm8, %v4939_v12, %v4982_v19 }
 0x38a   : > { %v5045_v27 = vadd.f32 %v5044_v57, %v4998_v6  ;;  %v5068_v2 = vmul.f32 %v4998_v6, %v4998_v6  ;;  %v4891_v4 = vpop.f32.mrf.mxu2  ;;  %v4796_v43 = vpop.f32.mrf.mxu0 }
 0x38b   : > { %v4940_v28 = vpop.f32.mrf.mxu3  ;;  %v4892_v55 = vadd.f32 %v4891_v4, %v4843_v63  ;;  %v4845_v8 = vpop.f32.mrf.mxu1  ;;  %v4797_v59 = vadd.f32 %v4796_v43, %v8360_v38 }
 0x38c   : > { %v5083_v9 = vadd.f32 %v5082_v50, %v5068_v2 }
 0x38d   : > { %v4941_v7 = vadd.f32 %v4940_v28, %v4892_v55  ;;  %v4846_v1 = vadd.f32 %v4845_v8, %v4797_v59 }
 0x38f   : > { %vm4967_vm9 = vcmp.ge.f32.partialorder %v4941_v7, 0.0  ;;  %v4983_v56 = vmul.f32 0.2, %v4941_v7 }
 0x391   : > { %v4999_v49 = vsel %vm4967_vm9, %v4941_v7, %v4983_v56 }
 0x392   : > { %v6700_v11 = vpack.c.bf16 %v4999_v49, %v4998_v6  ;;  %v5046_v0 = vadd.f32 %v5045_v27, %v4999_v49  ;;  %v5069_v21 = vmul.f32 %v4999_v49, %v4999_v49  ;;  %v4894_v25 = vpop.f32.mrf.mxu2  ;;  %v4798_v16 = vpop.f32.mrf.mxu0 }
 0x393   : > { %v4943_v15 = vpop.f32.mrf.mxu3  ;;  %v4895_v13 = vadd.f32 %v4894_v25, %v4846_v1  ;;  %v4847_v32 = vpop.f32.mrf.mxu1  ;;  %v4799_v23 = vadd.f32 %v4798_v16, %v8387_v40 }
 0x394   : > { %6720 = vst [vmem:[%s8429_s26 + $0x20] sm:$0xff] %v6700_v11   ;;  %v5084_v20 = vadd.f32 %v5083_v9, %v5069_v21 }
 0x395   : > { %v4944_v22 = vadd.f32 %v4943_v15, %v4895_v13  ;;  %v4848_v33 = vadd.f32 %v4847_v32, %v4799_v23 }
 0x397   : > { %vm4968_vm10 = vcmp.ge.f32.partialorder %v4944_v22, 0.0  ;;  %v4984_v24 = vmul.f32 0.2, %v4944_v22 }
 0x399   : > { %v5000_v38 = vsel %vm4968_vm10, %v4944_v22, %v4984_v24 }
 0x39a   : > { %v5047_v39 = vadd.f32 %v5046_v0, %v5000_v38  ;;  %v5070_v60 = vmul.f32 %v5000_v38, %v5000_v38  ;;  %v4896_v29 = vpop.f32.mrf.mxu2  ;;  %v4801_v34 = vpop.f32.mrf.mxu0 }
 0x39b   : > { %v4945_v17 = vpop.f32.mrf.mxu3  ;;  %v4897_v52 = vadd.f32 %v4896_v29, %v4848_v33  ;;  %v4850_v35 = vpop.f32.mrf.mxu1  ;;  %v4802_v37 = vadd.f32 %v4801_v34, %v8390_v10 }
 0x39c   : > { %v5085_v5 = vadd.f32 %v5084_v20, %v5070_v60 }
 0x39d   : > { %v4946_v36 = vadd.f32 %v4945_v17, %v4897_v52  ;;  %v4851_v40 = vadd.f32 %v4850_v35, %v4802_v37 }
 0x39f   : > { %vm4969_vm11 = vcmp.ge.f32.partialorder %v4946_v36, 0.0  ;;  %v4985_v31 = vmul.f32 0.2, %v4946_v36 }
 0x3a1   : > { %v5001_v18 = vsel %vm4969_vm11, %v4946_v36, %v4985_v31 }
 0x3a2   : > { %v6705_v41 = vpack.c.bf16 %v5001_v18, %v5000_v38  ;;  %v5048_v42 = vadd.f32 %v5047_v39, %v5001_v18  ;;  %v5071_v45 = vmul.f32 %v5001_v18, %v5001_v18  ;;  %v4899_v44 = vpop.f32.mrf.mxu2  ;;  %v4803_v54 = vpop.f32.mrf.mxu0 }
 0x3a3   : > { %v4948_v46 = vpop.f32.mrf.mxu3  ;;  %v4900_v26 = vadd.f32 %v4899_v44, %v4851_v40  ;;  %v4852_v47 = vpop.f32.mrf.mxu1  ;;  %v4804_v30 = vadd.f32 %v4803_v54, %v8417_v14  ;;  %v5142_v44 = vld [vmem:[%s8429_s26 + $0x4] sm:$0xf] (%p6864_p6)  ;;  %v5148_v54 = vld [vmem:[%s8429_s26 + $0x10] sm:$0xf] (%p6864_p6) }
 0x3a4   : > { %6721 = vst [vmem:[%s8429_s26 + $0x28] sm:$0xff] %v6705_v41   ;;  %v5086_v57 = vadd.f32 %v5085_v5, %v5071_v45  ;;  %v5140_v45 = vld [vmem:[%s8429_s26] sm:$0xf] (%p6864_p6) }
 0x3a5   : > { %v4949_v48 = vadd.f32 %v4948_v46, %v4900_v26  ;;  %v4853_v3 = vadd.f32 %v4852_v47, %v4804_v30  ;;  %v5144_v46 = vld [vmem:[%s8429_s26 + $0x8] sm:$0xf] (%p6864_p6)  ;;  %5141 = vst [vmem:[%s5123_s10] sm:$0xf] (%p6864_p6), %v5140_v45  ;;  %v5146_v26 = vld [vmem:[%s8429_s26 + $0xc] sm:$0xf] (%p6864_p6) }
 0x3a6   : > { %5143 = vst [vmem:[%s5123_s10 + $0x8] sm:$0xf] (%p6864_p6), %v5142_v44  ;;  %v5152_v47 = vld [vmem:[%s8429_s26 + $0x18] sm:$0xf] (%p6864_p6)  ;;  %v5156_v30 = vld [vmem:[%s8429_s26 + $0x20] sm:$0xf] (%p6864_p6) }
 0x3a7   : > { %vm4970_vm12 = vcmp.ge.f32.partialorder %v4949_v48, 0.0  ;;  %v4986_v53 = vmul.f32 0.2, %v4949_v48  ;;  %5145 = vst [vmem:[%s5123_s10 + $0x10] sm:$0xf] (%p6864_p6), %v5144_v46 }
 0x3a8   : > { %5147 = vst [vmem:[%s5123_s10 + $0x18] sm:$0xf] (%p6864_p6), %v5146_v26 }
 0x3a9   : > { %v5002_v10 = vsel %vm4970_vm12, %v4949_v48, %v4986_v53  ;;  %5149 = vst [vmem:[%s5123_s10 + $0x20] sm:$0xf] (%p6864_p6), %v5148_v54  ;;  %v5154_v48 = vld [vmem:[%s8429_s26 + $0x1c] sm:$0xf] (%p6864_p6)  ;;  %v5158_v53 = vld [vmem:[%s8429_s26 + $0x24] sm:$0xf] (%p6864_p6) }
 0x3aa   : > { %v5049_v58 = vadd.f32 %v5048_v42, %v5002_v10  ;;  %v5072_v50 = vmul.f32 %v5002_v10, %v5002_v10  ;;  %v4901_v12 = vpop.f32.mrf.mxu2  ;;  %v4806_v6 = vpop.f32.mrf.mxu0  ;;  %5153 = vst [vmem:[%s5123_s10 + $0x30] sm:$0xf] (%p6864_p6), %v5152_v47 }
 0x3ab   : > { %v4950_v62 = vpop.f32.mrf.mxu3  ;;  %v4902_v19 = vadd.f32 %v4901_v12, %v4853_v3  ;;  %v4807_v2 = vadd.f32 %v4806_v6, %v8420_v61  ;;  %v4855_v4 = vpop.f32.mrf.mxu1  ;;  %5155 = vst [vmem:[%s5123_s10 + $0x38] sm:$0xf] (%p6864_p6), %v5154_v48  ;;  %v5162_v3 = vld [vmem:[%s8429_s26 + $0x2c] sm:$0xf] (%p6864_p6) }
 0x3ac   : > { %v5087_v63 = vadd.f32 %v5086_v57, %v5072_v50  ;;  %v5150_v57 = vld [vmem:[%s8429_s26 + $0x14] sm:$0xf] (%p6864_p6)  ;;  %5157 = vst [vmem:[%s5123_s10 + $0x40] sm:$0xf] (%p6864_p6), %v5156_v30 }
 0x3ad   : > { %v4951_v27 = vadd.f32 %v4950_v62, %v4902_v19  ;;  %v4856_v14 = vadd.f32 %v4855_v4, %v4807_v2  ;;  %5151 = vst [vmem:[%s5123_s10 + $0x28] sm:$0xf] (%p6864_p6), %v5150_v57 }
 0x3ae   : > { %5159 = vst [vmem:[%s5123_s10 + $0x48] sm:$0xf] (%p6864_p6), %v5158_v53 }
 0x3af   : > { %vm4971_vm13 = vcmp.ge.f32.partialorder %v4951_v27, 0.0  ;;  %v4987_v28 = vmul.f32 0.2, %v4951_v27  ;;  %5163 = vst [vmem:[%s5123_s10 + $0x58] sm:$0xf] (%p6864_p6), %v5162_v3 }
 0x3b1   : > { %v5003_v55 = vsel %vm4971_vm13, %v4951_v27, %v4987_v28 }
 0x3b2   : > { %v6710_v43 = vpack.c.bf16 %v5003_v55, %v5002_v10  ;;  %v5050_v8 = vadd.f32 %v5049_v58, %v5003_v55  ;;  %v5073_v9 = vmul.f32 %v5003_v55, %v5003_v55  ;;  %v4904_v7 = vpop.f32.mrf.mxu2  ;;  %v4808_v49 = vpop.f32.mrf.mxu0  ;;  %v5160_v10 = vld [vmem:[%s8429_s26 + $0x28] sm:$0xf] (%p6864_p6) }
 0x3b3   : > { %v4953_v59 = vpop.f32.mrf.mxu3  ;;  %v4905_v56 = vadd.f32 %v4904_v7, %v4856_v14  ;;  %v4809_v0 = vadd.f32 %v4808_v49, %v8422_v51  ;;  %v4857_v61 = vpop.f32.mrf.mxu1  ;;  %5161 = vst [vmem:[%s5123_s10 + $0x50] sm:$0xf] (%p6864_p6), %v5160_v10 }
 0x3b4   : > { %6722 = vst [vmem:[%s8429_s26 + $0x30] sm:$0xff] %v6710_v43   ;;  %v5088_v1 = vadd.f32 %v5087_v63, %v5073_v9 }
 0x3b5   : > { %v4954_v11 = vadd.f32 %v4953_v59, %v4905_v56  ;;  %v4858_v15 = vadd.f32 %v4857_v61, %v4809_v0 }
 0x3b7   : > { %vm4972_vm14 = vcmp.ge.f32.partialorder %v4954_v11, 0.0  ;;  %v4988_v21 = vmul.f32 0.2, %v4954_v11 }
 0x3b9   : > { %v5004_v25 = vsel %vm4972_vm14, %v4954_v11, %v4988_v21 }
 0x3ba   : > { %v5051_v13 = vadd.f32 %v5050_v8, %v5004_v25  ;;  %v5074_v16 = vmul.f32 %v5004_v25, %v5004_v25  ;;  %v4906_v32 = vpop.f32.mrf.mxu2 }
 0x3bb   : > { %v4907_v20 = vadd.f32 %v4906_v32, %v4858_v15  ;;  %v4955_v23 = vpop.f32.mrf.mxu3  ;;  %v5164_v58 = vld [vmem:[%s8429_s26 + $0x30] sm:$0xf] (%p6864_p6)  ;;  %v5166_v50 = vld [vmem:[%s8429_s26 + $0x34] sm:$0xf] (%p6864_p6) }
 0x3bc   : > { %v5089_v22 = vadd.f32 %v5088_v1, %v5074_v16  ;;  %5165 = vst [vmem:[%s5123_s10 + $0x60] sm:$0xf] (%p6864_p6), %v5164_v58 }
 0x3bd   : > { %v4956_v24 = vadd.f32 %v4955_v23, %v4907_v20  ;;  %5167 = vst [vmem:[%s5123_s10 + $0x68] sm:$0xf] (%p6864_p6), %v5166_v50 }
 0x3bf   : > { %vm4973_vm15 = vcmp.ge.f32.partialorder %v4956_v24, 0.0  ;;  %v4989_v38 = vmul.f32 0.2, %v4956_v24 }
 0x3c1   : > { %v5005_v33 = vsel %vm4973_vm15, %v4956_v24, %v4989_v38 }
 0x3c2   : > { %v6715_v39 = vpack.c.bf16 %v5005_v33, %v5004_v25  ;;  %v5052_v51 = vadd.f32 %v5051_v13, %v5005_v33  ;;  %v5075_v60 = vmul.f32 %v5005_v33, %v5005_v33 }
 0x3c4   : > { %6723 = vst [vmem:[%s8429_s26 + $0x38] sm:$0xff] %v6715_v39   ;;  %v5053_v29 = vrot.slane %v5052_v51, 4  ;;  %v5090_v17 = vadd.f32 %v5089_v22, %v5075_v60 }
 0x3c6   : > { %v5054_v52 = vadd.f32 %v5053_v29, %v5052_v51  ;;  %v5091_v34 = vrot.slane %v5090_v17, 4 }
 0x3c8   : > { %v5055_v35 = vrot.slane %v5054_v52, 2  ;;  %v5092_v5 = vadd.f32 %v5091_v34, %v5090_v17 }
 0x3ca   : > { %v5056_v36 = vadd.f32 %v5055_v35, %v5054_v52  ;;  %v5093_v37 = vrot.slane %v5092_v5, 2 }
 0x3cb   : > { %v5168_v12 = vld [vmem:[%s8429_s26 + $0x38] sm:$0xf] (%p6864_p6)  ;;  %v5170_v62 = vld [vmem:[%s8429_s26 + $0x3c] sm:$0xf] (%p6864_p6) }
 0x3cc   : > { %v5057_v31 = vrot.slane %v5056_v36, 1  ;;  %v5094_v18 = vadd.f32 %v5093_v37, %v5092_v5  ;;  %5169 = vst [vmem:[%s5123_s10 + $0x70] sm:$0xf] (%p6864_p6), %v5168_v12 }
 0x3cd   : > { %5171 = vst [vmem:[%s5123_s10 + $0x78] sm:$0xf] (%p6864_p6), %v5170_v62 }
 0x3ce   : > { %v5058_v40 = vadd.f32 %v5057_v31, %v5056_v36  ;;  %v5095_v41 = vrot.slane %v5094_v18, 1  ;;  %5118 = sbr.rel (!%p6864_p6) target bundleno = 979 (0x3d3), region = 84 }
 0x3d0   : > { %5059 = vst [vmem:[%s2374_s9] sm:$0x1] %v5058_v40  ;;  %v5096_v42 = vadd.f32 %v5095_v41, %v5094_v18 }
 0x3d2   : > { %5097 = vst [vmem:[%s2381_s30] sm:$0x1] %v5096_v42 }
 0x3d3 PF: > { %s15_s19 = sadd.s32 1, %s6802_s19   ;;  %s8503_s15 = smov %s6790_s16 }
 0x3d4   : > { %p12_p12 = scmp.ge.s32.totalorder %s15_s19, 4   ;;  %s8504_s16 = smov %s6869_s25 }
 0x3d5   : > { %s8505_s17 = smov %s6798_s18  ;;  %s8506_s18 = smov %s8508_s20 }
 0x3d6   :  { %14 = sbr.rel (!%p12_p12) target bundleno = 3 (0x3), region = 187 }

// kernel: mul.17
= control target key start
LH: loop header
LB: loop body
LE: loop exit
PB: predicated region body
PF: predicated region fallthrough
CT: control target
= control target key end

     0   :  { %s34_s0 = inlined_call_operand.vmem [shape: f32[512], index: 0, kind: input, shape index: {}]   ;;  %s35_s1 = inlined_call_operand.vmem [shape: f32[512], index: 1, kind: input, shape index: {}]   ;;  %s36_s2 = inlined_call_operand.vmem [shape: f32[512], index: 2, kind: output, shape index: {}]  }
   0x1   :  { %v3_v0 = vld [vmem:[%s34_s0] sm:$0xf] }
   0x2   :  { %v4_v1 = vld [vmem:[%s35_s1] sm:$0xf] }
   0x3   :  { %v7_v2 = vmul.f32 %v4_v1, %v3_v0 }
   0x5   :  { %9 = vst [vmem:[%s36_s2] sm:$0xf] %v7_v2 }

// kernel: discriminator_forward.7
= control target key start
LH: loop header
LB: loop body
LE: loop exit
PB: predicated region body
PF: predicated region fallthrough
CT: control target
= control target key end

     0   :  { %s9469_s15 = smov 0   ;;  %s9471_s16 = smov 0   ;;  %s11258_s0 = inlined_call_operand.vmem [shape: bf16[32,4096], index: 0, kind: input, shape index: {}]   ;;  %s11259_s1 = inlined_call_operand.vmem [shape: bf16[4096,512], index: 1, kind: input, shape index: {}]   ;;  %s11260_s2 = inlined_call_operand.vmem [shape: bf16[32,512], index: 2, kind: output, shape index: {0}]   ;;  %s11261_s3 = inlined_call_operand.vmem [shape: f32[1,1,512], index: 3, kind: output, shape index: {1}]   ;;  %s11262_s4 = inlined_call_operand.vmem [shape: f32[1,1,512], index: 4, kind: output, shape index: {2}]  }
   0x1   :  { %s9473_s17 = smov 0   ;;  %s9475_s18 = smov 0  }
   0x2   :  { %s9477_s19 = smov 0  }
   0x3 LB: > { %s27_s20 = sadd.s32 1, %s9438_s18  ;;  %s7739_s21 = sadd.s32 4294967295, %s9442_s19   ;;  %s9442_s19 = sphi %s9477_s19, %s15_s19   ;;  %s9438_s18 = sphi %s9475_s18, %s11267_s18   ;;  %s9434_s17 = sphi %s9473_s17, %s11266_s17   ;;  %s9430_s16 = sphi %s9471_s16, %s11265_s16   ;;  %s9426_s15 = sphi %s9469_s15, %s11264_s15  }
   0x4   : > { %p29_p0 = scmp.ge.s32.totalorder %s27_s20, 4  ;;  %p67_p1 = scmp.ne.s32.totalorder %s9430_s16, %s9426_s15 }
   0x5   : > { %p68_p2 = scmp.eq.s32.totalorder %s9442_s19, 0  ;;  %p99_p4 = scmp.eq.s32.totalorder %s7739_s21, 3 }
   0x6   : > { %s11269_s20 = smov (%p29_p0, %s27_s20), 0  ;;  %s60_s23 = sadd.s32 1, %s9430_s16 }
   0x7   : > { %p69_p3 = por %p68_p2, %p67_p1  ;;  %s57_s22 = ssub.s32 %s9438_s18, %s11269_s20 }
   0x8   : > { %p58_p5 = scmp.eq.s32.totalorder %s57_s22, 0  ;;  %p9504_p6 = por %p99_p4, %p67_p1 }
   0x9   : > { %p7743_p7 = scmp.ge.s32.totalorder %s9442_s19, 4 }
   0xa   : > { %s9509_s25 = scalar_select %p58_p5, %s9430_s16, %s60_s23  }
   0xb   : > { %187 = sbr.rel (%p7743_p7) target bundleno = 532 (0x214), region = 20 }
  0x10   : > { %190 = sbr.rel (!%p69_p3) target bundleno = 532 (0x214), region = 24  ;;  %s192_s26 = sand.u32 (%p69_p3), 1, %s9430_s16  }
  0x11   : > { %s7745_s27 = sshll.u32 (%p69_p3), %s9438_s18, 2  ;;  %s7744_s28 = sshll.u32 (%p69_p3), %s192_s26, 11 }
  0x12   : > { %s9517_s5 = scalar_lea.vmem (%p69_p3), %s11259_s1, %s7745_s27  ;;  %s9521_s6 = scalar_lea.vmem (%p69_p3), [#allocation2], %s7744_s28 }
  0x13   : > { %v213_v0 = vld [vmem:[%s9517_s5] sm:$0xf] (%p69_p3)  ;;  %v215_v1 = vld [vmem:[%s9517_s5 + $0x10] sm:$0xf] (%p69_p3) }
  0x14   : > { %214 = vst [vmem:[%s9521_s6] sm:$0xf] (%p69_p3), %v213_v0  ;;  %v217_v2 = vld [vmem:[%s9517_s5 + $0x20] sm:$0xf] (%p69_p3)  ;;  %v219_v3 = vld [vmem:[%s9517_s5 + $0x30] sm:$0xf] (%p69_p3) }
  0x15   : > { %216 = vst [vmem:[%s9521_s6 + $0x4] sm:$0xf] %v215_v1  ;;  %v221_v4 = vld [vmem:[%s9517_s5 + $0x40] sm:$0xf]  ;;  %v223_v5 = vld [vmem:[%s9517_s5 + $0x50] sm:$0xf] }
  0x16   : > { %218 = vst [vmem:[%s9521_s6 + $0x8] sm:$0xf] %v217_v2  ;;  %v225_v6 = vld [vmem:[%s9517_s5 + $0x60] sm:$0xf]  ;;  %v227_v7 = vld [vmem:[%s9517_s5 + $0x70] sm:$0xf] }
  0x17   : > { %220 = vst [vmem:[%s9521_s6 + $0xc] sm:$0xf] %v219_v3  ;;  %v229_v8 = vld [vmem:[%s9517_s5 + $0x80] sm:$0xf]  ;;  %v231_v9 = vld [vmem:[%s9517_s5 + $0x90] sm:$0xf] }
  0x18   : > { %222 = vst [vmem:[%s9521_s6 + $0x10] sm:$0xf] %v221_v4  ;;  %v233_v10 = vld [vmem:[%s9517_s5 + $0xa0] sm:$0xf]  ;;  %v235_v11 = vld [vmem:[%s9517_s5 + $0xb0] sm:$0xf] }
  0x19   : > { %224 = vst [vmem:[%s9521_s6 + $0x14] sm:$0xf] %v223_v5  ;;  %v237_v12 = vld [vmem:[%s9517_s5 + $0xc0] sm:$0xf]  ;;  %v239_v13 = vld [vmem:[%s9517_s5 + $0xd0] sm:$0xf] }
  0x1a   : > { %226 = vst [vmem:[%s9521_s6 + $0x18] sm:$0xf] %v225_v6  ;;  %v241_v14 = vld [vmem:[%s9517_s5 + $0xe0] sm:$0xf]  ;;  %v243_v15 = vld [vmem:[%s9517_s5 + $0xf0] sm:$0xf] }
  0x1b   : > { %228 = vst [vmem:[%s9521_s6 + $0x1c] sm:$0xf] %v227_v7  ;;  %v245_v16 = vld [vmem:[%s9517_s5 + $0x100] sm:$0xf]  ;;  %v247_v17 = vld [vmem:[%s9517_s5 + $0x110] sm:$0xf] }
  0x1c   : > { %230 = vst [vmem:[%s9521_s6 + $0x20] sm:$0xf] %v229_v8  ;;  %v249_v18 = vld [vmem:[%s9517_s5 + $0x120] sm:$0xf]  ;;  %v251_v19 = vld [vmem:[%s9517_s5 + $0x130] sm:$0xf] }
  0x1d   : > { %232 = vst [vmem:[%s9521_s6 + $0x24] sm:$0xf] %v231_v9  ;;  %v253_v20 = vld [vmem:[%s9517_s5 + $0x140] sm:$0xf]  ;;  %v255_v21 = vld [vmem:[%s9517_s5 + $0x150] sm:$0xf] }
  0x1e   : > { %234 = vst [vmem:[%s9521_s6 + $0x28] sm:$0xf] %v233_v10  ;;  %v257_v22 = vld [vmem:[%s9517_s5 + $0x160] sm:$0xf]  ;;  %v259_v23 = vld [vmem:[%s9517_s5 + $0x170] sm:$0xf] }
  0x1f   : > { %236 = vst [vmem:[%s9521_s6 + $0x2c] sm:$0xf] %v235_v11  ;;  %v261_v24 = vld [vmem:[%s9517_s5 + $0x180] sm:$0xf]  ;;  %v263_v25 = vld [vmem:[%s9517_s5 + $0x190] sm:$0xf] }
  0x20   : > { %238 = vst [vmem:[%s9521_s6 + $0x30] sm:$0xf] %v237_v12  ;;  %v265_v26 = vld [vmem:[%s9517_s5 + $0x1a0] sm:$0xf]  ;;  %v267_v27 = vld [vmem:[%s9517_s5 + $0x1b0] sm:$0xf] }
  0x21   : > { %240 = vst [vmem:[%s9521_s6 + $0x34] sm:$0xf] %v239_v13  ;;  %v269_v28 = vld [vmem:[%s9517_s5 + $0x1c0] sm:$0xf]  ;;  %v271_v29 = vld [vmem:[%s9517_s5 + $0x1d0] sm:$0xf] }
  0x22   : > { %242 = vst [vmem:[%s9521_s6 + $0x38] sm:$0xf] %v241_v14  ;;  %v273_v30 = vld [vmem:[%s9517_s5 + $0x1e0] sm:$0xf]  ;;  %v275_v31 = vld [vmem:[%s9517_s5 + $0x1f0] sm:$0xf] }
  0x23   : > { %244 = vst [vmem:[%s9521_s6 + $0x3c] sm:$0xf] %v243_v15  ;;  %v277_v32 = vld [vmem:[%s9517_s5 + $0x200] sm:$0xf]  ;;  %v279_v33 = vld [vmem:[%s9517_s5 + $0x210] sm:$0xf] }
  0x24   : > { %246 = vst [vmem:[%s9521_s6 + $0x40] sm:$0xf] %v245_v16  ;;  %v281_v34 = vld [vmem:[%s9517_s5 + $0x220] sm:$0xf]  ;;  %v283_v35 = vld [vmem:[%s9517_s5 + $0x230] sm:$0xf] }
  0x25   : > { %248 = vst [vmem:[%s9521_s6 + $0x44] sm:$0xf] %v247_v17  ;;  %v285_v36 = vld [vmem:[%s9517_s5 + $0x240] sm:$0xf]  ;;  %v287_v37 = vld [vmem:[%s9517_s5 + $0x250] sm:$0xf] }
  0x26   : > { %250 = vst [vmem:[%s9521_s6 + $0x48] sm:$0xf] %v249_v18  ;;  %v289_v38 = vld [vmem:[%s9517_s5 + $0x260] sm:$0xf]  ;;  %v291_v39 = vld [vmem:[%s9517_s5 + $0x270] sm:$0xf] }
  0x27   : > { %252 = vst [vmem:[%s9521_s6 + $0x4c] sm:$0xf] %v251_v19  ;;  %v293_v40 = vld [vmem:[%s9517_s5 + $0x280] sm:$0xf]  ;;  %v295_v41 = vld [vmem:[%s9517_s5 + $0x290] sm:$0xf] }
  0x28   : > { %254 = vst [vmem:[%s9521_s6 + $0x50] sm:$0xf] %v253_v20  ;;  %v297_v42 = vld [vmem:[%s9517_s5 + $0x2a0] sm:$0xf]  ;;  %v299_v43 = vld [vmem:[%s9517_s5 + $0x2b0] sm:$0xf] }
  0x29   : > { %256 = vst [vmem:[%s9521_s6 + $0x54] sm:$0xf] %v255_v21  ;;  %v301_v44 = vld [vmem:[%s9517_s5 + $0x2c0] sm:$0xf]  ;;  %v303_v45 = vld [vmem:[%s9517_s5 + $0x2d0] sm:$0xf] }
  0x2a   : > { %258 = vst [vmem:[%s9521_s6 + $0x58] sm:$0xf] %v257_v22  ;;  %v305_v46 = vld [vmem:[%s9517_s5 + $0x2e0] sm:$0xf]  ;;  %v307_v47 = vld [vmem:[%s9517_s5 + $0x2f0] sm:$0xf] }
  0x2b   : > { %260 = vst [vmem:[%s9521_s6 + $0x5c] sm:$0xf] %v259_v23  ;;  %v309_v48 = vld [vmem:[%s9517_s5 + $0x300] sm:$0xf]  ;;  %v311_v49 = vld [vmem:[%s9517_s5 + $0x310] sm:$0xf] }
  0x2c   : > { %262 = vst [vmem:[%s9521_s6 + $0x60] sm:$0xf] %v261_v24  ;;  %v313_v50 = vld [vmem:[%s9517_s5 + $0x320] sm:$0xf]  ;;  %v315_v51 = vld [vmem:[%s9517_s5 + $0x330] sm:$0xf] }
  0x2d   : > { %264 = vst [vmem:[%s9521_s6 + $0x64] sm:$0xf] %v263_v25  ;;  %v317_v52 = vld [vmem:[%s9517_s5 + $0x340] sm:$0xf]  ;;  %v319_v53 = vld [vmem:[%s9517_s5 + $0x350] sm:$0xf] }
  0x2e   : > { %266 = vst [vmem:[%s9521_s6 + $0x68] sm:$0xf] %v265_v26  ;;  %v321_v54 = vld [vmem:[%s9517_s5 + $0x360] sm:$0xf]  ;;  %v323_v55 = vld [vmem:[%s9517_s5 + $0x370] sm:$0xf] }
  0x2f   : > { %268 = vst [vmem:[%s9521_s6 + $0x6c] sm:$0xf] %v267_v27  ;;  %v325_v56 = vld [vmem:[%s9517_s5 + $0x380] sm:$0xf]  ;;  %v327_v57 = vld [vmem:[%s9517_s5 + $0x390] sm:$0xf] }
  0x30   : > { %270 = vst [vmem:[%s9521_s6 + $0x70] sm:$0xf] %v269_v28  ;;  %v329_v58 = vld [vmem:[%s9517_s5 + $0x3a0] sm:$0xf]  ;;  %v331_v59 = vld [vmem:[%s9517_s5 + $0x3b0] sm:$0xf] }
  0x31   : > { %272 = vst [vmem:[%s9521_s6 + $0x74] sm:$0xf] %v271_v29  ;;  %v333_v60 = vld [vmem:[%s9517_s5 + $0x3c0] sm:$0xf]  ;;  %v335_v61 = vld [vmem:[%s9517_s5 + $0x3d0] sm:$0xf] }
  0x32   : > { %274 = vst [vmem:[%s9521_s6 + $0x78] sm:$0xf] %v273_v30  ;;  %v337_v62 = vld [vmem:[%s9517_s5 + $0x3e0] sm:$0xf]  ;;  %v339_v63 = vld [vmem:[%s9517_s5 + $0x3f0] sm:$0xf] }
  0x33   : > { %276 = vst [vmem:[%s9521_s6 + $0x7c] sm:$0xf] %v275_v31  ;;  %v341_v0 = vld [vmem:[%s9517_s5 + $0x400] sm:$0xf]  ;;  %v343_v1 = vld [vmem:[%s9517_s5 + $0x410] sm:$0xf] }
  0x34   : > { %278 = vst [vmem:[%s9521_s6 + $0x80] sm:$0xf] %v277_v32  ;;  %v345_v2 = vld [vmem:[%s9517_s5 + $0x420] sm:$0xf]  ;;  %v347_v3 = vld [vmem:[%s9517_s5 + $0x430] sm:$0xf] }
  0x35   : > { %280 = vst [vmem:[%s9521_s6 + $0x84] sm:$0xf] %v279_v33  ;;  %v349_v4 = vld [vmem:[%s9517_s5 + $0x440] sm:$0xf]  ;;  %v351_v5 = vld [vmem:[%s9517_s5 + $0x450] sm:$0xf] }
  0x36   : > { %282 = vst [vmem:[%s9521_s6 + $0x88] sm:$0xf] %v281_v34  ;;  %v353_v6 = vld [vmem:[%s9517_s5 + $0x460] sm:$0xf]  ;;  %v355_v7 = vld [vmem:[%s9517_s5 + $0x470] sm:$0xf] }
  0x37   : > { %284 = vst [vmem:[%s9521_s6 + $0x8c] sm:$0xf] %v283_v35  ;;  %v357_v8 = vld [vmem:[%s9517_s5 + $0x480] sm:$0xf]  ;;  %v359_v9 = vld [vmem:[%s9517_s5 + $0x490] sm:$0xf] }
  0x38   : > { %286 = vst [vmem:[%s9521_s6 + $0x90] sm:$0xf] %v285_v36  ;;  %v361_v10 = vld [vmem:[%s9517_s5 + $0x4a0] sm:$0xf]  ;;  %v363_v11 = vld [vmem:[%s9517_s5 + $0x4b0] sm:$0xf] }
  0x39   : > { %288 = vst [vmem:[%s9521_s6 + $0x94] sm:$0xf] %v287_v37  ;;  %v365_v12 = vld [vmem:[%s9517_s5 + $0x4c0] sm:$0xf]  ;;  %v367_v13 = vld [vmem:[%s9517_s5 + $0x4d0] sm:$0xf] }
  0x3a   : > { %290 = vst [vmem:[%s9521_s6 + $0x98] sm:$0xf] %v289_v38  ;;  %v369_v14 = vld [vmem:[%s9517_s5 + $0x4e0] sm:$0xf]  ;;  %v371_v15 = vld [vmem:[%s9517_s5 + $0x4f0] sm:$0xf] }
  0x3b   : > { %292 = vst [vmem:[%s9521_s6 + $0x9c] sm:$0xf] %v291_v39  ;;  %v373_v16 = vld [vmem:[%s9517_s5 + $0x500] sm:$0xf]  ;;  %v375_v17 = vld [vmem:[%s9517_s5 + $0x510] sm:$0xf] }
  0x3c   : > { %294 = vst [vmem:[%s9521_s6 + $0xa0] sm:$0xf] %v293_v40  ;;  %v377_v18 = vld [vmem:[%s9517_s5 + $0x520] sm:$0xf]  ;;  %v379_v19 = vld [vmem:[%s9517_s5 + $0x530] sm:$0xf] }
  0x3d   : > { %296 = vst [vmem:[%s9521_s6 + $0xa4] sm:$0xf] %v295_v41  ;;  %v381_v20 = vld [vmem:[%s9517_s5 + $0x540] sm:$0xf]  ;;  %v383_v21 = vld [vmem:[%s9517_s5 + $0x550] sm:$0xf] }
  0x3e   : > { %298 = vst [vmem:[%s9521_s6 + $0xa8] sm:$0xf] %v297_v42  ;;  %v385_v22 = vld [vmem:[%s9517_s5 + $0x560] sm:$0xf]  ;;  %v387_v23 = vld [vmem:[%s9517_s5 + $0x570] sm:$0xf] }
  0x3f   : > { %300 = vst [vmem:[%s9521_s6 + $0xac] sm:$0xf] %v299_v43  ;;  %v389_v24 = vld [vmem:[%s9517_s5 + $0x580] sm:$0xf]  ;;  %v391_v25 = vld [vmem:[%s9517_s5 + $0x590] sm:$0xf] }
  0x40   : > { %302 = vst [vmem:[%s9521_s6 + $0xb0] sm:$0xf] %v301_v44  ;;  %v393_v26 = vld [vmem:[%s9517_s5 + $0x5a0] sm:$0xf]  ;;  %v395_v27 = vld [vmem:[%s9517_s5 + $0x5b0] sm:$0xf] }
  0x41   : > { %304 = vst [vmem:[%s9521_s6 + $0xb4] sm:$0xf] %v303_v45  ;;  %v397_v28 = vld [vmem:[%s9517_s5 + $0x5c0] sm:$0xf]  ;;  %v399_v29 = vld [vmem:[%s9517_s5 + $0x5d0] sm:$0xf] }
  0x42   : > { %306 = vst [vmem:[%s9521_s6 + $0xb8] sm:$0xf] %v305_v46  ;;  %v401_v30 = vld [vmem:[%s9517_s5 + $0x5e0] sm:$0xf]  ;;  %v403_v31 = vld [vmem:[%s9517_s5 + $0x5f0] sm:$0xf] }
  0x43   : > { %308 = vst [vmem:[%s9521_s6 + $0xbc] sm:$0xf] %v307_v47  ;;  %v405_v32 = vld [vmem:[%s9517_s5 + $0x600] sm:$0xf]  ;;  %v407_v33 = vld [vmem:[%s9517_s5 + $0x610] sm:$0xf] }
  0x44   : > { %310 = vst [vmem:[%s9521_s6 + $0xc0] sm:$0xf] %v309_v48  ;;  %v409_v34 = vld [vmem:[%s9517_s5 + $0x620] sm:$0xf]  ;;  %v411_v35 = vld [vmem:[%s9517_s5 + $0x630] sm:$0xf] }
  0x45   : > { %312 = vst [vmem:[%s9521_s6 + $0xc4] sm:$0xf] %v311_v49  ;;  %v413_v36 = vld [vmem:[%s9517_s5 + $0x640] sm:$0xf]  ;;  %v415_v37 = vld [vmem:[%s9517_s5 + $0x650] sm:$0xf] }
  0x46   : > { %314 = vst [vmem:[%s9521_s6 + $0xc8] sm:$0xf] %v313_v50  ;;  %v417_v38 = vld [vmem:[%s9517_s5 + $0x660] sm:$0xf]  ;;  %v419_v39 = vld [vmem:[%s9517_s5 + $0x670] sm:$0xf] }
  0x47   : > { %316 = vst [vmem:[%s9521_s6 + $0xcc] sm:$0xf] %v315_v51  ;;  %v421_v40 = vld [vmem:[%s9517_s5 + $0x680] sm:$0xf]  ;;  %v423_v41 = vld [vmem:[%s9517_s5 + $0x690] sm:$0xf] }
  0x48   : > { %318 = vst [vmem:[%s9521_s6 + $0xd0] sm:$0xf] %v317_v52  ;;  %v425_v42 = vld [vmem:[%s9517_s5 + $0x6a0] sm:$0xf]  ;;  %v427_v43 = vld [vmem:[%s9517_s5 + $0x6b0] sm:$0xf] }
  0x49   : > { %320 = vst [vmem:[%s9521_s6 + $0xd4] sm:$0xf] %v319_v53  ;;  %v429_v44 = vld [vmem:[%s9517_s5 + $0x6c0] sm:$0xf]  ;;  %v431_v45 = vld [vmem:[%s9517_s5 + $0x6d0] sm:$0xf] }
  0x4a   : > { %322 = vst [vmem:[%s9521_s6 + $0xd8] sm:$0xf] %v321_v54  ;;  %v433_v46 = vld [vmem:[%s9517_s5 + $0x6e0] sm:$0xf]  ;;  %v435_v47 = vld [vmem:[%s9517_s5 + $0x6f0] sm:$0xf] }
  0x4b   : > { %324 = vst [vmem:[%s9521_s6 + $0xdc] sm:$0xf] %v323_v55  ;;  %v437_v48 = vld [vmem:[%s9517_s5 + $0x700] sm:$0xf]  ;;  %v439_v49 = vld [vmem:[%s9517_s5 + $0x710] sm:$0xf] }
  0x4c   : > { %326 = vst [vmem:[%s9521_s6 + $0xe0] sm:$0xf] %v325_v56  ;;  %v441_v50 = vld [vmem:[%s9517_s5 + $0x720] sm:$0xf]  ;;  %v443_v51 = vld [vmem:[%s9517_s5 + $0x730] sm:$0xf] }
  0x4d   : > { %328 = vst [vmem:[%s9521_s6 + $0xe4] sm:$0xf] %v327_v57  ;;  %v445_v52 = vld [vmem:[%s9517_s5 + $0x740] sm:$0xf]  ;;  %v447_v53 = vld [vmem:[%s9517_s5 + $0x750] sm:$0xf] }
  0x4e   : > { %330 = vst [vmem:[%s9521_s6 + $0xe8] sm:$0xf] %v329_v58  ;;  %v449_v54 = vld [vmem:[%s9517_s5 + $0x760] sm:$0xf]  ;;  %v451_v55 = vld [vmem:[%s9517_s5 + $0x770] sm:$0xf] }
  0x4f   : > { %332 = vst [vmem:[%s9521_s6 + $0xec] sm:$0xf] %v331_v59  ;;  %v453_v56 = vld [vmem:[%s9517_s5 + $0x780] sm:$0xf]  ;;  %v455_v57 = vld [vmem:[%s9517_s5 + $0x790] sm:$0xf] }
  0x50   : > { %334 = vst [vmem:[%s9521_s6 + $0xf0] sm:$0xf] %v333_v60  ;;  %v457_v58 = vld [vmem:[%s9517_s5 + $0x7a0] sm:$0xf]  ;;  %v459_v59 = vld [vmem:[%s9517_s5 + $0x7b0] sm:$0xf] }
  0x51   : > { %336 = vst [vmem:[%s9521_s6 + $0xf4] sm:$0xf] %v335_v61  ;;  %v461_v60 = vld [vmem:[%s9517_s5 + $0x7c0] sm:$0xf]  ;;  %v463_v61 = vld [vmem:[%s9517_s5 + $0x7d0] sm:$0xf] }
  0x52   : > { %338 = vst [vmem:[%s9521_s6 + $0xf8] sm:$0xf] %v337_v62  ;;  %v465_v62 = vld [vmem:[%s9517_s5 + $0x7e0] sm:$0xf] }
  0x53   : > { %340 = vst [vmem:[%s9521_s6 + $0xfc] sm:$0xf] %v339_v63  ;;  %v467_v63 = vld [vmem:[%s9517_s5 + $0x7f0] sm:$0xf] }
  0x54   : > { %342 = vst [vmem:[%s9521_s6 + $0x100] sm:$0xf] %v341_v0  ;;  %v469_v0 = vld [vmem:[%s9517_s5 + $0x800] sm:$0xf] }
  0x55   : > { %344 = vst [vmem:[%s9521_s6 + $0x104] sm:$0xf] %v343_v1  ;;  %v471_v1 = vld [vmem:[%s9517_s5 + $0x810] sm:$0xf] }
  0x56   : > { %346 = vst [vmem:[%s9521_s6 + $0x108] sm:$0xf] %v345_v2  ;;  %v473_v2 = vld [vmem:[%s9517_s5 + $0x820] sm:$0xf] }
  0x57   : > { %348 = vst [vmem:[%s9521_s6 + $0x10c] sm:$0xf] %v347_v3  ;;  %v475_v3 = vld [vmem:[%s9517_s5 + $0x830] sm:$0xf] }
  0x58   : > { %350 = vst [vmem:[%s9521_s6 + $0x110] sm:$0xf] %v349_v4  ;;  %v477_v4 = vld [vmem:[%s9517_s5 + $0x840] sm:$0xf] }
  0x59   : > { %352 = vst [vmem:[%s9521_s6 + $0x114] sm:$0xf] %v351_v5  ;;  %v479_v5 = vld [vmem:[%s9517_s5 + $0x850] sm:$0xf] }
  0x5a   : > { %354 = vst [vmem:[%s9521_s6 + $0x118] sm:$0xf] %v353_v6  ;;  %v481_v6 = vld [vmem:[%s9517_s5 + $0x860] sm:$0xf] }
  0x5b   : > { %356 = vst [vmem:[%s9521_s6 + $0x11c] sm:$0xf] %v355_v7  ;;  %v483_v7 = vld [vmem:[%s9517_s5 + $0x870] sm:$0xf] }
  0x5c   : > { %358 = vst [vmem:[%s9521_s6 + $0x120] sm:$0xf] %v357_v8  ;;  %v485_v8 = vld [vmem:[%s9517_s5 + $0x880] sm:$0xf] }
  0x5d   : > { %360 = vst [vmem:[%s9521_s6 + $0x124] sm:$0xf] %v359_v9  ;;  %v487_v9 = vld [vmem:[%s9517_s5 + $0x890] sm:$0xf] }
  0x5e   : > { %362 = vst [vmem:[%s9521_s6 + $0x128] sm:$0xf] %v361_v10  ;;  %v489_v10 = vld [vmem:[%s9517_s5 + $0x8a0] sm:$0xf] }
  0x5f   : > { %364 = vst [vmem:[%s9521_s6 + $0x12c] sm:$0xf] %v363_v11  ;;  %v491_v11 = vld [vmem:[%s9517_s5 + $0x8b0] sm:$0xf] }
  0x60   : > { %366 = vst [vmem:[%s9521_s6 + $0x130] sm:$0xf] %v365_v12  ;;  %v493_v12 = vld [vmem:[%s9517_s5 + $0x8c0] sm:$0xf] }
  0x61   : > { %368 = vst [vmem:[%s9521_s6 + $0x134] sm:$0xf] %v367_v13  ;;  %v495_v13 = vld [vmem:[%s9517_s5 + $0x8d0] sm:$0xf] }
  0x62   : > { %370 = vst [vmem:[%s9521_s6 + $0x138] sm:$0xf] %v369_v14  ;;  %v497_v14 = vld [vmem:[%s9517_s5 + $0x8e0] sm:$0xf] }
  0x63   : > { %372 = vst [vmem:[%s9521_s6 + $0x13c] sm:$0xf] %v371_v15  ;;  %v499_v15 = vld [vmem:[%s9517_s5 + $0x8f0] sm:$0xf] }
  0x64   : > { %374 = vst [vmem:[%s9521_s6 + $0x140] sm:$0xf] %v373_v16  ;;  %v501_v16 = vld [vmem:[%s9517_s5 + $0x900] sm:$0xf] }
  0x65   : > { %376 = vst [vmem:[%s9521_s6 + $0x144] sm:$0xf] %v375_v17  ;;  %v503_v17 = vld [vmem:[%s9517_s5 + $0x910] sm:$0xf] }
  0x66   : > { %378 = vst [vmem:[%s9521_s6 + $0x148] sm:$0xf] %v377_v18  ;;  %v505_v18 = vld [vmem:[%s9517_s5 + $0x920] sm:$0xf] }
  0x67   : > { %380 = vst [vmem:[%s9521_s6 + $0x14c] sm:$0xf] %v379_v19  ;;  %v507_v19 = vld [vmem:[%s9517_s5 + $0x930] sm:$0xf] }
  0x68   : > { %382 = vst [vmem:[%s9521_s6 + $0x150] sm:$0xf] %v381_v20  ;;  %v509_v20 = vld [vmem:[%s9517_s5 + $0x940] sm:$0xf] }
  0x69   : > { %384 = vst [vmem:[%s9521_s6 + $0x154] sm:$0xf] %v383_v21  ;;  %v511_v21 = vld [vmem:[%s9517_s5 + $0x950] sm:$0xf] }
  0x6a   : > { %386 = vst [vmem:[%s9521_s6 + $0x158] sm:$0xf] %v385_v22  ;;  %v513_v22 = vld [vmem:[%s9517_s5 + $0x960] sm:$0xf] }
  0x6b   : > { %388 = vst [vmem:[%s9521_s6 + $0x15c] sm:$0xf] %v387_v23  ;;  %v515_v23 = vld [vmem:[%s9517_s5 + $0x970] sm:$0xf] }
  0x6c   : > { %390 = vst [vmem:[%s9521_s6 + $0x160] sm:$0xf] %v389_v24  ;;  %v517_v24 = vld [vmem:[%s9517_s5 + $0x980] sm:$0xf] }
  0x6d   : > { %392 = vst [vmem:[%s9521_s6 + $0x164] sm:$0xf] %v391_v25  ;;  %v519_v25 = vld [vmem:[%s9517_s5 + $0x990] sm:$0xf] }
  0x6e   : > { %394 = vst [vmem:[%s9521_s6 + $0x168] sm:$0xf] %v393_v26  ;;  %v521_v26 = vld [vmem:[%s9517_s5 + $0x9a0] sm:$0xf] }
  0x6f   : > { %396 = vst [vmem:[%s9521_s6 + $0x16c] sm:$0xf] %v395_v27  ;;  %v523_v27 = vld [vmem:[%s9517_s5 + $0x9b0] sm:$0xf] }
  0x70   : > { %398 = vst [vmem:[%s9521_s6 + $0x170] sm:$0xf] %v397_v28  ;;  %v525_v28 = vld [vmem:[%s9517_s5 + $0x9c0] sm:$0xf] }
  0x71   : > { %400 = vst [vmem:[%s9521_s6 + $0x174] sm:$0xf] %v399_v29  ;;  %v527_v29 = vld [vmem:[%s9517_s5 + $0x9d0] sm:$0xf] }
  0x72   : > { %402 = vst [vmem:[%s9521_s6 + $0x178] sm:$0xf] %v401_v30  ;;  %v529_v30 = vld [vmem:[%s9517_s5 + $0x9e0] sm:$0xf] }
  0x73   : > { %404 = vst [vmem:[%s9521_s6 + $0x17c] sm:$0xf] %v403_v31  ;;  %v531_v31 = vld [vmem:[%s9517_s5 + $0x9f0] sm:$0xf] }
  0x74   : > { %406 = vst [vmem:[%s9521_s6 + $0x180] sm:$0xf] %v405_v32  ;;  %v533_v32 = vld [vmem:[%s9517_s5 + $0xa00] sm:$0xf] }
  0x75   : > { %408 = vst [vmem:[%s9521_s6 + $0x184] sm:$0xf] %v407_v33  ;;  %v535_v33 = vld [vmem:[%s9517_s5 + $0xa10] sm:$0xf] }
  0x76   : > { %410 = vst [vmem:[%s9521_s6 + $0x188] sm:$0xf] %v409_v34  ;;  %v537_v34 = vld [vmem:[%s9517_s5 + $0xa20] sm:$0xf] }
  0x77   : > { %412 = vst [vmem:[%s9521_s6 + $0x18c] sm:$0xf] %v411_v35  ;;  %v539_v35 = vld [vmem:[%s9517_s5 + $0xa30] sm:$0xf] }
  0x78   : > { %414 = vst [vmem:[%s9521_s6 + $0x190] sm:$0xf] %v413_v36  ;;  %v541_v36 = vld [vmem:[%s9517_s5 + $0xa40] sm:$0xf] }
  0x79   : > { %416 = vst [vmem:[%s9521_s6 + $0x194] sm:$0xf] %v415_v37  ;;  %v543_v37 = vld [vmem:[%s9517_s5 + $0xa50] sm:$0xf] }
  0x7a   : > { %418 = vst [vmem:[%s9521_s6 + $0x198] sm:$0xf] %v417_v38  ;;  %v545_v38 = vld [vmem:[%s9517_s5 + $0xa60] sm:$0xf] }
  0x7b   : > { %420 = vst [vmem:[%s9521_s6 + $0x19c] sm:$0xf] %v419_v39  ;;  %v547_v39 = vld [vmem:[%s9517_s5 + $0xa70] sm:$0xf] }
  0x7c   : > { %422 = vst [vmem:[%s9521_s6 + $0x1a0] sm:$0xf] %v421_v40  ;;  %v549_v40 = vld [vmem:[%s9517_s5 + $0xa80] sm:$0xf] }
  0x7d   : > { %424 = vst [vmem:[%s9521_s6 + $0x1a4] sm:$0xf] %v423_v41  ;;  %v551_v41 = vld [vmem:[%s9517_s5 + $0xa90] sm:$0xf] }
  0x7e   : > { %426 = vst [vmem:[%s9521_s6 + $0x1a8] sm:$0xf] %v425_v42  ;;  %v553_v42 = vld [vmem:[%s9517_s5 + $0xaa0] sm:$0xf] }
  0x7f   : > { %428 = vst [vmem:[%s9521_s6 + $0x1ac] sm:$0xf] %v427_v43  ;;  %v555_v43 = vld [vmem:[%s9517_s5 + $0xab0] sm:$0xf] }
  0x80   : > { %430 = vst [vmem:[%s9521_s6 + $0x1b0] sm:$0xf] %v429_v44  ;;  %v557_v44 = vld [vmem:[%s9517_s5 + $0xac0] sm:$0xf] }
  0x81   : > { %432 = vst [vmem:[%s9521_s6 + $0x1b4] sm:$0xf] %v431_v45  ;;  %v559_v45 = vld [vmem:[%s9517_s5 + $0xad0] sm:$0xf] }
  0x82   : > { %434 = vst [vmem:[%s9521_s6 + $0x1b8] sm:$0xf] %v433_v46  ;;  %v561_v46 = vld [vmem:[%s9517_s5 + $0xae0] sm:$0xf] }
  0x83   : > { %436 = vst [vmem:[%s9521_s6 + $0x1bc] sm:$0xf] %v435_v47  ;;  %v563_v47 = vld [vmem:[%s9517_s5 + $0xaf0] sm:$0xf] }
  0x84   : > { %438 = vst [vmem:[%s9521_s6 + $0x1c0] sm:$0xf] %v437_v48  ;;  %v565_v48 = vld [vmem:[%s9517_s5 + $0xb00] sm:$0xf] }
  0x85   : > { %440 = vst [vmem:[%s9521_s6 + $0x1c4] sm:$0xf] %v439_v49  ;;  %v567_v49 = vld [vmem:[%s9517_s5 + $0xb10] sm:$0xf] }
  0x86   : > { %442 = vst [vmem:[%s9521_s6 + $0x1c8] sm:$0xf] %v441_v50  ;;  %v569_v50 = vld [vmem:[%s9517_s5 + $0xb20] sm:$0xf] }
  0x87   : > { %444 = vst [vmem:[%s9521_s6 + $0x1cc] sm:$0xf] %v443_v51  ;;  %v571_v51 = vld [vmem:[%s9517_s5 + $0xb30] sm:$0xf] }
  0x88   : > { %446 = vst [vmem:[%s9521_s6 + $0x1d0] sm:$0xf] %v445_v52  ;;  %v573_v52 = vld [vmem:[%s9517_s5 + $0xb40] sm:$0xf] }
  0x89   : > { %448 = vst [vmem:[%s9521_s6 + $0x1d4] sm:$0xf] %v447_v53  ;;  %v575_v53 = vld [vmem:[%s9517_s5 + $0xb50] sm:$0xf] }
  0x8a   : > { %450 = vst [vmem:[%s9521_s6 + $0x1d8] sm:$0xf] %v449_v54  ;;  %v577_v54 = vld [vmem:[%s9517_s5 + $0xb60] sm:$0xf] }
  0x8b   : > { %452 = vst [vmem:[%s9521_s6 + $0x1dc] sm:$0xf] %v451_v55  ;;  %v579_v55 = vld [vmem:[%s9517_s5 + $0xb70] sm:$0xf] }
  0x8c   : > { %454 = vst [vmem:[%s9521_s6 + $0x1e0] sm:$0xf] %v453_v56  ;;  %v581_v56 = vld [vmem:[%s9517_s5 + $0xb80] sm:$0xf] }
  0x8d   : > { %456 = vst [vmem:[%s9521_s6 + $0x1e4] sm:$0xf] %v455_v57  ;;  %v583_v57 = vld [vmem:[%s9517_s5 + $0xb90] sm:$0xf] }
  0x8e   : > { %458 = vst [vmem:[%s9521_s6 + $0x1e8] sm:$0xf] %v457_v58  ;;  %v585_v58 = vld [vmem:[%s9517_s5 + $0xba0] sm:$0xf] }
  0x8f   : > { %460 = vst [vmem:[%s9521_s6 + $0x1ec] sm:$0xf] %v459_v59  ;;  %v587_v59 = vld [vmem:[%s9517_s5 + $0xbb0] sm:$0xf] }
  0x90   : > { %462 = vst [vmem:[%s9521_s6 + $0x1f0] sm:$0xf] %v461_v60  ;;  %v589_v60 = vld [vmem:[%s9517_s5 + $0xbc0] sm:$0xf] }
  0x91   : > { %464 = vst [vmem:[%s9521_s6 + $0x1f4] sm:$0xf] %v463_v61  ;;  %v591_v61 = vld [vmem:[%s9517_s5 + $0xbd0] sm:$0xf] }
  0x92   : > { %466 = vst [vmem:[%s9521_s6 + $0x1f8] sm:$0xf] %v465_v62  ;;  %v593_v62 = vld [vmem:[%s9517_s5 + $0xbe0] sm:$0xf] }
  0x93   : > { %468 = vst [vmem:[%s9521_s6 + $0x1fc] sm:$0xf] %v467_v63  ;;  %v595_v63 = vld [vmem:[%s9517_s5 + $0xbf0] sm:$0xf] }
  0x94   : > { %470 = vst [vmem:[%s9521_s6 + $0x200] sm:$0xf] %v469_v0  ;;  %v597_v0 = vld [vmem:[%s9517_s5 + $0xc00] sm:$0xf] }
  0x95   : > { %472 = vst [vmem:[%s9521_s6 + $0x204] sm:$0xf] %v471_v1  ;;  %v599_v1 = vld [vmem:[%s9517_s5 + $0xc10] sm:$0xf] }
  0x96   : > { %474 = vst [vmem:[%s9521_s6 + $0x208] sm:$0xf] %v473_v2  ;;  %v601_v2 = vld [vmem:[%s9517_s5 + $0xc20] sm:$0xf] }
  0x97   : > { %476 = vst [vmem:[%s9521_s6 + $0x20c] sm:$0xf] %v475_v3  ;;  %v603_v3 = vld [vmem:[%s9517_s5 + $0xc30] sm:$0xf] }
  0x98   : > { %478 = vst [vmem:[%s9521_s6 + $0x210] sm:$0xf] %v477_v4  ;;  %v605_v4 = vld [vmem:[%s9517_s5 + $0xc40] sm:$0xf] }
  0x99   : > { %480 = vst [vmem:[%s9521_s6 + $0x214] sm:$0xf] %v479_v5  ;;  %v607_v5 = vld [vmem:[%s9517_s5 + $0xc50] sm:$0xf] }
  0x9a   : > { %482 = vst [vmem:[%s9521_s6 + $0x218] sm:$0xf] %v481_v6  ;;  %v609_v6 = vld [vmem:[%s9517_s5 + $0xc60] sm:$0xf] }
  0x9b   : > { %484 = vst [vmem:[%s9521_s6 + $0x21c] sm:$0xf] %v483_v7  ;;  %v611_v7 = vld [vmem:[%s9517_s5 + $0xc70] sm:$0xf] }
  0x9c   : > { %486 = vst [vmem:[%s9521_s6 + $0x220] sm:$0xf] %v485_v8  ;;  %v613_v8 = vld [vmem:[%s9517_s5 + $0xc80] sm:$0xf] }
  0x9d   : > { %488 = vst [vmem:[%s9521_s6 + $0x224] sm:$0xf] %v487_v9  ;;  %v615_v9 = vld [vmem:[%s9517_s5 + $0xc90] sm:$0xf] }
  0x9e   : > { %490 = vst [vmem:[%s9521_s6 + $0x228] sm:$0xf] %v489_v10  ;;  %v617_v10 = vld [vmem:[%s9517_s5 + $0xca0] sm:$0xf] }
  0x9f   : > { %492 = vst [vmem:[%s9521_s6 + $0x22c] sm:$0xf] %v491_v11  ;;  %v619_v11 = vld [vmem:[%s9517_s5 + $0xcb0] sm:$0xf] }
  0xa0   : > { %494 = vst [vmem:[%s9521_s6 + $0x230] sm:$0xf] %v493_v12  ;;  %v621_v12 = vld [vmem:[%s9517_s5 + $0xcc0] sm:$0xf] }
  0xa1   : > { %496 = vst [vmem:[%s9521_s6 + $0x234] sm:$0xf] %v495_v13  ;;  %v623_v13 = vld [vmem:[%s9517_s5 + $0xcd0] sm:$0xf] }
  0xa2   : > { %498 = vst [vmem:[%s9521_s6 + $0x238] sm:$0xf] %v497_v14  ;;  %v625_v14 = vld [vmem:[%s9517_s5 + $0xce0] sm:$0xf] }
  0xa3   : > { %500 = vst [vmem:[%s9521_s6 + $0x23c] sm:$0xf] %v499_v15  ;;  %v627_v15 = vld [vmem:[%s9517_s5 + $0xcf0] sm:$0xf] }
  0xa4   : > { %502 = vst [vmem:[%s9521_s6 + $0x240] sm:$0xf] %v501_v16  ;;  %v629_v16 = vld [vmem:[%s9517_s5 + $0xd00] sm:$0xf] }
  0xa5   : > { %504 = vst [vmem:[%s9521_s6 + $0x244] sm:$0xf] %v503_v17  ;;  %v631_v17 = vld [vmem:[%s9517_s5 + $0xd10] sm:$0xf] }
  0xa6   : > { %506 = vst [vmem:[%s9521_s6 + $0x248] sm:$0xf] %v505_v18  ;;  %v633_v18 = vld [vmem:[%s9517_s5 + $0xd20] sm:$0xf] }
  0xa7   : > { %508 = vst [vmem:[%s9521_s6 + $0x24c] sm:$0xf] %v507_v19  ;;  %v635_v19 = vld [vmem:[%s9517_s5 + $0xd30] sm:$0xf] }
  0xa8   : > { %510 = vst [vmem:[%s9521_s6 + $0x250] sm:$0xf] %v509_v20  ;;  %v637_v20 = vld [vmem:[%s9517_s5 + $0xd40] sm:$0xf] }
  0xa9   : > { %512 = vst [vmem:[%s9521_s6 + $0x254] sm:$0xf] %v511_v21  ;;  %v639_v21 = vld [vmem:[%s9517_s5 + $0xd50] sm:$0xf] }
  0xaa   : > { %514 = vst [vmem:[%s9521_s6 + $0x258] sm:$0xf] %v513_v22  ;;  %v641_v22 = vld [vmem:[%s9517_s5 + $0xd60] sm:$0xf] }
  0xab   : > { %516 = vst [vmem:[%s9521_s6 + $0x25c] sm:$0xf] %v515_v23  ;;  %v643_v23 = vld [vmem:[%s9517_s5 + $0xd70] sm:$0xf] }
  0xac   : > { %518 = vst [vmem:[%s9521_s6 + $0x260] sm:$0xf] %v517_v24  ;;  %v645_v24 = vld [vmem:[%s9517_s5 + $0xd80] sm:$0xf] }
  0xad   : > { %520 = vst [vmem:[%s9521_s6 + $0x264] sm:$0xf] %v519_v25  ;;  %v647_v25 = vld [vmem:[%s9517_s5 + $0xd90] sm:$0xf] }
  0xae   : > { %522 = vst [vmem:[%s9521_s6 + $0x268] sm:$0xf] %v521_v26  ;;  %v649_v26 = vld [vmem:[%s9517_s5 + $0xda0] sm:$0xf] }
  0xaf   : > { %524 = vst [vmem:[%s9521_s6 + $0x26c] sm:$0xf] %v523_v27  ;;  %v651_v27 = vld [vmem:[%s9517_s5 + $0xdb0] sm:$0xf] }
  0xb0   : > { %526 = vst [vmem:[%s9521_s6 + $0x270] sm:$0xf] %v525_v28  ;;  %v653_v28 = vld [vmem:[%s9517_s5 + $0xdc0] sm:$0xf] }
  0xb1   : > { %528 = vst [vmem:[%s9521_s6 + $0x274] sm:$0xf] %v527_v29  ;;  %v655_v29 = vld [vmem:[%s9517_s5 + $0xdd0] sm:$0xf] }
  0xb2   : > { %530 = vst [vmem:[%s9521_s6 + $0x278] sm:$0xf] %v529_v30  ;;  %v657_v30 = vld [vmem:[%s9517_s5 + $0xde0] sm:$0xf] }
  0xb3   : > { %532 = vst [vmem:[%s9521_s6 + $0x27c] sm:$0xf] %v531_v31  ;;  %v659_v31 = vld [vmem:[%s9517_s5 + $0xdf0] sm:$0xf] }
  0xb4   : > { %534 = vst [vmem:[%s9521_s6 + $0x280] sm:$0xf] %v533_v32  ;;  %v661_v32 = vld [vmem:[%s9517_s5 + $0xe00] sm:$0xf] }
  0xb5   : > { %536 = vst [vmem:[%s9521_s6 + $0x284] sm:$0xf] %v535_v33  ;;  %v663_v33 = vld [vmem:[%s9517_s5 + $0xe10] sm:$0xf] }
  0xb6   : > { %538 = vst [vmem:[%s9521_s6 + $0x288] sm:$0xf] %v537_v34  ;;  %v665_v34 = vld [vmem:[%s9517_s5 + $0xe20] sm:$0xf] }
  0xb7   : > { %540 = vst [vmem:[%s9521_s6 + $0x28c] sm:$0xf] %v539_v35  ;;  %v667_v35 = vld [vmem:[%s9517_s5 + $0xe30] sm:$0xf] }
  0xb8   : > { %542 = vst [vmem:[%s9521_s6 + $0x290] sm:$0xf] %v541_v36  ;;  %v669_v36 = vld [vmem:[%s9517_s5 + $0xe40] sm:$0xf] }
  0xb9   : > { %544 = vst [vmem:[%s9521_s6 + $0x294] sm:$0xf] %v543_v37  ;;  %v671_v37 = vld [vmem:[%s9517_s5 + $0xe50] sm:$0xf] }
  0xba   : > { %546 = vst [vmem:[%s9521_s6 + $0x298] sm:$0xf] %v545_v38  ;;  %v673_v38 = vld [vmem:[%s9517_s5 + $0xe60] sm:$0xf] }
  0xbb   : > { %548 = vst [vmem:[%s9521_s6 + $0x29c] sm:$0xf] %v547_v39  ;;  %v675_v39 = vld [vmem:[%s9517_s5 + $0xe70] sm:$0xf] }
  0xbc   : > { %550 = vst [vmem:[%s9521_s6 + $0x2a0] sm:$0xf] %v549_v40  ;;  %v677_v40 = vld [vmem:[%s9517_s5 + $0xe80] sm:$0xf] }
  0xbd   : > { %552 = vst [vmem:[%s9521_s6 + $0x2a4] sm:$0xf] %v551_v41  ;;  %v679_v41 = vld [vmem:[%s9517_s5 + $0xe90] sm:$0xf] }
  0xbe   : > { %554 = vst [vmem:[%s9521_s6 + $0x2a8] sm:$0xf] %v553_v42  ;;  %v681_v42 = vld [vmem:[%s9517_s5 + $0xea0] sm:$0xf] }
  0xbf   : > { %556 = vst [vmem:[%s9521_s6 + $0x2ac] sm:$0xf] %v555_v43  ;;  %v683_v43 = vld [vmem:[%s9517_s5 + $0xeb0] sm:$0xf] }
  0xc0   : > { %558 = vst [vmem:[%s9521_s6 + $0x2b0] sm:$0xf] %v557_v44  ;;  %v685_v44 = vld [vmem:[%s9517_s5 + $0xec0] sm:$0xf] }
  0xc1   : > { %560 = vst [vmem:[%s9521_s6 + $0x2b4] sm:$0xf] %v559_v45  ;;  %v687_v45 = vld [vmem:[%s9517_s5 + $0xed0] sm:$0xf] }
  0xc2   : > { %562 = vst [vmem:[%s9521_s6 + $0x2b8] sm:$0xf] %v561_v46  ;;  %v689_v46 = vld [vmem:[%s9517_s5 + $0xee0] sm:$0xf] }
  0xc3   : > { %564 = vst [vmem:[%s9521_s6 + $0x2bc] sm:$0xf] %v563_v47  ;;  %v691_v47 = vld [vmem:[%s9517_s5 + $0xef0] sm:$0xf] }
  0xc4   : > { %566 = vst [vmem:[%s9521_s6 + $0x2c0] sm:$0xf] %v565_v48  ;;  %v693_v48 = vld [vmem:[%s9517_s5 + $0xf00] sm:$0xf] }
  0xc5   : > { %568 = vst [vmem:[%s9521_s6 + $0x2c4] sm:$0xf] %v567_v49  ;;  %v695_v49 = vld [vmem:[%s9517_s5 + $0xf10] sm:$0xf] }
  0xc6   : > { %570 = vst [vmem:[%s9521_s6 + $0x2c8] sm:$0xf] %v569_v50  ;;  %v697_v50 = vld [vmem:[%s9517_s5 + $0xf20] sm:$0xf] }
  0xc7   : > { %572 = vst [vmem:[%s9521_s6 + $0x2cc] sm:$0xf] %v571_v51  ;;  %v699_v51 = vld [vmem:[%s9517_s5 + $0xf30] sm:$0xf] }
  0xc8   : > { %574 = vst [vmem:[%s9521_s6 + $0x2d0] sm:$0xf] %v573_v52  ;;  %v701_v52 = vld [vmem:[%s9517_s5 + $0xf40] sm:$0xf] }
  0xc9   : > { %576 = vst [vmem:[%s9521_s6 + $0x2d4] sm:$0xf] %v575_v53  ;;  %v703_v53 = vld [vmem:[%s9517_s5 + $0xf50] sm:$0xf] }
  0xca   : > { %578 = vst [vmem:[%s9521_s6 + $0x2d8] sm:$0xf] %v577_v54  ;;  %v705_v54 = vld [vmem:[%s9517_s5 + $0xf60] sm:$0xf] }
  0xcb   : > { %580 = vst [vmem:[%s9521_s6 + $0x2dc] sm:$0xf] %v579_v55  ;;  %v707_v55 = vld [vmem:[%s9517_s5 + $0xf70] sm:$0xf] }
  0xcc   : > { %582 = vst [vmem:[%s9521_s6 + $0x2e0] sm:$0xf] %v581_v56  ;;  %v709_v56 = vld [vmem:[%s9517_s5 + $0xf80] sm:$0xf] }
  0xcd   : > { %584 = vst [vmem:[%s9521_s6 + $0x2e4] sm:$0xf] %v583_v57  ;;  %v711_v57 = vld [vmem:[%s9517_s5 + $0xf90] sm:$0xf] }
  0xce   : > { %586 = vst [vmem:[%s9521_s6 + $0x2e8] sm:$0xf] %v585_v58  ;;  %v713_v58 = vld [vmem:[%s9517_s5 + $0xfa0] sm:$0xf] }
  0xcf   : > { %588 = vst [vmem:[%s9521_s6 + $0x2ec] sm:$0xf] %v587_v59  ;;  %v715_v59 = vld [vmem:[%s9517_s5 + $0xfb0] sm:$0xf] }
  0xd0   : > { %590 = vst [vmem:[%s9521_s6 + $0x2f0] sm:$0xf] %v589_v60  ;;  %v717_v60 = vld [vmem:[%s9517_s5 + $0xfc0] sm:$0xf] }
  0xd1   : > { %592 = vst [vmem:[%s9521_s6 + $0x2f4] sm:$0xf] %v591_v61  ;;  %v719_v61 = vld [vmem:[%s9517_s5 + $0xfd0] sm:$0xf] }
  0xd2   : > { %594 = vst [vmem:[%s9521_s6 + $0x2f8] sm:$0xf] %v593_v62  ;;  %v721_v62 = vld [vmem:[%s9517_s5 + $0xfe0] sm:$0xf] }
  0xd3   : > { %596 = vst [vmem:[%s9521_s6 + $0x2fc] sm:$0xf] %v595_v63  ;;  %v723_v63 = vld [vmem:[%s9517_s5 + $0xff0] sm:$0xf] }
  0xd4   : > { %598 = vst [vmem:[%s9521_s6 + $0x300] sm:$0xf] %v597_v0  ;;  %v725_v0 = vld [vmem:[%s9517_s5 + $0x1000] sm:$0xf] }
  0xd5   : > { %600 = vst [vmem:[%s9521_s6 + $0x304] sm:$0xf] %v599_v1  ;;  %v727_v1 = vld [vmem:[%s9517_s5 + $0x1010] sm:$0xf] }
  0xd6   : > { %602 = vst [vmem:[%s9521_s6 + $0x308] sm:$0xf] %v601_v2  ;;  %v729_v2 = vld [vmem:[%s9517_s5 + $0x1020] sm:$0xf] }
  0xd7   : > { %604 = vst [vmem:[%s9521_s6 + $0x30c] sm:$0xf] %v603_v3  ;;  %v731_v3 = vld [vmem:[%s9517_s5 + $0x1030] sm:$0xf] }
  0xd8   : > { %606 = vst [vmem:[%s9521_s6 + $0x310] sm:$0xf] %v605_v4  ;;  %v733_v4 = vld [vmem:[%s9517_s5 + $0x1040] sm:$0xf] }
  0xd9   : > { %608 = vst [vmem:[%s9521_s6 + $0x314] sm:$0xf] %v607_v5  ;;  %v735_v5 = vld [vmem:[%s9517_s5 + $0x1050] sm:$0xf] }
  0xda   : > { %610 = vst [vmem:[%s9521_s6 + $0x318] sm:$0xf] %v609_v6  ;;  %v737_v6 = vld [vmem:[%s9517_s5 + $0x1060] sm:$0xf] }
  0xdb   : > { %612 = vst [vmem:[%s9521_s6 + $0x31c] sm:$0xf] %v611_v7  ;;  %v739_v7 = vld [vmem:[%s9517_s5 + $0x1070] sm:$0xf] }
  0xdc   : > { %614 = vst [vmem:[%s9521_s6 + $0x320] sm:$0xf] %v613_v8  ;;  %v741_v8 = vld [vmem:[%s9517_s5 + $0x1080] sm:$0xf] }
  0xdd   : > { %616 = vst [vmem:[%s9521_s6 + $0x324] sm:$0xf] %v615_v9  ;;  %v743_v9 = vld [vmem:[%s9517_s5 + $0x1090] sm:$0xf] }
  0xde   : > { %618 = vst [vmem:[%s9521_s6 + $0x328] sm:$0xf] %v617_v10  ;;  %v745_v10 = vld [vmem:[%s9517_s5 + $0x10a0] sm:$0xf] }
  0xdf   : > { %620 = vst [vmem:[%s9521_s6 + $0x32c] sm:$0xf] %v619_v11  ;;  %v747_v11 = vld [vmem:[%s9517_s5 + $0x10b0] sm:$0xf] }
  0xe0   : > { %622 = vst [vmem:[%s9521_s6 + $0x330] sm:$0xf] %v621_v12  ;;  %v749_v12 = vld [vmem:[%s9517_s5 + $0x10c0] sm:$0xf] }
  0xe1   : > { %624 = vst [vmem:[%s9521_s6 + $0x334] sm:$0xf] %v623_v13  ;;  %v751_v13 = vld [vmem:[%s9517_s5 + $0x10d0] sm:$0xf] }
  0xe2   : > { %626 = vst [vmem:[%s9521_s6 + $0x338] sm:$0xf] %v625_v14  ;;  %v753_v14 = vld [vmem:[%s9517_s5 + $0x10e0] sm:$0xf] }
  0xe3   : > { %628 = vst [vmem:[%s9521_s6 + $0x33c] sm:$0xf] %v627_v15  ;;  %v755_v15 = vld [vmem:[%s9517_s5 + $0x10f0] sm:$0xf] }
  0xe4   : > { %630 = vst [vmem:[%s9521_s6 + $0x340] sm:$0xf] %v629_v16  ;;  %v757_v16 = vld [vmem:[%s9517_s5 + $0x1100] sm:$0xf] }
  0xe5   : > { %632 = vst [vmem:[%s9521_s6 + $0x344] sm:$0xf] %v631_v17  ;;  %v759_v17 = vld [vmem:[%s9517_s5 + $0x1110] sm:$0xf] }
  0xe6   : > { %634 = vst [vmem:[%s9521_s6 + $0x348] sm:$0xf] %v633_v18  ;;  %v761_v18 = vld [vmem:[%s9517_s5 + $0x1120] sm:$0xf] }
  0xe7   : > { %636 = vst [vmem:[%s9521_s6 + $0x34c] sm:$0xf] %v635_v19  ;;  %v763_v19 = vld [vmem:[%s9517_s5 + $0x1130] sm:$0xf] }
  0xe8   : > { %638 = vst [vmem:[%s9521_s6 + $0x350] sm:$0xf] %v637_v20  ;;  %v765_v20 = vld [vmem:[%s9517_s5 + $0x1140] sm:$0xf] }
  0xe9   : > { %640 = vst [vmem:[%s9521_s6 + $0x354] sm:$0xf] %v639_v21  ;;  %v767_v21 = vld [vmem:[%s9517_s5 + $0x1150] sm:$0xf] }
  0xea   : > { %642 = vst [vmem:[%s9521_s6 + $0x358] sm:$0xf] %v641_v22  ;;  %v769_v22 = vld [vmem:[%s9517_s5 + $0x1160] sm:$0xf] }
  0xeb   : > { %644 = vst [vmem:[%s9521_s6 + $0x35c] sm:$0xf] %v643_v23  ;;  %v771_v23 = vld [vmem:[%s9517_s5 + $0x1170] sm:$0xf] }
  0xec   : > { %646 = vst [vmem:[%s9521_s6 + $0x360] sm:$0xf] %v645_v24  ;;  %v773_v24 = vld [vmem:[%s9517_s5 + $0x1180] sm:$0xf] }
  0xed   : > { %648 = vst [vmem:[%s9521_s6 + $0x364] sm:$0xf] %v647_v25  ;;  %v775_v25 = vld [vmem:[%s9517_s5 + $0x1190] sm:$0xf] }
  0xee   : > { %650 = vst [vmem:[%s9521_s6 + $0x368] sm:$0xf] %v649_v26  ;;  %v777_v26 = vld [vmem:[%s9517_s5 + $0x11a0] sm:$0xf] }
  0xef   : > { %652 = vst [vmem:[%s9521_s6 + $0x36c] sm:$0xf] %v651_v27  ;;  %v779_v27 = vld [vmem:[%s9517_s5 + $0x11b0] sm:$0xf] }
  0xf0   : > { %654 = vst [vmem:[%s9521_s6 + $0x370] sm:$0xf] %v653_v28  ;;  %v781_v28 = vld [vmem:[%s9517_s5 + $0x11c0] sm:$0xf] }
  0xf1   : > { %656 = vst [vmem:[%s9521_s6 + $0x374] sm:$0xf] %v655_v29  ;;  %v783_v29 = vld [vmem:[%s9517_s5 + $0x11d0] sm:$0xf] }
  0xf2   : > { %658 = vst [vmem:[%s9521_s6 + $0x378] sm:$0xf] %v657_v30  ;;  %v785_v30 = vld [vmem:[%s9517_s5 + $0x11e0] sm:$0xf] }
  0xf3   : > { %660 = vst [vmem:[%s9521_s6 + $0x37c] sm:$0xf] %v659_v31  ;;  %v787_v31 = vld [vmem:[%s9517_s5 + $0x11f0] sm:$0xf] }
  0xf4   : > { %662 = vst [vmem:[%s9521_s6 + $0x380] sm:$0xf] %v661_v32  ;;  %v789_v32 = vld [vmem:[%s9517_s5 + $0x1200] sm:$0xf] }
  0xf5   : > { %664 = vst [vmem:[%s9521_s6 + $0x384] sm:$0xf] %v663_v33  ;;  %v791_v33 = vld [vmem:[%s9517_s5 + $0x1210] sm:$0xf] }
  0xf6   : > { %666 = vst [vmem:[%s9521_s6 + $0x388] sm:$0xf] %v665_v34  ;;  %v793_v34 = vld [vmem:[%s9517_s5 + $0x1220] sm:$0xf] }
  0xf7   : > { %668 = vst [vmem:[%s9521_s6 + $0x38c] sm:$0xf] %v667_v35  ;;  %v795_v35 = vld [vmem:[%s9517_s5 + $0x1230] sm:$0xf] }
  0xf8   : > { %670 = vst [vmem:[%s9521_s6 + $0x390] sm:$0xf] %v669_v36  ;;  %v797_v36 = vld [vmem:[%s9517_s5 + $0x1240] sm:$0xf] }
  0xf9   : > { %672 = vst [vmem:[%s9521_s6 + $0x394] sm:$0xf] %v671_v37  ;;  %v799_v37 = vld [vmem:[%s9517_s5 + $0x1250] sm:$0xf] }
  0xfa   : > { %674 = vst [vmem:[%s9521_s6 + $0x398] sm:$0xf] %v673_v38  ;;  %v801_v38 = vld [vmem:[%s9517_s5 + $0x1260] sm:$0xf] }
  0xfb   : > { %676 = vst [vmem:[%s9521_s6 + $0x39c] sm:$0xf] %v675_v39  ;;  %v803_v39 = vld [vmem:[%s9517_s5 + $0x1270] sm:$0xf] }
  0xfc   : > { %678 = vst [vmem:[%s9521_s6 + $0x3a0] sm:$0xf] %v677_v40  ;;  %v805_v40 = vld [vmem:[%s9517_s5 + $0x1280] sm:$0xf] }
  0xfd   : > { %680 = vst [vmem:[%s9521_s6 + $0x3a4] sm:$0xf] %v679_v41  ;;  %v807_v41 = vld [vmem:[%s9517_s5 + $0x1290] sm:$0xf] }
  0xfe   : > { %682 = vst [vmem:[%s9521_s6 + $0x3a8] sm:$0xf] %v681_v42  ;;  %v809_v42 = vld [vmem:[%s9517_s5 + $0x12a0] sm:$0xf] }
  0xff   : > { %684 = vst [vmem:[%s9521_s6 + $0x3ac] sm:$0xf] %v683_v43  ;;  %v811_v43 = vld [vmem:[%s9517_s5 + $0x12b0] sm:$0xf] }
 0x100   : > { %686 = vst [vmem:[%s9521_s6 + $0x3b0] sm:$0xf] %v685_v44  ;;  %v813_v44 = vld [vmem:[%s9517_s5 + $0x12c0] sm:$0xf] }
 0x101   : > { %688 = vst [vmem:[%s9521_s6 + $0x3b4] sm:$0xf] %v687_v45  ;;  %v815_v45 = vld [vmem:[%s9517_s5 + $0x12d0] sm:$0xf] }
 0x102   : > { %690 = vst [vmem:[%s9521_s6 + $0x3b8] sm:$0xf] %v689_v46  ;;  %v817_v46 = vld [vmem:[%s9517_s5 + $0x12e0] sm:$0xf] }
 0x103   : > { %692 = vst [vmem:[%s9521_s6 + $0x3bc] sm:$0xf] %v691_v47  ;;  %v819_v47 = vld [vmem:[%s9517_s5 + $0x12f0] sm:$0xf] }
 0x104   : > { %694 = vst [vmem:[%s9521_s6 + $0x3c0] sm:$0xf] %v693_v48  ;;  %v821_v48 = vld [vmem:[%s9517_s5 + $0x1300] sm:$0xf] }
 0x105   : > { %696 = vst [vmem:[%s9521_s6 + $0x3c4] sm:$0xf] %v695_v49  ;;  %v823_v49 = vld [vmem:[%s9517_s5 + $0x1310] sm:$0xf] }
 0x106   : > { %698 = vst [vmem:[%s9521_s6 + $0x3c8] sm:$0xf] %v697_v50  ;;  %v825_v50 = vld [vmem:[%s9517_s5 + $0x1320] sm:$0xf] }
 0x107   : > { %700 = vst [vmem:[%s9521_s6 + $0x3cc] sm:$0xf] %v699_v51  ;;  %v827_v51 = vld [vmem:[%s9517_s5 + $0x1330] sm:$0xf] }
 0x108   : > { %702 = vst [vmem:[%s9521_s6 + $0x3d0] sm:$0xf] %v701_v52  ;;  %v829_v52 = vld [vmem:[%s9517_s5 + $0x1340] sm:$0xf] }
 0x109   : > { %704 = vst [vmem:[%s9521_s6 + $0x3d4] sm:$0xf] %v703_v53  ;;  %v831_v53 = vld [vmem:[%s9517_s5 + $0x1350] sm:$0xf] }
 0x10a   : > { %706 = vst [vmem:[%s9521_s6 + $0x3d8] sm:$0xf] %v705_v54  ;;  %v833_v54 = vld [vmem:[%s9517_s5 + $0x1360] sm:$0xf] }
 0x10b   : > { %708 = vst [vmem:[%s9521_s6 + $0x3dc] sm:$0xf] %v707_v55  ;;  %v835_v55 = vld [vmem:[%s9517_s5 + $0x1370] sm:$0xf] }
 0x10c   : > { %710 = vst [vmem:[%s9521_s6 + $0x3e0] sm:$0xf] %v709_v56  ;;  %v837_v56 = vld [vmem:[%s9517_s5 + $0x1380] sm:$0xf] }
 0x10d   : > { %712 = vst [vmem:[%s9521_s6 + $0x3e4] sm:$0xf] %v711_v57  ;;  %v839_v57 = vld [vmem:[%s9517_s5 + $0x1390] sm:$0xf] }
 0x10e   : > { %714 = vst [vmem:[%s9521_s6 + $0x3e8] sm:$0xf] %v713_v58  ;;  %v841_v58 = vld [vmem:[%s9517_s5 + $0x13a0] sm:$0xf] }
 0x10f   : > { %716 = vst [vmem:[%s9521_s6 + $0x3ec] sm:$0xf] %v715_v59  ;;  %v843_v59 = vld [vmem:[%s9517_s5 + $0x13b0] sm:$0xf] }
 0x110   : > { %718 = vst [vmem:[%s9521_s6 + $0x3f0] sm:$0xf] %v717_v60  ;;  %v845_v60 = vld [vmem:[%s9517_s5 + $0x13c0] sm:$0xf] }
 0x111   : > { %720 = vst [vmem:[%s9521_s6 + $0x3f4] sm:$0xf] %v719_v61  ;;  %v847_v61 = vld [vmem:[%s9517_s5 + $0x13d0] sm:$0xf] }
 0x112   : > { %722 = vst [vmem:[%s9521_s6 + $0x3f8] sm:$0xf] %v721_v62  ;;  %v849_v62 = vld [vmem:[%s9517_s5 + $0x13e0] sm:$0xf] }
 0x113   : > { %724 = vst [vmem:[%s9521_s6 + $0x3fc] sm:$0xf] %v723_v63  ;;  %v851_v63 = vld [vmem:[%s9517_s5 + $0x13f0] sm:$0xf] }
 0x114   : > { %726 = vst [vmem:[%s9521_s6 + $0x400] sm:$0xf] %v725_v0  ;;  %v853_v0 = vld [vmem:[%s9517_s5 + $0x1400] sm:$0xf] }
 0x115   : > { %728 = vst [vmem:[%s9521_s6 + $0x404] sm:$0xf] %v727_v1  ;;  %v855_v1 = vld [vmem:[%s9517_s5 + $0x1410] sm:$0xf] }
 0x116   : > { %730 = vst [vmem:[%s9521_s6 + $0x408] sm:$0xf] %v729_v2  ;;  %v857_v2 = vld [vmem:[%s9517_s5 + $0x1420] sm:$0xf] }
 0x117   : > { %732 = vst [vmem:[%s9521_s6 + $0x40c] sm:$0xf] %v731_v3  ;;  %v859_v3 = vld [vmem:[%s9517_s5 + $0x1430] sm:$0xf] }
 0x118   : > { %734 = vst [vmem:[%s9521_s6 + $0x410] sm:$0xf] %v733_v4  ;;  %v861_v4 = vld [vmem:[%s9517_s5 + $0x1440] sm:$0xf] }
 0x119   : > { %736 = vst [vmem:[%s9521_s6 + $0x414] sm:$0xf] %v735_v5  ;;  %v863_v5 = vld [vmem:[%s9517_s5 + $0x1450] sm:$0xf] }
 0x11a   : > { %738 = vst [vmem:[%s9521_s6 + $0x418] sm:$0xf] %v737_v6  ;;  %v865_v6 = vld [vmem:[%s9517_s5 + $0x1460] sm:$0xf] }
 0x11b   : > { %740 = vst [vmem:[%s9521_s6 + $0x41c] sm:$0xf] %v739_v7  ;;  %v867_v7 = vld [vmem:[%s9517_s5 + $0x1470] sm:$0xf] }
 0x11c   : > { %742 = vst [vmem:[%s9521_s6 + $0x420] sm:$0xf] %v741_v8  ;;  %v869_v8 = vld [vmem:[%s9517_s5 + $0x1480] sm:$0xf] }
 0x11d   : > { %744 = vst [vmem:[%s9521_s6 + $0x424] sm:$0xf] %v743_v9  ;;  %v871_v9 = vld [vmem:[%s9517_s5 + $0x1490] sm:$0xf] }
 0x11e   : > { %746 = vst [vmem:[%s9521_s6 + $0x428] sm:$0xf] %v745_v10  ;;  %v873_v10 = vld [vmem:[%s9517_s5 + $0x14a0] sm:$0xf] }
 0x11f   : > { %748 = vst [vmem:[%s9521_s6 + $0x42c] sm:$0xf] %v747_v11  ;;  %v875_v11 = vld [vmem:[%s9517_s5 + $0x14b0] sm:$0xf] }
 0x120   : > { %750 = vst [vmem:[%s9521_s6 + $0x430] sm:$0xf] %v749_v12  ;;  %v877_v12 = vld [vmem:[%s9517_s5 + $0x14c0] sm:$0xf] }
 0x121   : > { %752 = vst [vmem:[%s9521_s6 + $0x434] sm:$0xf] %v751_v13  ;;  %v879_v13 = vld [vmem:[%s9517_s5 + $0x14d0] sm:$0xf] }
 0x122   : > { %754 = vst [vmem:[%s9521_s6 + $0x438] sm:$0xf] %v753_v14  ;;  %v881_v14 = vld [vmem:[%s9517_s5 + $0x14e0] sm:$0xf] }
 0x123   : > { %756 = vst [vmem:[%s9521_s6 + $0x43c] sm:$0xf] %v755_v15  ;;  %v883_v15 = vld [vmem:[%s9517_s5 + $0x14f0] sm:$0xf] }
 0x124   : > { %758 = vst [vmem:[%s9521_s6 + $0x440] sm:$0xf] %v757_v16  ;;  %v885_v16 = vld [vmem:[%s9517_s5 + $0x1500] sm:$0xf] }
 0x125   : > { %760 = vst [vmem:[%s9521_s6 + $0x444] sm:$0xf] %v759_v17  ;;  %v887_v17 = vld [vmem:[%s9517_s5 + $0x1510] sm:$0xf] }
 0x126   : > { %762 = vst [vmem:[%s9521_s6 + $0x448] sm:$0xf] %v761_v18  ;;  %v889_v18 = vld [vmem:[%s9517_s5 + $0x1520] sm:$0xf] }
 0x127   : > { %764 = vst [vmem:[%s9521_s6 + $0x44c] sm:$0xf] %v763_v19  ;;  %v891_v19 = vld [vmem:[%s9517_s5 + $0x1530] sm:$0xf] }
 0x128   : > { %766 = vst [vmem:[%s9521_s6 + $0x450] sm:$0xf] %v765_v20  ;;  %v893_v20 = vld [vmem:[%s9517_s5 + $0x1540] sm:$0xf] }
 0x129   : > { %768 = vst [vmem:[%s9521_s6 + $0x454] sm:$0xf] %v767_v21  ;;  %v895_v21 = vld [vmem:[%s9517_s5 + $0x1550] sm:$0xf] }
 0x12a   : > { %770 = vst [vmem:[%s9521_s6 + $0x458] sm:$0xf] %v769_v22  ;;  %v897_v22 = vld [vmem:[%s9517_s5 + $0x1560] sm:$0xf] }
 0x12b   : > { %772 = vst [vmem:[%s9521_s6 + $0x45c] sm:$0xf] %v771_v23  ;;  %v899_v23 = vld [vmem:[%s9517_s5 + $0x1570] sm:$0xf] }
 0x12c   : > { %774 = vst [vmem:[%s9521_s6 + $0x460] sm:$0xf] %v773_v24  ;;  %v901_v24 = vld [vmem:[%s9517_s5 + $0x1580] sm:$0xf] }
 0x12d   : > { %776 = vst [vmem:[%s9521_s6 + $0x464] sm:$0xf] %v775_v25  ;;  %v903_v25 = vld [vmem:[%s9517_s5 + $0x1590] sm:$0xf] }
 0x12e   : > { %778 = vst [vmem:[%s9521_s6 + $0x468] sm:$0xf] %v777_v26  ;;  %v905_v26 = vld [vmem:[%s9517_s5 + $0x15a0] sm:$0xf] }
 0x12f   : > { %780 = vst [vmem:[%s9521_s6 + $0x46c] sm:$0xf] %v779_v27  ;;  %v907_v27 = vld [vmem:[%s9517_s5 + $0x15b0] sm:$0xf] }
 0x130   : > { %782 = vst [vmem:[%s9521_s6 + $0x470] sm:$0xf] %v781_v28  ;;  %v909_v28 = vld [vmem:[%s9517_s5 + $0x15c0] sm:$0xf] }
 0x131   : > { %784 = vst [vmem:[%s9521_s6 + $0x474] sm:$0xf] %v783_v29  ;;  %v911_v29 = vld [vmem:[%s9517_s5 + $0x15d0] sm:$0xf] }
 0x132   : > { %786 = vst [vmem:[%s9521_s6 + $0x478] sm:$0xf] %v785_v30  ;;  %v913_v30 = vld [vmem:[%s9517_s5 + $0x15e0] sm:$0xf] }
 0x133   : > { %788 = vst [vmem:[%s9521_s6 + $0x47c] sm:$0xf] %v787_v31  ;;  %v915_v31 = vld [vmem:[%s9517_s5 + $0x15f0] sm:$0xf] }
 0x134   : > { %790 = vst [vmem:[%s9521_s6 + $0x480] sm:$0xf] %v789_v32  ;;  %v917_v32 = vld [vmem:[%s9517_s5 + $0x1600] sm:$0xf] }
 0x135   : > { %792 = vst [vmem:[%s9521_s6 + $0x484] sm:$0xf] %v791_v33  ;;  %v919_v33 = vld [vmem:[%s9517_s5 + $0x1610] sm:$0xf] }
 0x136   : > { %794 = vst [vmem:[%s9521_s6 + $0x488] sm:$0xf] %v793_v34  ;;  %v921_v34 = vld [vmem:[%s9517_s5 + $0x1620] sm:$0xf] }
 0x137   : > { %796 = vst [vmem:[%s9521_s6 + $0x48c] sm:$0xf] %v795_v35  ;;  %v923_v35 = vld [vmem:[%s9517_s5 + $0x1630] sm:$0xf] }
 0x138   : > { %798 = vst [vmem:[%s9521_s6 + $0x490] sm:$0xf] %v797_v36  ;;  %v925_v36 = vld [vmem:[%s9517_s5 + $0x1640] sm:$0xf] }
 0x139   : > { %800 = vst [vmem:[%s9521_s6 + $0x494] sm:$0xf] %v799_v37  ;;  %v927_v37 = vld [vmem:[%s9517_s5 + $0x1650] sm:$0xf] }
 0x13a   : > { %802 = vst [vmem:[%s9521_s6 + $0x498] sm:$0xf] %v801_v38  ;;  %v929_v38 = vld [vmem:[%s9517_s5 + $0x1660] sm:$0xf] }
 0x13b   : > { %804 = vst [vmem:[%s9521_s6 + $0x49c] sm:$0xf] %v803_v39  ;;  %v931_v39 = vld [vmem:[%s9517_s5 + $0x1670] sm:$0xf] }
 0x13c   : > { %806 = vst [vmem:[%s9521_s6 + $0x4a0] sm:$0xf] %v805_v40  ;;  %v933_v40 = vld [vmem:[%s9517_s5 + $0x1680] sm:$0xf] }
 0x13d   : > { %808 = vst [vmem:[%s9521_s6 + $0x4a4] sm:$0xf] %v807_v41  ;;  %v935_v41 = vld [vmem:[%s9517_s5 + $0x1690] sm:$0xf] }
 0x13e   : > { %810 = vst [vmem:[%s9521_s6 + $0x4a8] sm:$0xf] %v809_v42  ;;  %v937_v42 = vld [vmem:[%s9517_s5 + $0x16a0] sm:$0xf] }
 0x13f   : > { %812 = vst [vmem:[%s9521_s6 + $0x4ac] sm:$0xf] %v811_v43  ;;  %v939_v43 = vld [vmem:[%s9517_s5 + $0x16b0] sm:$0xf] }
 0x140   : > { %814 = vst [vmem:[%s9521_s6 + $0x4b0] sm:$0xf] %v813_v44  ;;  %v941_v44 = vld [vmem:[%s9517_s5 + $0x16c0] sm:$0xf] }
 0x141   : > { %816 = vst [vmem:[%s9521_s6 + $0x4b4] sm:$0xf] %v815_v45  ;;  %v943_v45 = vld [vmem:[%s9517_s5 + $0x16d0] sm:$0xf] }
 0x142   : > { %818 = vst [vmem:[%s9521_s6 + $0x4b8] sm:$0xf] %v817_v46  ;;  %v945_v46 = vld [vmem:[%s9517_s5 + $0x16e0] sm:$0xf] }
 0x143   : > { %820 = vst [vmem:[%s9521_s6 + $0x4bc] sm:$0xf] %v819_v47  ;;  %v947_v47 = vld [vmem:[%s9517_s5 + $0x16f0] sm:$0xf] }
 0x144   : > { %822 = vst [vmem:[%s9521_s6 + $0x4c0] sm:$0xf] %v821_v48  ;;  %v949_v48 = vld [vmem:[%s9517_s5 + $0x1700] sm:$0xf] }
 0x145   : > { %824 = vst [vmem:[%s9521_s6 + $0x4c4] sm:$0xf] %v823_v49  ;;  %v951_v49 = vld [vmem:[%s9517_s5 + $0x1710] sm:$0xf] }
 0x146   : > { %826 = vst [vmem:[%s9521_s6 + $0x4c8] sm:$0xf] %v825_v50  ;;  %v953_v50 = vld [vmem:[%s9517_s5 + $0x1720] sm:$0xf] }
 0x147   : > { %828 = vst [vmem:[%s9521_s6 + $0x4cc] sm:$0xf] %v827_v51  ;;  %v955_v51 = vld [vmem:[%s9517_s5 + $0x1730] sm:$0xf] }
 0x148   : > { %830 = vst [vmem:[%s9521_s6 + $0x4d0] sm:$0xf] %v829_v52  ;;  %v957_v52 = vld [vmem:[%s9517_s5 + $0x1740] sm:$0xf] }
 0x149   : > { %832 = vst [vmem:[%s9521_s6 + $0x4d4] sm:$0xf] %v831_v53  ;;  %v959_v53 = vld [vmem:[%s9517_s5 + $0x1750] sm:$0xf] }
 0x14a   : > { %834 = vst [vmem:[%s9521_s6 + $0x4d8] sm:$0xf] %v833_v54  ;;  %v961_v54 = vld [vmem:[%s9517_s5 + $0x1760] sm:$0xf] }
 0x14b   : > { %836 = vst [vmem:[%s9521_s6 + $0x4dc] sm:$0xf] %v835_v55  ;;  %v963_v55 = vld [vmem:[%s9517_s5 + $0x1770] sm:$0xf] }
 0x14c   : > { %838 = vst [vmem:[%s9521_s6 + $0x4e0] sm:$0xf] %v837_v56  ;;  %v965_v56 = vld [vmem:[%s9517_s5 + $0x1780] sm:$0xf] }
 0x14d   : > { %840 = vst [vmem:[%s9521_s6 + $0x4e4] sm:$0xf] %v839_v57  ;;  %v967_v57 = vld [vmem:[%s9517_s5 + $0x1790] sm:$0xf] }
 0x14e   : > { %842 = vst [vmem:[%s9521_s6 + $0x4e8] sm:$0xf] %v841_v58  ;;  %v969_v58 = vld [vmem:[%s9517_s5 + $0x17a0] sm:$0xf] }
 0x14f   : > { %844 = vst [vmem:[%s9521_s6 + $0x4ec] sm:$0xf] %v843_v59  ;;  %v971_v59 = vld [vmem:[%s9517_s5 + $0x17b0] sm:$0xf] }
 0x150   : > { %846 = vst [vmem:[%s9521_s6 + $0x4f0] sm:$0xf] %v845_v60  ;;  %v973_v60 = vld [vmem:[%s9517_s5 + $0x17c0] sm:$0xf] }
 0x151   : > { %848 = vst [vmem:[%s9521_s6 + $0x4f4] sm:$0xf] %v847_v61  ;;  %v975_v61 = vld [vmem:[%s9517_s5 + $0x17d0] sm:$0xf] }
 0x152   : > { %850 = vst [vmem:[%s9521_s6 + $0x4f8] sm:$0xf] %v849_v62  ;;  %v977_v62 = vld [vmem:[%s9517_s5 + $0x17e0] sm:$0xf] }
 0x153   : > { %852 = vst [vmem:[%s9521_s6 + $0x4fc] sm:$0xf] %v851_v63  ;;  %v979_v63 = vld [vmem:[%s9517_s5 + $0x17f0] sm:$0xf] }
 0x154   : > { %854 = vst [vmem:[%s9521_s6 + $0x500] sm:$0xf] %v853_v0  ;;  %v981_v0 = vld [vmem:[%s9517_s5 + $0x1800] sm:$0xf] }
 0x155   : > { %856 = vst [vmem:[%s9521_s6 + $0x504] sm:$0xf] %v855_v1  ;;  %v983_v1 = vld [vmem:[%s9517_s5 + $0x1810] sm:$0xf] }
 0x156   : > { %858 = vst [vmem:[%s9521_s6 + $0x508] sm:$0xf] %v857_v2  ;;  %v985_v2 = vld [vmem:[%s9517_s5 + $0x1820] sm:$0xf] }
 0x157   : > { %860 = vst [vmem:[%s9521_s6 + $0x50c] sm:$0xf] %v859_v3  ;;  %v987_v3 = vld [vmem:[%s9517_s5 + $0x1830] sm:$0xf] }
 0x158   : > { %862 = vst [vmem:[%s9521_s6 + $0x510] sm:$0xf] %v861_v4  ;;  %v989_v4 = vld [vmem:[%s9517_s5 + $0x1840] sm:$0xf] }
 0x159   : > { %864 = vst [vmem:[%s9521_s6 + $0x514] sm:$0xf] %v863_v5  ;;  %v991_v5 = vld [vmem:[%s9517_s5 + $0x1850] sm:$0xf] }
 0x15a   : > { %866 = vst [vmem:[%s9521_s6 + $0x518] sm:$0xf] %v865_v6  ;;  %v993_v6 = vld [vmem:[%s9517_s5 + $0x1860] sm:$0xf] }
 0x15b   : > { %868 = vst [vmem:[%s9521_s6 + $0x51c] sm:$0xf] %v867_v7  ;;  %v995_v7 = vld [vmem:[%s9517_s5 + $0x1870] sm:$0xf] }
 0x15c   : > { %870 = vst [vmem:[%s9521_s6 + $0x520] sm:$0xf] %v869_v8  ;;  %v997_v8 = vld [vmem:[%s9517_s5 + $0x1880] sm:$0xf] }
 0x15d   : > { %872 = vst [vmem:[%s9521_s6 + $0x524] sm:$0xf] %v871_v9  ;;  %v999_v9 = vld [vmem:[%s9517_s5 + $0x1890] sm:$0xf] }
 0x15e   : > { %874 = vst [vmem:[%s9521_s6 + $0x528] sm:$0xf] %v873_v10  ;;  %v1001_v10 = vld [vmem:[%s9517_s5 + $0x18a0] sm:$0xf] }
 0x15f   : > { %876 = vst [vmem:[%s9521_s6 + $0x52c] sm:$0xf] %v875_v11  ;;  %v1003_v11 = vld [vmem:[%s9517_s5 + $0x18b0] sm:$0xf] }
 0x160   : > { %878 = vst [vmem:[%s9521_s6 + $0x530] sm:$0xf] %v877_v12  ;;  %v1005_v12 = vld [vmem:[%s9517_s5 + $0x18c0] sm:$0xf] }
 0x161   : > { %880 = vst [vmem:[%s9521_s6 + $0x534] sm:$0xf] %v879_v13  ;;  %v1007_v13 = vld [vmem:[%s9517_s5 + $0x18d0] sm:$0xf] }
 0x162   : > { %882 = vst [vmem:[%s9521_s6 + $0x538] sm:$0xf] %v881_v14  ;;  %v1009_v14 = vld [vmem:[%s9517_s5 + $0x18e0] sm:$0xf] }
 0x163   : > { %884 = vst [vmem:[%s9521_s6 + $0x53c] sm:$0xf] %v883_v15  ;;  %v1011_v15 = vld [vmem:[%s9517_s5 + $0x18f0] sm:$0xf] }
 0x164   : > { %886 = vst [vmem:[%s9521_s6 + $0x540] sm:$0xf] %v885_v16  ;;  %v1013_v16 = vld [vmem:[%s9517_s5 + $0x1900] sm:$0xf] }
 0x165   : > { %888 = vst [vmem:[%s9521_s6 + $0x544] sm:$0xf] %v887_v17  ;;  %v1015_v17 = vld [vmem:[%s9517_s5 + $0x1910] sm:$0xf] }
 0x166   : > { %890 = vst [vmem:[%s9521_s6 + $0x548] sm:$0xf] %v889_v18  ;;  %v1017_v18 = vld [vmem:[%s9517_s5 + $0x1920] sm:$0xf] }
 0x167   : > { %892 = vst [vmem:[%s9521_s6 + $0x54c] sm:$0xf] %v891_v19  ;;  %v1019_v19 = vld [vmem:[%s9517_s5 + $0x1930] sm:$0xf] }
 0x168   : > { %894 = vst [vmem:[%s9521_s6 + $0x550] sm:$0xf] %v893_v20  ;;  %v1021_v20 = vld [vmem:[%s9517_s5 + $0x1940] sm:$0xf] }
 0x169   : > { %896 = vst [vmem:[%s9521_s6 + $0x554] sm:$0xf] %v895_v21  ;;  %v1023_v21 = vld [vmem:[%s9517_s5 + $0x1950] sm:$0xf] }
 0x16a   : > { %898 = vst [vmem:[%s9521_s6 + $0x558] sm:$0xf] %v897_v22  ;;  %v1025_v22 = vld [vmem:[%s9517_s5 + $0x1960] sm:$0xf] }
 0x16b   : > { %900 = vst [vmem:[%s9521_s6 + $0x55c] sm:$0xf] %v899_v23  ;;  %v1027_v23 = vld [vmem:[%s9517_s5 + $0x1970] sm:$0xf] }
 0x16c   : > { %902 = vst [vmem:[%s9521_s6 + $0x560] sm:$0xf] %v901_v24  ;;  %v1029_v24 = vld [vmem:[%s9517_s5 + $0x1980] sm:$0xf] }
 0x16d   : > { %904 = vst [vmem:[%s9521_s6 + $0x564] sm:$0xf] %v903_v25  ;;  %v1031_v25 = vld [vmem:[%s9517_s5 + $0x1990] sm:$0xf] }
 0x16e   : > { %906 = vst [vmem:[%s9521_s6 + $0x568] sm:$0xf] %v905_v26  ;;  %v1033_v26 = vld [vmem:[%s9517_s5 + $0x19a0] sm:$0xf] }
 0x16f   : > { %908 = vst [vmem:[%s9521_s6 + $0x56c] sm:$0xf] %v907_v27  ;;  %v1035_v27 = vld [vmem:[%s9517_s5 + $0x19b0] sm:$0xf] }
 0x170   : > { %910 = vst [vmem:[%s9521_s6 + $0x570] sm:$0xf] %v909_v28  ;;  %v1037_v28 = vld [vmem:[%s9517_s5 + $0x19c0] sm:$0xf] }
 0x171   : > { %912 = vst [vmem:[%s9521_s6 + $0x574] sm:$0xf] %v911_v29  ;;  %v1039_v29 = vld [vmem:[%s9517_s5 + $0x19d0] sm:$0xf] }
 0x172   : > { %914 = vst [vmem:[%s9521_s6 + $0x578] sm:$0xf] %v913_v30  ;;  %v1041_v30 = vld [vmem:[%s9517_s5 + $0x19e0] sm:$0xf] }
 0x173   : > { %916 = vst [vmem:[%s9521_s6 + $0x57c] sm:$0xf] %v915_v31  ;;  %v1043_v31 = vld [vmem:[%s9517_s5 + $0x19f0] sm:$0xf] }
 0x174   : > { %918 = vst [vmem:[%s9521_s6 + $0x580] sm:$0xf] %v917_v32  ;;  %v1045_v32 = vld [vmem:[%s9517_s5 + $0x1a00] sm:$0xf] }
 0x175   : > { %920 = vst [vmem:[%s9521_s6 + $0x584] sm:$0xf] %v919_v33  ;;  %v1047_v33 = vld [vmem:[%s9517_s5 + $0x1a10] sm:$0xf] }
 0x176   : > { %922 = vst [vmem:[%s9521_s6 + $0x588] sm:$0xf] %v921_v34  ;;  %v1049_v34 = vld [vmem:[%s9517_s5 + $0x1a20] sm:$0xf] }
 0x177   : > { %924 = vst [vmem:[%s9521_s6 + $0x58c] sm:$0xf] %v923_v35  ;;  %v1051_v35 = vld [vmem:[%s9517_s5 + $0x1a30] sm:$0xf] }
 0x178   : > { %926 = vst [vmem:[%s9521_s6 + $0x590] sm:$0xf] %v925_v36  ;;  %v1053_v36 = vld [vmem:[%s9517_s5 + $0x1a40] sm:$0xf] }
 0x179   : > { %928 = vst [vmem:[%s9521_s6 + $0x594] sm:$0xf] %v927_v37  ;;  %v1055_v37 = vld [vmem:[%s9517_s5 + $0x1a50] sm:$0xf] }
 0x17a   : > { %930 = vst [vmem:[%s9521_s6 + $0x598] sm:$0xf] %v929_v38  ;;  %v1057_v38 = vld [vmem:[%s9517_s5 + $0x1a60] sm:$0xf] }
 0x17b   : > { %932 = vst [vmem:[%s9521_s6 + $0x59c] sm:$0xf] %v931_v39  ;;  %v1059_v39 = vld [vmem:[%s9517_s5 + $0x1a70] sm:$0xf] }
 0x17c   : > { %934 = vst [vmem:[%s9521_s6 + $0x5a0] sm:$0xf] %v933_v40  ;;  %v1061_v40 = vld [vmem:[%s9517_s5 + $0x1a80] sm:$0xf] }
 0x17d   : > { %936 = vst [vmem:[%s9521_s6 + $0x5a4] sm:$0xf] %v935_v41  ;;  %v1063_v41 = vld [vmem:[%s9517_s5 + $0x1a90] sm:$0xf] }
 0x17e   : > { %938 = vst [vmem:[%s9521_s6 + $0x5a8] sm:$0xf] %v937_v42  ;;  %v1065_v42 = vld [vmem:[%s9517_s5 + $0x1aa0] sm:$0xf] }
 0x17f   : > { %940 = vst [vmem:[%s9521_s6 + $0x5ac] sm:$0xf] %v939_v43  ;;  %v1067_v43 = vld [vmem:[%s9517_s5 + $0x1ab0] sm:$0xf] }
 0x180   : > { %942 = vst [vmem:[%s9521_s6 + $0x5b0] sm:$0xf] %v941_v44  ;;  %v1069_v44 = vld [vmem:[%s9517_s5 + $0x1ac0] sm:$0xf] }
 0x181   : > { %944 = vst [vmem:[%s9521_s6 + $0x5b4] sm:$0xf] %v943_v45  ;;  %v1071_v45 = vld [vmem:[%s9517_s5 + $0x1ad0] sm:$0xf] }
 0x182   : > { %946 = vst [vmem:[%s9521_s6 + $0x5b8] sm:$0xf] %v945_v46  ;;  %v1073_v46 = vld [vmem:[%s9517_s5 + $0x1ae0] sm:$0xf] }
 0x183   : > { %948 = vst [vmem:[%s9521_s6 + $0x5bc] sm:$0xf] %v947_v47  ;;  %v1075_v47 = vld [vmem:[%s9517_s5 + $0x1af0] sm:$0xf] }
 0x184   : > { %950 = vst [vmem:[%s9521_s6 + $0x5c0] sm:$0xf] %v949_v48  ;;  %v1077_v48 = vld [vmem:[%s9517_s5 + $0x1b00] sm:$0xf] }
 0x185   : > { %952 = vst [vmem:[%s9521_s6 + $0x5c4] sm:$0xf] %v951_v49  ;;  %v1079_v49 = vld [vmem:[%s9517_s5 + $0x1b10] sm:$0xf] }
 0x186   : > { %954 = vst [vmem:[%s9521_s6 + $0x5c8] sm:$0xf] %v953_v50  ;;  %v1081_v50 = vld [vmem:[%s9517_s5 + $0x1b20] sm:$0xf] }
 0x187   : > { %956 = vst [vmem:[%s9521_s6 + $0x5cc] sm:$0xf] %v955_v51  ;;  %v1083_v51 = vld [vmem:[%s9517_s5 + $0x1b30] sm:$0xf] }
 0x188   : > { %958 = vst [vmem:[%s9521_s6 + $0x5d0] sm:$0xf] %v957_v52  ;;  %v1085_v52 = vld [vmem:[%s9517_s5 + $0x1b40] sm:$0xf] }
 0x189   : > { %960 = vst [vmem:[%s9521_s6 + $0x5d4] sm:$0xf] %v959_v53  ;;  %v1087_v53 = vld [vmem:[%s9517_s5 + $0x1b50] sm:$0xf] }
 0x18a   : > { %962 = vst [vmem:[%s9521_s6 + $0x5d8] sm:$0xf] %v961_v54  ;;  %v1089_v54 = vld [vmem:[%s9517_s5 + $0x1b60] sm:$0xf] }
 0x18b   : > { %964 = vst [vmem:[%s9521_s6 + $0x5dc] sm:$0xf] %v963_v55  ;;  %v1091_v55 = vld [vmem:[%s9517_s5 + $0x1b70] sm:$0xf] }
 0x18c   : > { %966 = vst [vmem:[%s9521_s6 + $0x5e0] sm:$0xf] %v965_v56  ;;  %v1093_v56 = vld [vmem:[%s9517_s5 + $0x1b80] sm:$0xf] }
 0x18d   : > { %968 = vst [vmem:[%s9521_s6 + $0x5e4] sm:$0xf] %v967_v57  ;;  %v1095_v57 = vld [vmem:[%s9517_s5 + $0x1b90] sm:$0xf] }
 0x18e   : > { %970 = vst [vmem:[%s9521_s6 + $0x5e8] sm:$0xf] %v969_v58  ;;  %v1097_v58 = vld [vmem:[%s9517_s5 + $0x1ba0] sm:$0xf] }
 0x18f   : > { %972 = vst [vmem:[%s9521_s6 + $0x5ec] sm:$0xf] %v971_v59  ;;  %v1099_v59 = vld [vmem:[%s9517_s5 + $0x1bb0] sm:$0xf] }
 0x190   : > { %974 = vst [vmem:[%s9521_s6 + $0x5f0] sm:$0xf] %v973_v60  ;;  %v1101_v60 = vld [vmem:[%s9517_s5 + $0x1bc0] sm:$0xf] }
 0x191   : > { %976 = vst [vmem:[%s9521_s6 + $0x5f4] sm:$0xf] %v975_v61  ;;  %v1103_v61 = vld [vmem:[%s9517_s5 + $0x1bd0] sm:$0xf] }
 0x192   : > { %978 = vst [vmem:[%s9521_s6 + $0x5f8] sm:$0xf] %v977_v62  ;;  %v1105_v62 = vld [vmem:[%s9517_s5 + $0x1be0] sm:$0xf] }
 0x193   : > { %980 = vst [vmem:[%s9521_s6 + $0x5fc] sm:$0xf] %v979_v63  ;;  %v1107_v63 = vld [vmem:[%s9517_s5 + $0x1bf0] sm:$0xf] }
 0x194   : > { %982 = vst [vmem:[%s9521_s6 + $0x600] sm:$0xf] %v981_v0  ;;  %v1109_v0 = vld [vmem:[%s9517_s5 + $0x1c00] sm:$0xf] }
 0x195   : > { %984 = vst [vmem:[%s9521_s6 + $0x604] sm:$0xf] %v983_v1  ;;  %v1111_v1 = vld [vmem:[%s9517_s5 + $0x1c10] sm:$0xf] }
 0x196   : > { %986 = vst [vmem:[%s9521_s6 + $0x608] sm:$0xf] %v985_v2  ;;  %v1113_v2 = vld [vmem:[%s9517_s5 + $0x1c20] sm:$0xf] }
 0x197   : > { %988 = vst [vmem:[%s9521_s6 + $0x60c] sm:$0xf] %v987_v3  ;;  %v1115_v3 = vld [vmem:[%s9517_s5 + $0x1c30] sm:$0xf] }
 0x198   : > { %990 = vst [vmem:[%s9521_s6 + $0x610] sm:$0xf] %v989_v4  ;;  %v1117_v4 = vld [vmem:[%s9517_s5 + $0x1c40] sm:$0xf] }
 0x199   : > { %992 = vst [vmem:[%s9521_s6 + $0x614] sm:$0xf] %v991_v5  ;;  %v1119_v5 = vld [vmem:[%s9517_s5 + $0x1c50] sm:$0xf] }
 0x19a   : > { %994 = vst [vmem:[%s9521_s6 + $0x618] sm:$0xf] %v993_v6  ;;  %v1121_v6 = vld [vmem:[%s9517_s5 + $0x1c60] sm:$0xf] }
 0x19b   : > { %996 = vst [vmem:[%s9521_s6 + $0x61c] sm:$0xf] %v995_v7  ;;  %v1123_v7 = vld [vmem:[%s9517_s5 + $0x1c70] sm:$0xf] }
 0x19c   : > { %998 = vst [vmem:[%s9521_s6 + $0x620] sm:$0xf] %v997_v8  ;;  %v1125_v8 = vld [vmem:[%s9517_s5 + $0x1c80] sm:$0xf] }
 0x19d   : > { %1000 = vst [vmem:[%s9521_s6 + $0x624] sm:$0xf] %v999_v9  ;;  %v1127_v9 = vld [vmem:[%s9517_s5 + $0x1c90] sm:$0xf] }
 0x19e   : > { %1002 = vst [vmem:[%s9521_s6 + $0x628] sm:$0xf] %v1001_v10  ;;  %v1129_v10 = vld [vmem:[%s9517_s5 + $0x1ca0] sm:$0xf] }
 0x19f   : > { %1004 = vst [vmem:[%s9521_s6 + $0x62c] sm:$0xf] %v1003_v11  ;;  %v1131_v11 = vld [vmem:[%s9517_s5 + $0x1cb0] sm:$0xf] }
 0x1a0   : > { %1006 = vst [vmem:[%s9521_s6 + $0x630] sm:$0xf] %v1005_v12  ;;  %v1133_v12 = vld [vmem:[%s9517_s5 + $0x1cc0] sm:$0xf] }
 0x1a1   : > { %1008 = vst [vmem:[%s9521_s6 + $0x634] sm:$0xf] %v1007_v13  ;;  %v1135_v13 = vld [vmem:[%s9517_s5 + $0x1cd0] sm:$0xf] }
 0x1a2   : > { %1010 = vst [vmem:[%s9521_s6 + $0x638] sm:$0xf] %v1009_v14  ;;  %v1137_v14 = vld [vmem:[%s9517_s5 + $0x1ce0] sm:$0xf] }
 0x1a3   : > { %1012 = vst [vmem:[%s9521_s6 + $0x63c] sm:$0xf] %v1011_v15  ;;  %v1139_v15 = vld [vmem:[%s9517_s5 + $0x1cf0] sm:$0xf] }
 0x1a4   : > { %1014 = vst [vmem:[%s9521_s6 + $0x640] sm:$0xf] %v1013_v16  ;;  %v1141_v16 = vld [vmem:[%s9517_s5 + $0x1d00] sm:$0xf] }
 0x1a5   : > { %1016 = vst [vmem:[%s9521_s6 + $0x644] sm:$0xf] %v1015_v17  ;;  %v1143_v17 = vld [vmem:[%s9517_s5 + $0x1d10] sm:$0xf] }
 0x1a6   : > { %1018 = vst [vmem:[%s9521_s6 + $0x648] sm:$0xf] %v1017_v18  ;;  %v1145_v18 = vld [vmem:[%s9517_s5 + $0x1d20] sm:$0xf] }
 0x1a7   : > { %1020 = vst [vmem:[%s9521_s6 + $0x64c] sm:$0xf] %v1019_v19  ;;  %v1147_v19 = vld [vmem:[%s9517_s5 + $0x1d30] sm:$0xf] }
 0x1a8   : > { %1022 = vst [vmem:[%s9521_s6 + $0x650] sm:$0xf] %v1021_v20  ;;  %v1149_v20 = vld [vmem:[%s9517_s5 + $0x1d40] sm:$0xf] }
 0x1a9   : > { %1024 = vst [vmem:[%s9521_s6 + $0x654] sm:$0xf] %v1023_v21  ;;  %v1151_v21 = vld [vmem:[%s9517_s5 + $0x1d50] sm:$0xf] }
 0x1aa   : > { %1026 = vst [vmem:[%s9521_s6 + $0x658] sm:$0xf] %v1025_v22  ;;  %v1153_v22 = vld [vmem:[%s9517_s5 + $0x1d60] sm:$0xf] }
 0x1ab   : > { %1028 = vst [vmem:[%s9521_s6 + $0x65c] sm:$0xf] %v1027_v23  ;;  %v1155_v23 = vld [vmem:[%s9517_s5 + $0x1d70] sm:$0xf] }
 0x1ac   : > { %1030 = vst [vmem:[%s9521_s6 + $0x660] sm:$0xf] %v1029_v24  ;;  %v1157_v24 = vld [vmem:[%s9517_s5 + $0x1d80] sm:$0xf] }
 0x1ad   : > { %1032 = vst [vmem:[%s9521_s6 + $0x664] sm:$0xf] %v1031_v25  ;;  %v1159_v25 = vld [vmem:[%s9517_s5 + $0x1d90] sm:$0xf] }
 0x1ae   : > { %1034 = vst [vmem:[%s9521_s6 + $0x668] sm:$0xf] %v1033_v26  ;;  %v1161_v26 = vld [vmem:[%s9517_s5 + $0x1da0] sm:$0xf] }
 0x1af   : > { %1036 = vst [vmem:[%s9521_s6 + $0x66c] sm:$0xf] %v1035_v27  ;;  %v1163_v27 = vld [vmem:[%s9517_s5 + $0x1db0] sm:$0xf] }
 0x1b0   : > { %1038 = vst [vmem:[%s9521_s6 + $0x670] sm:$0xf] %v1037_v28  ;;  %v1165_v28 = vld [vmem:[%s9517_s5 + $0x1dc0] sm:$0xf] }
 0x1b1   : > { %1040 = vst [vmem:[%s9521_s6 + $0x674] sm:$0xf] %v1039_v29  ;;  %v1167_v29 = vld [vmem:[%s9517_s5 + $0x1dd0] sm:$0xf] }
 0x1b2   : > { %1042 = vst [vmem:[%s9521_s6 + $0x678] sm:$0xf] %v1041_v30  ;;  %v1169_v30 = vld [vmem:[%s9517_s5 + $0x1de0] sm:$0xf] }
 0x1b3   : > { %1044 = vst [vmem:[%s9521_s6 + $0x67c] sm:$0xf] %v1043_v31  ;;  %v1171_v31 = vld [vmem:[%s9517_s5 + $0x1df0] sm:$0xf] }
 0x1b4   : > { %1046 = vst [vmem:[%s9521_s6 + $0x680] sm:$0xf] %v1045_v32  ;;  %v1173_v32 = vld [vmem:[%s9517_s5 + $0x1e00] sm:$0xf] }
 0x1b5   : > { %1048 = vst [vmem:[%s9521_s6 + $0x684] sm:$0xf] %v1047_v33  ;;  %v1175_v33 = vld [vmem:[%s9517_s5 + $0x1e10] sm:$0xf] }
 0x1b6   : > { %1050 = vst [vmem:[%s9521_s6 + $0x688] sm:$0xf] %v1049_v34  ;;  %v1177_v34 = vld [vmem:[%s9517_s5 + $0x1e20] sm:$0xf] }
 0x1b7   : > { %1052 = vst [vmem:[%s9521_s6 + $0x68c] sm:$0xf] %v1051_v35  ;;  %v1179_v35 = vld [vmem:[%s9517_s5 + $0x1e30] sm:$0xf] }
 0x1b8   : > { %1054 = vst [vmem:[%s9521_s6 + $0x690] sm:$0xf] %v1053_v36  ;;  %v1181_v36 = vld [vmem:[%s9517_s5 + $0x1e40] sm:$0xf] }
 0x1b9   : > { %1056 = vst [vmem:[%s9521_s6 + $0x694] sm:$0xf] %v1055_v37  ;;  %v1183_v37 = vld [vmem:[%s9517_s5 + $0x1e50] sm:$0xf] }
 0x1ba   : > { %1058 = vst [vmem:[%s9521_s6 + $0x698] sm:$0xf] %v1057_v38  ;;  %v1185_v38 = vld [vmem:[%s9517_s5 + $0x1e60] sm:$0xf] }
 0x1bb   : > { %1060 = vst [vmem:[%s9521_s6 + $0x69c] sm:$0xf] %v1059_v39  ;;  %v1187_v39 = vld [vmem:[%s9517_s5 + $0x1e70] sm:$0xf] }
 0x1bc   : > { %1062 = vst [vmem:[%s9521_s6 + $0x6a0] sm:$0xf] %v1061_v40  ;;  %v1189_v40 = vld [vmem:[%s9517_s5 + $0x1e80] sm:$0xf] }
 0x1bd   : > { %1064 = vst [vmem:[%s9521_s6 + $0x6a4] sm:$0xf] %v1063_v41  ;;  %v1191_v41 = vld [vmem:[%s9517_s5 + $0x1e90] sm:$0xf] }
 0x1be   : > { %1066 = vst [vmem:[%s9521_s6 + $0x6a8] sm:$0xf] %v1065_v42  ;;  %v1193_v42 = vld [vmem:[%s9517_s5 + $0x1ea0] sm:$0xf] }
 0x1bf   : > { %1068 = vst [vmem:[%s9521_s6 + $0x6ac] sm:$0xf] %v1067_v43  ;;  %v1195_v43 = vld [vmem:[%s9517_s5 + $0x1eb0] sm:$0xf] }
 0x1c0   : > { %1070 = vst [vmem:[%s9521_s6 + $0x6b0] sm:$0xf] %v1069_v44  ;;  %v1197_v44 = vld [vmem:[%s9517_s5 + $0x1ec0] sm:$0xf] }
 0x1c1   : > { %1072 = vst [vmem:[%s9521_s6 + $0x6b4] sm:$0xf] %v1071_v45  ;;  %v1199_v45 = vld [vmem:[%s9517_s5 + $0x1ed0] sm:$0xf] }
 0x1c2   : > { %1074 = vst [vmem:[%s9521_s6 + $0x6b8] sm:$0xf] %v1073_v46  ;;  %v1201_v46 = vld [vmem:[%s9517_s5 + $0x1ee0] sm:$0xf] }
 0x1c3   : > { %1076 = vst [vmem:[%s9521_s6 + $0x6bc] sm:$0xf] %v1075_v47  ;;  %v1203_v47 = vld [vmem:[%s9517_s5 + $0x1ef0] sm:$0xf] }
 0x1c4   : > { %1078 = vst [vmem:[%s9521_s6 + $0x6c0] sm:$0xf] %v1077_v48  ;;  %v1205_v48 = vld [vmem:[%s9517_s5 + $0x1f00] sm:$0xf] }
 0x1c5   : > { %1080 = vst [vmem:[%s9521_s6 + $0x6c4] sm:$0xf] %v1079_v49  ;;  %v1207_v49 = vld [vmem:[%s9517_s5 + $0x1f10] sm:$0xf] }
 0x1c6   : > { %1082 = vst [vmem:[%s9521_s6 + $0x6c8] sm:$0xf] %v1081_v50  ;;  %v1209_v50 = vld [vmem:[%s9517_s5 + $0x1f20] sm:$0xf] }
 0x1c7   : > { %1084 = vst [vmem:[%s9521_s6 + $0x6cc] sm:$0xf] %v1083_v51  ;;  %v1211_v51 = vld [vmem:[%s9517_s5 + $0x1f30] sm:$0xf] }
 0x1c8   : > { %1086 = vst [vmem:[%s9521_s6 + $0x6d0] sm:$0xf] %v1085_v52  ;;  %v1213_v52 = vld [vmem:[%s9517_s5 + $0x1f40] sm:$0xf] }
 0x1c9   : > { %1088 = vst [vmem:[%s9521_s6 + $0x6d4] sm:$0xf] %v1087_v53  ;;  %v1215_v53 = vld [vmem:[%s9517_s5 + $0x1f50] sm:$0xf] }
 0x1ca   : > { %1090 = vst [vmem:[%s9521_s6 + $0x6d8] sm:$0xf] %v1089_v54  ;;  %v1217_v54 = vld [vmem:[%s9517_s5 + $0x1f60] sm:$0xf] }
 0x1cb   : > { %1092 = vst [vmem:[%s9521_s6 + $0x6dc] sm:$0xf] %v1091_v55  ;;  %v1219_v55 = vld [vmem:[%s9517_s5 + $0x1f70] sm:$0xf] }
 0x1cc   : > { %1094 = vst [vmem:[%s9521_s6 + $0x6e0] sm:$0xf] %v1093_v56  ;;  %v1221_v56 = vld [vmem:[%s9517_s5 + $0x1f80] sm:$0xf] }
 0x1cd   : > { %1096 = vst [vmem:[%s9521_s6 + $0x6e4] sm:$0xf] %v1095_v57  ;;  %v1223_v57 = vld [vmem:[%s9517_s5 + $0x1f90] sm:$0xf] }
 0x1ce   : > { %1098 = vst [vmem:[%s9521_s6 + $0x6e8] sm:$0xf] %v1097_v58  ;;  %v1225_v58 = vld [vmem:[%s9517_s5 + $0x1fa0] sm:$0xf] }
 0x1cf   : > { %1100 = vst [vmem:[%s9521_s6 + $0x6ec] sm:$0xf] %v1099_v59  ;;  %v1227_v59 = vld [vmem:[%s9517_s5 + $0x1fb0] sm:$0xf] }
 0x1d0   : > { %1102 = vst [vmem:[%s9521_s6 + $0x6f0] sm:$0xf] %v1101_v60  ;;  %v1229_v60 = vld [vmem:[%s9517_s5 + $0x1fc0] sm:$0xf] }
 0x1d1   : > { %1104 = vst [vmem:[%s9521_s6 + $0x6f4] sm:$0xf] %v1103_v61  ;;  %v1231_v61 = vld [vmem:[%s9517_s5 + $0x1fd0] sm:$0xf] }
 0x1d2   : > { %1106 = vst [vmem:[%s9521_s6 + $0x6f8] sm:$0xf] %v1105_v62  ;;  %v1233_v62 = vld [vmem:[%s9517_s5 + $0x1fe0] sm:$0xf] }
 0x1d3   : > { %1108 = vst [vmem:[%s9521_s6 + $0x6fc] sm:$0xf] %v1107_v63  ;;  %v1235_v63 = vld [vmem:[%s9517_s5 + $0x1ff0] sm:$0xf] }
 0x1d4   : > { %1110 = vst [vmem:[%s9521_s6 + $0x700] sm:$0xf] %v1109_v0 }
 0x1d5   : > { %1112 = vst [vmem:[%s9521_s6 + $0x704] sm:$0xf] %v1111_v1 }
 0x1d6   : > { %1114 = vst [vmem:[%s9521_s6 + $0x708] sm:$0xf] %v1113_v2 }
 0x1d7   : > { %1116 = vst [vmem:[%s9521_s6 + $0x70c] sm:$0xf] %v1115_v3 }
 0x1d8   : > { %1118 = vst [vmem:[%s9521_s6 + $0x710] sm:$0xf] %v1117_v4 }
 0x1d9   : > { %1120 = vst [vmem:[%s9521_s6 + $0x714] sm:$0xf] %v1119_v5 }
 0x1da   : > { %1122 = vst [vmem:[%s9521_s6 + $0x718] sm:$0xf] %v1121_v6 }
 0x1db   : > { %1124 = vst [vmem:[%s9521_s6 + $0x71c] sm:$0xf] %v1123_v7 }
 0x1dc   : > { %1126 = vst [vmem:[%s9521_s6 + $0x720] sm:$0xf] %v1125_v8 }
 0x1dd   : > { %1128 = vst [vmem:[%s9521_s6 + $0x724] sm:$0xf] %v1127_v9 }
 0x1de   : > { %1130 = vst [vmem:[%s9521_s6 + $0x728] sm:$0xf] %v1129_v10 }
 0x1df   : > { %1132 = vst [vmem:[%s9521_s6 + $0x72c] sm:$0xf] %v1131_v11 }
 0x1e0   : > { %1134 = vst [vmem:[%s9521_s6 + $0x730] sm:$0xf] %v1133_v12 }
 0x1e1   : > { %1136 = vst [vmem:[%s9521_s6 + $0x734] sm:$0xf] %v1135_v13 }
 0x1e2   : > { %1138 = vst [vmem:[%s9521_s6 + $0x738] sm:$0xf] %v1137_v14 }
 0x1e3   : > { %1140 = vst [vmem:[%s9521_s6 + $0x73c] sm:$0xf] %v1139_v15 }
 0x1e4   : > { %1142 = vst [vmem:[%s9521_s6 + $0x740] sm:$0xf] %v1141_v16 }
 0x1e5   : > { %1144 = vst [vmem:[%s9521_s6 + $0x744] sm:$0xf] %v1143_v17 }
 0x1e6   : > { %1146 = vst [vmem:[%s9521_s6 + $0x748] sm:$0xf] %v1145_v18 }
 0x1e7   : > { %1148 = vst [vmem:[%s9521_s6 + $0x74c] sm:$0xf] %v1147_v19 }
 0x1e8   : > { %1150 = vst [vmem:[%s9521_s6 + $0x750] sm:$0xf] %v1149_v20 }
 0x1e9   : > { %1152 = vst [vmem:[%s9521_s6 + $0x754] sm:$0xf] %v1151_v21 }
 0x1ea   : > { %1154 = vst [vmem:[%s9521_s6 + $0x758] sm:$0xf] %v1153_v22 }
 0x1eb   : > { %1156 = vst [vmem:[%s9521_s6 + $0x75c] sm:$0xf] %v1155_v23 }
 0x1ec   : > { %1158 = vst [vmem:[%s9521_s6 + $0x760] sm:$0xf] %v1157_v24 }
 0x1ed   : > { %1160 = vst [vmem:[%s9521_s6 + $0x764] sm:$0xf] %v1159_v25 }
 0x1ee   : > { %1162 = vst [vmem:[%s9521_s6 + $0x768] sm:$0xf] %v1161_v26 }
 0x1ef   : > { %1164 = vst [vmem:[%s9521_s6 + $0x76c] sm:$0xf] %v1163_v27 }
 0x1f0   : > { %1166 = vst [vmem:[%s9521_s6 + $0x770] sm:$0xf] %v1165_v28 }
 0x1f1   : > { %1168 = vst [vmem:[%s9521_s6 + $0x774] sm:$0xf] %v1167_v29 }
 0x1f2   : > { %1170 = vst [vmem:[%s9521_s6 + $0x778] sm:$0xf] %v1169_v30 }
 0x1f3   : > { %1172 = vst [vmem:[%s9521_s6 + $0x77c] sm:$0xf] %v1171_v31 }
 0x1f4   : > { %1174 = vst [vmem:[%s9521_s6 + $0x780] sm:$0xf] %v1173_v32 }
 0x1f5   : > { %1176 = vst [vmem:[%s9521_s6 + $0x784] sm:$0xf] %v1175_v33 }
 0x1f6   : > { %1178 = vst [vmem:[%s9521_s6 + $0x788] sm:$0xf] %v1177_v34 }
 0x1f7   : > { %1180 = vst [vmem:[%s9521_s6 + $0x78c] sm:$0xf] %v1179_v35 }
 0x1f8   : > { %1182 = vst [vmem:[%s9521_s6 + $0x790] sm:$0xf] %v1181_v36 }
 0x1f9   : > { %1184 = vst [vmem:[%s9521_s6 + $0x794] sm:$0xf] %v1183_v37 }
 0x1fa   : > { %1186 = vst [vmem:[%s9521_s6 + $0x798] sm:$0xf] %v1185_v38 }
 0x1fb   : > { %1188 = vst [vmem:[%s9521_s6 + $0x79c] sm:$0xf] %v1187_v39 }
 0x1fc   : > { %1190 = vst [vmem:[%s9521_s6 + $0x7a0] sm:$0xf] %v1189_v40 }
 0x1fd   : > { %1192 = vst [vmem:[%s9521_s6 + $0x7a4] sm:$0xf] %v1191_v41 }
 0x1fe   : > { %1194 = vst [vmem:[%s9521_s6 + $0x7a8] sm:$0xf] %v1193_v42 }
 0x1ff   : > { %1196 = vst [vmem:[%s9521_s6 + $0x7ac] sm:$0xf] %v1195_v43 }
 0x200   : > { %1198 = vst [vmem:[%s9521_s6 + $0x7b0] sm:$0xf] %v1197_v44 }
 0x201   : > { %1200 = vst [vmem:[%s9521_s6 + $0x7b4] sm:$0xf] %v1199_v45 }
 0x202   : > { %1202 = vst [vmem:[%s9521_s6 + $0x7b8] sm:$0xf] %v1201_v46 }
 0x203   : > { %1204 = vst [vmem:[%s9521_s6 + $0x7bc] sm:$0xf] %v1203_v47 }
 0x204   : > { %1206 = vst [vmem:[%s9521_s6 + $0x7c0] sm:$0xf] %v1205_v48 }
 0x205   : > { %1208 = vst [vmem:[%s9521_s6 + $0x7c4] sm:$0xf] %v1207_v49 }
 0x206   : > { %1210 = vst [vmem:[%s9521_s6 + $0x7c8] sm:$0xf] %v1209_v50 }
 0x207   : > { %1212 = vst [vmem:[%s9521_s6 + $0x7cc] sm:$0xf] %v1211_v51 }
 0x208   : > { %1214 = vst [vmem:[%s9521_s6 + $0x7d0] sm:$0xf] %v1213_v52 }
 0x209   : > { %1216 = vst [vmem:[%s9521_s6 + $0x7d4] sm:$0xf] %v1215_v53 }
 0x20a   : > { %1218 = vst [vmem:[%s9521_s6 + $0x7d8] sm:$0xf] %v1217_v54 }
 0x20b   : > { %1220 = vst [vmem:[%s9521_s6 + $0x7dc] sm:$0xf] %v1219_v55 }
 0x20c   : > { %1222 = vst [vmem:[%s9521_s6 + $0x7e0] sm:$0xf] %v1221_v56 }
 0x20d   : > { %1224 = vst [vmem:[%s9521_s6 + $0x7e4] sm:$0xf] %v1223_v57 }
 0x20e   : > { %1226 = vst [vmem:[%s9521_s6 + $0x7e8] sm:$0xf] %v1225_v58 }
 0x20f   : > { %1228 = vst [vmem:[%s9521_s6 + $0x7ec] sm:$0xf] %v1227_v59 }
 0x210   : > { %1230 = vst [vmem:[%s9521_s6 + $0x7f0] sm:$0xf] %v1229_v60 }
 0x211   : > { %1232 = vst [vmem:[%s9521_s6 + $0x7f4] sm:$0xf] %v1231_v61 }
 0x212   : > { %1234 = vst [vmem:[%s9521_s6 + $0x7f8] sm:$0xf] %v1233_v62 }
 0x213   : > { %1236 = vst [vmem:[%s9521_s6 + $0x7fc] sm:$0xf] %v1235_v63 }
 0x214 PF: > { %p7746_p8 = scmp.ge.s32.totalorder %s9442_s19, 1  ;;  %p4357_p9 = scmp.lt.s32.totalorder %s9442_s19, 5 }
 0x216   : > { %p4358_p10 = pnand %p7746_p8, %p4357_p9 }
 0x217   : > { %s4364_s7 = sand.u32 (!%p4358_p10), 1, %s9426_s15   ;;  %p4418_p11 = scmp.lt.s32.totalorder (!%p4358_p10), %s9434_s17, 3 }
 0x218   : > { %4361 = sbr.rel (%p4358_p10) target bundleno = 976 (0x3d0), region = 76  ;;  %s7747_s8 = sshll.u32 (!%p4358_p10), %s4364_s7, 11 }
 0x219   : > { %s10550_s9 = scalar_lea.vmem (!%p4358_p10), [#allocation2], %s7747_s8  ;;  %s7748_s6 = sshll.u32 (!%p4358_p10), %s4364_s7, 4 }
 0x21a   : > { %s11221_s8 = scalar_lea.vmem (!%p4358_p10), [#allocation3], %s7748_s6 }
 0x21d   : > { %v9104_v0 = vld [vmem:[%s10550_s9 + $0x38] sm:$0xff]  ;;  %v9103_v4 = vld [vmem:[%s10550_s9 + $0x30] sm:$0xff]  ;;  %v9102_v8 = vld [vmem:[%s10550_s9 + $0x28] sm:$0xff]  ;;  %s4419_s15 = scalar_select %p4418_p11, %s9434_s17, 3 }
 0x21e   : > { %v9112_v1 = vld [vmem:[%s10550_s9 + $0x78] sm:$0xff]  ;;  %6862 = vmatpush.bf16.msra.mxu0 %v9104_v0  ;;  %v9111_v5 = vld [vmem:[%s10550_s9 + $0x70] sm:$0xff]  ;;  %v9110_v9 = vld [vmem:[%s10550_s9 + $0x68] sm:$0xff]  ;;  %s9030_s14 = sshll.u32 (%p9504_p6), %s9434_s17, 2 }
 0x21f   : > { %v9120_v2 = vld [vmem:[%s10550_s9 + $0xb8] sm:$0xff]  ;;  %6881 = vmatpush.bf16.msra.mxu1 %v9112_v1  ;;  %v9119_v6 = vld [vmem:[%s10550_s9 + $0xb0] sm:$0xff]  ;;  %v9118_v10 = vld [vmem:[%s10550_s9 + $0xa8] sm:$0xff]  ;;  %s4422_s11 = scalar_lea.vmem %s11261_s3, %s4419_s15  ;;  %s4429_s13 = scalar_lea.vmem %s11262_s4, %s4419_s15 }
 0x220   : > { %v9128_v3 = vld [vmem:[%s10550_s9 + $0xf8] sm:$0xff]  ;;  %6900 = vmatpush.bf16.msra.mxu2 %v9120_v2  ;;  %v9127_v7 = vld [vmem:[%s10550_s9 + $0xf0] sm:$0xff]  ;;  %v9126_v11 = vld [vmem:[%s10550_s9 + $0xe8] sm:$0xff]  ;;  %s7527_s23 = scalar_lea.vmem (%p9504_p6), %s11260_s2, %s9030_s14 }
 0x221   : > { %6919 = vmatpush.bf16.msra.mxu3 %v9128_v3  ;;  %v9101_v12 = vld [vmem:[%s10550_s9 + $0x20] sm:$0xff]  ;;  %v9100_v16 = vld [vmem:[%s10550_s9 + $0x18] sm:$0xff]  ;;  %v9099_v20 = vld [vmem:[%s10550_s9 + $0x10] sm:$0xff] }
 0x222   : > { %6863 = vmatpush.bf16.msra.mxu0 %v9103_v4  ;;  %v9109_v13 = vld [vmem:[%s10550_s9 + $0x60] sm:$0xff]  ;;  %v9108_v17 = vld [vmem:[%s10550_s9 + $0x58] sm:$0xff]  ;;  %v9107_v21 = vld [vmem:[%s10550_s9 + $0x50] sm:$0xff] }
 0x223   : > { %6882 = vmatpush.bf16.msra.mxu1 %v9111_v5  ;;  %v9117_v14 = vld [vmem:[%s10550_s9 + $0xa0] sm:$0xff]  ;;  %v9116_v18 = vld [vmem:[%s10550_s9 + $0x98] sm:$0xff]  ;;  %v9115_v22 = vld [vmem:[%s10550_s9 + $0x90] sm:$0xff] }
 0x224   : > { %6901 = vmatpush.bf16.msra.mxu2 %v9119_v6  ;;  %v9125_v15 = vld [vmem:[%s10550_s9 + $0xe0] sm:$0xff]  ;;  %v9124_v19 = vld [vmem:[%s10550_s9 + $0xd8] sm:$0xff]  ;;  %v9123_v23 = vld [vmem:[%s10550_s9 + $0xd0] sm:$0xff] }
 0x225   : > { %6920 = vmatpush.bf16.msra.mxu3 %v9127_v7  ;;  %v9098_v24 = vld [vmem:[%s10550_s9 + $0x8] sm:$0xff]  ;;  %v9097_v28 = vld [vmem:[%s10550_s9] sm:$0xff]  ;;  %v9152_v40 = vld [vmem:[%s10550_s9 + $0x1b8] sm:$0xff] }
 0x226   : > { %6864 = vmatpush.bf16.msra.mxu0 %v9102_v8  ;;  %v9106_v25 = vld [vmem:[%s10550_s9 + $0x48] sm:$0xff]  ;;  %v7751_v29 = vld [vmem:[%s11258_s0] sm:$0xf]  ;;  %v9033_v34 = vld [vmem:[%s11258_s0 + $0x4] sm:$0xf] }
 0x227   : > { %6883 = vmatpush.bf16.msra.mxu1 %v9110_v9  ;;  %v9114_v26 = vld [vmem:[%s10550_s9 + $0x88] sm:$0xff]  ;;  %v9049_v30 = vld [vmem:[%s11258_s0 + $0x7c] sm:$0xf0]  ;;  %v7753_v35 = vld [vmem:[%s11258_s0 + $0x80] sm:$0xf0] }
 0x228   : > { %6902 = vmatpush.bf16.msra.mxu2 %v9118_v10  ;;  %v9122_v27 = vld [vmem:[%s10550_s9 + $0xc8] sm:$0xff]  ;;  %v9105_v31 = vld [vmem:[%s10550_s9 + $0x40] sm:$0xff]  ;;  %v9136_v41 = vld [vmem:[%s10550_s9 + $0x138] sm:$0xff]  ;;  %v7752_v42 = vor.u32 %v9049_v30, %v7751_v29  ;;  %v7756_v43 = vor.u32 %v9033_v34, %v7753_v35 }
 0x229   : > { %6921 = vmatpush.bf16.msra.mxu3 %v9126_v11  ;;  %v9113_v32 = vld [vmem:[%s10550_s9 + $0x80] sm:$0xff]  ;;  %v7759_v36 = vld [vmem:[%s11258_s0 + $0x8] sm:$0xf]  ;;  %v9034_v38 = vld [vmem:[%s11258_s0 + $0xc] sm:$0xf] }
 0x22a   : > { %6865 = vmatpush.bf16.msra.mxu0 %v9101_v12  ;;  %v9121_v33 = vld [vmem:[%s10550_s9 + $0xc0] sm:$0xff]  ;;  %v9050_v37 = vld [vmem:[%s11258_s0 + $0x84] sm:$0xf0]  ;;  %v7761_v39 = vld [vmem:[%s11258_s0 + $0x88] sm:$0xf0] }
 0x22b   : > { %6884 = vmatpush.bf16.msra.mxu1 %v9109_v13  ;;  %v7760_v44 = vor.u32 %v9050_v37, %v7759_v36  ;;  %v7764_v45 = vor.u32 %v9034_v38, %v7761_v39  ;;  %v9144_v46 = vld [vmem:[%s10550_s9 + $0x178] sm:$0xff]  ;;  %v9151_v48 = vld [vmem:[%s10550_s9 + $0x1b0] sm:$0xff]  ;;  %v9150_v52 = vld [vmem:[%s10550_s9 + $0x1a8] sm:$0xff] }
 0x22c   : > { %6903 = vmatpush.bf16.msra.mxu2 %v9117_v14  ;;  %v9160_v47 = vld [vmem:[%s10550_s9 + $0x1f8] sm:$0xff]  ;;  %v9135_v49 = vld [vmem:[%s10550_s9 + $0x130] sm:$0xff]  ;;  %v9134_v53 = vld [vmem:[%s10550_s9 + $0x128] sm:$0xff] }
 0x22d   : > { %6922 = vmatpush.bf16.msra.mxu3 %v9125_v15  ;;  %v9143_v50 = vld [vmem:[%s10550_s9 + $0x170] sm:$0xff]  ;;  %v9142_v54 = vld [vmem:[%s10550_s9 + $0x168] sm:$0xff]  ;;  %v9149_v56 = vld [vmem:[%s10550_s9 + $0x1a0] sm:$0xff] }
 0x22e   : > { %6866 = vmatpush.bf16.msra.mxu0 %v9100_v16  ;;  %v9159_v51 = vld [vmem:[%s10550_s9 + $0x1f0] sm:$0xff]  ;;  %v9158_v55 = vld [vmem:[%s10550_s9 + $0x1e8] sm:$0xff]  ;;  %v9133_v57 = vld [vmem:[%s10550_s9 + $0x120] sm:$0xff] }
 0x22f   : > { %6885 = vmatpush.bf16.msra.mxu1 %v9108_v17  ;;  %v9141_v58 = vld [vmem:[%s10550_s9 + $0x160] sm:$0xff]  ;;  %v7887_v0 = vld [vmem:[%s11258_s0 + $0x108] sm:$0xf]  ;;  %v9066_v2 = vld [vmem:[%s11258_s0 + $0x10c] sm:$0xf] }
 0x230   : > { %6904 = vmatpush.bf16.msra.mxu2 %v9116_v18  ;;  %v9157_v59 = vld [vmem:[%s10550_s9 + $0x1e0] sm:$0xff]  ;;  %v9082_v1 = vld [vmem:[%s11258_s0 + $0x184] sm:$0xf0]  ;;  %v7889_v3 = vld [vmem:[%s11258_s0 + $0x188] sm:$0xf0] }
 0x231   : > { %6923 = vmatpush.bf16.msra.mxu3 %v9124_v19  ;;  %v7879_v60 = vld [vmem:[%s11258_s0 + $0x100] sm:$0xf]  ;;  %v9065_v62 = vld [vmem:[%s11258_s0 + $0x104] sm:$0xf]  ;;  %v9148_v4 = vld [vmem:[%s10550_s9 + $0x198] sm:$0xff]  ;;  %v7888_v8 = vor.u32 %v9082_v1, %v7887_v0  ;;  %v7892_v9 = vor.u32 %v9066_v2, %v7889_v3 }
 0x232   : > { %6867 = vmatpush.bf16.msra.mxu0 %v9099_v20  ;;  %v9081_v61 = vld [vmem:[%s11258_s0 + $0x17c] sm:$0xf0]  ;;  %v7881_v63 = vld [vmem:[%s11258_s0 + $0x180] sm:$0xf0]  ;;  %v9132_v5 = vld [vmem:[%s10550_s9 + $0x118] sm:$0xff] }
 0x233   : > { %6886 = vmatpush.bf16.msra.mxu1 %v9107_v21  ;;  %v7880_v6 = vor.u32 %v9081_v61, %v7879_v60  ;;  %v7884_v7 = vor.u32 %v9065_v62, %v7881_v63  ;;  %v9140_v10 = vld [vmem:[%s10550_s9 + $0x158] sm:$0xff]  ;;  %v9147_v12 = vld [vmem:[%s10550_s9 + $0x190] sm:$0xff]  ;;  %v9146_v16 = vld [vmem:[%s10550_s9 + $0x188] sm:$0xff] }
 0x234   : > { %6905 = vmatpush.bf16.msra.mxu2 %v9115_v22  ;;  %v9156_v11 = vld [vmem:[%s10550_s9 + $0x1d8] sm:$0xff]  ;;  %v9131_v13 = vld [vmem:[%s10550_s9 + $0x110] sm:$0xff]  ;;  %v9130_v17 = vld [vmem:[%s10550_s9 + $0x108] sm:$0xff] }
 0x235   : > { %6924 = vmatpush.bf16.msra.mxu3 %v9123_v23  ;;  %v9139_v14 = vld [vmem:[%s10550_s9 + $0x150] sm:$0xff]  ;;  %v9138_v18 = vld [vmem:[%s10550_s9 + $0x148] sm:$0xff]  ;;  %v9145_v20 = vld [vmem:[%s10550_s9 + $0x180] sm:$0xff] }
 0x236   : > { %6868 = vmatpush.bf16.msra.mxu0 %v9098_v24  ;;  %v9155_v15 = vld [vmem:[%s10550_s9 + $0x1d0] sm:$0xff]  ;;  %v9154_v19 = vld [vmem:[%s10550_s9 + $0x1c8] sm:$0xff]  ;;  %v9129_v21 = vld [vmem:[%s10550_s9 + $0x100] sm:$0xff] }
 0x237   : > { %6887 = vmatpush.bf16.msra.mxu1 %v9106_v25  ;;  %v9137_v22 = vld [vmem:[%s10550_s9 + $0x140] sm:$0xff]  ;;  %v7767_v24 = vld [vmem:[%s11258_s0 + $0x10] sm:$0xf]  ;;  %v9184_v25 = vld [vmem:[%s10550_s9 + $0x2b8] sm:$0xff] }
 0x238   : > { %6906 = vmatpush.bf16.msra.mxu2 %v9114_v26  ;;  %v9153_v23 = vld [vmem:[%s10550_s9 + $0x1c0] sm:$0xff]  ;;  %v9168_v26 = vld [vmem:[%s10550_s9 + $0x238] sm:$0xff]  ;;  %v7769_v29 = vld [vmem:[%s11258_s0 + $0x90] sm:$0xf0] }
 0x239   : > { %6925 = vmatpush.bf16.msra.mxu3 %v9122_v27  ;;  %v9051_v27 = vld [vmem:[%s11258_s0 + $0x8c] sm:$0xf0]  ;;  %v7775_v30 = vld [vmem:[%s11258_s0 + $0x18] sm:$0xf]  ;;  %v7905_v61 = vld [vmem:[%s11258_s0 + $0x198] sm:$0xf0] }
 0x23a   : > { %6869 = vmatpush.bf16.msra.mxu0 %v9097_v28  ;;  %v9035_v28 = vld [vmem:[%s11258_s0 + $0x14] sm:$0xf]  ;;  %v9176_v34 = vld [vmem:[%s10550_s9 + $0x278] sm:$0xff]  ;;  %v7768_v36 = vor.u32 %v9051_v27, %v7767_v24  ;;  %v7785_v24 = vld [vmem:[%s11258_s0 + $0xa0] sm:$0xf0] }
 0x23b   : > { %6888 = vmatpush.bf16.msra.mxu1 %v9105_v31  ;;  %v9052_v31 = vld [vmem:[%s11258_s0 + $0x94] sm:$0xf0]  ;;  %v9183_v37 = vld [vmem:[%s10550_s9 + $0x2b0] sm:$0xff]  ;;  %v7772_v38 = vor.u32 %v9035_v28, %v7769_v29  ;;  %v9038_v27 = vld [vmem:[%s11258_s0 + $0x2c] sm:$0xf] }
 0x23c   : > { %6907 = vmatpush.bf16.msra.mxu2 %v9113_v32  ;;  %v9036_v32 = vld [vmem:[%s11258_s0 + $0x1c] sm:$0xf]  ;;  %v7776_v39 = vor.u32 %v9052_v31, %v7775_v30  ;;  %v9179_v1 = vld [vmem:[%s10550_s9 + $0x290] sm:$0xff]  ;;  %v7793_v28 = vld [vmem:[%s11258_s0 + $0xa8] sm:$0xf0] }
 0x23d   : > { %6926 = vmatpush.bf16.msra.mxu3 %v9121_v33  ;;  %6870 = vmatmul.bf16.vlgmr.msra.gmra.mxu0 %v7752_v42  ;;  %v7777_v33 = vld [vmem:[%s11258_s0 + $0x98] sm:$0xf0]  ;;  %v9175_v42 = vld [vmem:[%s10550_s9 + $0x270] sm:$0xff] }
 0x23e   : > { %6938 = vmatpush.bf16.msrb.mxu0 %v9136_v41  ;;  %6889 = vmatmul.bf16.vlgmr.msra.gmra.mxu1 %v7756_v43  ;;  %v9192_v35 = vld [vmem:[%s10550_s9 + $0x2f8] sm:$0xff]  ;;  %v9167_v41 = vld [vmem:[%s10550_s9 + $0x230] sm:$0xff] }
 0x23f   : > { %6908 = vmatmul.bf16.vlgmr.msra.gmra.mxu2 %v7760_v44  ;;  %6957 = vmatpush.bf16.msrb.mxu1 %v9144_v46  ;;  %v9191_v43 = vld [vmem:[%s10550_s9 + $0x2f0] sm:$0xff]  ;;  %v9182_v44 = vld [vmem:[%s10550_s9 + $0x2a8] sm:$0xff]  ;;  %v9164_v60 = vld [vmem:[%s10550_s9 + $0x218] sm:$0xff] }
 0x240   : > { %6976 = vmatpush.bf16.msrb.mxu2 %v9152_v40  ;;  %6927 = vmatmul.bf16.vlgmr.msra.gmra.mxu3 %v7764_v45  ;;  %v7780_v40 = vor.u32 %v9036_v32, %v7777_v33  ;;  %v9166_v45 = vld [vmem:[%s10550_s9 + $0x228] sm:$0xff]  ;;  %v9172_v62 = vld [vmem:[%s10550_s9 + $0x258] sm:$0xff]  ;;  %v9207_v30 = vld [vmem:[%s10550_s9 + $0x370] sm:$0xff]  ;;  %v7796_v33 = vor.u32 %v9038_v27, %v7793_v28 }
 0x241   : > { %6995 = vmatpush.bf16.msrb.mxu3 %v9160_v47  ;;  %v9174_v46 = vld [vmem:[%s10550_s9 + $0x268] sm:$0xff]  ;;  %v9188_v63 = vld [vmem:[%s10550_s9 + $0x2d8] sm:$0xff] }
 0x242   : > { %6939 = vmatpush.bf16.msrb.mxu0 %v9135_v49  ;;  %v9190_v47 = vld [vmem:[%s10550_s9 + $0x2e8] sm:$0xff]  ;;  %v9165_v49 = vld [vmem:[%s10550_s9 + $0x220] sm:$0xff] }
 0x243   : > { %6958 = vmatpush.bf16.msrb.mxu1 %v9143_v50  ;;  %v9173_v50 = vld [vmem:[%s10550_s9 + $0x260] sm:$0xff]  ;;  %v9246_v28 = vld [vmem:[%s10550_s9 + $0x4a8] sm:$0xff] }
 0x244   : > { %6977 = vmatpush.bf16.msrb.mxu2 %v9151_v48  ;;  %v9181_v48 = vld [vmem:[%s10550_s9 + $0x2a0] sm:$0xff] }
 0x245   : > { %6996 = vmatpush.bf16.msrb.mxu3 %v9159_v51  ;;  %v9189_v51 = vld [vmem:[%s10550_s9 + $0x2e0] sm:$0xff] }
 0x246   : > { %6940 = vmatpush.bf16.msrb.mxu0 %v9134_v53  ;;  %v9083_v53 = vld [vmem:[%s11258_s0 + $0x18c] sm:$0xf0] }
 0x247   : > { %6959 = vmatpush.bf16.msrb.mxu1 %v9142_v54  ;;  %v9180_v54 = vld [vmem:[%s10550_s9 + $0x298] sm:$0xff] }
 0x248   : > { %6978 = vmatpush.bf16.msrb.mxu2 %v9150_v52  ;;  %v7895_v52 = vld [vmem:[%s11258_s0 + $0x110] sm:$0xf] }
 0x249   : > { %6997 = vmatpush.bf16.msrb.mxu3 %v9158_v55  ;;  %v9067_v55 = vld [vmem:[%s11258_s0 + $0x114] sm:$0xf]  ;;  %v7896_v0 = vor.u32 %v9083_v53, %v7895_v52  ;;  %v9070_v52 = vld [vmem:[%s11258_s0 + $0x12c] sm:$0xf]  ;;  %v9196_v53 = vld [vmem:[%s10550_s9 + $0x318] sm:$0xff] }
 0x24a   : > { %6941 = vmatpush.bf16.msrb.mxu0 %v9133_v57  ;;  %v7903_v57 = vld [vmem:[%s11258_s0 + $0x118] sm:$0xf] }
 0x24b   : > { %6960 = vmatpush.bf16.msrb.mxu1 %v9141_v58  ;;  %v9084_v58 = vld [vmem:[%s11258_s0 + $0x194] sm:$0xf0] }
 0x24c   : > { %6979 = vmatpush.bf16.msrb.mxu2 %v9149_v56  ;;  %v7897_v56 = vld [vmem:[%s11258_s0 + $0x190] sm:$0xf0]  ;;  %v7904_v3 = vor.u32 %v9084_v58, %v7903_v57 }
 0x24d   : > { %6998 = vmatpush.bf16.msrb.mxu3 %v9157_v59  ;;  %6875 = vmatmul.bf16.gmra.mxu0 %v7880_v6  ;;  %v9068_v59 = vld [vmem:[%s11258_s0 + $0x11c] sm:$0xf]  ;;  %v7900_v2 = vor.u32 %v9067_v55, %v7897_v56  ;;  %v9171_v6 = vld [vmem:[%s10550_s9 + $0x250] sm:$0xff] }
 0x24e   : > { %6942 = vmatpush.bf16.msrb.mxu0 %v9132_v5  ;;  %6894 = vmatmul.bf16.gmra.mxu1 %v7884_v7  ;;  %v9163_v5 = vld [vmem:[%s10550_s9 + $0x210] sm:$0xff]  ;;  %v9220_v55 = vld [vmem:[%s10550_s9 + $0x3d8] sm:$0xff] }
 0x24f   : > { %6913 = vmatmul.bf16.gmra.mxu2 %v7888_v8  ;;  %6961 = vmatpush.bf16.msrb.mxu1 %v9140_v10  ;;  %v9187_v7 = vld [vmem:[%s10550_s9 + $0x2d0] sm:$0xff]  ;;  %v9178_v8 = vld [vmem:[%s10550_s9 + $0x288] sm:$0xff] }
 0x250   : > { %6980 = vmatpush.bf16.msrb.mxu2 %v9148_v4  ;;  %6932 = vmatmul.bf16.gmra.mxu3 %v7892_v9  ;;  %v7908_v4 = vor.u32 %v9068_v59, %v7905_v61  ;;  %v9162_v9 = vld [vmem:[%s10550_s9 + $0x208] sm:$0xff]  ;;  %v9211_v56 = vld [vmem:[%s10550_s9 + $0x390] sm:$0xff] }
 0x251   : > { %6999 = vmatpush.bf16.msrb.mxu3 %v9156_v11  ;;  %v9170_v10 = vld [vmem:[%s10550_s9 + $0x248] sm:$0xff]  ;;  %v9203_v58 = vld [vmem:[%s10550_s9 + $0x350] sm:$0xff] }
 0x252   : > { %6943 = vmatpush.bf16.msrb.mxu0 %v9131_v13  ;;  %v9186_v11 = vld [vmem:[%s10550_s9 + $0x2c8] sm:$0xff]  ;;  %v9216_v13 = vld [vmem:[%s10550_s9 + $0x3b8] sm:$0xff] }
 0x253   : > { %6962 = vmatpush.bf16.msrb.mxu1 %v9139_v14  ;;  %v9161_v14 = vld [vmem:[%s10550_s9 + $0x200] sm:$0xff] }
 0x254   : > { %6981 = vmatpush.bf16.msrb.mxu2 %v9147_v12  ;;  %v9177_v12 = vld [vmem:[%s10550_s9 + $0x280] sm:$0xff] }
 0x255   : > { %7000 = vmatpush.bf16.msrb.mxu3 %v9155_v15  ;;  %v9169_v15 = vld [vmem:[%s10550_s9 + $0x240] sm:$0xff] }
 0x256   : > { %6944 = vmatpush.bf16.msrb.mxu0 %v9130_v17  ;;  %v7783_v17 = vld [vmem:[%s11258_s0 + $0x20] sm:$0xf] }
 0x257   : > { %6963 = vmatpush.bf16.msrb.mxu1 %v9138_v18  ;;  %v9053_v18 = vld [vmem:[%s11258_s0 + $0x9c] sm:$0xf0] }
 0x258   : > { %6982 = vmatpush.bf16.msrb.mxu2 %v9146_v16  ;;  %v9185_v16 = vld [vmem:[%s10550_s9 + $0x2c0] sm:$0xff]  ;;  %v7784_v29 = vor.u32 %v9053_v18, %v7783_v17  ;;  %v7801_v17 = vld [vmem:[%s11258_s0 + $0xb0] sm:$0xf0]  ;;  %v7807_v18 = vld [vmem:[%s11258_s0 + $0x38] sm:$0xf] }
 0x259   : > { %7001 = vmatpush.bf16.msrb.mxu3 %v9154_v19  ;;  %v9200_v19 = vld [vmem:[%s10550_s9 + $0x338] sm:$0xff] }
 0x25a   : > { %6945 = vmatpush.bf16.msrb.mxu0 %v9129_v21  ;;  %v9037_v21 = vld [vmem:[%s11258_s0 + $0x24] sm:$0xf] }
 0x25b   : > { %6964 = vmatpush.bf16.msrb.mxu1 %v9137_v22  ;;  %v9224_v22 = vld [vmem:[%s10550_s9 + $0x3f8] sm:$0xff]  ;;  %v7788_v31 = vor.u32 %v9037_v21, %v7785_v24  ;;  %v9255_v24 = vld [vmem:[%s10550_s9 + $0x4f0] sm:$0xff] }
 0x25c   : > { %6983 = vmatpush.bf16.msrb.mxu2 %v9145_v20  ;;  %v9208_v20 = vld [vmem:[%s10550_s9 + $0x378] sm:$0xff] }
 0x25d   : > { %7002 = vmatpush.bf16.msrb.mxu3 %v9153_v23  ;;  %6946 = vmatmul.bf16.vlgmr.msrb.gmra.mxu0 %v7768_v36  ;;  %v9215_v23 = vld [vmem:[%s10550_s9 + $0x3b0] sm:$0xff]  ;;  %v9214_v36 = vld [vmem:[%s10550_s9 + $0x3a8] sm:$0xff]  ;;  %v7809_v21 = vld [vmem:[%s11258_s0 + $0xb8] sm:$0xf0] }
 0x25e   : > { %7014 = vmatpush.bf16.msra.mxu0 %v9168_v26  ;;  %6965 = vmatmul.bf16.vlgmr.msrb.gmra.mxu1 %v7772_v38  ;;  %v9054_v26 = vld [vmem:[%s11258_s0 + $0xa4] sm:$0xf0] }
 0x25f   : > { %7033 = vmatpush.bf16.msra.mxu1 %v9176_v34  ;;  %6984 = vmatmul.bf16.vlgmr.msrb.gmra.mxu2 %v7776_v39  ;;  %v9199_v34 = vld [vmem:[%s10550_s9 + $0x330] sm:$0xff]  ;;  %v9198_v38 = vld [vmem:[%s10550_s9 + $0x328] sm:$0xff] }
 0x260   : > { %7052 = vmatpush.bf16.msra.mxu2 %v9184_v25  ;;  %7003 = vmatmul.bf16.vlgmr.msrb.gmra.mxu3 %v7780_v40  ;;  %v7791_v25 = vld [vmem:[%s11258_s0 + $0x28] sm:$0xf]  ;;  %v9213_v40 = vld [vmem:[%s10550_s9 + $0x3a0] sm:$0xff] }
 0x261   : > { %7071 = vmatpush.bf16.msra.mxu3 %v9192_v35  ;;  %v7792_v32 = vor.u32 %v9054_v26, %v7791_v25  ;;  %v9223_v35 = vld [vmem:[%s10550_s9 + $0x3f0] sm:$0xff]  ;;  %v9222_v39 = vld [vmem:[%s10550_s9 + $0x3e8] sm:$0xff] }
 0x262   : > { %7015 = vmatpush.bf16.msra.mxu0 %v9167_v41  ;;  %v9205_v41 = vld [vmem:[%s10550_s9 + $0x360] sm:$0xff] }
 0x263   : > { %7034 = vmatpush.bf16.msra.mxu1 %v9175_v42  ;;  %v9197_v42 = vld [vmem:[%s10550_s9 + $0x320] sm:$0xff] }
 0x264   : > { %7053 = vmatpush.bf16.msra.mxu2 %v9183_v37  ;;  %v9206_v37 = vld [vmem:[%s10550_s9 + $0x368] sm:$0xff] }
 0x265   : > { %7072 = vmatpush.bf16.msra.mxu3 %v9191_v43  ;;  %v9221_v43 = vld [vmem:[%s10550_s9 + $0x3e0] sm:$0xff] }
 0x266   : > { %7016 = vmatpush.bf16.msra.mxu0 %v9166_v45  ;;  %v7911_v45 = vld [vmem:[%s11258_s0 + $0x120] sm:$0xf] }
 0x267   : > { %7035 = vmatpush.bf16.msra.mxu1 %v9174_v46  ;;  %v9085_v46 = vld [vmem:[%s11258_s0 + $0x19c] sm:$0xf0] }
 0x268   : > { %7054 = vmatpush.bf16.msra.mxu2 %v9182_v44  ;;  %v9212_v44 = vld [vmem:[%s10550_s9 + $0x398] sm:$0xff]  ;;  %v7912_v57 = vor.u32 %v9085_v46, %v7911_v45 }
 0x269   : > { %7073 = vmatpush.bf16.msra.mxu3 %v9190_v47  ;;  %v9204_v47 = vld [vmem:[%s10550_s9 + $0x358] sm:$0xff] }
 0x26a   : > { %7017 = vmatpush.bf16.msra.mxu0 %v9165_v49  ;;  %v7913_v49 = vld [vmem:[%s11258_s0 + $0x1a0] sm:$0xf0]  ;;  %v9088_v45 = vld [vmem:[%s11258_s0 + $0x1b4] sm:$0xf0]  ;;  %v9072_v46 = vld [vmem:[%s11258_s0 + $0x13c] sm:$0xf] }
 0x26b   : > { %7036 = vmatpush.bf16.msra.mxu1 %v9173_v50  ;;  %v7919_v50 = vld [vmem:[%s11258_s0 + $0x128] sm:$0xf] }
 0x26c   : > { %7055 = vmatpush.bf16.msra.mxu2 %v9181_v48  ;;  %v9069_v48 = vld [vmem:[%s11258_s0 + $0x124] sm:$0xf] }
 0x26d   : > { %7074 = vmatpush.bf16.msra.mxu3 %v9189_v51  ;;  %6951 = vmatmul.bf16.gmra.mxu0 %v7896_v0  ;;  %v9086_v51 = vld [vmem:[%s11258_s0 + $0x1a4] sm:$0xf0]  ;;  %v7916_v59 = vor.u32 %v9069_v48, %v7913_v49  ;;  %v7937_v48 = vld [vmem:[%s11258_s0 + $0x1b8] sm:$0xf0]  ;;  %v9227_v49 = vld [vmem:[%s10550_s9 + $0x410] sm:$0xff] }
 0x26e   : > { %7018 = vmatpush.bf16.msra.mxu0 %v9164_v60  ;;  %6970 = vmatmul.bf16.gmra.mxu1 %v7900_v2  ;;  %v7920_v60 = vor.u32 %v9086_v51, %v7919_v50  ;;  %v9210_v0 = vld [vmem:[%s10550_s9 + $0x388] sm:$0xff]  ;;  %v9235_v50 = vld [vmem:[%s10550_s9 + $0x450] sm:$0xff] }
 0x26f   : > { %7037 = vmatpush.bf16.msra.mxu1 %v9172_v62  ;;  %6989 = vmatmul.bf16.gmra.mxu2 %v7904_v3  ;;  %v9195_v62 = vld [vmem:[%s10550_s9 + $0x310] sm:$0xff]  ;;  %v9194_v2 = vld [vmem:[%s10550_s9 + $0x308] sm:$0xff] }
 0x270   : > { %7056 = vmatpush.bf16.msra.mxu2 %v9180_v54  ;;  %7008 = vmatmul.bf16.gmra.mxu3 %v7908_v4  ;;  %v7921_v54 = vld [vmem:[%s11258_s0 + $0x1a8] sm:$0xf0]  ;;  %v9209_v4 = vld [vmem:[%s10550_s9 + $0x380] sm:$0xff] }
 0x271   : > { %7075 = vmatpush.bf16.msra.mxu3 %v9188_v63  ;;  %v7924_v61 = vor.u32 %v9070_v52, %v7921_v54  ;;  %v9219_v63 = vld [vmem:[%s10550_s9 + $0x3d0] sm:$0xff]  ;;  %v9218_v3 = vld [vmem:[%s10550_s9 + $0x3c8] sm:$0xff] }
 0x272   : > { %7019 = vmatpush.bf16.msra.mxu0 %v9163_v5  ;;  %v9201_v5 = vld [vmem:[%s10550_s9 + $0x340] sm:$0xff]  ;;  %v9251_v52 = vld [vmem:[%s10550_s9 + $0x4d0] sm:$0xff] }
 0x273   : > { %7038 = vmatpush.bf16.msra.mxu1 %v9171_v6  ;;  %v9248_v6 = vld [vmem:[%s10550_s9 + $0x4b8] sm:$0xff] }
 0x274   : > { %7057 = vmatpush.bf16.msra.mxu2 %v9179_v1  ;;  %v9202_v1 = vld [vmem:[%s10550_s9 + $0x348] sm:$0xff] }
 0x275   : > { %7076 = vmatpush.bf16.msra.mxu3 %v9187_v7  ;;  %v9240_v7 = vld [vmem:[%s10550_s9 + $0x478] sm:$0xff] }
 0x276   : > { %7020 = vmatpush.bf16.msra.mxu0 %v9162_v9  ;;  %v9217_v9 = vld [vmem:[%s10550_s9 + $0x3c0] sm:$0xff] }
 0x277   : > { %7039 = vmatpush.bf16.msra.mxu1 %v9170_v10  ;;  %v9232_v10 = vld [vmem:[%s10550_s9 + $0x438] sm:$0xff] }
 0x278   : > { %7058 = vmatpush.bf16.msra.mxu2 %v9178_v8  ;;  %v9193_v8 = vld [vmem:[%s10550_s9 + $0x300] sm:$0xff] }
 0x279   : > { %7077 = vmatpush.bf16.msra.mxu3 %v9186_v11  ;;  %v7799_v11 = vld [vmem:[%s11258_s0 + $0x30] sm:$0xf] }
 0x27a   : > { %7021 = vmatpush.bf16.msra.mxu0 %v9161_v14  ;;  %v9055_v14 = vld [vmem:[%s11258_s0 + $0xac] sm:$0xf0] }
 0x27b   : > { %7040 = vmatpush.bf16.msra.mxu1 %v9169_v15  ;;  %v9039_v15 = vld [vmem:[%s11258_s0 + $0x34] sm:$0xf] }
 0x27c   : > { %7059 = vmatpush.bf16.msra.mxu2 %v9177_v12  ;;  %v9256_v12 = vld [vmem:[%s10550_s9 + $0x4f8] sm:$0xff]  ;;  %v7804_v25 = vor.u32 %v9039_v15, %v7801_v17  ;;  %v7825_v15 = vld [vmem:[%s11258_s0 + $0xc8] sm:$0xf0] }
 0x27d   : > { %7078 = vmatpush.bf16.msra.mxu3 %v9185_v16  ;;  %7022 = vmatmul.bf16.vlgmr.msra.gmra.mxu0 %v7784_v29  ;;  %v9239_v16 = vld [vmem:[%s10550_s9 + $0x470] sm:$0xff]  ;;  %v9230_v29 = vld [vmem:[%s10550_s9 + $0x428] sm:$0xff] }
 0x27e   : > { %7090 = vmatpush.bf16.msrb.mxu0 %v9200_v19  ;;  %7041 = vmatmul.bf16.vlgmr.msra.gmra.mxu1 %v7788_v31  ;;  %v9056_v19 = vld [vmem:[%s11258_s0 + $0xb4] sm:$0xf0]  ;;  %v9254_v31 = vld [vmem:[%s10550_s9 + $0x4e8] sm:$0xff] }
 0x27f   : > { %7109 = vmatpush.bf16.msrb.mxu1 %v9208_v20  ;;  %7060 = vmatmul.bf16.vlgmr.msra.gmra.mxu2 %v7792_v32  ;;  %v9040_v20 = vld [vmem:[%s11258_s0 + $0x3c] sm:$0xf]  ;;  %v7808_v26 = vor.u32 %v9056_v19, %v7807_v18  ;;  %v9245_v32 = vld [vmem:[%s10550_s9 + $0x4a0] sm:$0xff]  ;;  %v9278_v17 = vld [vmem:[%s10550_s9 + $0x5a8] sm:$0xff] }
 0x280   : > { %7128 = vmatpush.bf16.msrb.mxu2 %v9216_v13  ;;  %7079 = vmatmul.bf16.vlgmr.msra.gmra.mxu3 %v7796_v33  ;;  %v9247_v13 = vld [vmem:[%s10550_s9 + $0x4b0] sm:$0xff]  ;;  %v7812_v27 = vor.u32 %v9040_v20, %v7809_v21  ;;  %v9229_v33 = vld [vmem:[%s10550_s9 + $0x420] sm:$0xff] }
 0x281   : > { %7147 = vmatpush.bf16.msrb.mxu3 %v9224_v22  ;;  %v9231_v22 = vld [vmem:[%s10550_s9 + $0x430] sm:$0xff] }
 0x282   : > { %7091 = vmatpush.bf16.msrb.mxu0 %v9199_v34  ;;  %v9237_v34 = vld [vmem:[%s10550_s9 + $0x460] sm:$0xff] }
 0x283   : > { %7110 = vmatpush.bf16.msrb.mxu1 %v9207_v30  ;;  %v9238_v30 = vld [vmem:[%s10550_s9 + $0x468] sm:$0xff] }
 0x284   : > { %7129 = vmatpush.bf16.msrb.mxu2 %v9215_v23  ;;  %v7800_v23 = vor.u32 %v9055_v14, %v7799_v11  ;;  %v7823_v11 = vld [vmem:[%s11258_s0 + $0x48] sm:$0xf]  ;;  %v9042_v14 = vld [vmem:[%s11258_s0 + $0x4c] sm:$0xf] }
 0x285   : > { %7148 = vmatpush.bf16.msrb.mxu3 %v9223_v35  ;;  %v9253_v35 = vld [vmem:[%s10550_s9 + $0x4e0] sm:$0xff] }
 0x286   : > { %7092 = vmatpush.bf16.msrb.mxu0 %v9198_v38  ;;  %v9236_v38 = vld [vmem:[%s10550_s9 + $0x458] sm:$0xff] }
 0x287   : > { %7111 = vmatpush.bf16.msrb.mxu1 %v9206_v37  ;;  %v9228_v37 = vld [vmem:[%s10550_s9 + $0x418] sm:$0xff] }
 0x288   : > { %7130 = vmatpush.bf16.msrb.mxu2 %v9214_v36  ;;  %v9244_v36 = vld [vmem:[%s10550_s9 + $0x498] sm:$0xff] }
 0x289   : > { %7149 = vmatpush.bf16.msrb.mxu3 %v9222_v39  ;;  %v7927_v39 = vld [vmem:[%s11258_s0 + $0x130] sm:$0xf] }
 0x28a   : > { %7093 = vmatpush.bf16.msrb.mxu0 %v9197_v42  ;;  %v9071_v42 = vld [vmem:[%s11258_s0 + $0x134] sm:$0xf] }
 0x28b   : > { %7112 = vmatpush.bf16.msrb.mxu1 %v9205_v41  ;;  %v9252_v41 = vld [vmem:[%s10550_s9 + $0x4d8] sm:$0xff] }
 0x28c   : > { %7131 = vmatpush.bf16.msrb.mxu2 %v9213_v40  ;;  %v9087_v40 = vld [vmem:[%s11258_s0 + $0x1ac] sm:$0xf0] }
 0x28d   : > { %7150 = vmatpush.bf16.msrb.mxu3 %v9221_v43  ;;  %7027 = vmatmul.bf16.gmra.mxu0 %v7912_v57  ;;  %v7929_v43 = vld [vmem:[%s11258_s0 + $0x1b0] sm:$0xf0]  ;;  %v7928_v51 = vor.u32 %v9087_v40, %v7927_v39  ;;  %v9226_v57 = vld [vmem:[%s10550_s9 + $0x408] sm:$0xff]  ;;  %v9268_v40 = vld [vmem:[%s10550_s9 + $0x558] sm:$0xff] }
 0x28e   : > { %7094 = vmatpush.bf16.msrb.mxu0 %v9196_v53  ;;  %7046 = vmatmul.bf16.gmra.mxu1 %v7916_v59  ;;  %v7932_v53 = vor.u32 %v9071_v42, %v7929_v43  ;;  %v9250_v59 = vld [vmem:[%s10550_s9 + $0x4c8] sm:$0xff]  ;;  %v7943_v42 = vld [vmem:[%s11258_s0 + $0x140] sm:$0xf] }
 0x28f   : > { %7113 = vmatpush.bf16.msrb.mxu1 %v9204_v47  ;;  %7065 = vmatmul.bf16.gmra.mxu2 %v7920_v60  ;;  %v9243_v47 = vld [vmem:[%s10550_s9 + $0x490] sm:$0xff]  ;;  %v9241_v60 = vld [vmem:[%s10550_s9 + $0x480] sm:$0xff] }
 0x290   : > { %7132 = vmatpush.bf16.msrb.mxu2 %v9212_v44  ;;  %7084 = vmatmul.bf16.gmra.mxu3 %v7924_v61  ;;  %v7935_v44 = vld [vmem:[%s11258_s0 + $0x138] sm:$0xf]  ;;  %v9225_v61 = vld [vmem:[%s10550_s9 + $0x400] sm:$0xff] }
 0x291   : > { %7151 = vmatpush.bf16.msrb.mxu3 %v9220_v55  ;;  %v7936_v54 = vor.u32 %v9088_v45, %v7935_v44  ;;  %v7940_v55 = vor.u32 %v9072_v46, %v7937_v48  ;;  %v9089_v43 = vld [vmem:[%s11258_s0 + $0x1bc] sm:$0xf0]  ;;  %v9275_v44 = vld [vmem:[%s10550_s9 + $0x590] sm:$0xff]  ;;  %v9073_v45 = vld [vmem:[%s11258_s0 + $0x144] sm:$0xf] }
 0x292   : > { %7095 = vmatpush.bf16.msrb.mxu0 %v9195_v62  ;;  %v9233_v62 = vld [vmem:[%s10550_s9 + $0x440] sm:$0xff]  ;;  %v9090_v48 = vld [vmem:[%s11258_s0 + $0x1c4] sm:$0xf0] }
 0x293   : > { %7114 = vmatpush.bf16.msrb.mxu1 %v9203_v58  ;;  %v9234_v58 = vld [vmem:[%s10550_s9 + $0x448] sm:$0xff]  ;;  %v7945_v46 = vld [vmem:[%s11258_s0 + $0x1c0] sm:$0xf0] }
 0x294   : > { %7133 = vmatpush.bf16.msrb.mxu2 %v9211_v56  ;;  %v9242_v56 = vld [vmem:[%s10550_s9 + $0x488] sm:$0xff] }
 0x295   : > { %7152 = vmatpush.bf16.msrb.mxu3 %v9219_v63  ;;  %v9249_v63 = vld [vmem:[%s10550_s9 + $0x4c0] sm:$0xff] }
 0x296   : > { %7096 = vmatpush.bf16.msrb.mxu0 %v9194_v2  ;;  %v9272_v2 = vld [vmem:[%s10550_s9 + $0x578] sm:$0xff] }
 0x297   : > { %7115 = vmatpush.bf16.msrb.mxu1 %v9202_v1  ;;  %v9264_v1 = vld [vmem:[%s10550_s9 + $0x538] sm:$0xff] }
 0x298   : > { %7134 = vmatpush.bf16.msrb.mxu2 %v9210_v0  ;;  %v9280_v0 = vld [vmem:[%s10550_s9 + $0x5b8] sm:$0xff] }
 0x299   : > { %7153 = vmatpush.bf16.msrb.mxu3 %v9218_v3  ;;  %v9288_v3 = vld [vmem:[%s10550_s9 + $0x5f8] sm:$0xff] }
 0x29a   : > { %7097 = vmatpush.bf16.msrb.mxu0 %v9193_v8  ;;  %v7817_v8 = vld [vmem:[%s11258_s0 + $0xc0] sm:$0xf0] }
 0x29b   : > { %7116 = vmatpush.bf16.msrb.mxu1 %v9201_v5  ;;  %v9057_v5 = vld [vmem:[%s11258_s0 + $0xbc] sm:$0xf0] }
 0x29c   : > { %7135 = vmatpush.bf16.msrb.mxu2 %v9209_v4  ;;  %v7815_v4 = vld [vmem:[%s11258_s0 + $0x40] sm:$0xf] }
 0x29d   : > { %7154 = vmatpush.bf16.msrb.mxu3 %v9217_v9  ;;  %7098 = vmatmul.bf16.vlgmr.msrb.gmra.mxu0 %v7800_v23  ;;  %v9263_v9 = vld [vmem:[%s10550_s9 + $0x530] sm:$0xff]  ;;  %v7828_v23 = vor.u32 %v9042_v14, %v7825_v15 }
 0x29e   : > { %7166 = vmatpush.bf16.msra.mxu0 %v9232_v10  ;;  %7117 = vmatmul.bf16.vlgmr.msrb.gmra.mxu1 %v7804_v25  ;;  %v9271_v10 = vld [vmem:[%s10550_s9 + $0x570] sm:$0xff]  ;;  %v9270_v25 = vld [vmem:[%s10550_s9 + $0x568] sm:$0xff] }
 0x29f   : > { %7185 = vmatpush.bf16.msra.mxu1 %v9240_v7  ;;  %7136 = vmatmul.bf16.vlgmr.msrb.gmra.mxu2 %v7808_v26  ;;  %v9279_v7 = vld [vmem:[%s10550_s9 + $0x5b0] sm:$0xff]  ;;  %v9286_v26 = vld [vmem:[%s10550_s9 + $0x5e8] sm:$0xff] }
 0x2a0   : > { %7204 = vmatpush.bf16.msra.mxu2 %v9248_v6  ;;  %7155 = vmatmul.bf16.vlgmr.msrb.gmra.mxu3 %v7812_v27  ;;  %v9041_v6 = vld [vmem:[%s11258_s0 + $0x44] sm:$0xf] }
 0x2a1   : > { %7223 = vmatpush.bf16.msra.mxu3 %v9256_v12  ;;  %v9058_v12 = vld [vmem:[%s11258_s0 + $0xc4] sm:$0xf0]  ;;  %v7820_v20 = vor.u32 %v9041_v6, %v7817_v8  ;;  %v9277_v27 = vld [vmem:[%s10550_s9 + $0x5a0] sm:$0xff]  ;;  %v9312_v6 = vld [vmem:[%s10550_s9 + $0x6b8] sm:$0xff] }
 0x2a2   : > { %7167 = vmatpush.bf16.msra.mxu0 %v9231_v22  ;;  %v7824_v21 = vor.u32 %v9058_v12, %v7823_v11  ;;  %v9265_v8 = vld [vmem:[%s10550_s9 + $0x540] sm:$0xff]  ;;  %v9296_v12 = vld [vmem:[%s10550_s9 + $0x638] sm:$0xff] }
 0x2a3   : > { %7186 = vmatpush.bf16.msra.mxu1 %v9239_v16  ;;  %v7816_v16 = vor.u32 %v9057_v5, %v7815_v4  ;;  %v9282_v4 = vld [vmem:[%s10550_s9 + $0x5c8] sm:$0xff]  ;;  %v9273_v5 = vld [vmem:[%s10550_s9 + $0x580] sm:$0xff] }
 0x2a4   : > { %7205 = vmatpush.bf16.msra.mxu2 %v9247_v13  ;;  %v9287_v13 = vld [vmem:[%s10550_s9 + $0x5f0] sm:$0xff] }
 0x2a5   : > { %7224 = vmatpush.bf16.msra.mxu3 %v9255_v24  ;;  %v9262_v24 = vld [vmem:[%s10550_s9 + $0x528] sm:$0xff] }
 0x2a6   : > { %7168 = vmatpush.bf16.msra.mxu0 %v9230_v29  ;;  %v9269_v29 = vld [vmem:[%s10550_s9 + $0x560] sm:$0xff] }
 0x2a7   : > { %7187 = vmatpush.bf16.msra.mxu1 %v9238_v30  ;;  %v9285_v30 = vld [vmem:[%s10550_s9 + $0x5e0] sm:$0xff] }
 0x2a8   : > { %7206 = vmatpush.bf16.msra.mxu2 %v9246_v28  ;;  %v9261_v28 = vld [vmem:[%s10550_s9 + $0x520] sm:$0xff] }
 0x2a9   : > { %7225 = vmatpush.bf16.msra.mxu3 %v9254_v31 }
 0x2aa   : > { %7169 = vmatpush.bf16.msra.mxu0 %v9229_v33  ;;  %v9276_v33 = vld [vmem:[%s10550_s9 + $0x598] sm:$0xff] }
 0x2ab   : > { %7188 = vmatpush.bf16.msra.mxu1 %v9237_v34 }
 0x2ac   : > { %7207 = vmatpush.bf16.msra.mxu2 %v9245_v32 }
 0x2ad   : > { %7226 = vmatpush.bf16.msra.mxu3 %v9253_v35  ;;  %7103 = vmatmul.bf16.gmra.mxu0 %v7928_v51  ;;  %v7953_v51 = vld [vmem:[%s11258_s0 + $0x1c8] sm:$0xf0] }
 0x2ae   : > { %7170 = vmatpush.bf16.msra.mxu0 %v9228_v37  ;;  %7122 = vmatmul.bf16.gmra.mxu1 %v7932_v53  ;;  %v9283_v53 = vld [vmem:[%s10550_s9 + $0x5d0] sm:$0xff] }
 0x2af   : > { %7189 = vmatpush.bf16.msra.mxu1 %v9236_v38  ;;  %7141 = vmatmul.bf16.gmra.mxu2 %v7936_v54  ;;  %v9260_v38 = vld [vmem:[%s10550_s9 + $0x518] sm:$0xff] }
 0x2b0   : > { %7208 = vmatpush.bf16.msra.mxu2 %v9244_v36  ;;  %7160 = vmatmul.bf16.gmra.mxu3 %v7940_v55 }
 0x2b1   : > { %7227 = vmatpush.bf16.msra.mxu3 %v9252_v41  ;;  %v9284_v41 = vld [vmem:[%s10550_s9 + $0x5d8] sm:$0xff] }
 0x2b2   : > { %7171 = vmatpush.bf16.msra.mxu0 %v9227_v49  ;;  %v9074_v49 = vld [vmem:[%s11258_s0 + $0x14c] sm:$0xf] }
 0x2b3   : > { %7190 = vmatpush.bf16.msra.mxu1 %v9235_v50  ;;  %v9259_v50 = vld [vmem:[%s10550_s9 + $0x510] sm:$0xff] }
 0x2b4   : > { %7209 = vmatpush.bf16.msra.mxu2 %v9243_v47  ;;  %v7951_v47 = vld [vmem:[%s11258_s0 + $0x148] sm:$0xf] }
 0x2b5   : > { %7228 = vmatpush.bf16.msra.mxu3 %v9251_v52  ;;  %v9267_v52 = vld [vmem:[%s10550_s9 + $0x550] sm:$0xff] }
 0x2b6   : > { %7172 = vmatpush.bf16.msra.mxu0 %v9226_v57  ;;  %v9274_v57 = vld [vmem:[%s10550_s9 + $0x588] sm:$0xff] }
 0x2b7   : > { %7191 = vmatpush.bf16.msra.mxu1 %v9234_v58 }
 0x2b8   : > { %7210 = vmatpush.bf16.msra.mxu2 %v9242_v56  ;;  %v7944_v56 = vor.u32 %v9089_v43, %v7943_v42 }
 0x2b9   : > { %7229 = vmatpush.bf16.msra.mxu3 %v9250_v59 }
 0x2ba   : > { %7173 = vmatpush.bf16.msra.mxu0 %v9225_v61  ;;  %v6871_v18 = vpop.f32.mrf.mxu0  ;;  %v7948_v61 = vor.u32 %v9073_v45, %v7945_v46  ;;  %v9294_v45 = vld [vmem:[%s10550_s9 + $0x628] sm:$0xff] }
 0x2bb   : > { %7192 = vmatpush.bf16.msra.mxu1 %v9233_v62  ;;  %v6890_v19 = vpop.f32.mrf.mxu1  ;;  %v7952_v62 = vor.u32 %v9090_v48, %v7951_v47  ;;  %v9318_v47 = vld [vmem:[%s10550_s9 + $0x6e8] sm:$0xff]  ;;  %v9309_v48 = vld [vmem:[%s10550_s9 + $0x6a0] sm:$0xff] }
 0x2bc   : > { %7211 = vmatpush.bf16.msra.mxu2 %v9241_v60  ;;  %v6891_v22 = vadd.f32 %v6890_v19, %v6871_v18  ;;  %v9311_v18 = vld [vmem:[%s10550_s9 + $0x6b0] sm:$0xff] }
 0x2bd   : > { %7230 = vmatpush.bf16.msra.mxu3 %v9249_v63  ;;  %7174 = vmatmul.bf16.vlgmr.msra.gmra.mxu0 %v7816_v16 }
 0x2be   : > { %7242 = vmatpush.bf16.msrb.mxu0 %v9264_v1  ;;  %7193 = vmatmul.bf16.vlgmr.msra.gmra.mxu1 %v7820_v20  ;;  %v9258_v1 = vld [vmem:[%s10550_s9 + $0x508] sm:$0xff] }
 0x2bf   : > { %7261 = vmatpush.bf16.msrb.mxu1 %v9272_v2  ;;  %7212 = vmatmul.bf16.vlgmr.msra.gmra.mxu2 %v7824_v21  ;;  %v7831_v21 = vld [vmem:[%s11258_s0 + $0x50] sm:$0xf] }
 0x2c0   : > { %7280 = vmatpush.bf16.msrb.mxu2 %v9280_v0  ;;  %7231 = vmatmul.bf16.vlgmr.msra.gmra.mxu3 %v7828_v23  ;;  %v7956_v0 = vor.u32 %v9074_v49, %v7953_v51  ;;  %v9295_v23 = vld [vmem:[%s10550_s9 + $0x630] sm:$0xff]  ;;  %v9317_v51 = vld [vmem:[%s10550_s9 + $0x6e0] sm:$0xff] }
 0x2c1   : > { %7299 = vmatpush.bf16.msrb.mxu3 %v9288_v3  ;;  %v9266_v3 = vld [vmem:[%s10550_s9 + $0x548] sm:$0xff] }
 0x2c2   : > { %7243 = vmatpush.bf16.msrb.mxu0 %v9263_v9  ;;  %v6909_v31 = vpop.f32.mrf.mxu2  ;;  %v6873_v35 = vpop.f32.mrf.mxu0  ;;  %v9281_v9 = vld [vmem:[%s10550_s9 + $0x5c0] sm:$0xff] }
 0x2c3   : > { %7262 = vmatpush.bf16.msrb.mxu1 %v9271_v10  ;;  %v6928_v32 = vpop.f32.mrf.mxu3  ;;  %v6910_v34 = vadd.f32 %v6909_v31, %v6891_v22  ;;  %v6892_v36 = vpop.f32.mrf.mxu1  ;;  %v9059_v22 = vld [vmem:[%s11258_s0 + $0xcc] sm:$0xf0]  ;;  %v9044_v31 = vld [vmem:[%s11258_s0 + $0x5c] sm:$0xf] }
 0x2c4   : > { %7281 = vmatpush.bf16.msrb.mxu2 %v9279_v7  ;;  %v6893_v37 = vadd.f32 %v6892_v36, %v6873_v35  ;;  %v9257_v7 = vld [vmem:[%s10550_s9 + $0x500] sm:$0xff]  ;;  %v7832_v35 = vor.u32 %v9059_v22, %v7831_v21  ;;  %v9302_v36 = vld [vmem:[%s10550_s9 + $0x668] sm:$0xff] }
 0x2c5   : > { %7300 = vmatpush.bf16.msrb.mxu3 %v9287_v13  ;;  %v10946_v39 = vadd.f32 %v6928_v32, %v6910_v34  ;;  %v9304_v13 = vld [vmem:[%s10550_s9 + $0x678] sm:$0xff] }
 0x2c6   : > { %7244 = vmatpush.bf16.msrb.mxu0 %v9262_v24  ;;  %v9303_v24 = vld [vmem:[%s10550_s9 + $0x670] sm:$0xff]  ;;  %v7841_v32 = vld [vmem:[%s11258_s0 + $0xd8] sm:$0xf0] }
 0x2c7   : > { %7263 = vmatpush.bf16.msrb.mxu1 %v9270_v25  ;;  %v9043_v25 = vld [vmem:[%s11258_s0 + $0x54] sm:$0xf] }
 0x2c8   : > { %7282 = vmatpush.bf16.msrb.mxu2 %v9278_v17  ;;  %v9320_v17 = vld [vmem:[%s10550_s9 + $0x6f8] sm:$0xff] }
 0x2c9   : > { %7301 = vmatpush.bf16.msrb.mxu3 %v9286_v26  ;;  %v9319_v26 = vld [vmem:[%s10550_s9 + $0x6f0] sm:$0xff] }
 0x2ca   : > { %7245 = vmatpush.bf16.msrb.mxu0 %v9261_v28  ;;  %v6911_v54 = vpop.f32.mrf.mxu2  ;;  %v6876_v59 = vpop.f32.mrf.mxu0  ;;  %v7833_v28 = vld [vmem:[%s11258_s0 + $0xd0] sm:$0xf0] }
 0x2cb   : > { %7264 = vmatpush.bf16.msrb.mxu1 %v9269_v29  ;;  %v6930_v55 = vpop.f32.mrf.mxu3  ;;  %v6912_v58 = vadd.f32 %v6911_v54, %v6893_v37  ;;  %v6895_v60 = vpop.f32.mrf.mxu1  ;;  %v7839_v29 = vld [vmem:[%s11258_s0 + $0x58] sm:$0xf] }
 0x2cc   : > { %7283 = vmatpush.bf16.msrb.mxu2 %v9277_v27  ;;  %v6896_v63 = vadd.f32 %v6895_v60, %v6876_v59  ;;  %v9310_v27 = vld [vmem:[%s10550_s9 + $0x6a8] sm:$0xff]  ;;  %v9300_v54 = vld [vmem:[%s10550_s9 + $0x658] sm:$0xff] }
 0x2cd   : > { %7302 = vmatpush.bf16.msrb.mxu3 %v9285_v30  ;;  %v10980_v2 = vadd.f32 %v6930_v55, %v6912_v58  ;;  %7179 = vmatmul.bf16.gmra.mxu0 %v7944_v56  ;;  %v9060_v30 = vld [vmem:[%s11258_s0 + $0xd4] sm:$0xf0] }
 0x2ce   : > { %7246 = vmatpush.bf16.msrb.mxu0 %v9260_v38  ;;  %7198 = vmatmul.bf16.gmra.mxu1 %v7948_v61  ;;  %v9292_v60 = vld [vmem:[%s10550_s9 + $0x618] sm:$0xff] }
 0x2cf   : > { %7265 = vmatpush.bf16.msrb.mxu1 %v9268_v40  ;;  %7217 = vmatmul.bf16.gmra.mxu2 %v7952_v62  ;;  %v7836_v40 = vor.u32 %v9043_v25, %v7833_v28  ;;  %v9316_v62 = vld [vmem:[%s10550_s9 + $0x6d8] sm:$0xff]  ;;  %v9290_v25 = vld [vmem:[%s10550_s9 + $0x608] sm:$0xff]  ;;  %v9305_v28 = vld [vmem:[%s10550_s9 + $0x680] sm:$0xff] }
 0x2d0   : > { %7284 = vmatpush.bf16.msrb.mxu2 %v9276_v33  ;;  %7236 = vmatmul.bf16.gmra.mxu3 %v7956_v0 }
 0x2d1   : > { %7303 = vmatpush.bf16.msrb.mxu3 %v9284_v41  ;;  %v7840_v41 = vor.u32 %v9060_v30, %v7839_v29  ;;  %v9297_v30 = vld [vmem:[%s10550_s9 + $0x640] sm:$0xff] }
 0x2d2   : > { %7247 = vmatpush.bf16.msrb.mxu0 %v9259_v50  ;;  %v6914_v10 = vpop.f32.mrf.mxu2  ;;  %v6878_v15 = vpop.f32.mrf.mxu0  ;;  %v9301_v50 = vld [vmem:[%s10550_s9 + $0x660] sm:$0xff] }
 0x2d3   : > { %7266 = vmatpush.bf16.msrb.mxu1 %v9267_v52  ;;  %v6933_v11 = vpop.f32.mrf.mxu3  ;;  %v6915_v14 = vadd.f32 %v6914_v10, %v6896_v63  ;;  %v6897_v16 = vpop.f32.mrf.mxu1  ;;  %v9308_v52 = vld [vmem:[%s10550_s9 + $0x698] sm:$0xff]  ;;  %v9307_v63 = vld [vmem:[%s10550_s9 + $0x690] sm:$0xff] }
 0x2d4   : > { %7285 = vmatpush.bf16.msrb.mxu2 %v9275_v44  ;;  %v6898_v19 = vadd.f32 %v6897_v16, %v6878_v15  ;;  %v7844_v44 = vor.u32 %v9044_v31, %v7841_v32  ;;  %v7969_v10 = vld [vmem:[%s11258_s0 + $0x1d8] sm:$0xf0]  ;;  %v9298_v15 = vld [vmem:[%s10550_s9 + $0x648] sm:$0xff]  ;;  %v9289_v32 = vld [vmem:[%s10550_s9 + $0x600] sm:$0xff] }
 0x2d5   : > { %7304 = vmatpush.bf16.msrb.mxu3 %v9283_v53  ;;  %v10993_v20 = vadd.f32 %v6933_v11, %v6915_v14  ;;  %v9315_v11 = vld [vmem:[%s10550_s9 + $0x6d0] sm:$0xff]  ;;  %v9336_v31 = vld [vmem:[%s10550_s9 + $0x778] sm:$0xff] }
 0x2d6   : > { %7248 = vmatpush.bf16.msrb.mxu0 %v9258_v1  ;;  %v7959_v1 = vld [vmem:[%s11258_s0 + $0x150] sm:$0xf] }
 0x2d7   : > { %7267 = vmatpush.bf16.msrb.mxu1 %v9266_v3  ;;  %v9299_v3 = vld [vmem:[%s10550_s9 + $0x650] sm:$0xff] }
 0x2d8   : > { %7286 = vmatpush.bf16.msrb.mxu2 %v9274_v57 }
 0x2d9   : > { %7305 = vmatpush.bf16.msrb.mxu3 %v9282_v4  ;;  %v9075_v4 = vld [vmem:[%s11258_s0 + $0x154] sm:$0xf] }
 0x2da   : > { %7249 = vmatpush.bf16.msrb.mxu0 %v9257_v7  ;;  %v6916_v33 = vpop.f32.mrf.mxu2  ;;  %v6947_v38 = vpop.f32.mrf.mxu0  ;;  %v9092_v7 = vld [vmem:[%s11258_s0 + $0x1d4] sm:$0xf0] }
 0x2db   : > { %7268 = vmatpush.bf16.msrb.mxu1 %v9265_v8  ;;  %v6935_v34 = vpop.f32.mrf.mxu3  ;;  %v6917_v37 = vadd.f32 %v6916_v33, %v6898_v19  ;;  %v6948_v42 = vadd.f32 %v6947_v38, %v10946_v39  ;;  %v6966_v43 = vpop.f32.mrf.mxu1  ;;  %v9293_v39 = vld [vmem:[%s10550_s9 + $0x620] sm:$0xff]  ;;  %v9076_v8 = vld [vmem:[%s11258_s0 + $0x15c] sm:$0xf] }
 0x2dc   : > { %7287 = vmatpush.bf16.msrb.mxu2 %v9273_v5  ;;  %v7961_v5 = vld [vmem:[%s11258_s0 + $0x1d0] sm:$0xf0]  ;;  %v9313_v33 = vld [vmem:[%s10550_s9 + $0x6c0] sm:$0xff] }
 0x2dd   : > { %7306 = vmatpush.bf16.msrb.mxu3 %v9281_v9  ;;  %v11026_v46 = vadd.f32 %v6935_v34, %v6917_v37  ;;  %v6967_v49 = vadd.f32 %v6966_v43, %v6948_v42  ;;  %7250 = vmatmul.bf16.vlgmr.msrb.gmra.mxu0 %v7832_v35  ;;  %v9291_v9 = vld [vmem:[%s10550_s9 + $0x610] sm:$0xff]  ;;  %v7964_v19 = vor.u32 %v9075_v4, %v7961_v5  ;;  %v9328_v34 = vld [vmem:[%s10550_s9 + $0x738] sm:$0xff] }
 0x2de   : > { %7318 = vmatpush.bf16.msra.mxu0 %v9296_v12  ;;  %7269 = vmatmul.bf16.vlgmr.msrb.gmra.mxu1 %v7836_v40  ;;  %v9306_v12 = vld [vmem:[%s10550_s9 + $0x688] sm:$0xff]  ;;  %v9343_v37 = vld [vmem:[%s10550_s9 + $0x7b0] sm:$0xff] }
 0x2df   : > { %7337 = vmatpush.bf16.msra.mxu1 %v9304_v13  ;;  %7288 = vmatmul.bf16.vlgmr.msrb.gmra.mxu2 %v7840_v41  ;;  %v9335_v42 = vld [vmem:[%s10550_s9 + $0x770] sm:$0xff] }
 0x2e0   : > { %7356 = vmatpush.bf16.msra.mxu2 %v9312_v6  ;;  %7307 = vmatmul.bf16.vlgmr.msrb.gmra.mxu3 %v7844_v44  ;;  %v7967_v6 = vld [vmem:[%s11258_s0 + $0x158] sm:$0xf] }
 0x2e1   : > { %7375 = vmatpush.bf16.msra.mxu3 %v9320_v17  ;;  %v7968_v21 = vor.u32 %v9092_v7, %v7967_v6  ;;  %v9341_v7 = vld [vmem:[%s10550_s9 + $0x7a0] sm:$0xff] }
 0x2e2   : > { %7319 = vmatpush.bf16.msra.mxu0 %v9295_v23  ;;  %v6985_v53 = vpop.f32.mrf.mxu2  ;;  %v6949_v57 = vpop.f32.mrf.mxu0 }
 0x2e3   : > { %7338 = vmatpush.bf16.msra.mxu1 %v9303_v24  ;;  %v6986_v55 = vadd.f32 %v6985_v53, %v6967_v49  ;;  %v7004_v56 = vpop.f32.mrf.mxu3  ;;  %v6950_v58 = vadd.f32 %v6949_v57, %v10980_v2  ;;  %v6968_v59 = vpop.f32.mrf.mxu1  ;;  %v9091_v2 = vld [vmem:[%s11258_s0 + $0x1cc] sm:$0xf0]  ;;  %v7972_v24 = vor.u32 %v9076_v8, %v7969_v10  ;;  %v7847_v49 = vld [vmem:[%s11258_s0 + $0x60] sm:$0xf]  ;;  %v7849_v53 = vld [vmem:[%s11258_s0 + $0xe0] sm:$0xf0] }
 0x2e4   : > { %7357 = vmatpush.bf16.msra.mxu2 %v9311_v18  ;;  %v7960_v14 = vor.u32 %v9091_v2, %v7959_v1  ;;  %v7857_v57 = vld [vmem:[%s11258_s0 + $0xe8] sm:$0xf0]  ;;  %v9333_v10 = vld [vmem:[%s10550_s9 + $0x760] sm:$0xff] }
 0x2e5   : > { %7376 = vmatpush.bf16.msra.mxu3 %v9319_v26  ;;  %v11037_v61 = vadd.f32 %v7004_v56, %v6986_v55  ;;  %v6969_v0 = vadd.f32 %v6968_v59, %v6950_v58  ;;  %v9062_v55 = vld [vmem:[%s11258_s0 + $0xe4] sm:$0xf0]  ;;  %v9046_v56 = vld [vmem:[%s11258_s0 + $0x6c] sm:$0xf] }
 0x2e6   : > { %7320 = vmatpush.bf16.msra.mxu0 %v9294_v45  ;;  %v9326_v58 = vld [vmem:[%s10550_s9 + $0x728] sm:$0xff]  ;;  %v7860_v6 = vor.u32 %v9046_v56, %v7857_v57  ;;  %v9345_v56 = vld [vmem:[%s10550_s9 + $0x7c0] sm:$0xff] }
 0x2e7   : > { %7339 = vmatpush.bf16.msra.mxu1 %v9302_v36  ;;  %v9352_v36 = vld [vmem:[%s10550_s9 + $0x7f8] sm:$0xff] }
 0x2e8   : > { %7358 = vmatpush.bf16.msra.mxu2 %v9310_v27  ;;  %v9314_v27 = vld [vmem:[%s10550_s9 + $0x6c8] sm:$0xff] }
 0x2e9   : > { %7377 = vmatpush.bf16.msra.mxu3 %v9318_v47  ;;  %v9327_v47 = vld [vmem:[%s10550_s9 + $0x730] sm:$0xff] }
 0x2ea   : > { %7321 = vmatpush.bf16.msra.mxu0 %v9293_v39  ;;  %v6987_v13 = vpop.f32.mrf.mxu2  ;;  %v6952_v18 = vpop.f32.mrf.mxu0  ;;  %v9342_v39 = vld [vmem:[%s10550_s9 + $0x7a8] sm:$0xff] }
 0x2eb   : > { %7340 = vmatpush.bf16.msra.mxu1 %v9301_v50  ;;  %v6988_v16 = vadd.f32 %v6987_v13, %v6969_v0  ;;  %v7006_v17 = vpop.f32.mrf.mxu3  ;;  %v6953_v22 = vadd.f32 %v6952_v18, %v10993_v20  ;;  %v6971_v23 = vpop.f32.mrf.mxu1  ;;  %v9344_v20 = vld [vmem:[%s10550_s9 + $0x7b8] sm:$0xff]  ;;  %v9351_v50 = vld [vmem:[%s10550_s9 + $0x7f0] sm:$0xff] }
 0x2ec   : > { %7359 = vmatpush.bf16.msra.mxu2 %v9309_v48  ;;  %v9324_v13 = vld [vmem:[%s10550_s9 + $0x718] sm:$0xff] }
 0x2ed   : > { %7378 = vmatpush.bf16.msra.mxu3 %v9317_v51  ;;  %v11072_v26 = vadd.f32 %v7006_v17, %v6988_v16  ;;  %v6972_v29 = vadd.f32 %v6971_v23, %v6953_v22  ;;  %7255 = vmatmul.bf16.gmra.mxu0 %v7960_v14  ;;  %v9045_v51 = vld [vmem:[%s11258_s0 + $0x64] sm:$0xf]  ;;  %v9332_v14 = vld [vmem:[%s10550_s9 + $0x758] sm:$0xff]  ;;  %v9339_v23 = vld [vmem:[%s10550_s9 + $0x790] sm:$0xff] }
 0x2ee   : > { %7322 = vmatpush.bf16.msra.mxu0 %v9292_v60  ;;  %7274 = vmatmul.bf16.gmra.mxu1 %v7964_v19  ;;  %v7852_v2 = vor.u32 %v9045_v51, %v7849_v53  ;;  %v9348_v16 = vld [vmem:[%s10550_s9 + $0x7d8] sm:$0xff]  ;;  %v9337_v51 = vld [vmem:[%s10550_s9 + $0x780] sm:$0xff] }
 0x2ef   : > { %7341 = vmatpush.bf16.msra.mxu1 %v9300_v54  ;;  %7293 = vmatmul.bf16.gmra.mxu2 %v7968_v21  ;;  %v7855_v54 = vld [vmem:[%s11258_s0 + $0x68] sm:$0xf]  ;;  %v9321_v53 = vld [vmem:[%s10550_s9 + $0x700] sm:$0xff] }
 0x2f0   : > { %7360 = vmatpush.bf16.msra.mxu2 %v9308_v52  ;;  %7312 = vmatmul.bf16.gmra.mxu3 %v7972_v24  ;;  %v9334_v52 = vld [vmem:[%s10550_s9 + $0x768] sm:$0xff] }
 0x2f1   : > { %7379 = vmatpush.bf16.msra.mxu3 %v9316_v62  ;;  %v9350_v62 = vld [vmem:[%s10550_s9 + $0x7e8] sm:$0xff] }
 0x2f2   : > { %7323 = vmatpush.bf16.msra.mxu0 %v9291_v9  ;;  %v6990_v35 = vpop.f32.mrf.mxu2  ;;  %v6954_v41 = vpop.f32.mrf.mxu0  ;;  %v9325_v9 = vld [vmem:[%s10550_s9 + $0x720] sm:$0xff] }
 0x2f3   : > { %7342 = vmatpush.bf16.msra.mxu1 %v9299_v3  ;;  %v6991_v38 = vadd.f32 %v6990_v35, %v6972_v29  ;;  %v7009_v40 = vpop.f32.mrf.mxu3  ;;  %v6955_v43 = vadd.f32 %v6954_v41, %v11026_v46  ;;  %v6973_v44 = vpop.f32.mrf.mxu1  ;;  %v9061_v46 = vld [vmem:[%s11258_s0 + $0xdc] sm:$0xf0]  ;;  %v7856_v3 = vor.u32 %v9062_v55, %v7855_v54  ;;  %v9338_v35 = vld [vmem:[%s10550_s9 + $0x788] sm:$0xff] }
 0x2f4   : > { %7361 = vmatpush.bf16.msra.mxu2 %v9307_v63  ;;  %v7848_v60 = vor.u32 %v9061_v46, %v7847_v49  ;;  %v7975_v29 = vld [vmem:[%s11258_s0 + $0x160] sm:$0xf] }
 0x2f5   : > { %7380 = vmatpush.bf16.msra.mxu3 %v9315_v11  ;;  %v11086_v45 = vadd.f32 %v7009_v40, %v6991_v38  ;;  %v6974_v48 = vadd.f32 %v6973_v44, %v6955_v43  ;;  %v9330_v38 = vld [vmem:[%s10550_s9 + $0x748] sm:$0xff]  ;;  %v9329_v54 = vld [vmem:[%s10550_s9 + $0x740] sm:$0xff] }
 0x2f6   : > { %7324 = vmatpush.bf16.msra.mxu0 %v9290_v25  ;;  %v9323_v25 = vld [vmem:[%s10550_s9 + $0x710] sm:$0xff] }
 0x2f7   : > { %7343 = vmatpush.bf16.msra.mxu1 %v9298_v15 }
 0x2f8   : > { %7362 = vmatpush.bf16.msra.mxu2 %v9306_v12  ;;  %v9349_v12 = vld [vmem:[%s10550_s9 + $0x7e0] sm:$0xff] }
 0x2f9   : > { %7381 = vmatpush.bf16.msra.mxu3 %v9314_v27  ;;  %v9331_v27 = vld [vmem:[%s10550_s9 + $0x750] sm:$0xff] }
 0x2fa   : > { %7325 = vmatpush.bf16.msra.mxu0 %v9289_v32  ;;  %v6992_v59 = vpop.f32.mrf.mxu2  ;;  %v7023_v1 = vpop.f32.mrf.mxu0  ;;  %v7983_v32 = vld [vmem:[%s11258_s0 + $0x168] sm:$0xf] }
 0x2fb   : > { %7344 = vmatpush.bf16.msra.mxu1 %v9297_v30  ;;  %v6993_v63 = vadd.f32 %v6992_v59, %v6974_v48  ;;  %v7011_v0 = vpop.f32.mrf.mxu3  ;;  %v7024_v4 = vadd.f32 %v7023_v1, %v11037_v61  ;;  %v7042_v5 = vpop.f32.mrf.mxu1  ;;  %v9340_v61 = vld [vmem:[%s10550_s9 + $0x798] sm:$0xff]  ;;  %v9347_v30 = vld [vmem:[%s10550_s9 + $0x7d0] sm:$0xff] }
 0x2fc   : > { %7363 = vmatpush.bf16.msra.mxu2 %v9305_v28  ;;  %v7863_v1 = vld [vmem:[%s11258_s0 + $0x70] sm:$0xf] }
 0x2fd   : > { %7382 = vmatpush.bf16.msra.mxu3 %v9313_v33  ;;  %v11120_v8 = vadd.f32 %v7011_v0, %v6993_v63  ;;  %v7043_v11 = vadd.f32 %v7042_v5, %v7024_v4  ;;  %7326 = vmatmul.bf16.vlgmr.msra.gmra.mxu0 %v7848_v60  ;;  %v9094_v33 = vld [vmem:[%s11258_s0 + $0x1e4] sm:$0xf0]  ;;  %v7865_v4 = vld [vmem:[%s11258_s0 + $0xf0] sm:$0xf0]  ;;  %v7871_v5 = vld [vmem:[%s11258_s0 + $0x78] sm:$0xf] }
 0x2fe   : > { %7394 = vmatpush.bf16.msrb.mxu0 %v9328_v34  ;;  %7345 = vmatmul.bf16.vlgmr.msra.gmra.mxu1 %v7852_v2  ;;  %v9078_v34 = vld [vmem:[%s11258_s0 + $0x16c] sm:$0xf]  ;;  %v7984_v49 = vor.u32 %v9094_v33, %v7983_v32  ;;  %v9063_v2 = vld [vmem:[%s11258_s0 + $0xec] sm:$0xf0]  ;;  %v7999_v32 = vld [vmem:[%s11258_s0 + $0x178] sm:$0xf] }
 0x2ff   : > { %7413 = vmatpush.bf16.msrb.mxu1 %v9336_v31  ;;  %7364 = vmatmul.bf16.vlgmr.msra.gmra.mxu2 %v7856_v3  ;;  %v7977_v31 = vld [vmem:[%s11258_s0 + $0x1e0] sm:$0xf0]  ;;  %v9047_v3 = vld [vmem:[%s11258_s0 + $0x74] sm:$0xf]  ;;  %v9096_v33 = vld [vmem:[%s11258_s0 + $0x1f4] sm:$0xf0] }
 0x300   : > { %7432 = vmatpush.bf16.msrb.mxu2 %v9344_v20  ;;  %7383 = vmatmul.bf16.vlgmr.msra.gmra.mxu3 %v7860_v6  ;;  %v9077_v20 = vld [vmem:[%s11258_s0 + $0x164] sm:$0xf]  ;;  %v9064_v6 = vld [vmem:[%s11258_s0 + $0xf4] sm:$0xf0] }
 0x301   : > { %7451 = vmatpush.bf16.msrb.mxu3 %v9352_v36  ;;  %v7985_v36 = vld [vmem:[%s11258_s0 + $0x1e8] sm:$0xf0]  ;;  %v7980_v48 = vor.u32 %v9077_v20, %v7977_v31  ;;  %v9079_v20 = vld [vmem:[%s11258_s0 + $0x174] sm:$0xf] }
 0x302   : > { %7395 = vmatpush.bf16.msrb.mxu0 %v9327_v47  ;;  %v7061_v15 = vpop.f32.mrf.mxu2  ;;  %v7025_v19 = vpop.f32.mrf.mxu0  ;;  %v7988_v46 = vor.u32 %v9078_v34, %v7985_v36  ;;  %v7993_v31 = vld [vmem:[%s11258_s0 + $0x1f0] sm:$0xf0]  ;;  %v9080_v34 = vld [vmem:[%s11258_s0 + $0x17c] sm:$0xf] }
 0x303   : > { %7414 = vmatpush.bf16.msrb.mxu1 %v9335_v42  ;;  %v7062_v17 = vadd.f32 %v7061_v15, %v7043_v11  ;;  %v7080_v18 = vpop.f32.mrf.mxu3  ;;  %v7026_v21 = vadd.f32 %v7025_v19, %v11072_v26  ;;  %v7044_v22 = vpop.f32.mrf.mxu1  ;;  %v9093_v26 = vld [vmem:[%s11258_s0 + $0x1dc] sm:$0xf0]  ;;  %v9346_v42 = vld [vmem:[%s10550_s9 + $0x7c8] sm:$0xff] }
 0x304   : > { %7433 = vmatpush.bf16.msrb.mxu2 %v9343_v37  ;;  %v9322_v37 = vld [vmem:[%s10550_s9 + $0x708] sm:$0xff]  ;;  %v7976_v41 = vor.u32 %v9093_v26, %v7975_v29 }
 0x305   : > { %7452 = vmatpush.bf16.msrb.mxu3 %v9351_v50  ;;  %v11131_v24 = vadd.f32 %v7080_v18, %v7062_v17  ;;  %v7045_v28 = vadd.f32 %v7044_v22, %v7026_v21 }
 0x306   : > { %7396 = vmatpush.bf16.msrb.mxu0 %v9326_v58 }
 0x307   : > { %7415 = vmatpush.bf16.msrb.mxu1 %v9334_v52 }
 0x308   : > { %7434 = vmatpush.bf16.msrb.mxu2 %v9342_v39 }
 0x309   : > { %7453 = vmatpush.bf16.msrb.mxu3 %v9350_v62 }
 0x30a   : > { %7397 = vmatpush.bf16.msrb.mxu0 %v9325_v9  ;;  %v7063_v40 = vpop.f32.mrf.mxu2  ;;  %v7028_v47 = vpop.f32.mrf.mxu0 }
 0x30b   : > { %7416 = vmatpush.bf16.msrb.mxu1 %v9333_v10  ;;  %v7064_v43 = vadd.f32 %v7063_v40, %v7045_v28  ;;  %v7082_v44 = vpop.f32.mrf.mxu3  ;;  %v7029_v50 = vadd.f32 %v7028_v47, %v11086_v45  ;;  %v7047_v39 = vpop.f32.mrf.mxu1  ;;  %v7864_v10 = vor.u32 %v9063_v2, %v7863_v1 }
 0x30c   : > { %7435 = vmatpush.bf16.msrb.mxu2 %v9341_v7  ;;  %v9048_v7 = vld [vmem:[%s11258_s0 + $0x7c] sm:$0xf] }
 0x30d   : > { %7454 = vmatpush.bf16.msrb.mxu3 %v9349_v12  ;;  %v7083_v52 = vadd.f32 %v7082_v44, %v7064_v43  ;;  %v7048_v55 = vadd.f32 %v7047_v39, %v7029_v50  ;;  %7331 = vmatmul.bf16.gmra.mxu0 %v7976_v41  ;;  %v8000_v43 = vor.u32 %v9096_v33, %v7999_v32 }
 0x30e   : > { %7398 = vmatpush.bf16.msrb.mxu0 %v9324_v13  ;;  %7350 = vmatmul.bf16.gmra.mxu1 %v7980_v48  ;;  %v7868_v13 = vor.u32 %v9047_v3, %v7865_v4 }
 0x30f   : > { %7417 = vmatpush.bf16.msrb.mxu1 %v9332_v14  ;;  %7369 = vmatmul.bf16.gmra.mxu2 %v7984_v49  ;;  %v7872_v14 = vor.u32 %v9064_v6, %v7871_v5 }
 0x310   : > { %7436 = vmatpush.bf16.msrb.mxu2 %v9340_v61  ;;  %7388 = vmatmul.bf16.gmra.mxu3 %v7988_v46 }
 0x311   : > { %7455 = vmatpush.bf16.msrb.mxu3 %v9348_v16 }
 0x312   : > { %7399 = vmatpush.bf16.msrb.mxu0 %v9323_v25  ;;  %v7066_v45 = vpop.f32.mrf.mxu2  ;;  %v7030_v59 = vpop.f32.mrf.mxu0 }
 0x313   : > { %7418 = vmatpush.bf16.msrb.mxu1 %v9331_v27  ;;  %v7067_v57 = vadd.f32 %v7066_v45, %v7048_v55  ;;  %v7085_v58 = vpop.f32.mrf.mxu3  ;;  %v7031_v60 = vadd.f32 %v7030_v59, %v11120_v8  ;;  %v7049_v62 = vpop.f32.mrf.mxu1  ;;  %v7873_v8 = vld [vmem:[%s11258_s0 + $0xf8] sm:$0xf0] }
 0x314   : > { %7437 = vmatpush.bf16.msrb.mxu2 %v9339_v23  ;;  %v7876_v17 = vor.u32 %v9048_v7, %v7873_v8 }
 0x315   : > { %7456 = vmatpush.bf16.msrb.mxu3 %v9347_v30  ;;  %v7086_v63 = vadd.f32 %v7085_v58, %v7067_v57  ;;  %v7050_v0 = vadd.f32 %v7049_v62, %v7031_v60  ;;  %v9095_v30 = vld [vmem:[%s11258_s0 + $0x1ec] sm:$0xf0] }
 0x316   : > { %7400 = vmatpush.bf16.msrb.mxu0 %v9322_v37 }
 0x317   : > { %7419 = vmatpush.bf16.msrb.mxu1 %v9330_v38 }
 0x318   : > { %7438 = vmatpush.bf16.msrb.mxu2 %v9338_v35  ;;  %v8001_v35 = vld [vmem:[%s11258_s0 + $0x1f8] sm:$0xf0] }
 0x319   : > { %7457 = vmatpush.bf16.msrb.mxu3 %v9346_v42  ;;  %v7996_v42 = vor.u32 %v9079_v20, %v7993_v31  ;;  %v8004_v48 = vor.u32 %v9080_v34, %v8001_v35 }
 0x31a   : > { %7401 = vmatpush.bf16.msrb.mxu0 %v9321_v53  ;;  %v7068_v9 = vpop.f32.mrf.mxu2  ;;  %v7099_v61 = vpop.f32.mrf.mxu0 }
 0x31b   : > { %7420 = vmatpush.bf16.msrb.mxu1 %v9329_v54  ;;  %v7069_v11 = vadd.f32 %v7068_v9, %v7050_v0  ;;  %v7087_v12 = vpop.f32.mrf.mxu3  ;;  %v7100_v15 = vadd.f32 %v7099_v61, %v11131_v24  ;;  %v7118_v16 = vpop.f32.mrf.mxu1  ;;  %v7991_v24 = vld [vmem:[%s11258_s0 + $0x170] sm:$0xf] }
 0x31c   : > { %7439 = vmatpush.bf16.msrb.mxu2 %v9337_v51  ;;  %v7992_v37 = vor.u32 %v9095_v30, %v7991_v24 }
 0x31d   : > { %7458 = vmatpush.bf16.msrb.mxu3 %v9345_v56  ;;  %v7088_v18 = vadd.f32 %v7087_v12, %v7069_v11  ;;  %v7119_v19 = vadd.f32 %v7118_v16, %v7100_v15  ;;  %7402 = vmatmul.bf16.vlgmr.msrb.gmra.mxu0 %v7864_v10 }
 0x31e   : > { %7421 = vmatmul.bf16.vlgmr.msrb.gmra.mxu1 %v7868_v13 }
 0x31f   : > { %7440 = vmatmul.bf16.vlgmr.msrb.gmra.mxu2 %v7872_v14 }
 0x320   : > { %7459 = vmatmul.bf16.vlgmr.msrb.gmra.mxu3 %v7876_v17 }
 0x322   : > { %v7137_v21 = vpop.f32.mrf.mxu2  ;;  %v7101_v25 = vpop.f32.mrf.mxu0 }
 0x323   : > { %v7138_v22 = vadd.f32 %v7137_v21, %v7119_v19  ;;  %v7156_v23 = vpop.f32.mrf.mxu3  ;;  %v7102_v27 = vadd.f32 %v7101_v25, %v7083_v52  ;;  %v7120_v28 = vpop.f32.mrf.mxu1 }
 0x325   : > { %v7157_v29 = vadd.f32 %v7156_v23, %v7138_v22  ;;  %v7121_v26 = vadd.f32 %v7120_v28, %v7102_v27 }
 0x32a   : > { %v7139_v36 = vpop.f32.mrf.mxu2  ;;  %v7104_v41 = vpop.f32.mrf.mxu0 }
 0x32b   : > { %v7140_v38 = vadd.f32 %v7139_v36, %v7121_v26  ;;  %v7158_v40 = vpop.f32.mrf.mxu3  ;;  %v7105_v44 = vadd.f32 %v7104_v41, %v7086_v63  ;;  %v7123_v47 = vpop.f32.mrf.mxu1 }
 0x32d   : > { %v7159_v49 = vadd.f32 %v7158_v40, %v7140_v38  ;;  %v7124_v50 = vadd.f32 %v7123_v47, %v7105_v44  ;;  %7407 = vmatmul.bf16.gmra.mxu0 %v7992_v37 }
 0x32e   : > { %7426 = vmatmul.bf16.gmra.mxu1 %v7996_v42 }
 0x32f   : > { %7445 = vmatmul.bf16.gmra.mxu2 %v8000_v43 }
 0x330   : > { %7464 = vmatmul.bf16.gmra.mxu3 %v8004_v48 }
 0x332   : > { %v7142_v39 = vpop.f32.mrf.mxu2  ;;  %v7106_v52 = vpop.f32.mrf.mxu0 }
 0x333   : > { %v7143_v46 = vadd.f32 %v7142_v39, %v7124_v50  ;;  %v7161_v51 = vpop.f32.mrf.mxu3  ;;  %v7107_v53 = vadd.f32 %v7106_v52, %v7088_v18  ;;  %v7125_v54 = vpop.f32.mrf.mxu1 }
 0x335   : > { %v7162_v55 = vadd.f32 %v7161_v51, %v7143_v46  ;;  %v7126_v56 = vadd.f32 %v7125_v54, %v7107_v53 }
 0x33a   : > { %v7144_v45 = vpop.f32.mrf.mxu2  ;;  %v7175_v59 = vpop.f32.mrf.mxu0 }
 0x33b   : > { %v7145_v57 = vadd.f32 %v7144_v45, %v7126_v56  ;;  %v7163_v58 = vpop.f32.mrf.mxu3  ;;  %v7176_v60 = vadd.f32 %v7175_v59, %v7157_v29  ;;  %v7194_v62 = vpop.f32.mrf.mxu1 }
 0x33d   : > { %v7164_v63 = vadd.f32 %v7163_v58, %v7145_v57  ;;  %v7195_v0 = vadd.f32 %v7194_v62, %v7176_v60 }
 0x342   : > { %v7213_v1 = vpop.f32.mrf.mxu2  ;;  %v7177_v4 = vpop.f32.mrf.mxu0 }
 0x343   : > { %v7214_v2 = vadd.f32 %v7213_v1, %v7195_v0  ;;  %v7232_v3 = vpop.f32.mrf.mxu3  ;;  %v7178_v5 = vadd.f32 %v7177_v4, %v7159_v49  ;;  %v7196_v6 = vpop.f32.mrf.mxu1 }
 0x345   : > { %v7233_v7 = vadd.f32 %v7232_v3, %v7214_v2  ;;  %v7197_v8 = vadd.f32 %v7196_v6, %v7178_v5 }
 0x34a   : > { %v7215_v9 = vpop.f32.mrf.mxu2  ;;  %v7180_v12 = vpop.f32.mrf.mxu0 }
 0x34b   : > { %v7216_v10 = vadd.f32 %v7215_v9, %v7197_v8  ;;  %v7234_v11 = vpop.f32.mrf.mxu3  ;;  %v7181_v61 = vadd.f32 %v7180_v12, %v7162_v55  ;;  %v7199_v13 = vpop.f32.mrf.mxu1 }
 0x34d   : > { %v7235_v14 = vadd.f32 %v7234_v11, %v7216_v10  ;;  %v7200_v15 = vadd.f32 %v7199_v13, %v7181_v61 }
 0x352   : > { %v7218_v16 = vpop.f32.mrf.mxu2  ;;  %v7182_v19 = vpop.f32.mrf.mxu0 }
 0x353   : > { %v7219_v17 = vadd.f32 %v7218_v16, %v7200_v15  ;;  %v7237_v18 = vpop.f32.mrf.mxu3  ;;  %v7183_v21 = vadd.f32 %v7182_v19, %v7164_v63  ;;  %v7201_v22 = vpop.f32.mrf.mxu1 }
 0x355   : > { %v7238_v23 = vadd.f32 %v7237_v18, %v7219_v17  ;;  %v7202_v25 = vadd.f32 %v7201_v22, %v7183_v21 }
 0x35a   : > { %v7220_v27 = vpop.f32.mrf.mxu2  ;;  %v7251_v26 = vpop.f32.mrf.mxu0 }
 0x35b   : > { %v7221_v28 = vadd.f32 %v7220_v27, %v7202_v25  ;;  %v7239_v29 = vpop.f32.mrf.mxu3  ;;  %v7270_v24 = vpop.f32.mrf.mxu1  ;;  %v7252_v51 = vadd.f32 %v7251_v26, %v7233_v7 }
 0x35d   : > { %v7240_v30 = vadd.f32 %v7239_v29, %v7221_v28  ;;  %v7271_v56 = vadd.f32 %v7270_v24, %v7252_v51 }
 0x362   : > { %v7289_v20 = vpop.f32.mrf.mxu2  ;;  %v7253_v32 = vpop.f32.mrf.mxu0 }
 0x363   : > { %v7308_v31 = vpop.f32.mrf.mxu3  ;;  %v7272_v33 = vpop.f32.mrf.mxu1  ;;  %v7254_v45 = vadd.f32 %v7253_v32, %v7235_v14  ;;  %v7290_v57 = vadd.f32 %v7289_v20, %v7271_v56 }
 0x365   : > { %v7273_v58 = vadd.f32 %v7272_v33, %v7254_v45  ;;  %v7309_v60 = vadd.f32 %v7308_v31, %v7290_v57 }
 0x36a   : > { %v7291_v34 = vpop.f32.mrf.mxu2  ;;  %v7256_v36 = vpop.f32.mrf.mxu0 }
 0x36b   : > { %v7310_v35 = vpop.f32.mrf.mxu3  ;;  %v7275_v37 = vpop.f32.mrf.mxu1  ;;  %v7292_v62 = vadd.f32 %v7291_v34, %v7273_v58  ;;  %v7257_v2 = vadd.f32 %v7256_v36, %v7238_v23 }
 0x36d   : > { %v7311_v4 = vadd.f32 %v7310_v35, %v7292_v62  ;;  %v7276_v5 = vadd.f32 %v7275_v37, %v7257_v2 }
 0x372   : > { %v7294_v38 = vpop.f32.mrf.mxu2  ;;  %v7258_v41 = vpop.f32.mrf.mxu0 }
 0x373   : > { %v7313_v40 = vpop.f32.mrf.mxu3  ;;  %v7277_v42 = vpop.f32.mrf.mxu1  ;;  %v7295_v9 = vadd.f32 %v7294_v38, %v7276_v5  ;;  %v7259_v61 = vadd.f32 %v7258_v41, %v7240_v30 }
 0x375   : > { %v7314_v15 = vadd.f32 %v7313_v40, %v7295_v9  ;;  %v7278_v18 = vadd.f32 %v7277_v42, %v7259_v61 }
 0x37a   : > { %v7296_v43 = vpop.f32.mrf.mxu2  ;;  %v7327_v47 = vpop.f32.mrf.mxu0 }
 0x37b   : > { %v7315_v44 = vpop.f32.mrf.mxu3  ;;  %v7346_v48 = vpop.f32.mrf.mxu1  ;;  %v7328_v3 = vadd.f32 %v7327_v47, %v7309_v60  ;;  %v7297_v22 = vadd.f32 %v7296_v43, %v7278_v18 }
 0x37d   : > { %v7347_v6 = vadd.f32 %v7346_v48, %v7328_v3  ;;  %v7316_v31 = vadd.f32 %v7315_v44, %v7297_v22 }
 0x382   : > { %v7365_v49 = vpop.f32.mrf.mxu2  ;;  %v7329_v39 = vpop.f32.mrf.mxu0 }
 0x383   : > { %v7384_v50 = vpop.f32.mrf.mxu3  ;;  %v7348_v46 = vpop.f32.mrf.mxu1  ;;  %v7330_v7 = vadd.f32 %v7329_v39, %v7311_v4  ;;  %v7366_v10 = vadd.f32 %v7365_v49, %v7347_v6 }
 0x385   : > { %v7349_v14 = vadd.f32 %v7348_v46, %v7330_v7  ;;  %v7385_v16 = vadd.f32 %v7384_v50, %v7366_v10 }
 0x38a   : > { %v7367_v52 = vpop.f32.mrf.mxu2  ;;  %v7332_v54 = vpop.f32.mrf.mxu0 }
 0x38b   : > { %v7386_v53 = vpop.f32.mrf.mxu3  ;;  %v7351_v55 = vpop.f32.mrf.mxu1  ;;  %v7368_v17 = vadd.f32 %v7367_v52, %v7349_v14  ;;  %v7333_v19 = vadd.f32 %v7332_v54, %v7314_v15 }
 0x38d   : > { %v7387_v25 = vadd.f32 %v7386_v53, %v7368_v17  ;;  %v7352_v26 = vadd.f32 %v7351_v55, %v7333_v19 }
 0x392   : > { %v7370_v59 = vpop.f32.mrf.mxu2  ;;  %v7334_v0 = vpop.f32.mrf.mxu0 }
 0x393   : > { %v7389_v63 = vpop.f32.mrf.mxu3  ;;  %v7353_v1 = vpop.f32.mrf.mxu1  ;;  %v7371_v30 = vadd.f32 %v7370_v59, %v7352_v26  ;;  %v7335_v33 = vadd.f32 %v7334_v0, %v7316_v31 }
 0x395   : > { %v7390_v36 = vadd.f32 %v7389_v63, %v7371_v30  ;;  %v7354_v42 = vadd.f32 %v7353_v1, %v7335_v33 }
 0x39a   : > { %v7372_v8 = vpop.f32.mrf.mxu2  ;;  %v7403_v12 = vpop.f32.mrf.mxu0 }
 0x39b   : > { %v7391_v11 = vpop.f32.mrf.mxu3  ;;  %v7422_v13 = vpop.f32.mrf.mxu1  ;;  %v7404_v21 = vadd.f32 %v7403_v12, %v7385_v16  ;;  %v7373_v48 = vadd.f32 %v7372_v8, %v7354_v42 }
 0x39d   : > { %v7423_v24 = vadd.f32 %v7422_v13, %v7404_v21  ;;  %v7392_v54 = vadd.f32 %v7391_v11, %v7373_v48 }
 0x3a2   : > { %v7441_v23 = vpop.f32.mrf.mxu2  ;;  %v7405_v28 = vpop.f32.mrf.mxu0 }
 0x3a3   : > { %v7460_v27 = vpop.f32.mrf.mxu3  ;;  %v7424_v29 = vpop.f32.mrf.mxu1  ;;  %v7406_v20 = vadd.f32 %v7405_v28, %v7387_v25  ;;  %v7442_v32 = vadd.f32 %v7441_v23, %v7423_v24 }
 0x3a5   : > { %v7425_v34 = vadd.f32 %v7424_v29, %v7406_v20  ;;  %v7461_v37 = vadd.f32 %v7460_v27, %v7442_v32 }
 0x3a7   : > { %v7488_v50 = vmul.f32 %v7461_v37, %v7461_v37 }
 0x3aa   : > { %v7443_v35 = vpop.f32.mrf.mxu2  ;;  %v7408_v41 = vpop.f32.mrf.mxu0 }
 0x3ab   : > { %v7444_v38 = vadd.f32 %v7443_v35, %v7425_v34  ;;  %v7462_v40 = vpop.f32.mrf.mxu3  ;;  %v7409_v47 = vadd.f32 %v7408_v41, %v7390_v36  ;;  %v7427_v49 = vpop.f32.mrf.mxu1 }
 0x3ad   : > { %v7463_v43 = vadd.f32 %v7462_v40, %v7444_v38  ;;  %v7428_v52 = vadd.f32 %v7427_v49, %v7409_v47 }
 0x3af   : > { %v9356_v39 = vpack.c.bf16 %v7463_v43, %v7461_v37  ;;  %v7478_v44 = vadd.f32 %v7463_v43, %v7461_v37  ;;  %v7489_v46 = vmul.f32 %v7463_v43, %v7463_v43 }
 0x3b1   : > { %9357 = vst [vmem:[%s11221_s8] sm:$0xff] %v9356_v39   ;;  %v7492_v51 = vadd.f32 %v7489_v46, %v7488_v50 }
 0x3b2   : > { %v7446_v53 = vpop.f32.mrf.mxu2  ;;  %v7410_v45 = vpop.f32.mrf.mxu0 }
 0x3b3   : > { %v7447_v55 = vadd.f32 %v7446_v53, %v7428_v52  ;;  %v7465_v56 = vpop.f32.mrf.mxu3  ;;  %v7411_v58 = vadd.f32 %v7410_v45, %v7392_v54  ;;  %v7429_v62 = vpop.f32.mrf.mxu1 }
 0x3b5   : > { %v7466_v57 = vadd.f32 %v7465_v56, %v7447_v55  ;;  %v7430_v0 = vadd.f32 %v7429_v62, %v7411_v58 }
 0x3b7   : > { %v7479_v59 = vadd.f32 %v7478_v44, %v7466_v57  ;;  %v7490_v60 = vmul.f32 %v7466_v57, %v7466_v57 }
 0x3b8   : > { %v7544_v21 = vld [vmem:[%s11221_s8] sm:$0xf] (%p9504_p6)  ;;  %v7546_v22 = vld [vmem:[%s11221_s8 + $0x4] sm:$0xf] (%p9504_p6) }
 0x3b9   : > { %v7493_v63 = vadd.f32 %v7492_v51, %v7490_v60  ;;  %7545 = vst [vmem:[%s7527_s23] sm:$0xf] (%p9504_p6), %v7544_v21 }
 0x3ba   : > { %v7448_v1 = vpop.f32.mrf.mxu2  ;;  %7547 = vst [vmem:[%s7527_s23 + $0x10] sm:$0xf] (%p9504_p6), %v7546_v22 }
 0x3bb   : > { %v7449_v2 = vadd.f32 %v7448_v1, %v7430_v0  ;;  %v7467_v3 = vpop.f32.mrf.mxu3 }
 0x3bd   : > { %v7468_v4 = vadd.f32 %v7467_v3, %v7449_v2 }
 0x3bf   : > { %v9361_v5 = vpack.c.bf16 %v7468_v4, %v7466_v57  ;;  %v7480_v6 = vadd.f32 %v7479_v59, %v7468_v4  ;;  %v7491_v7 = vmul.f32 %v7468_v4, %v7468_v4 }
 0x3c1   : > { %9363 = vst [vmem:[%s11221_s8 + $0x8] sm:$0xff] %v9361_v5   ;;  %v7481_v8 = vrot.slane %v7480_v6, 4  ;;  %v7494_v9 = vadd.f32 %v7493_v63, %v7491_v7 }
 0x3c3   : > { %v7482_v10 = vadd.f32 %v7481_v8, %v7480_v6  ;;  %v7495_v11 = vrot.slane %v7494_v9, 4 }
 0x3c5   : > { %v7483_v12 = vrot.slane %v7482_v10, 2  ;;  %v7496_v61 = vadd.f32 %v7495_v11, %v7494_v9 }
 0x3c7   : > { %v7484_v13 = vadd.f32 %v7483_v12, %v7482_v10  ;;  %v7497_v14 = vrot.slane %v7496_v61, 2 }
 0x3c8   : > { %v7548_v23 = vld [vmem:[%s11221_s8 + $0x8] sm:$0xf] (%p9504_p6)  ;;  %v7550_v25 = vld [vmem:[%s11221_s8 + $0xc] sm:$0xf] (%p9504_p6) }
 0x3c9   : > { %v7485_v15 = vrot.slane %v7484_v13, 1  ;;  %v7498_v16 = vadd.f32 %v7497_v14, %v7496_v61  ;;  %7549 = vst [vmem:[%s7527_s23 + $0x20] sm:$0xf] (%p9504_p6), %v7548_v23 }
 0x3ca   : > { %7551 = vst [vmem:[%s7527_s23 + $0x30] sm:$0xf] (%p9504_p6), %v7550_v25 }
 0x3cb   : > { %v7486_v17 = vadd.f32 %v7485_v15, %v7484_v13  ;;  %v7499_v18 = vrot.slane %v7498_v16, 1  ;;  %7522 = sbr.rel (!%p9504_p6) target bundleno = 976 (0x3d0), region = 84 }
 0x3cd   : > { %7487 = vst [vmem:[%s4422_s11] sm:$0x1] %v7486_v17  ;;  %v7500_v19 = vadd.f32 %v7499_v18, %v7498_v16 }
 0x3cf   : > { %7501 = vst [vmem:[%s4429_s13] sm:$0x1] %v7500_v19 }
 0x3d0 PF: > { %s15_s19 = sadd.s32 1, %s9442_s19   ;;  %s11264_s15 = smov %s9430_s16 }
 0x3d1   : > { %p12_p12 = scmp.ge.s32.totalorder %s15_s19, 6   ;;  %s11265_s16 = smov %s9509_s25 }
 0x3d2   : > { %s11266_s17 = smov %s9438_s18  ;;  %s11267_s18 = smov %s11269_s20 }
 0x3d3   :  { %14 = sbr.rel (!%p12_p12) target bundleno = 3 (0x3), region = 187 }

</bundles_post_ra>
